<compile_context>
chip_gen: v7x
topology: tpu7x:2x2x1
jax: 0.10.0
libtpu: 0.0.40
codegen_flags: <defaults>
</compile_context>

<pallas_src>
import functools

import jax
import jax.numpy as jnp
from jax.experimental import pallas as pl
from jax.experimental.pallas import tpu as pltpu


def _round_up(x, m):
    return ((x + m - 1) // m) * m


# ---------------------------------------------------------------------------
# Kernel 1: 3x3 / stride-2 conv + bias + ReLU with in-kernel im2col.
#
# The image is pre-padded (pad=1) and reshaped OUTSIDE the kernel with a pure
# (free) reshape into stride-2 phase pairs:
#     (B, Hp, Wp, C) -> (B, Hp//2, 2, Wp//2, 2*C)
# Inside the kernel each 3x3 tap (i, j) is a static window:
#     phase-rows [i//2 : i//2 + Ho) at parity i%2,
#     phase-cols [j//2 : j//2 + Wo), lanes (j%2)*C : (j%2)*C + C.
# The contraction over Cin is unrolled VPU FMAs (lane-broadcast of the
# per-channel weight row); with Cin = 3/16 this stays far below the HBM
# roofline, which is the binding constraint for this layer stack.
# ---------------------------------------------------------------------------
def conv3x3_s2_kernel(x_ref, w_ref, b_ref, o_ref, *, cin, ho, wo):
    acc = jnp.zeros((ho, wo, w_ref.shape[1]), jnp.float32)
    for i in range(3):
        hq, hoff = i % 2, i // 2
        for j in range(3):
            wq, woff = j % 2, j // 2
            # (ho, wo, 2*cin) static shifted window of the phase image (f32)
            tap = x_ref[0, pl.ds(hoff, ho), hq, pl.ds(woff, wo), :].astype(
                jnp.float32)
            base = (i * 3 + j) * cin
            for c in range(cin):
                col = tap[:, :, wq * cin + c: wq * cin + c + 1]    # (ho, wo, 1)
                row = w_ref[pl.ds(base + c, 1), :]                 # (1, cout)
                acc = acc + col * row
    out = jnp.maximum(acc + b_ref[...], 0.0)
    o_ref[0] = out.astype(o_ref.dtype)


def conv3x3_s2_relu(x_nhwc, w_hwio, b, pad_vals=None):
    """3x3 conv, stride 2, pad 1, + bias + ReLU.  bf16 output, true Cout.

    pad_vals: optional per-channel border constant (the raw-pixel value that
    maps to zero after the affine folded into w/b); default zero padding.
    """
    B, H, W, Cin = x_nhwc.shape
    KH, KW, _, Cout = w_hwio.shape
    assert (KH, KW) == (3, 3)

    Hp, Wp = H + 2, W + 2
    Ho = (Hp - 3) // 2 + 1
    Wo = (Wp - 3) // 2 + 1
    # Pad up to even extents so the stride-2 phase reshape is exact; the extra
    # row/col (odd H/W only) is never read (max input index used is 2*Ho < Hp2).
    Hp2, Wp2 = _round_up(Hp, 2), _round_up(Wp, 2)
    if pad_vals is None:
        xp = jnp.pad(x_nhwc,
                     ((0, 0), (1, Hp2 - H - 1), (1, Wp2 - W - 1), (0, 0)))
    else:
        base = jnp.broadcast_to(
            pad_vals.reshape(1, 1, 1, Cin).astype(x_nhwc.dtype),
            (B, Hp2, Wp2, Cin))
        xp = base.at[:, 1:H + 1, 1:W + 1, :].set(x_nhwc)
    Hh, Ww = Hp2 // 2, Wp2 // 2                    # == Ho + 1, Wo + 1
    xph = xp.reshape(B, Hh, 2, Ww, 2 * Cin)        # pure reshape, no data move

    w2d = w_hwio.reshape(9 * Cin, Cout).astype(jnp.float32)
    b2d = b.reshape(1, Cout).astype(jnp.float32)

    kernel = functools.partial(conv3x3_s2_kernel, cin=Cin, ho=Ho, wo=Wo)
    # Per-sample image block is small (<1 MiB for <=128px images), so default
    # scoped VMEM limits hold on v5e/v6e/v7x even with double buffering.
    return pl.pallas_call(
        kernel,
        out_shape=jax.ShapeDtypeStruct((B, Ho, Wo, Cout), jnp.bfloat16),
        grid=(B,),
        in_specs=[
            pl.BlockSpec((1, Hh, 2, Ww, 2 * Cin), lambda bi: (bi, 0, 0, 0, 0)),
            pl.BlockSpec((9 * Cin, Cout), lambda bi: (0, 0)),
            pl.BlockSpec((1, Cout), lambda bi: (0, 0)),
        ],
        out_specs=pl.BlockSpec((1, Ho, Wo, Cout), lambda bi: (bi, 0, 0, 0)),
        compiler_params=pltpu.CompilerParams(
            dimension_semantics=("parallel",)),
    )(xph, w2d, b2d)


# ---------------------------------------------------------------------------
# Kernel 2: LPIPS per-layer comparison.
#   Takes the stacked (2N, tp, C) bf16 feature block ONCE, splits img1/img2
#   rows inside the kernel, upcasts to f32, channel-unit-normalizes
#   (x / (sqrt(sum x^2) + eps), matching reference normalize_tensor), squared
#   diff, non-negative per-channel lin weights, and accumulates the spatial
#   sum into a resident per-sample block.  Grid = (spatial-half, tile) with
#   ("parallel", "arbitrary") so v7x's two TensorCores both stream features.
# ---------------------------------------------------------------------------
def lpips_compare_kernel(f_ref, w_ref, o_ref, *, n):
    p = pl.program_id(1)

    @pl.when(p == 0)
    def _():
        o_ref[...] = jnp.zeros_like(o_ref)

    x = f_ref[...].astype(jnp.float32)            # (2N, tp, C), f32 math (v5e)
    f1, f2 = x[:n], x[n:]
    eps = 1e-10
    n1 = f1 / (jnp.sqrt(jnp.sum(f1 * f1, axis=-1, keepdims=True)) + eps)
    n2 = f2 / (jnp.sqrt(jnp.sum(f2 * f2, axis=-1, keepdims=True)) + eps)
    d = (n1 - n2) ** 2 * w_ref[...]               # (N, tp, C)
    s = jnp.sum(d, axis=-1)                       # (N, tp)
    o_ref[...] = o_ref[...] + jnp.sum(s, axis=-1, keepdims=True)


def lpips_layer_score(feat, lin_w):
    """feat: (2N, Ho, Wo, C) bf16 — img1 rows [0:N), img2 rows [N:2N)."""
    B, Ho, Wo, C = feat.shape
    n = B // 2
    P = Ho * Wo
    f = feat.reshape(B, P, C)                     # free reshape (minor dim kept)

    # Spatial tile: multiple of 8 sublanes, capped so the double-buffered
    # input block (B*tp*C*2B*2buf) stays well under 1 MiB — safe on v5e's
    # 16 MiB scoped default and v7x's 64 MiB physical VMEM.
    tp = min(256, _round_up(pl.cdiv(P, 2), 8))
    P_pad = _round_up(P, 2 * tp)
    if P_pad != P:
        # Zero rows normalize to 0 and contribute exactly 0 to the score.
        f = jnp.pad(f, ((0, 0), (0, P_pad - P), (0, 0)))
    half_tiles = P_pad // (2 * tp)

    w3 = lin_w.reshape(1, 1, C).astype(jnp.float32)
    kernel = functools.partial(lpips_compare_kernel, n=n)
    out = pl.pallas_call(
        kernel,
        out_shape=jax.ShapeDtypeStruct((2, n, 1), jnp.float32),
        grid=(2, half_tiles),
        in_specs=[
            pl.BlockSpec((B, tp, C), lambda h, p: (0, h * half_tiles + p, 0)),
            pl.BlockSpec((1, 1, C), lambda h, p: (0, 0, 0)),
        ],
        out_specs=pl.BlockSpec((1, n, 1), lambda h, p: (h, 0, 0)),
        compiler_params=pltpu.CompilerParams(
            dimension_semantics=("parallel", "arbitrary")),
    )(f, w3)
    # Combine the two spatial halves and take the spatial mean (true P).
    return jnp.sum(out, axis=0)[:, 0] * (1.0 / P)          # (N,)


# ---------------------------------------------------------------------------
# Parameter init (deterministic, synthetic "squeeze" backbone + lin layers)
# ---------------------------------------------------------------------------
def init_params():
    key = jax.random.PRNGKey(42)
    k1, k2, k3, k4 = jax.random.split(key, 4)
    return {
        "w1": jax.random.normal(k1, (3, 3, 3, 16), jnp.float32) * 0.1,
        "b1": jnp.zeros((16,), jnp.float32),
        "w2": jax.random.normal(k2, (3, 3, 16, 32), jnp.float32) * 0.1,
        "b2": jnp.zeros((32,), jnp.float32),
        # LPIPS lin weights are constrained non-negative
        "lin1": jnp.abs(jax.random.normal(k3, (16,), jnp.float32)) * 0.1,
        "lin2": jnp.abs(jax.random.normal(k4, (32,), jnp.float32)) * 0.1,
    }


# ---------------------------------------------------------------------------
# Full forward: reproduces LpipsLoss.forward semantics
#   img/255 -> LPIPS(img1, img2) -> 1 - score
# ---------------------------------------------------------------------------
def lpips_loss(img1_nchw, img2_nchw, params):
    # LPIPS ScalingLayer constants (per-channel shift / scale)
    shift = jnp.array([-0.030, -0.088, -0.188], jnp.float32)
    scale = jnp.array([0.458, 0.448, 0.450], jnp.float32)

    # NCHW -> NHWC raw images; both images share the conv stack, so stack
    # them along batch and run one pallas_call per layer.
    x1 = jnp.transpose(img1_nchw, (0, 2, 3, 1)).astype(jnp.float32)
    x2 = jnp.transpose(img2_nchw, (0, 2, 3, 1)).astype(jnp.float32)
    N = x1.shape[0]
    x = jnp.concatenate([x1, x2], axis=0)          # (2N, H, W, 3) raw pixels

    # Fold (img/255 - shift)/scale into the first conv:
    #   x_scaled = img * a + d,  a = 1/(255*scale),  d = -shift/scale
    a = 1.0 / (255.0 * scale)
    d = -shift / scale
    w1f = params["w1"] * a.reshape(1, 1, 3, 1)
    b1f = params["b1"] + jnp.sum(params["w1"] * d.reshape(1, 1, 3, 1),
                                 axis=(0, 1, 2))
    # Raw-pixel value that maps to 0 after the affine, so the conv's zero
    # padding still happens in the scaled domain (exact semantics preserved).
    pad_vals = 255.0 * shift

    # Shared feature extractor: both images in one batch, bf16 features with
    # the true channel counts (no lane-pad round-trip through HBM).
    fa = conv3x3_s2_relu(x, w1f, b1f, pad_vals=pad_vals)   # (2N, H/2, W/2, 16)
    fb = conv3x3_s2_relu(fa, params["w2"], params["b2"])   # (2N, H/4, W/4, 32)

    s_a = lpips_layer_score(fa, params["lin1"])
    s_b = lpips_layer_score(fb, params["lin2"])
    lpips_score = jnp.mean(s_a + s_b)              # sum layers, mean batch

    return 1.0 - lpips_score


if __name__ == "__main__":
    key = jax.random.PRNGKey(0)
    k1, k2 = jax.random.split(key)
    # Small 8-bit-style images, NCHW as in the PyTorch module
    img1 = jax.random.uniform(k1, (2, 3, 16, 16), jnp.float32, 0.0, 255.0)
    img2 = jax.random.uniform(k2, (2, 3, 16, 16), jnp.float32, 0.0, 255.0)

    params = init_params()
    loss = jax.jit(lpips_loss)(img1, img2, params)
    jax.block_until_ready(loss)
    assert jnp.isfinite(loss), "loss is not finite"
    print("KERNEL_OK")
</pallas_src>

<mosaic_0001>
module attributes {stable_mosaic.version = 11 : i64} {
  func.func @conv3x3_s2_kernel(%arg0: i32, %arg1: memref<1x9x2x9x6xf32, #tpu.memory_space<vmem>>, %arg2: memref<27x16xf32, #tpu.memory_space<vmem>>, %arg3: memref<1x16xf32, #tpu.memory_space<vmem>>, %arg4: memref<1x8x8x16xbf16, #tpu.memory_space<vmem>>) attributes {dimension_semantics = [#tpu.dimension_semantics<parallel>], iteration_bounds = array<i64: 4>, scalar_prefetch = 0 : i64, scratch_operands = 0 : i64, tpu.core_type = #tpu.core_type<tc>, window_params = [{transform_indices = @transform_0, window_bounds = array<i64: 1, 9, 2, 9, 6>}, {pipeline_mode = #tpu.pipeline_mode<synchronous>, transform_indices = @transform_1, window_bounds = array<i64: 27, 16>}, {pipeline_mode = #tpu.pipeline_mode<synchronous>, transform_indices = @transform_2, window_bounds = array<i64: 1, 16>}, {transform_indices = @transform_3, window_bounds = array<i64: 1, 8, 8, 16>}]} {
    %cst = arith.constant 0.000000e+00 : f32
    %0 = vector.broadcast %cst : f32 to vector<8x8x16xf32>
    %c0 = arith.constant 0 : index
    %c0_0 = arith.constant 0 : index
    %c0_1 = arith.constant 0 : index
    %c0_2 = arith.constant 0 : index
    %c0_3 = arith.constant 0 : index
    %1 = vector.load %arg1[%c0, %c0_0, %c0_1, %c0_2, %c0_3] : memref<1x9x2x9x6xf32, #tpu.memory_space<vmem>>, vector<1x8x1x8x6xf32>
    %2 = vector.shape_cast %1 : vector<1x8x1x8x6xf32> to vector<8x8x6xf32>
    %3 = vector.extract_strided_slice %2 {offsets = [0, 0, 0], sizes = [8, 8, 1], strides = [1, 1, 1]} : vector<8x8x6xf32> to vector<8x8x1xf32>
    %c0_4 = arith.constant 0 : index
    %c0_5 = arith.constant 0 : index
    %4 = vector.load %arg2[%c0_4, %c0_5] : memref<27x16xf32, #tpu.memory_space<vmem>>, vector<1x16xf32>
    %5 = vector.shape_cast %4 : vector<1x16xf32> to vector<1x1x16xf32>
    %6 = vector.broadcast %3 : vector<8x8x1xf32> to vector<8x8x16xf32>
    %7 = vector.broadcast %5 : vector<1x1x16xf32> to vector<8x8x16xf32>
    %8 = arith.mulf %6, %7 : vector<8x8x16xf32>
    %9 = arith.addf %0, %8 : vector<8x8x16xf32>
    %10 = vector.extract_strided_slice %2 {offsets = [0, 0, 1], sizes = [8, 8, 1], strides = [1, 1, 1]} : vector<8x8x6xf32> to vector<8x8x1xf32>
    %c1 = arith.constant 1 : index
    %c0_6 = arith.constant 0 : index
    %11 = vector.load %arg2[%c1, %c0_6] : memref<27x16xf32, #tpu.memory_space<vmem>>, vector<1x16xf32>
    %12 = vector.shape_cast %11 : vector<1x16xf32> to vector<1x1x16xf32>
    %13 = vector.broadcast %10 : vector<8x8x1xf32> to vector<8x8x16xf32>
    %14 = vector.broadcast %12 : vector<1x1x16xf32> to vector<8x8x16xf32>
    %15 = arith.mulf %13, %14 : vector<8x8x16xf32>
    %16 = arith.addf %9, %15 : vector<8x8x16xf32>
    %17 = vector.extract_strided_slice %2 {offsets = [0, 0, 2], sizes = [8, 8, 1], strides = [1, 1, 1]} : vector<8x8x6xf32> to vector<8x8x1xf32>
    %c2 = arith.constant 2 : index
    %c0_7 = arith.constant 0 : index
    %18 = vector.load %arg2[%c2, %c0_7] : memref<27x16xf32, #tpu.memory_space<vmem>>, vector<1x16xf32>
    %19 = vector.shape_cast %18 : vector<1x16xf32> to vector<1x1x16xf32>
    %20 = vector.broadcast %17 : vector<8x8x1xf32> to vector<8x8x16xf32>
    %21 = vector.broadcast %19 : vector<1x1x16xf32> to vector<8x8x16xf32>
    %22 = arith.mulf %20, %21 : vector<8x8x16xf32>
    %23 = arith.addf %16, %22 : vector<8x8x16xf32>
    %c0_8 = arith.constant 0 : index
    %c0_9 = arith.constant 0 : index
    %c0_10 = arith.constant 0 : index
    %c0_11 = arith.constant 0 : index
    %c0_12 = arith.constant 0 : index
    %24 = vector.load %arg1[%c0_8, %c0_9, %c0_10, %c0_11, %c0_12] : memref<1x9x2x9x6xf32, #tpu.memory_space<vmem>>, vector<1x8x1x8x6xf32>
    %25 = vector.shape_cast %24 : vector<1x8x1x8x6xf32> to vector<8x8x6xf32>
    %26 = vector.extract_strided_slice %25 {offsets = [0, 0, 3], sizes = [8, 8, 1], strides = [1, 1, 1]} : vector<8x8x6xf32> to vector<8x8x1xf32>
    %c3 = arith.constant 3 : index
    %c0_13 = arith.constant 0 : index
    %27 = vector.load %arg2[%c3, %c0_13] : memref<27x16xf32, #tpu.memory_space<vmem>>, vector<1x16xf32>
    %28 = vector.shape_cast %27 : vector<1x16xf32> to vector<1x1x16xf32>
    %29 = vector.broadcast %26 : vector<8x8x1xf32> to vector<8x8x16xf32>
    %30 = vector.broadcast %28 : vector<1x1x16xf32> to vector<8x8x16xf32>
    %31 = arith.mulf %29, %30 : vector<8x8x16xf32>
    %32 = arith.addf %23, %31 : vector<8x8x16xf32>
    %33 = vector.extract_strided_slice %25 {offsets = [0, 0, 4], sizes = [8, 8, 1], strides = [1, 1, 1]} : vector<8x8x6xf32> to vector<8x8x1xf32>
    %c4 = arith.constant 4 : index
    %c0_14 = arith.constant 0 : index
    %34 = vector.load %arg2[%c4, %c0_14] : memref<27x16xf32, #tpu.memory_space<vmem>>, vector<1x16xf32>
    %35 = vector.shape_cast %34 : vector<1x16xf32> to vector<1x1x16xf32>
    %36 = vector.broadcast %33 : vector<8x8x1xf32> to vector<8x8x16xf32>
    %37 = vector.broadcast %35 : vector<1x1x16xf32> to vector<8x8x16xf32>
    %38 = arith.mulf %36, %37 : vector<8x8x16xf32>
    %39 = arith.addf %32, %38 : vector<8x8x16xf32>
    %40 = vector.extract_strided_slice %25 {offsets = [0, 0, 5], sizes = [8, 8, 1], strides = [1, 1, 1]} : vector<8x8x6xf32> to vector<8x8x1xf32>
    %c5 = arith.constant 5 : index
    %c0_15 = arith.constant 0 : index
    %41 = vector.load %arg2[%c5, %c0_15] : memref<27x16xf32, #tpu.memory_space<vmem>>, vector<1x16xf32>
    %42 = vector.shape_cast %41 : vector<1x16xf32> to vector<1x1x16xf32>
    %43 = vector.broadcast %40 : vector<8x8x1xf32> to vector<8x8x16xf32>
    %44 = vector.broadcast %42 : vector<1x1x16xf32> to vector<8x8x16xf32>
    %45 = arith.mulf %43, %44 : vector<8x8x16xf32>
    %46 = arith.addf %39, %45 : vector<8x8x16xf32>
    %c0_16 = arith.constant 0 : index
    %c0_17 = arith.constant 0 : index
    %c0_18 = arith.constant 0 : index
    %c1_19 = arith.constant 1 : index
    %c0_20 = arith.constant 0 : index
    %47 = vector.load %arg1[%c0_16, %c0_17, %c0_18, %c1_19, %c0_20] : memref<1x9x2x9x6xf32, #tpu.memory_space<vmem>>, vector<1x8x1x8x6xf32>
    %48 = vector.shape_cast %47 : vector<1x8x1x8x6xf32> to vector<8x8x6xf32>
    %49 = vector.extract_strided_slice %48 {offsets = [0, 0, 0], sizes = [8, 8, 1], strides = [1, 1, 1]} : vector<8x8x6xf32> to vector<8x8x1xf32>
    %c6 = arith.constant 6 : index
    %c0_21 = arith.constant 0 : index
    %50 = vector.load %arg2[%c6, %c0_21] : memref<27x16xf32, #tpu.memory_space<vmem>>, vector<1x16xf32>
    %51 = vector.shape_cast %50 : vector<1x16xf32> to vector<1x1x16xf32>
    %52 = vector.broadcast %49 : vector<8x8x1xf32> to vector<8x8x16xf32>
    %53 = vector.broadcast %51 : vector<1x1x16xf32> to vector<8x8x16xf32>
    %54 = arith.mulf %52, %53 : vector<8x8x16xf32>
    %55 = arith.addf %46, %54 : vector<8x8x16xf32>
    %56 = vector.extract_strided_slice %48 {offsets = [0, 0, 1], sizes = [8, 8, 1], strides = [1, 1, 1]} : vector<8x8x6xf32> to vector<8x8x1xf32>
    %c7 = arith.constant 7 : index
    %c0_22 = arith.constant 0 : index
    %57 = vector.load %arg2[%c7, %c0_22] : memref<27x16xf32, #tpu.memory_space<vmem>>, vector<1x16xf32>
    %58 = vector.shape_cast %57 : vector<1x16xf32> to vector<1x1x16xf32>
    %59 = vector.broadcast %56 : vector<8x8x1xf32> to vector<8x8x16xf32>
    %60 = vector.broadcast %58 : vector<1x1x16xf32> to vector<8x8x16xf32>
    %61 = arith.mulf %59, %60 : vector<8x8x16xf32>
    %62 = arith.addf %55, %61 : vector<8x8x16xf32>
    %63 = vector.extract_strided_slice %48 {offsets = [0, 0, 2], sizes = [8, 8, 1], strides = [1, 1, 1]} : vector<8x8x6xf32> to vector<8x8x1xf32>
    %c8 = arith.constant 8 : index
    %c0_23 = arith.constant 0 : index
    %64 = vector.load %arg2[%c8, %c0_23] : memref<27x16xf32, #tpu.memory_space<vmem>>, vector<1x16xf32>
    %65 = vector.shape_cast %64 : vector<1x16xf32> to vector<1x1x16xf32>
    %66 = vector.broadcast %63 : vector<8x8x1xf32> to vector<8x8x16xf32>
    %67 = vector.broadcast %65 : vector<1x1x16xf32> to vector<8x8x16xf32>
    %68 = arith.mulf %66, %67 : vector<8x8x16xf32>
    %69 = arith.addf %62, %68 : vector<8x8x16xf32>
    %c0_24 = arith.constant 0 : index
    %c0_25 = arith.constant 0 : index
    %c1_26 = arith.constant 1 : index
    %c0_27 = arith.constant 0 : index
    %c0_28 = arith.constant 0 : index
    %70 = vector.load %arg1[%c0_24, %c0_25, %c1_26, %c0_27, %c0_28] : memref<1x9x2x9x6xf32, #tpu.memory_space<vmem>>, vector<1x8x1x8x6xf32>
    %71 = vector.shape_cast %70 : vector<1x8x1x8x6xf32> to vector<8x8x6xf32>
    %72 = vector.extract_strided_slice %71 {offsets = [0, 0, 0], sizes = [8, 8, 1], strides = [1, 1, 1]} : vector<8x8x6xf32> to vector<8x8x1xf32>
    %c9 = arith.constant 9 : index
    %c0_29 = arith.constant 0 : index
    %73 = vector.load %arg2[%c9, %c0_29] : memref<27x16xf32, #tpu.memory_space<vmem>>, vector<1x16xf32>
    %74 = vector.shape_cast %73 : vector<1x16xf32> to vector<1x1x16xf32>
    %75 = vector.broadcast %72 : vector<8x8x1xf32> to vector<8x8x16xf32>
    %76 = vector.broadcast %74 : vector<1x1x16xf32> to vector<8x8x16xf32>
    %77 = arith.mulf %75, %76 : vector<8x8x16xf32>
    %78 = arith.addf %69, %77 : vector<8x8x16xf32>
    %79 = vector.extract_strided_slice %71 {offsets = [0, 0, 1], sizes = [8, 8, 1], strides = [1, 1, 1]} : vector<8x8x6xf32> to vector<8x8x1xf32>
    %c10 = arith.constant 10 : index
    %c0_30 = arith.constant 0 : index
    %80 = vector.load %arg2[%c10, %c0_30] : memref<27x16xf32, #tpu.memory_space<vmem>>, vector<1x16xf32>
    %81 = vector.shape_cast %80 : vector<1x16xf32> to vector<1x1x16xf32>
    %82 = vector.broadcast %79 : vector<8x8x1xf32> to vector<8x8x16xf32>
    %83 = vector.broadcast %81 : vector<1x1x16xf32> to vector<8x8x16xf32>
    %84 = arith.mulf %82, %83 : vector<8x8x16xf32>
    %85 = arith.addf %78, %84 : vector<8x8x16xf32>
    %86 = vector.extract_strided_slice %71 {offsets = [0, 0, 2], sizes = [8, 8, 1], strides = [1, 1, 1]} : vector<8x8x6xf32> to vector<8x8x1xf32>
    %c11 = arith.constant 11 : index
    %c0_31 = arith.constant 0 : index
    %87 = vector.load %arg2[%c11, %c0_31] : memref<27x16xf32, #tpu.memory_space<vmem>>, vector<1x16xf32>
    %88 = vector.shape_cast %87 : vector<1x16xf32> to vector<1x1x16xf32>
    %89 = vector.broadcast %86 : vector<8x8x1xf32> to vector<8x8x16xf32>
    %90 = vector.broadcast %88 : vector<1x1x16xf32> to vector<8x8x16xf32>
    %91 = arith.mulf %89, %90 : vector<8x8x16xf32>
    %92 = arith.addf %85, %91 : vector<8x8x16xf32>
    %c0_32 = arith.constant 0 : index
    %c0_33 = arith.constant 0 : index
    %c1_34 = arith.constant 1 : index
    %c0_35 = arith.constant 0 : index
    %c0_36 = arith.constant 0 : index
    %93 = vector.load %arg1[%c0_32, %c0_33, %c1_34, %c0_35, %c0_36] : memref<1x9x2x9x6xf32, #tpu.memory_space<vmem>>, vector<1x8x1x8x6xf32>
    %94 = vector.shape_cast %93 : vector<1x8x1x8x6xf32> to vector<8x8x6xf32>
    %95 = vector.extract_strided_slice %94 {offsets = [0, 0, 3], sizes = [8, 8, 1], strides = [1, 1, 1]} : vector<8x8x6xf32> to vector<8x8x1xf32>
    %c12 = arith.constant 12 : index
    %c0_37 = arith.constant 0 : index
    %96 = vector.load %arg2[%c12, %c0_37] : memref<27x16xf32, #tpu.memory_space<vmem>>, vector<1x16xf32>
    %97 = vector.shape_cast %96 : vector<1x16xf32> to vector<1x1x16xf32>
    %98 = vector.broadcast %95 : vector<8x8x1xf32> to vector<8x8x16xf32>
    %99 = vector.broadcast %97 : vector<1x1x16xf32> to vector<8x8x16xf32>
    %100 = arith.mulf %98, %99 : vector<8x8x16xf32>
    %101 = arith.addf %92, %100 : vector<8x8x16xf32>
    %102 = vector.extract_strided_slice %94 {offsets = [0, 0, 4], sizes = [8, 8, 1], strides = [1, 1, 1]} : vector<8x8x6xf32> to vector<8x8x1xf32>
    %c13 = arith.constant 13 : index
    %c0_38 = arith.constant 0 : index
    %103 = vector.load %arg2[%c13, %c0_38] : memref<27x16xf32, #tpu.memory_space<vmem>>, vector<1x16xf32>
    %104 = vector.shape_cast %103 : vector<1x16xf32> to vector<1x1x16xf32>
    %105 = vector.broadcast %102 : vector<8x8x1xf32> to vector<8x8x16xf32>
    %106 = vector.broadcast %104 : vector<1x1x16xf32> to vector<8x8x16xf32>
    %107 = arith.mulf %105, %106 : vector<8x8x16xf32>
    %108 = arith.addf %101, %107 : vector<8x8x16xf32>
    %109 = vector.extract_strided_slice %94 {offsets = [0, 0, 5], sizes = [8, 8, 1], strides = [1, 1, 1]} : vector<8x8x6xf32> to vector<8x8x1xf32>
    %c14 = arith.constant 14 : index
    %c0_39 = arith.constant 0 : index
    %110 = vector.load %arg2[%c14, %c0_39] : memref<27x16xf32, #tpu.memory_space<vmem>>, vector<1x16xf32>
    %111 = vector.shape_cast %110 : vector<1x16xf32> to vector<1x1x16xf32>
    %112 = vector.broadcast %109 : vector<8x8x1xf32> to vector<8x8x16xf32>
    %113 = vector.broadcast %111 : vector<1x1x16xf32> to vector<8x8x16xf32>
    %114 = arith.mulf %112, %113 : vector<8x8x16xf32>
    %115 = arith.addf %108, %114 : vector<8x8x16xf32>
    %c0_40 = arith.constant 0 : index
    %c0_41 = arith.constant 0 : index
    %c1_42 = arith.constant 1 : index
    %c1_43 = arith.constant 1 : index
    %c0_44 = arith.constant 0 : index
    %116 = vector.load %arg1[%c0_40, %c0_41, %c1_42, %c1_43, %c0_44] : memref<1x9x2x9x6xf32, #tpu.memory_space<vmem>>, vector<1x8x1x8x6xf32>
    %117 = vector.shape_cast %116 : vector<1x8x1x8x6xf32> to vector<8x8x6xf32>
    %118 = vector.extract_strided_slice %117 {offsets = [0, 0, 0], sizes = [8, 8, 1], strides = [1, 1, 1]} : vector<8x8x6xf32> to vector<8x8x1xf32>
    %c15 = arith.constant 15 : index
    %c0_45 = arith.constant 0 : index
    %119 = vector.load %arg2[%c15, %c0_45] : memref<27x16xf32, #tpu.memory_space<vmem>>, vector<1x16xf32>
    %120 = vector.shape_cast %119 : vector<1x16xf32> to vector<1x1x16xf32>
    %121 = vector.broadcast %118 : vector<8x8x1xf32> to vector<8x8x16xf32>
    %122 = vector.broadcast %120 : vector<1x1x16xf32> to vector<8x8x16xf32>
    %123 = arith.mulf %121, %122 : vector<8x8x16xf32>
    %124 = arith.addf %115, %123 : vector<8x8x16xf32>
    %125 = vector.extract_strided_slice %117 {offsets = [0, 0, 1], sizes = [8, 8, 1], strides = [1, 1, 1]} : vector<8x8x6xf32> to vector<8x8x1xf32>
    %c16 = arith.constant 16 : index
    %c0_46 = arith.constant 0 : index
    %126 = vector.load %arg2[%c16, %c0_46] : memref<27x16xf32, #tpu.memory_space<vmem>>, vector<1x16xf32>
    %127 = vector.shape_cast %126 : vector<1x16xf32> to vector<1x1x16xf32>
    %128 = vector.broadcast %125 : vector<8x8x1xf32> to vector<8x8x16xf32>
    %129 = vector.broadcast %127 : vector<1x1x16xf32> to vector<8x8x16xf32>
    %130 = arith.mulf %128, %129 : vector<8x8x16xf32>
    %131 = arith.addf %124, %130 : vector<8x8x16xf32>
    %132 = vector.extract_strided_slice %117 {offsets = [0, 0, 2], sizes = [8, 8, 1], strides = [1, 1, 1]} : vector<8x8x6xf32> to vector<8x8x1xf32>
    %c17 = arith.constant 17 : index
    %c0_47 = arith.constant 0 : index
    %133 = vector.load %arg2[%c17, %c0_47] : memref<27x16xf32, #tpu.memory_space<vmem>>, vector<1x16xf32>
    %134 = vector.shape_cast %133 : vector<1x16xf32> to vector<1x1x16xf32>
    %135 = vector.broadcast %132 : vector<8x8x1xf32> to vector<8x8x16xf32>
    %136 = vector.broadcast %134 : vector<1x1x16xf32> to vector<8x8x16xf32>
    %137 = arith.mulf %135, %136 : vector<8x8x16xf32>
    %138 = arith.addf %131, %137 : vector<8x8x16xf32>
    %c0_48 = arith.constant 0 : index
    %c1_49 = arith.constant 1 : index
    %c0_50 = arith.constant 0 : index
    %c0_51 = arith.constant 0 : index
    %c0_52 = arith.constant 0 : index
    %139 = vector.load %arg1[%c0_48, %c1_49, %c0_50, %c0_51, %c0_52] : memref<1x9x2x9x6xf32, #tpu.memory_space<vmem>>, vector<1x8x1x8x6xf32>
    %140 = vector.shape_cast %139 : vector<1x8x1x8x6xf32> to vector<8x8x6xf32>
    %141 = vector.extract_strided_slice %140 {offsets = [0, 0, 0], sizes = [8, 8, 1], strides = [1, 1, 1]} : vector<8x8x6xf32> to vector<8x8x1xf32>
    %c18 = arith.constant 18 : index
    %c0_53 = arith.constant 0 : index
    %142 = vector.load %arg2[%c18, %c0_53] : memref<27x16xf32, #tpu.memory_space<vmem>>, vector<1x16xf32>
    %143 = vector.shape_cast %142 : vector<1x16xf32> to vector<1x1x16xf32>
    %144 = vector.broadcast %141 : vector<8x8x1xf32> to vector<8x8x16xf32>
    %145 = vector.broadcast %143 : vector<1x1x16xf32> to vector<8x8x16xf32>
    %146 = arith.mulf %144, %145 : vector<8x8x16xf32>
    %147 = arith.addf %138, %146 : vector<8x8x16xf32>
    %148 = vector.extract_strided_slice %140 {offsets = [0, 0, 1], sizes = [8, 8, 1], strides = [1, 1, 1]} : vector<8x8x6xf32> to vector<8x8x1xf32>
    %c19 = arith.constant 19 : index
    %c0_54 = arith.constant 0 : index
    %149 = vector.load %arg2[%c19, %c0_54] : memref<27x16xf32, #tpu.memory_space<vmem>>, vector<1x16xf32>
    %150 = vector.shape_cast %149 : vector<1x16xf32> to vector<1x1x16xf32>
    %151 = vector.broadcast %148 : vector<8x8x1xf32> to vector<8x8x16xf32>
    %152 = vector.broadcast %150 : vector<1x1x16xf32> to vector<8x8x16xf32>
    %153 = arith.mulf %151, %152 : vector<8x8x16xf32>
    %154 = arith.addf %147, %153 : vector<8x8x16xf32>
    %155 = vector.extract_strided_slice %140 {offsets = [0, 0, 2], sizes = [8, 8, 1], strides = [1, 1, 1]} : vector<8x8x6xf32> to vector<8x8x1xf32>
    %c20 = arith.constant 20 : index
    %c0_55 = arith.constant 0 : index
    %156 = vector.load %arg2[%c20, %c0_55] : memref<27x16xf32, #tpu.memory_space<vmem>>, vector<1x16xf32>
    %157 = vector.shape_cast %156 : vector<1x16xf32> to vector<1x1x16xf32>
    %158 = vector.broadcast %155 : vector<8x8x1xf32> to vector<8x8x16xf32>
    %159 = vector.broadcast %157 : vector<1x1x16xf32> to vector<8x8x16xf32>
    %160 = arith.mulf %158, %159 : vector<8x8x16xf32>
    %161 = arith.addf %154, %160 : vector<8x8x16xf32>
    %c0_56 = arith.constant 0 : index
    %c1_57 = arith.constant 1 : index
    %c0_58 = arith.constant 0 : index
    %c0_59 = arith.constant 0 : index
    %c0_60 = arith.constant 0 : index
    %162 = vector.load %arg1[%c0_56, %c1_57, %c0_58, %c0_59, %c0_60] : memref<1x9x2x9x6xf32, #tpu.memory_space<vmem>>, vector<1x8x1x8x6xf32>
    %163 = vector.shape_cast %162 : vector<1x8x1x8x6xf32> to vector<8x8x6xf32>
    %164 = vector.extract_strided_slice %163 {offsets = [0, 0, 3], sizes = [8, 8, 1], strides = [1, 1, 1]} : vector<8x8x6xf32> to vector<8x8x1xf32>
    %c21 = arith.constant 21 : index
    %c0_61 = arith.constant 0 : index
    %165 = vector.load %arg2[%c21, %c0_61] : memref<27x16xf32, #tpu.memory_space<vmem>>, vector<1x16xf32>
    %166 = vector.shape_cast %165 : vector<1x16xf32> to vector<1x1x16xf32>
    %167 = vector.broadcast %164 : vector<8x8x1xf32> to vector<8x8x16xf32>
    %168 = vector.broadcast %166 : vector<1x1x16xf32> to vector<8x8x16xf32>
    %169 = arith.mulf %167, %168 : vector<8x8x16xf32>
    %170 = arith.addf %161, %169 : vector<8x8x16xf32>
    %171 = vector.extract_strided_slice %163 {offsets = [0, 0, 4], sizes = [8, 8, 1], strides = [1, 1, 1]} : vector<8x8x6xf32> to vector<8x8x1xf32>
    %c22 = arith.constant 22 : index
    %c0_62 = arith.constant 0 : index
    %172 = vector.load %arg2[%c22, %c0_62] : memref<27x16xf32, #tpu.memory_space<vmem>>, vector<1x16xf32>
    %173 = vector.shape_cast %172 : vector<1x16xf32> to vector<1x1x16xf32>
    %174 = vector.broadcast %171 : vector<8x8x1xf32> to vector<8x8x16xf32>
    %175 = vector.broadcast %173 : vector<1x1x16xf32> to vector<8x8x16xf32>
    %176 = arith.mulf %174, %175 : vector<8x8x16xf32>
    %177 = arith.addf %170, %176 : vector<8x8x16xf32>
    %178 = vector.extract_strided_slice %163 {offsets = [0, 0, 5], sizes = [8, 8, 1], strides = [1, 1, 1]} : vector<8x8x6xf32> to vector<8x8x1xf32>
    %c23 = arith.constant 23 : index
    %c0_63 = arith.constant 0 : index
    %179 = vector.load %arg2[%c23, %c0_63] : memref<27x16xf32, #tpu.memory_space<vmem>>, vector<1x16xf32>
    %180 = vector.shape_cast %179 : vector<1x16xf32> to vector<1x1x16xf32>
    %181 = vector.broadcast %178 : vector<8x8x1xf32> to vector<8x8x16xf32>
    %182 = vector.broadcast %180 : vector<1x1x16xf32> to vector<8x8x16xf32>
    %183 = arith.mulf %181, %182 : vector<8x8x16xf32>
    %184 = arith.addf %177, %183 : vector<8x8x16xf32>
    %c0_64 = arith.constant 0 : index
    %c1_65 = arith.constant 1 : index
    %c0_66 = arith.constant 0 : index
    %c1_67 = arith.constant 1 : index
    %c0_68 = arith.constant 0 : index
    %185 = vector.load %arg1[%c0_64, %c1_65, %c0_66, %c1_67, %c0_68] : memref<1x9x2x9x6xf32, #tpu.memory_space<vmem>>, vector<1x8x1x8x6xf32>
    %186 = vector.shape_cast %185 : vector<1x8x1x8x6xf32> to vector<8x8x6xf32>
    %187 = vector.extract_strided_slice %186 {offsets = [0, 0, 0], sizes = [8, 8, 1], strides = [1, 1, 1]} : vector<8x8x6xf32> to vector<8x8x1xf32>
    %c24 = arith.constant 24 : index
    %c0_69 = arith.constant 0 : index
    %188 = vector.load %arg2[%c24, %c0_69] : memref<27x16xf32, #tpu.memory_space<vmem>>, vector<1x16xf32>
    %189 = vector.shape_cast %188 : vector<1x16xf32> to vector<1x1x16xf32>
    %190 = vector.broadcast %187 : vector<8x8x1xf32> to vector<8x8x16xf32>
    %191 = vector.broadcast %189 : vector<1x1x16xf32> to vector<8x8x16xf32>
    %192 = arith.mulf %190, %191 : vector<8x8x16xf32>
    %193 = arith.addf %184, %192 : vector<8x8x16xf32>
    %194 = vector.extract_strided_slice %186 {offsets = [0, 0, 1], sizes = [8, 8, 1], strides = [1, 1, 1]} : vector<8x8x6xf32> to vector<8x8x1xf32>
    %c25 = arith.constant 25 : index
    %c0_70 = arith.constant 0 : index
    %195 = vector.load %arg2[%c25, %c0_70] : memref<27x16xf32, #tpu.memory_space<vmem>>, vector<1x16xf32>
    %196 = vector.shape_cast %195 : vector<1x16xf32> to vector<1x1x16xf32>
    %197 = vector.broadcast %194 : vector<8x8x1xf32> to vector<8x8x16xf32>
    %198 = vector.broadcast %196 : vector<1x1x16xf32> to vector<8x8x16xf32>
    %199 = arith.mulf %197, %198 : vector<8x8x16xf32>
    %200 = arith.addf %193, %199 : vector<8x8x16xf32>
    %201 = vector.extract_strided_slice %186 {offsets = [0, 0, 2], sizes = [8, 8, 1], strides = [1, 1, 1]} : vector<8x8x6xf32> to vector<8x8x1xf32>
    %c26 = arith.constant 26 : index
    %c0_71 = arith.constant 0 : index
    %202 = vector.load %arg2[%c26, %c0_71] : memref<27x16xf32, #tpu.memory_space<vmem>>, vector<1x16xf32>
    %203 = vector.shape_cast %202 : vector<1x16xf32> to vector<1x1x16xf32>
    %204 = vector.broadcast %201 : vector<8x8x1xf32> to vector<8x8x16xf32>
    %205 = vector.broadcast %203 : vector<1x1x16xf32> to vector<8x8x16xf32>
    %206 = arith.mulf %204, %205 : vector<8x8x16xf32>
    %207 = arith.addf %200, %206 : vector<8x8x16xf32>
    %c0_72 = arith.constant 0 : index
    %c0_73 = arith.constant 0 : index
    %208 = vector.load %arg3[%c0_72, %c0_73] : memref<1x16xf32, #tpu.memory_space<vmem>>, vector<1x16xf32>
    %209 = vector.shape_cast %208 : vector<1x16xf32> to vector<1x1x16xf32>
    %210 = vector.broadcast %209 : vector<1x1x16xf32> to vector<8x8x16xf32>
    %211 = arith.addf %207, %210 : vector<8x8x16xf32>
    %cst_74 = arith.constant 0.000000e+00 : f32
    %212 = vector.broadcast %cst_74 : f32 to vector<8x8x16xf32>
    %213 = arith.maximumf %211, %212 : vector<8x8x16xf32>
    %214 = arith.truncf %213 : vector<8x8x16xf32> to vector<8x8x16xbf16>
    %c0_75 = arith.constant 0 : index
    %c0_76 = arith.constant 0 : index
    %c0_77 = arith.constant 0 : index
    %c0_78 = arith.constant 0 : index
    %215 = vector.load %arg4[%c0_75, %c0_76, %c0_77, %c0_78] : memref<1x8x8x16xbf16, #tpu.memory_space<vmem>>, vector<1x8x8x16xbf16>
    %216 = vector.shape_cast %215 : vector<1x8x8x16xbf16> to vector<8x8x16xbf16>
    %217 = vector.shape_cast %214 : vector<8x8x16xbf16> to vector<1x8x8x16xbf16>
    tpu.vector_store %arg4[%c0_75, %c0_76, %c0_77, %c0_78], %217 {strides = array<i32>} : memref<1x8x8x16xbf16, #tpu.memory_space<vmem>>, vector<1x8x8x16xbf16>,
    return
  }
  func.func @transform_0(%arg0: i32) -> (i32, i32, i32, i32, i32) {
    %c0_i32 = arith.constant 0 : i32
    %c0_i32_0 = arith.constant 0 : i32
    %c0_i32_1 = arith.constant 0 : i32
    %c0_i32_2 = arith.constant 0 : i32
    %c0_i32_3 = arith.constant 0 : i32
    return %arg0, %c0_i32, %c0_i32_0, %c0_i32_1, %c0_i32_2 : i32, i32, i32, i32, i32
  }
  func.func @transform_1(%arg0: i32) -> (i32, i32) {
    %c0_i32 = arith.constant 0 : i32
    %c0_i32_0 = arith.constant 0 : i32
    %c0_i32_1 = arith.constant 0 : i32
    return %c0_i32, %c0_i32_0 : i32, i32
  }
  func.func @transform_2(%arg0: i32) -> (i32, i32) {
    %c0_i32 = arith.constant 0 : i32
    %c0_i32_0 = arith.constant 0 : i32
    %c0_i32_1 = arith.constant 0 : i32
    return %c0_i32, %c0_i32_0 : i32, i32
  }
  func.func @transform_3(%arg0: i32) -> (i32, i32, i32, i32) {
    %c0_i32 = arith.constant 0 : i32
    %c0_i32_0 = arith.constant 0 : i32
    %c0_i32_1 = arith.constant 0 : i32
    %c0_i32_2 = arith.constant 0 : i32
    return %arg0, %c0_i32, %c0_i32_0, %c0_i32_1 : i32, i32, i32, i32
  }
}

module attributes {stable_mosaic.version = 11 : i64} {
  func.func @conv3x3_s2_kernel(%arg0: i32, %arg1: memref<1x5x2x5x32xbf16, #tpu.memory_space<vmem>>, %arg2: memref<144x32xf32, #tpu.memory_space<vmem>>, %arg3: memref<1x32xf32, #tpu.memory_space<vmem>>, %arg4: memref<1x4x4x32xbf16, #tpu.memory_space<vmem>>) attributes {dimension_semantics = [#tpu.dimension_semantics<parallel>], iteration_bounds = array<i64: 4>, scalar_prefetch = 0 : i64, scratch_operands = 0 : i64, tpu.core_type = #tpu.core_type<tc>, window_params = [{transform_indices = @transform_0, window_bounds = array<i64: 1, 5, 2, 5, 32>}, {pipeline_mode = #tpu.pipeline_mode<synchronous>, transform_indices = @transform_1, window_bounds = array<i64: 144, 32>}, {pipeline_mode = #tpu.pipeline_mode<synchronous>, transform_indices = @transform_2, window_bounds = array<i64: 1, 32>}, {transform_indices = @transform_3, window_bounds = array<i64: 1, 4, 4, 32>}]} {
    %cst = arith.constant 0.000000e+00 : f32
    %0 = vector.broadcast %cst : f32 to vector<4x4x32xf32>
    %c0 = arith.constant 0 : index
    %c0_0 = arith.constant 0 : index
    %c0_1 = arith.constant 0 : index
    %c0_2 = arith.constant 0 : index
    %c0_3 = arith.constant 0 : index
    %1 = vector.load %arg1[%c0, %c0_0, %c0_1, %c0_2, %c0_3] : memref<1x5x2x5x32xbf16, #tpu.memory_space<vmem>>, vector<1x4x1x4x32xbf16>
    %2 = vector.shape_cast %1 : vector<1x4x1x4x32xbf16> to vector<4x4x32xbf16>
    %3 = arith.extf %2 : vector<4x4x32xbf16> to vector<4x4x32xf32>
    %4 = vector.extract_strided_slice %3 {offsets = [0, 0, 0], sizes = [4, 4, 1], strides = [1, 1, 1]} : vector<4x4x32xf32> to vector<4x4x1xf32>
    %c0_4 = arith.constant 0 : index
    %c0_5 = arith.constant 0 : index
    %5 = vector.load %arg2[%c0_4, %c0_5] : memref<144x32xf32, #tpu.memory_space<vmem>>, vector<1x32xf32>
    %6 = vector.shape_cast %5 : vector<1x32xf32> to vector<1x1x32xf32>
    %7 = vector.broadcast %4 : vector<4x4x1xf32> to vector<4x4x32xf32>
    %8 = vector.broadcast %6 : vector<1x1x32xf32> to vector<4x4x32xf32>
    %9 = arith.mulf %7, %8 : vector<4x4x32xf32>
    %10 = arith.addf %0, %9 : vector<4x4x32xf32>
    %11 = vector.extract_strided_slice %3 {offsets = [0, 0, 1], sizes = [4, 4, 1], strides = [1, 1, 1]} : vector<4x4x32xf32> to vector<4x4x1xf32>
    %c1 = arith.constant 1 : index
    %c0_6 = arith.constant 0 : index
    %12 = vector.load %arg2[%c1, %c0_6] : memref<144x32xf32, #tpu.memory_space<vmem>>, vector<1x32xf32>
    %13 = vector.shape_cast %12 : vector<1x32xf32> to vector<1x1x32xf32>
    %14 = vector.broadcast %11 : vector<4x4x1xf32> to vector<4x4x32xf32>
    %15 = vector.broadcast %13 : vector<1x1x32xf32> to vector<4x4x32xf32>
    %16 = arith.mulf %14, %15 : vector<4x4x32xf32>
    %17 = arith.addf %10, %16 : vector<4x4x32xf32>
    %18 = vector.extract_strided_slice %3 {offsets = [0, 0, 2], sizes = [4, 4, 1], strides = [1, 1, 1]} : vector<4x4x32xf32> to vector<4x4x1xf32>
    %c2 = arith.constant 2 : index
    %c0_7 = arith.constant 0 : index
    %19 = vector.load %arg2[%c2, %c0_7] : memref<144x32xf32, #tpu.memory_space<vmem>>, vector<1x32xf32>
    %20 = vector.shape_cast %19 : vector<1x32xf32> to vector<1x1x32xf32>
    %21 = vector.broadcast %18 : vector<4x4x1xf32> to vector<4x4x32xf32>
    %22 = vector.broadcast %20 : vector<1x1x32xf32> to vector<4x4x32xf32>
    %23 = arith.mulf %21, %22 : vector<4x4x32xf32>
    %24 = arith.addf %17, %23 : vector<4x4x32xf32>
    %25 = vector.extract_strided_slice %3 {offsets = [0, 0, 3], sizes = [4, 4, 1], strides = [1, 1, 1]} : vector<4x4x32xf32> to vector<4x4x1xf32>
    %c3 = arith.constant 3 : index
    %c0_8 = arith.constant 0 : index
    %26 = vector.load %arg2[%c3, %c0_8] : memref<144x32xf32, #tpu.memory_space<vmem>>, vector<1x32xf32>
    %27 = vector.shape_cast %26 : vector<1x32xf32> to vector<1x1x32xf32>
    %28 = vector.broadcast %25 : vector<4x4x1xf32> to vector<4x4x32xf32>
    %29 = vector.broadcast %27 : vector<1x1x32xf32> to vector<4x4x32xf32>
    %30 = arith.mulf %28, %29 : vector<4x4x32xf32>
    %31 = arith.addf %24, %30 : vector<4x4x32xf32>
    %32 = vector.extract_strided_slice %3 {offsets = [0, 0, 4], sizes = [4, 4, 1], strides = [1, 1, 1]} : vector<4x4x32xf32> to vector<4x4x1xf32>
    %c4 = arith.constant 4 : index
    %c0_9 = arith.constant 0 : index
    %33 = vector.load %arg2[%c4, %c0_9] : memref<144x32xf32, #tpu.memory_space<vmem>>, vector<1x32xf32>
    %34 = vector.shape_cast %33 : vector<1x32xf32> to vector<1x1x32xf32>
    %35 = vector.broadcast %32 : vector<4x4x1xf32> to vector<4x4x32xf32>
    %36 = vector.broadcast %34 : vector<1x1x32xf32> to vector<4x4x32xf32>
    %37 = arith.mulf %35, %36 : vector<4x4x32xf32>
    %38 = arith.addf %31, %37 : vector<4x4x32xf32>
    %39 = vector.extract_strided_slice %3 {offsets = [0, 0, 5], sizes = [4, 4, 1], strides = [1, 1, 1]} : vector<4x4x32xf32> to vector<4x4x1xf32>
    %c5 = arith.constant 5 : index
    %c0_10 = arith.constant 0 : index
    %40 = vector.load %arg2[%c5, %c0_10] : memref<144x32xf32, #tpu.memory_space<vmem>>, vector<1x32xf32>
    %41 = vector.shape_cast %40 : vector<1x32xf32> to vector<1x1x32xf32>
    %42 = vector.broadcast %39 : vector<4x4x1xf32> to vector<4x4x32xf32>
    %43 = vector.broadcast %41 : vector<1x1x32xf32> to vector<4x4x32xf32>
    %44 = arith.mulf %42, %43 : vector<4x4x32xf32>
    %45 = arith.addf %38, %44 : vector<4x4x32xf32>
    %46 = vector.extract_strided_slice %3 {offsets = [0, 0, 6], sizes = [4, 4, 1], strides = [1, 1, 1]} : vector<4x4x32xf32> to vector<4x4x1xf32>
    %c6 = arith.constant 6 : index
    %c0_11 = arith.constant 0 : index
    %47 = vector.load %arg2[%c6, %c0_11] : memref<144x32xf32, #tpu.memory_space<vmem>>, vector<1x32xf32>
    %48 = vector.shape_cast %47 : vector<1x32xf32> to vector<1x1x32xf32>
    %49 = vector.broadcast %46 : vector<4x4x1xf32> to vector<4x4x32xf32>
    %50 = vector.broadcast %48 : vector<1x1x32xf32> to vector<4x4x32xf32>
    %51 = arith.mulf %49, %50 : vector<4x4x32xf32>
    %52 = arith.addf %45, %51 : vector<4x4x32xf32>
    %53 = vector.extract_strided_slice %3 {offsets = [0, 0, 7], sizes = [4, 4, 1], strides = [1, 1, 1]} : vector<4x4x32xf32> to vector<4x4x1xf32>
    %c7 = arith.constant 7 : index
    %c0_12 = arith.constant 0 : index
    %54 = vector.load %arg2[%c7, %c0_12] : memref<144x32xf32, #tpu.memory_space<vmem>>, vector<1x32xf32>
    %55 = vector.shape_cast %54 : vector<1x32xf32> to vector<1x1x32xf32>
    %56 = vector.broadcast %53 : vector<4x4x1xf32> to vector<4x4x32xf32>
    %57 = vector.broadcast %55 : vector<1x1x32xf32> to vector<4x4x32xf32>
    %58 = arith.mulf %56, %57 : vector<4x4x32xf32>
    %59 = arith.addf %52, %58 : vector<4x4x32xf32>
    %60 = vector.extract_strided_slice %3 {offsets = [0, 0, 8], sizes = [4, 4, 1], strides = [1, 1, 1]} : vector<4x4x32xf32> to vector<4x4x1xf32>
    %c8 = arith.constant 8 : index
    %c0_13 = arith.constant 0 : index
    %61 = vector.load %arg2[%c8, %c0_13] : memref<144x32xf32, #tpu.memory_space<vmem>>, vector<1x32xf32>
    %62 = vector.shape_cast %61 : vector<1x32xf32> to vector<1x1x32xf32>
    %63 = vector.broadcast %60 : vector<4x4x1xf32> to vector<4x4x32xf32>
    %64 = vector.broadcast %62 : vector<1x1x32xf32> to vector<4x4x32xf32>
    %65 = arith.mulf %63, %64 : vector<4x4x32xf32>
    %66 = arith.addf %59, %65 : vector<4x4x32xf32>
    %67 = vector.extract_strided_slice %3 {offsets = [0, 0, 9], sizes = [4, 4, 1], strides = [1, 1, 1]} : vector<4x4x32xf32> to vector<4x4x1xf32>
    %c9 = arith.constant 9 : index
    %c0_14 = arith.constant 0 : index
    %68 = vector.load %arg2[%c9, %c0_14] : memref<144x32xf32, #tpu.memory_space<vmem>>, vector<1x32xf32>
    %69 = vector.shape_cast %68 : vector<1x32xf32> to vector<1x1x32xf32>
    %70 = vector.broadcast %67 : vector<4x4x1xf32> to vector<4x4x32xf32>
    %71 = vector.broadcast %69 : vector<1x1x32xf32> to vector<4x4x32xf32>
    %72 = arith.mulf %70, %71 : vector<4x4x32xf32>
    %73 = arith.addf %66, %72 : vector<4x4x32xf32>
    %74 = vector.extract_strided_slice %3 {offsets = [0, 0, 10], sizes = [4, 4, 1], strides = [1, 1, 1]} : vector<4x4x32xf32> to vector<4x4x1xf32>
    %c10 = arith.constant 10 : index
    %c0_15 = arith.constant 0 : index
    %75 = vector.load %arg2[%c10, %c0_15] : memref<144x32xf32, #tpu.memory_space<vmem>>, vector<1x32xf32>
    %76 = vector.shape_cast %75 : vector<1x32xf32> to vector<1x1x32xf32>
    %77 = vector.broadcast %74 : vector<4x4x1xf32> to vector<4x4x32xf32>
    %78 = vector.broadcast %76 : vector<1x1x32xf32> to vector<4x4x32xf32>
    %79 = arith.mulf %77, %78 : vector<4x4x32xf32>
    %80 = arith.addf %73, %79 : vector<4x4x32xf32>
    %81 = vector.extract_strided_slice %3 {offsets = [0, 0, 11], sizes = [4, 4, 1], strides = [1, 1, 1]} : vector<4x4x32xf32> to vector<4x4x1xf32>
    %c11 = arith.constant 11 : index
    %c0_16 = arith.constant 0 : index
    %82 = vector.load %arg2[%c11, %c0_16] : memref<144x32xf32, #tpu.memory_space<vmem>>, vector<1x32xf32>
    %83 = vector.shape_cast %82 : vector<1x32xf32> to vector<1x1x32xf32>
    %84 = vector.broadcast %81 : vector<4x4x1xf32> to vector<4x4x32xf32>
    %85 = vector.broadcast %83 : vector<1x1x32xf32> to vector<4x4x32xf32>
    %86 = arith.mulf %84, %85 : vector<4x4x32xf32>
    %87 = arith.addf %80, %86 : vector<4x4x32xf32>
    %88 = vector.extract_strided_slice %3 {offsets = [0, 0, 12], sizes = [4, 4, 1], strides = [1, 1, 1]} : vector<4x4x32xf32> to vector<4x4x1xf32>
    %c12 = arith.constant 12 : index
    %c0_17 = arith.constant 0 : index
    %89 = vector.load %arg2[%c12, %c0_17] : memref<144x32xf32, #tpu.memory_space<vmem>>, vector<1x32xf32>
    %90 = vector.shape_cast %89 : vector<1x32xf32> to vector<1x1x32xf32>
    %91 = vector.broadcast %88 : vector<4x4x1xf32> to vector<4x4x32xf32>
    %92 = vector.broadcast %90 : vector<1x1x32xf32> to vector<4x4x32xf32>
    %93 = arith.mulf %91, %92 : vector<4x4x32xf32>
    %94 = arith.addf %87, %93 : vector<4x4x32xf32>
    %95 = vector.extract_strided_slice %3 {offsets = [0, 0, 13], sizes = [4, 4, 1], strides = [1, 1, 1]} : vector<4x4x32xf32> to vector<4x4x1xf32>
    %c13 = arith.constant 13 : index
    %c0_18 = arith.constant 0 : index
    %96 = vector.load %arg2[%c13, %c0_18] : memref<144x32xf32, #tpu.memory_space<vmem>>, vector<1x32xf32>
    %97 = vector.shape_cast %96 : vector<1x32xf32> to vector<1x1x32xf32>
    %98 = vector.broadcast %95 : vector<4x4x1xf32> to vector<4x4x32xf32>
    %99 = vector.broadcast %97 : vector<1x1x32xf32> to vector<4x4x32xf32>
    %100 = arith.mulf %98, %99 : vector<4x4x32xf32>
    %101 = arith.addf %94, %100 : vector<4x4x32xf32>
    %102 = vector.extract_strided_slice %3 {offsets = [0, 0, 14], sizes = [4, 4, 1], strides = [1, 1, 1]} : vector<4x4x32xf32> to vector<4x4x1xf32>
    %c14 = arith.constant 14 : index
    %c0_19 = arith.constant 0 : index
    %103 = vector.load %arg2[%c14, %c0_19] : memref<144x32xf32, #tpu.memory_space<vmem>>, vector<1x32xf32>
    %104 = vector.shape_cast %103 : vector<1x32xf32> to vector<1x1x32xf32>
    %105 = vector.broadcast %102 : vector<4x4x1xf32> to vector<4x4x32xf32>
    %106 = vector.broadcast %104 : vector<1x1x32xf32> to vector<4x4x32xf32>
    %107 = arith.mulf %105, %106 : vector<4x4x32xf32>
    %108 = arith.addf %101, %107 : vector<4x4x32xf32>
    %109 = vector.extract_strided_slice %3 {offsets = [0, 0, 15], sizes = [4, 4, 1], strides = [1, 1, 1]} : vector<4x4x32xf32> to vector<4x4x1xf32>
    %c15 = arith.constant 15 : index
    %c0_20 = arith.constant 0 : index
    %110 = vector.load %arg2[%c15, %c0_20] : memref<144x32xf32, #tpu.memory_space<vmem>>, vector<1x32xf32>
    %111 = vector.shape_cast %110 : vector<1x32xf32> to vector<1x1x32xf32>
    %112 = vector.broadcast %109 : vector<4x4x1xf32> to vector<4x4x32xf32>
    %113 = vector.broadcast %111 : vector<1x1x32xf32> to vector<4x4x32xf32>
    %114 = arith.mulf %112, %113 : vector<4x4x32xf32>
    %115 = arith.addf %108, %114 : vector<4x4x32xf32>
    %c0_21 = arith.constant 0 : index
    %c0_22 = arith.constant 0 : index
    %c0_23 = arith.constant 0 : index
    %c0_24 = arith.constant 0 : index
    %c0_25 = arith.constant 0 : index
    %116 = vector.load %arg1[%c0_21, %c0_22, %c0_23, %c0_24, %c0_25] : memref<1x5x2x5x32xbf16, #tpu.memory_space<vmem>>, vector<1x4x1x4x32xbf16>
    %117 = vector.shape_cast %116 : vector<1x4x1x4x32xbf16> to vector<4x4x32xbf16>
    %118 = arith.extf %117 : vector<4x4x32xbf16> to vector<4x4x32xf32>
    %119 = vector.extract_strided_slice %118 {offsets = [0, 0, 16], sizes = [4, 4, 1], strides = [1, 1, 1]} : vector<4x4x32xf32> to vector<4x4x1xf32>
    %c16 = arith.constant 16 : index
    %c0_26 = arith.constant 0 : index
    %120 = vector.load %arg2[%c16, %c0_26] : memref<144x32xf32, #tpu.memory_space<vmem>>, vector<1x32xf32>
    %121 = vector.shape_cast %120 : vector<1x32xf32> to vector<1x1x32xf32>
    %122 = vector.broadcast %119 : vector<4x4x1xf32> to vector<4x4x32xf32>
    %123 = vector.broadcast %121 : vector<1x1x32xf32> to vector<4x4x32xf32>
    %124 = arith.mulf %122, %123 : vector<4x4x32xf32>
    %125 = arith.addf %115, %124 : vector<4x4x32xf32>
    %126 = vector.extract_strided_slice %118 {offsets = [0, 0, 17], sizes = [4, 4, 1], strides = [1, 1, 1]} : vector<4x4x32xf32> to vector<4x4x1xf32>
    %c17 = arith.constant 17 : index
    %c0_27 = arith.constant 0 : index
    %127 = vector.load %arg2[%c17, %c0_27] : memref<144x32xf32, #tpu.memory_space<vmem>>, vector<1x32xf32>
    %128 = vector.shape_cast %127 : vector<1x32xf32> to vector<1x1x32xf32>
    %129 = vector.broadcast %126 : vector<4x4x1xf32> to vector<4x4x32xf32>
    %130 = vector.broadcast %128 : vector<1x1x32xf32> to vector<4x4x32xf32>
    %131 = arith.mulf %129, %130 : vector<4x4x32xf32>
    %132 = arith.addf %125, %131 : vector<4x4x32xf32>
    %133 = vector.extract_strided_slice %118 {offsets = [0, 0, 18], sizes = [4, 4, 1], strides = [1, 1, 1]} : vector<4x4x32xf32> to vector<4x4x1xf32>
    %c18 = arith.constant 18 : index
    %c0_28 = arith.constant 0 : index
    %134 = vector.load %arg2[%c18, %c0_28] : memref<144x32xf32, #tpu.memory_space<vmem>>, vector<1x32xf32>
    %135 = vector.shape_cast %134 : vector<1x32xf32> to vector<1x1x32xf32>
    %136 = vector.broadcast %133 : vector<4x4x1xf32> to vector<4x4x32xf32>
    %137 = vector.broadcast %135 : vector<1x1x32xf32> to vector<4x4x32xf32>
    %138 = arith.mulf %136, %137 : vector<4x4x32xf32>
    %139 = arith.addf %132, %138 : vector<4x4x32xf32>
    %140 = vector.extract_strided_slice %118 {offsets = [0, 0, 19], sizes = [4, 4, 1], strides = [1, 1, 1]} : vector<4x4x32xf32> to vector<4x4x1xf32>
    %c19 = arith.constant 19 : index
    %c0_29 = arith.constant 0 : index
    %141 = vector.load %arg2[%c19, %c0_29] : memref<144x32xf32, #tpu.memory_space<vmem>>, vector<1x32xf32>
    %142 = vector.shape_cast %141 : vector<1x32xf32> to vector<1x1x32xf32>
    %143 = vector.broadcast %140 : vector<4x4x1xf32> to vector<4x4x32xf32>
    %144 = vector.broadcast %142 : vector<1x1x32xf32> to vector<4x4x32xf32>
    %145 = arith.mulf %143, %144 : vector<4x4x32xf32>
    %146 = arith.addf %139, %145 : vector<4x4x32xf32>
    %147 = vector.extract_strided_slice %118 {offsets = [0, 0, 20], sizes = [4, 4, 1], strides = [1, 1, 1]} : vector<4x4x32xf32> to vector<4x4x1xf32>
    %c20 = arith.constant 20 : index
    %c0_30 = arith.constant 0 : index
    %148 = vector.load %arg2[%c20, %c0_30] : memref<144x32xf32, #tpu.memory_space<vmem>>, vector<1x32xf32>
    %149 = vector.shape_cast %148 : vector<1x32xf32> to vector<1x1x32xf32>
    %150 = vector.broadcast %147 : vector<4x4x1xf32> to vector<4x4x32xf32>
    %151 = vector.broadcast %149 : vector<1x1x32xf32> to vector<4x4x32xf32>
    %152 = arith.mulf %150, %151 : vector<4x4x32xf32>
    %153 = arith.addf %146, %152 : vector<4x4x32xf32>
    %154 = vector.extract_strided_slice %118 {offsets = [0, 0, 21], sizes = [4, 4, 1], strides = [1, 1, 1]} : vector<4x4x32xf32> to vector<4x4x1xf32>
    %c21 = arith.constant 21 : index
    %c0_31 = arith.constant 0 : index
    %155 = vector.load %arg2[%c21, %c0_31] : memref<144x32xf32, #tpu.memory_space<vmem>>, vector<1x32xf32>
    %156 = vector.shape_cast %155 : vector<1x32xf32> to vector<1x1x32xf32>
    %157 = vector.broadcast %154 : vector<4x4x1xf32> to vector<4x4x32xf32>
    %158 = vector.broadcast %156 : vector<1x1x32xf32> to vector<4x4x32xf32>
    %159 = arith.mulf %157, %158 : vector<4x4x32xf32>
    %160 = arith.addf %153, %159 : vector<4x4x32xf32>
    %161 = vector.extract_strided_slice %118 {offsets = [0, 0, 22], sizes = [4, 4, 1], strides = [1, 1, 1]} : vector<4x4x32xf32> to vector<4x4x1xf32>
    %c22 = arith.constant 22 : index
    %c0_32 = arith.constant 0 : index
    %162 = vector.load %arg2[%c22, %c0_32] : memref<144x32xf32, #tpu.memory_space<vmem>>, vector<1x32xf32>
    %163 = vector.shape_cast %162 : vector<1x32xf32> to vector<1x1x32xf32>
    %164 = vector.broadcast %161 : vector<4x4x1xf32> to vector<4x4x32xf32>
    %165 = vector.broadcast %163 : vector<1x1x32xf32> to vector<4x4x32xf32>
    %166 = arith.mulf %164, %165 : vector<4x4x32xf32>
    %167 = arith.addf %160, %166 : vector<4x4x32xf32>
    %168 = vector.extract_strided_slice %118 {offsets = [0, 0, 23], sizes = [4, 4, 1], strides = [1, 1, 1]} : vector<4x4x32xf32> to vector<4x4x1xf32>
    %c23 = arith.constant 23 : index
    %c0_33 = arith.constant 0 : index
    %169 = vector.load %arg2[%c23, %c0_33] : memref<144x32xf32, #tpu.memory_space<vmem>>, vector<1x32xf32>
    %170 = vector.shape_cast %169 : vector<1x32xf32> to vector<1x1x32xf32>
    %171 = vector.broadcast %168 : vector<4x4x1xf32> to vector<4x4x32xf32>
    %172 = vector.broadcast %170 : vector<1x1x32xf32> to vector<4x4x32xf32>
    %173 = arith.mulf %171, %172 : vector<4x4x32xf32>
    %174 = arith.addf %167, %173 : vector<4x4x32xf32>
    %175 = vector.extract_strided_slice %118 {offsets = [0, 0, 24], sizes = [4, 4, 1], strides = [1, 1, 1]} : vector<4x4x32xf32> to vector<4x4x1xf32>
    %c24 = arith.constant 24 : index
    %c0_34 = arith.constant 0 : index
    %176 = vector.load %arg2[%c24, %c0_34] : memref<144x32xf32, #tpu.memory_space<vmem>>, vector<1x32xf32>
    %177 = vector.shape_cast %176 : vector<1x32xf32> to vector<1x1x32xf32>
    %178 = vector.broadcast %175 : vector<4x4x1xf32> to vector<4x4x32xf32>
    %179 = vector.broadcast %177 : vector<1x1x32xf32> to vector<4x4x32xf32>
    %180 = arith.mulf %178, %179 : vector<4x4x32xf32>
    %181 = arith.addf %174, %180 : vector<4x4x32xf32>
    %182 = vector.extract_strided_slice %118 {offsets = [0, 0, 25], sizes = [4, 4, 1], strides = [1, 1, 1]} : vector<4x4x32xf32> to vector<4x4x1xf32>
    %c25 = arith.constant 25 : index
    %c0_35 = arith.constant 0 : index
    %183 = vector.load %arg2[%c25, %c0_35] : memref<144x32xf32, #tpu.memory_space<vmem>>, vector<1x32xf32>
    %184 = vector.shape_cast %183 : vector<1x32xf32> to vector<1x1x32xf32>
    %185 = vector.broadcast %182 : vector<4x4x1xf32> to vector<4x4x32xf32>
    %186 = vector.broadcast %184 : vector<1x1x32xf32> to vector<4x4x32xf32>
    %187 = arith.mulf %185, %186 : vector<4x4x32xf32>
    %188 = arith.addf %181, %187 : vector<4x4x32xf32>
    %189 = vector.extract_strided_slice %118 {offsets = [0, 0, 26], sizes = [4, 4, 1], strides = [1, 1, 1]} : vector<4x4x32xf32> to vector<4x4x1xf32>
    %c26 = arith.constant 26 : index
    %c0_36 = arith.constant 0 : index
    %190 = vector.load %arg2[%c26, %c0_36] : memref<144x32xf32, #tpu.memory_space<vmem>>, vector<1x32xf32>
    %191 = vector.shape_cast %190 : vector<1x32xf32> to vector<1x1x32xf32>
    %192 = vector.broadcast %189 : vector<4x4x1xf32> to vector<4x4x32xf32>
    %193 = vector.broadcast %191 : vector<1x1x32xf32> to vector<4x4x32xf32>
    %194 = arith.mulf %192, %193 : vector<4x4x32xf32>
    %195 = arith.addf %188, %194 : vector<4x4x32xf32>
    %196 = vector.extract_strided_slice %118 {offsets = [0, 0, 27], sizes = [4, 4, 1], strides = [1, 1, 1]} : vector<4x4x32xf32> to vector<4x4x1xf32>
    %c27 = arith.constant 27 : index
    %c0_37 = arith.constant 0 : index
    %197 = vector.load %arg2[%c27, %c0_37] : memref<144x32xf32, #tpu.memory_space<vmem>>, vector<1x32xf32>
    %198 = vector.shape_cast %197 : vector<1x32xf32> to vector<1x1x32xf32>
    %199 = vector.broadcast %196 : vector<4x4x1xf32> to vector<4x4x32xf32>
    %200 = vector.broadcast %198 : vector<1x1x32xf32> to vector<4x4x32xf32>
    %201 = arith.mulf %199, %200 : vector<4x4x32xf32>
    %202 = arith.addf %195, %201 : vector<4x4x32xf32>
    %203 = vector.extract_strided_slice %118 {offsets = [0, 0, 28], sizes = [4, 4, 1], strides = [1, 1, 1]} : vector<4x4x32xf32> to vector<4x4x1xf32>
    %c28 = arith.constant 28 : index
    %c0_38 = arith.constant 0 : index
    %204 = vector.load %arg2[%c28, %c0_38] : memref<144x32xf32, #tpu.memory_space<vmem>>, vector<1x32xf32>
    %205 = vector.shape_cast %204 : vector<1x32xf32> to vector<1x1x32xf32>
    %206 = vector.broadcast %203 : vector<4x4x1xf32> to vector<4x4x32xf32>
    %207 = vector.broadcast %205 : vector<1x1x32xf32> to vector<4x4x32xf32>
    %208 = arith.mulf %206, %207 : vector<4x4x32xf32>
    %209 = arith.addf %202, %208 : vector<4x4x32xf32>
    %210 = vector.extract_strided_slice %118 {offsets = [0, 0, 29], sizes = [4, 4, 1], strides = [1, 1, 1]} : vector<4x4x32xf32> to vector<4x4x1xf32>
    %c29 = arith.constant 29 : index
    %c0_39 = arith.constant 0 : index
    %211 = vector.load %arg2[%c29, %c0_39] : memref<144x32xf32, #tpu.memory_space<vmem>>, vector<1x32xf32>
    %212 = vector.shape_cast %211 : vector<1x32xf32> to vector<1x1x32xf32>
    %213 = vector.broadcast %210 : vector<4x4x1xf32> to vector<4x4x32xf32>
    %214 = vector.broadcast %212 : vector<1x1x32xf32> to vector<4x4x32xf32>
    %215 = arith.mulf %213, %214 : vector<4x4x32xf32>
    %216 = arith.addf %209, %215 : vector<4x4x32xf32>
    %217 = vector.extract_strided_slice %118 {offsets = [0, 0, 30], sizes = [4, 4, 1], strides = [1, 1, 1]} : vector<4x4x32xf32> to vector<4x4x1xf32>
    %c30 = arith.constant 30 : index
    %c0_40 = arith.constant 0 : index
    %218 = vector.load %arg2[%c30, %c0_40] : memref<144x32xf32, #tpu.memory_space<vmem>>, vector<1x32xf32>
    %219 = vector.shape_cast %218 : vector<1x32xf32> to vector<1x1x32xf32>
    %220 = vector.broadcast %217 : vector<4x4x1xf32> to vector<4x4x32xf32>
    %221 = vector.broadcast %219 : vector<1x1x32xf32> to vector<4x4x32xf32>
    %222 = arith.mulf %220, %221 : vector<4x4x32xf32>
    %223 = arith.addf %216, %222 : vector<4x4x32xf32>
    %224 = vector.extract_strided_slice %118 {offsets = [0, 0, 31], sizes = [4, 4, 1], strides = [1, 1, 1]} : vector<4x4x32xf32> to vector<4x4x1xf32>
    %c31 = arith.constant 31 : index
    %c0_41 = arith.constant 0 : index
    %225 = vector.load %arg2[%c31, %c0_41] : memref<144x32xf32, #tpu.memory_space<vmem>>, vector<1x32xf32>
    %226 = vector.shape_cast %225 : vector<1x32xf32> to vector<1x1x32xf32>
    %227 = vector.broadcast %224 : vector<4x4x1xf32> to vector<4x4x32xf32>
    %228 = vector.broadcast %226 : vector<1x1x32xf32> to vector<4x4x32xf32>
    %229 = arith.mulf %227, %228 : vector<4x4x32xf32>
    %230 = arith.addf %223, %229 : vector<4x4x32xf32>
    %c0_42 = arith.constant 0 : index
    %c0_43 = arith.constant 0 : index
    %c0_44 = arith.constant 0 : index
    %c1_45 = arith.constant 1 : index
    %c0_46 = arith.constant 0 : index
    %231 = vector.load %arg1[%c0_42, %c0_43, %c0_44, %c1_45, %c0_46] : memref<1x5x2x5x32xbf16, #tpu.memory_space<vmem>>, vector<1x4x1x4x32xbf16>
    %232 = vector.shape_cast %231 : vector<1x4x1x4x32xbf16> to vector<4x4x32xbf16>
    %233 = arith.extf %232 : vector<4x4x32xbf16> to vector<4x4x32xf32>
    %234 = vector.extract_strided_slice %233 {offsets = [0, 0, 0], sizes = [4, 4, 1], strides = [1, 1, 1]} : vector<4x4x32xf32> to vector<4x4x1xf32>
    %c32 = arith.constant 32 : index
    %c0_47 = arith.constant 0 : index
    %235 = vector.load %arg2[%c32, %c0_47] : memref<144x32xf32, #tpu.memory_space<vmem>>, vector<1x32xf32>
    %236 = vector.shape_cast %235 : vector<1x32xf32> to vector<1x1x32xf32>
    %237 = vector.broadcast %234 : vector<4x4x1xf32> to vector<4x4x32xf32>
    %238 = vector.broadcast %236 : vector<1x1x32xf32> to vector<4x4x32xf32>
    %239 = arith.mulf %237, %238 : vector<4x4x32xf32>
    %240 = arith.addf %230, %239 : vector<4x4x32xf32>
    %241 = vector.extract_strided_slice %233 {offsets = [0, 0, 1], sizes = [4, 4, 1], strides = [1, 1, 1]} : vector<4x4x32xf32> to vector<4x4x1xf32>
    %c33 = arith.constant 33 : index
    %c0_48 = arith.constant 0 : index
    %242 = vector.load %arg2[%c33, %c0_48] : memref<144x32xf32, #tpu.memory_space<vmem>>, vector<1x32xf32>
    %243 = vector.shape_cast %242 : vector<1x32xf32> to vector<1x1x32xf32>
    %244 = vector.broadcast %241 : vector<4x4x1xf32> to vector<4x4x32xf32>
    %245 = vector.broadcast %243 : vector<1x1x32xf32> to vector<4x4x32xf32>
    %246 = arith.mulf %244, %245 : vector<4x4x32xf32>
    %247 = arith.addf %240, %246 : vector<4x4x32xf32>
    %248 = vector.extract_strided_slice %233 {offsets = [0, 0, 2], sizes = [4, 4, 1], strides = [1, 1, 1]} : vector<4x4x32xf32> to vector<4x4x1xf32>
    %c34 = arith.constant 34 : index
    %c0_49 = arith.constant 0 : index
    %249 = vector.load %arg2[%c34, %c0_49] : memref<144x32xf32, #tpu.memory_space<vmem>>, vector<1x32xf32>
    %250 = vector.shape_cast %249 : vector<1x32xf32> to vector<1x1x32xf32>
    %251 = vector.broadcast %248 : vector<4x4x1xf32> to vector<4x4x32xf32>
    %252 = vector.broadcast %250 : vector<1x1x32xf32> to vector<4x4x32xf32>
    %253 = arith.mulf %251, %252 : vector<4x4x32xf32>
    %254 = arith.addf %247, %253 : vector<4x4x32xf32>
    %255 = vector.extract_strided_slice %233 {offsets = [0, 0, 3], sizes = [4, 4, 1], strides = [1, 1, 1]} : vector<4x4x32xf32> to vector<4x4x1xf32>
    %c35 = arith.constant 35 : index
    %c0_50 = arith.constant 0 : index
    %256 = vector.load %arg2[%c35, %c0_50] : memref<144x32xf32, #tpu.memory_space<vmem>>, vector<1x32xf32>
    %257 = vector.shape_cast %256 : vector<1x32xf32> to vector<1x1x32xf32>
    %258 = vector.broadcast %255 : vector<4x4x1xf32> to vector<4x4x32xf32>
    %259 = vector.broadcast %257 : vector<1x1x32xf32> to vector<4x4x32xf32>
    %260 = arith.mulf %258, %259 : vector<4x4x32xf32>
    %261 = arith.addf %254, %260 : vector<4x4x32xf32>
    %262 = vector.extract_strided_slice %233 {offsets = [0, 0, 4], sizes = [4, 4, 1], strides = [1, 1, 1]} : vector<4x4x32xf32> to vector<4x4x1xf32>
    %c36 = arith.constant 36 : index
    %c0_51 = arith.constant 0 : index
    %263 = vector.load %arg2[%c36, %c0_51] : memref<144x32xf32, #tpu.memory_space<vmem>>, vector<1x32xf32>
    %264 = vector.shape_cast %263 : vector<1x32xf32> to vector<1x1x32xf32>
    %265 = vector.broadcast %262 : vector<4x4x1xf32> to vector<4x4x32xf32>
    %266 = vector.broadcast %264 : vector<1x1x32xf32> to vector<4x4x32xf32>
    %267 = arith.mulf %265, %266 : vector<4x4x32xf32>
    %268 = arith.addf %261, %267 : vector<4x4x32xf32>
    %269 = vector.extract_strided_slice %233 {offsets = [0, 0, 5], sizes = [4, 4, 1], strides = [1, 1, 1]} : vector<4x4x32xf32> to vector<4x4x1xf32>
    %c37 = arith.constant 37 : index
    %c0_52 = arith.constant 0 : index
    %270 = vector.load %arg2[%c37, %c0_52] : memref<144x32xf32, #tpu.memory_space<vmem>>, vector<1x32xf32>
    %271 = vector.shape_cast %270 : vector<1x32xf32> to vector<1x1x32xf32>
    %272 = vector.broadcast %269 : vector<4x4x1xf32> to vector<4x4x32xf32>
    %273 = vector.broadcast %271 : vector<1x1x32xf32> to vector<4x4x32xf32>
    %274 = arith.mulf %272, %273 : vector<4x4x32xf32>
    %275 = arith.addf %268, %274 : vector<4x4x32xf32>
    %276 = vector.extract_strided_slice %233 {offsets = [0, 0, 6], sizes = [4, 4, 1], strides = [1, 1, 1]} : vector<4x4x32xf32> to vector<4x4x1xf32>
    %c38 = arith.constant 38 : index
    %c0_53 = arith.constant 0 : index
    %277 = vector.load %arg2[%c38, %c0_53] : memref<144x32xf32, #tpu.memory_space<vmem>>, vector<1x32xf32>
    %278 = vector.shape_cast %277 : vector<1x32xf32> to vector<1x1x32xf32>
    %279 = vector.broadcast %276 : vector<4x4x1xf32> to vector<4x4x32xf32>
    %280 = vector.broadcast %278 : vector<1x1x32xf32> to vector<4x4x32xf32>
    %281 = arith.mulf %279, %280 : vector<4x4x32xf32>
    %282 = arith.addf %275, %281 : vector<4x4x32xf32>
    %283 = vector.extract_strided_slice %233 {offsets = [0, 0, 7], sizes = [4, 4, 1], strides = [1, 1, 1]} : vector<4x4x32xf32> to vector<4x4x1xf32>
    %c39 = arith.constant 39 : index
    %c0_54 = arith.constant 0 : index
    %284 = vector.load %arg2[%c39, %c0_54] : memref<144x32xf32, #tpu.memory_space<vmem>>, vector<1x32xf32>
    %285 = vector.shape_cast %284 : vector<1x32xf32> to vector<1x1x32xf32>
    %286 = vector.broadcast %283 : vector<4x4x1xf32> to vector<4x4x32xf32>
    %287 = vector.broadcast %285 : vector<1x1x32xf32> to vector<4x4x32xf32>
    %288 = arith.mulf %286, %287 : vector<4x4x32xf32>
    %289 = arith.addf %282, %288 : vector<4x4x32xf32>
    %290 = vector.extract_strided_slice %233 {offsets = [0, 0, 8], sizes = [4, 4, 1], strides = [1, 1, 1]} : vector<4x4x32xf32> to vector<4x4x1xf32>
    %c40 = arith.constant 40 : index
    %c0_55 = arith.constant 0 : index
    %291 = vector.load %arg2[%c40, %c0_55] : memref<144x32xf32, #tpu.memory_space<vmem>>, vector<1x32xf32>
    %292 = vector.shape_cast %291 : vector<1x32xf32> to vector<1x1x32xf32>
    %293 = vector.broadcast %290 : vector<4x4x1xf32> to vector<4x4x32xf32>
    %294 = vector.broadcast %292 : vector<1x1x32xf32> to vector<4x4x32xf32>
    %295 = arith.mulf %293, %294 : vector<4x4x32xf32>
    %296 = arith.addf %289, %295 : vector<4x4x32xf32>
    %297 = vector.extract_strided_slice %233 {offsets = [0, 0, 9], sizes = [4, 4, 1], strides = [1, 1, 1]} : vector<4x4x32xf32> to vector<4x4x1xf32>
    %c41 = arith.constant 41 : index
    %c0_56 = arith.constant 0 : index
    %298 = vector.load %arg2[%c41, %c0_56] : memref<144x32xf32, #tpu.memory_space<vmem>>, vector<1x32xf32>
    %299 = vector.shape_cast %298 : vector<1x32xf32> to vector<1x1x32xf32>
    %300 = vector.broadcast %297 : vector<4x4x1xf32> to vector<4x4x32xf32>
    %301 = vector.broadcast %299 : vector<1x1x32xf32> to vector<4x4x32xf32>
    %302 = arith.mulf %300, %301 : vector<4x4x32xf32>
    %303 = arith.addf %296, %302 : vector<4x4x32xf32>
    %304 = vector.extract_strided_slice %233 {offsets = [0, 0, 10], sizes = [4, 4, 1], strides = [1, 1, 1]} : vector<4x4x32xf32> to vector<4x4x1xf32>
    %c42 = arith.constant 42 : index
    %c0_57 = arith.constant 0 : index
    %305 = vector.load %arg2[%c42, %c0_57] : memref<144x32xf32, #tpu.memory_space<vmem>>, vector<1x32xf32>
    %306 = vector.shape_cast %305 : vector<1x32xf32> to vector<1x1x32xf32>
    %307 = vector.broadcast %304 : vector<4x4x1xf32> to vector<4x4x32xf32>
    %308 = vector.broadcast %306 : vector<1x1x32xf32> to vector<4x4x32xf32>
    %309 = arith.mulf %307, %308 : vector<4x4x32xf32>
    %310 = arith.addf %303, %309 : vector<4x4x32xf32>
    %311 = vector.extract_strided_slice %233 {offsets = [0, 0, 11], sizes = [4, 4, 1], strides = [1, 1, 1]} : vector<4x4x32xf32> to vector<4x4x1xf32>
    %c43 = arith.constant 43 : index
    %c0_58 = arith.constant 0 : index
    %312 = vector.load %arg2[%c43, %c0_58] : memref<144x32xf32, #tpu.memory_space<vmem>>, vector<1x32xf32>
    %313 = vector.shape_cast %312 : vector<1x32xf32> to vector<1x1x32xf32>
    %314 = vector.broadcast %311 : vector<4x4x1xf32> to vector<4x4x32xf32>
    %315 = vector.broadcast %313 : vector<1x1x32xf32> to vector<4x4x32xf32>
    %316 = arith.mulf %314, %315 : vector<4x4x32xf32>
    %317 = arith.addf %310, %316 : vector<4x4x32xf32>
    %318 = vector.extract_strided_slice %233 {offsets = [0, 0, 12], sizes = [4, 4, 1], strides = [1, 1, 1]} : vector<4x4x32xf32> to vector<4x4x1xf32>
    %c44 = arith.constant 44 : index
    %c0_59 = arith.constant 0 : index
    %319 = vector.load %arg2[%c44, %c0_59] : memref<144x32xf32, #tpu.memory_space<vmem>>, vector<1x32xf32>
    %320 = vector.shape_cast %319 : vector<1x32xf32> to vector<1x1x32xf32>
    %321 = vector.broadcast %318 : vector<4x4x1xf32> to vector<4x4x32xf32>
    %322 = vector.broadcast %320 : vector<1x1x32xf32> to vector<4x4x32xf32>
    %323 = arith.mulf %321, %322 : vector<4x4x32xf32>
    %324 = arith.addf %317, %323 : vector<4x4x32xf32>
    %325 = vector.extract_strided_slice %233 {offsets = [0, 0, 13], sizes = [4, 4, 1], strides = [1, 1, 1]} : vector<4x4x32xf32> to vector<4x4x1xf32>
    %c45 = arith.constant 45 : index
    %c0_60 = arith.constant 0 : index
    %326 = vector.load %arg2[%c45, %c0_60] : memref<144x32xf32, #tpu.memory_space<vmem>>, vector<1x32xf32>
    %327 = vector.shape_cast %326 : vector<1x32xf32> to vector<1x1x32xf32>
    %328 = vector.broadcast %325 : vector<4x4x1xf32> to vector<4x4x32xf32>
    %329 = vector.broadcast %327 : vector<1x1x32xf32> to vector<4x4x32xf32>
    %330 = arith.mulf %328, %329 : vector<4x4x32xf32>
    %331 = arith.addf %324, %330 : vector<4x4x32xf32>
    %332 = vector.extract_strided_slice %233 {offsets = [0, 0, 14], sizes = [4, 4, 1], strides = [1, 1, 1]} : vector<4x4x32xf32> to vector<4x4x1xf32>
    %c46 = arith.constant 46 : index
    %c0_61 = arith.constant 0 : index
    %333 = vector.load %arg2[%c46, %c0_61] : memref<144x32xf32, #tpu.memory_space<vmem>>, vector<1x32xf32>
    %334 = vector.shape_cast %333 : vector<1x32xf32> to vector<1x1x32xf32>
    %335 = vector.broadcast %332 : vector<4x4x1xf32> to vector<4x4x32xf32>
    %336 = vector.broadcast %334 : vector<1x1x32xf32> to vector<4x4x32xf32>
    %337 = arith.mulf %335, %336 : vector<4x4x32xf32>
    %338 = arith.addf %331, %337 : vector<4x4x32xf32>
    %339 = vector.extract_strided_slice %233 {offsets = [0, 0, 15], sizes = [4, 4, 1], strides = [1, 1, 1]} : vector<4x4x32xf32> to vector<4x4x1xf32>
    %c47 = arith.constant 47 : index
    %c0_62 = arith.constant 0 : index
    %340 = vector.load %arg2[%c47, %c0_62] : memref<144x32xf32, #tpu.memory_space<vmem>>, vector<1x32xf32>
    %341 = vector.shape_cast %340 : vector<1x32xf32> to vector<1x1x32xf32>
    %342 = vector.broadcast %339 : vector<4x4x1xf32> to vector<4x4x32xf32>
    %343 = vector.broadcast %341 : vector<1x1x32xf32> to vector<4x4x32xf32>
    %344 = arith.mulf %342, %343 : vector<4x4x32xf32>
    %345 = arith.addf %338, %344 : vector<4x4x32xf32>
    %c0_63 = arith.constant 0 : index
    %c0_64 = arith.constant 0 : index
    %c1_65 = arith.constant 1 : index
    %c0_66 = arith.constant 0 : index
    %c0_67 = arith.constant 0 : index
    %346 = vector.load %arg1[%c0_63, %c0_64, %c1_65, %c0_66, %c0_67] : memref<1x5x2x5x32xbf16, #tpu.memory_space<vmem>>, vector<1x4x1x4x32xbf16>
    %347 = vector.shape_cast %346 : vector<1x4x1x4x32xbf16> to vector<4x4x32xbf16>
    %348 = arith.extf %347 : vector<4x4x32xbf16> to vector<4x4x32xf32>
    %349 = vector.extract_strided_slice %348 {offsets = [0, 0, 0], sizes = [4, 4, 1], strides = [1, 1, 1]} : vector<4x4x32xf32> to vector<4x4x1xf32>
    %c48 = arith.constant 48 : index
    %c0_68 = arith.constant 0 : index
    %350 = vector.load %arg2[%c48, %c0_68] : memref<144x32xf32, #tpu.memory_space<vmem>>, vector<1x32xf32>
    %351 = vector.shape_cast %350 : vector<1x32xf32> to vector<1x1x32xf32>
    %352 = vector.broadcast %349 : vector<4x4x1xf32> to vector<4x4x32xf32>
    %353 = vector.broadcast %351 : vector<1x1x32xf32> to vector<4x4x32xf32>
    %354 = arith.mulf %352, %353 : vector<4x4x32xf32>
    %355 = arith.addf %345, %354 : vector<4x4x32xf32>
    %356 = vector.extract_strided_slice %348 {offsets = [0, 0, 1], sizes = [4, 4, 1], strides = [1, 1, 1]} : vector<4x4x32xf32> to vector<4x4x1xf32>
    %c49 = arith.constant 49 : index
    %c0_69 = arith.constant 0 : index
    %357 = vector.load %arg2[%c49, %c0_69] : memref<144x32xf32, #tpu.memory_space<vmem>>, vector<1x32xf32>
    %358 = vector.shape_cast %357 : vector<1x32xf32> to vector<1x1x32xf32>
    %359 = vector.broadcast %356 : vector<4x4x1xf32> to vector<4x4x32xf32>
    %360 = vector.broadcast %358 : vector<1x1x32xf32> to vector<4x4x32xf32>
    %361 = arith.mulf %359, %360 : vector<4x4x32xf32>
    %362 = arith.addf %355, %361 : vector<4x4x32xf32>
    %363 = vector.extract_strided_slice %348 {offsets = [0, 0, 2], sizes = [4, 4, 1], strides = [1, 1, 1]} : vector<4x4x32xf32> to vector<4x4x1xf32>
    %c50 = arith.constant 50 : index
    %c0_70 = arith.constant 0 : index
    %364 = vector.load %arg2[%c50, %c0_70] : memref<144x32xf32, #tpu.memory_space<vmem>>, vector<1x32xf32>
    %365 = vector.shape_cast %364 : vector<1x32xf32> to vector<1x1x32xf32>
    %366 = vector.broadcast %363 : vector<4x4x1xf32> to vector<4x4x32xf32>
    %367 = vector.broadcast %365 : vector<1x1x32xf32> to vector<4x4x32xf32>
    %368 = arith.mulf %366, %367 : vector<4x4x32xf32>
    %369 = arith.addf %362, %368 : vector<4x4x32xf32>
    %370 = vector.extract_strided_slice %348 {offsets = [0, 0, 3], sizes = [4, 4, 1], strides = [1, 1, 1]} : vector<4x4x32xf32> to vector<4x4x1xf32>
    %c51 = arith.constant 51 : index
    %c0_71 = arith.constant 0 : index
    %371 = vector.load %arg2[%c51, %c0_71] : memref<144x32xf32, #tpu.memory_space<vmem>>, vector<1x32xf32>
    %372 = vector.shape_cast %371 : vector<1x32xf32> to vector<1x1x32xf32>
    %373 = vector.broadcast %370 : vector<4x4x1xf32> to vector<4x4x32xf32>
    %374 = vector.broadcast %372 : vector<1x1x32xf32> to vector<4x4x32xf32>
    %375 = arith.mulf %373, %374 : vector<4x4x32xf32>
    %376 = arith.addf %369, %375 : vector<4x4x32xf32>
    %377 = vector.extract_strided_slice %348 {offsets = [0, 0, 4], sizes = [4, 4, 1], strides = [1, 1, 1]} : vector<4x4x32xf32> to vector<4x4x1xf32>
    %c52 = arith.constant 52 : index
    %c0_72 = arith.constant 0 : index
    %378 = vector.load %arg2[%c52, %c0_72] : memref<144x32xf32, #tpu.memory_space<vmem>>, vector<1x32xf32>
    %379 = vector.shape_cast %378 : vector<1x32xf32> to vector<1x1x32xf32>
    %380 = vector.broadcast %377 : vector<4x4x1xf32> to vector<4x4x32xf32>
    %381 = vector.broadcast %379 : vector<1x1x32xf32> to vector<4x4x32xf32>
    %382 = arith.mulf %380, %381 : vector<4x4x32xf32>
    %383 = arith.addf %376, %382 : vector<4x4x32xf32>
    %384 = vector.extract_strided_slice %348 {offsets = [0, 0, 5], sizes = [4, 4, 1], strides = [1, 1, 1]} : vector<4x4x32xf32> to vector<4x4x1xf32>
    %c53 = arith.constant 53 : index
    %c0_73 = arith.constant 0 : index
    %385 = vector.load %arg2[%c53, %c0_73] : memref<144x32xf32, #tpu.memory_space<vmem>>, vector<1x32xf32>
    %386 = vector.shape_cast %385 : vector<1x32xf32> to vector<1x1x32xf32>
    %387 = vector.broadcast %384 : vector<4x4x1xf32> to vector<4x4x32xf32>
    %388 = vector.broadcast %386 : vector<1x1x32xf32> to vector<4x4x32xf32>
    %389 = arith.mulf %387, %388 : vector<4x4x32xf32>
    %390 = arith.addf %383, %389 : vector<4x4x32xf32>
    %391 = vector.extract_strided_slice %348 {offsets = [0, 0, 6], sizes = [4, 4, 1], strides = [1, 1, 1]} : vector<4x4x32xf32> to vector<4x4x1xf32>
    %c54 = arith.constant 54 : index
    %c0_74 = arith.constant 0 : index
    %392 = vector.load %arg2[%c54, %c0_74] : memref<144x32xf32, #tpu.memory_space<vmem>>, vector<1x32xf32>
    %393 = vector.shape_cast %392 : vector<1x32xf32> to vector<1x1x32xf32>
    %394 = vector.broadcast %391 : vector<4x4x1xf32> to vector<4x4x32xf32>
    %395 = vector.broadcast %393 : vector<1x1x32xf32> to vector<4x4x32xf32>
    %396 = arith.mulf %394, %395 : vector<4x4x32xf32>
    %397 = arith.addf %390, %396 : vector<4x4x32xf32>
    %398 = vector.extract_strided_slice %348 {offsets = [0, 0, 7], sizes = [4, 4, 1], strides = [1, 1, 1]} : vector<4x4x32xf32> to vector<4x4x1xf32>
    %c55 = arith.constant 55 : index
    %c0_75 = arith.constant 0 : index
    %399 = vector.load %arg2[%c55, %c0_75] : memref<144x32xf32, #tpu.memory_space<vmem>>, vector<1x32xf32>
    %400 = vector.shape_cast %399 : vector<1x32xf32> to vector<1x1x32xf32>
    %401 = vector.broadcast %398 : vector<4x4x1xf32> to vector<4x4x32xf32>
    %402 = vector.broadcast %400 : vector<1x1x32xf32> to vector<4x4x32xf32>
    %403 = arith.mulf %401, %402 : vector<4x4x32xf32>
    %404 = arith.addf %397, %403 : vector<4x4x32xf32>
    %405 = vector.extract_strided_slice %348 {offsets = [0, 0, 8], sizes = [4, 4, 1], strides = [1, 1, 1]} : vector<4x4x32xf32> to vector<4x4x1xf32>
    %c56 = arith.constant 56 : index
    %c0_76 = arith.constant 0 : index
    %406 = vector.load %arg2[%c56, %c0_76] : memref<144x32xf32, #tpu.memory_space<vmem>>, vector<1x32xf32>
    %407 = vector.shape_cast %406 : vector<1x32xf32> to vector<1x1x32xf32>
    %408 = vector.broadcast %405 : vector<4x4x1xf32> to vector<4x4x32xf32>
    %409 = vector.broadcast %407 : vector<1x1x32xf32> to vector<4x4x32xf32>
    %410 = arith.mulf %408, %409 : vector<4x4x32xf32>
    %411 = arith.addf %404, %410 : vector<4x4x32xf32>
    %412 = vector.extract_strided_slice %348 {offsets = [0, 0, 9], sizes = [4, 4, 1], strides = [1, 1, 1]} : vector<4x4x32xf32> to vector<4x4x1xf32>
    %c57 = arith.constant 57 : index
    %c0_77 = arith.constant 0 : index
    %413 = vector.load %arg2[%c57, %c0_77] : memref<144x32xf32, #tpu.memory_space<vmem>>, vector<1x32xf32>
    %414 = vector.shape_cast %413 : vector<1x32xf32> to vector<1x1x32xf32>
    %415 = vector.broadcast %412 : vector<4x4x1xf32> to vector<4x4x32xf32>
    %416 = vector.broadcast %414 : vector<1x1x32xf32> to vector<4x4x32xf32>
    %417 = arith.mulf %415, %416 : vector<4x4x32xf32>
    %418 = arith.addf %411, %417 : vector<4x4x32xf32>
    %419 = vector.extract_strided_slice %348 {offsets = [0, 0, 10], sizes = [4, 4, 1], strides = [1, 1, 1]} : vector<4x4x32xf32> to vector<4x4x1xf32>
    %c58 = arith.constant 58 : index
    %c0_78 = arith.constant 0 : index
    %420 = vector.load %arg2[%c58, %c0_78] : memref<144x32xf32, #tpu.memory_space<vmem>>, vector<1x32xf32>
    %421 = vector.shape_cast %420 : vector<1x32xf32> to vector<1x1x32xf32>
    %422 = vector.broadcast %419 : vector<4x4x1xf32> to vector<4x4x32xf32>
    %423 = vector.broadcast %421 : vector<1x1x32xf32> to vector<4x4x32xf32>
    %424 = arith.mulf %422, %423 : vector<4x4x32xf32>
    %425 = arith.addf %418, %424 : vector<4x4x32xf32>
    %426 = vector.extract_strided_slice %348 {offsets = [0, 0, 11], sizes = [4, 4, 1], strides = [1, 1, 1]} : vector<4x4x32xf32> to vector<4x4x1xf32>
    %c59 = arith.constant 59 : index
    %c0_79 = arith.constant 0 : index
    %427 = vector.load %arg2[%c59, %c0_79] : memref<144x32xf32, #tpu.memory_space<vmem>>, vector<1x32xf32>
    %428 = vector.shape_cast %427 : vector<1x32xf32> to vector<1x1x32xf32>
    %429 = vector.broadcast %426 : vector<4x4x1xf32> to vector<4x4x32xf32>
    %430 = vector.broadcast %428 : vector<1x1x32xf32> to vector<4x4x32xf32>
    %431 = arith.mulf %429, %430 : vector<4x4x32xf32>
    %432 = arith.addf %425, %431 : vector<4x4x32xf32>
    %433 = vector.extract_strided_slice %348 {offsets = [0, 0, 12], sizes = [4, 4, 1], strides = [1, 1, 1]} : vector<4x4x32xf32> to vector<4x4x1xf32>
    %c60 = arith.constant 60 : index
    %c0_80 = arith.constant 0 : index
    %434 = vector.load %arg2[%c60, %c0_80] : memref<144x32xf32, #tpu.memory_space<vmem>>, vector<1x32xf32>
    %435 = vector.shape_cast %434 : vector<1x32xf32> to vector<1x1x32xf32>
    %436 = vector.broadcast %433 : vector<4x4x1xf32> to vector<4x4x32xf32>
    %437 = vector.broadcast %435 : vector<1x1x32xf32> to vector<4x4x32xf32>
    %438 = arith.mulf %436, %437 : vector<4x4x32xf32>
    %439 = arith.addf %432, %438 : vector<4x4x32xf32>
    %440 = vector.extract_strided_slice %348 {offsets = [0, 0, 13], sizes = [4, 4, 1], strides = [1, 1, 1]} : vector<4x4x32xf32> to vector<4x4x1xf32>
    %c61 = arith.constant 61 : index
    %c0_81 = arith.constant 0 : index
    %441 = vector.load %arg2[%c61, %c0_81] : memref<144x32xf32, #tpu.memory_space<vmem>>, vector<1x32xf32>
    %442 = vector.shape_cast %441 : vector<1x32xf32> to vector<1x1x32xf32>
    %443 = vector.broadcast %440 : vector<4x4x1xf32> to vector<4x4x32xf32>
    %444 = vector.broadcast %442 : vector<1x1x32xf32> to vector<4x4x32xf32>
    %445 = arith.mulf %443, %444 : vector<4x4x32xf32>
    %446 = arith.addf %439, %445 : vector<4x4x32xf32>
    %447 = vector.extract_strided_slice %348 {offsets = [0, 0, 14], sizes = [4, 4, 1], strides = [1, 1, 1]} : vector<4x4x32xf32> to vector<4x4x1xf32>
    %c62 = arith.constant 62 : index
    %c0_82 = arith.constant 0 : index
    %448 = vector.load %arg2[%c62, %c0_82] : memref<144x32xf32, #tpu.memory_space<vmem>>, vector<1x32xf32>
    %449 = vector.shape_cast %448 : vector<1x32xf32> to vector<1x1x32xf32>
    %450 = vector.broadcast %447 : vector<4x4x1xf32> to vector<4x4x32xf32>
    %451 = vector.broadcast %449 : vector<1x1x32xf32> to vector<4x4x32xf32>
    %452 = arith.mulf %450, %451 : vector<4x4x32xf32>
    %453 = arith.addf %446, %452 : vector<4x4x32xf32>
    %454 = vector.extract_strided_slice %348 {offsets = [0, 0, 15], sizes = [4, 4, 1], strides = [1, 1, 1]} : vector<4x4x32xf32> to vector<4x4x1xf32>
    %c63 = arith.constant 63 : index
    %c0_83 = arith.constant 0 : index
    %455 = vector.load %arg2[%c63, %c0_83] : memref<144x32xf32, #tpu.memory_space<vmem>>, vector<1x32xf32>
    %456 = vector.shape_cast %455 : vector<1x32xf32> to vector<1x1x32xf32>
    %457 = vector.broadcast %454 : vector<4x4x1xf32> to vector<4x4x32xf32>
    %458 = vector.broadcast %456 : vector<1x1x32xf32> to vector<4x4x32xf32>
    %459 = arith.mulf %457, %458 : vector<4x4x32xf32>
    %460 = arith.addf %453, %459 : vector<4x4x32xf32>
    %c0_84 = arith.constant 0 : index
    %c0_85 = arith.constant 0 : index
    %c1_86 = arith.constant 1 : index
    %c0_87 = arith.constant 0 : index
    %c0_88 = arith.constant 0 : index
    %461 = vector.load %arg1[%c0_84, %c0_85, %c1_86, %c0_87, %c0_88] : memref<1x5x2x5x32xbf16, #tpu.memory_space<vmem>>, vector<1x4x1x4x32xbf16>
    %462 = vector.shape_cast %461 : vector<1x4x1x4x32xbf16> to vector<4x4x32xbf16>
    %463 = arith.extf %462 : vector<4x4x32xbf16> to vector<4x4x32xf32>
    %464 = vector.extract_strided_slice %463 {offsets = [0, 0, 16], sizes = [4, 4, 1], strides = [1, 1, 1]} : vector<4x4x32xf32> to vector<4x4x1xf32>
    %c64 = arith.constant 64 : index
    %c0_89 = arith.constant 0 : index
    %465 = vector.load %arg2[%c64, %c0_89] : memref<144x32xf32, #tpu.memory_space<vmem>>, vector<1x32xf32>
    %466 = vector.shape_cast %465 : vector<1x32xf32> to vector<1x1x32xf32>
    %467 = vector.broadcast %464 : vector<4x4x1xf32> to vector<4x4x32xf32>
    %468 = vector.broadcast %466 : vector<1x1x32xf32> to vector<4x4x32xf32>
    %469 = arith.mulf %467, %468 : vector<4x4x32xf32>
    %470 = arith.addf %460, %469 : vector<4x4x32xf32>
    %471 = vector.extract_strided_slice %463 {offsets = [0, 0, 17], sizes = [4, 4, 1], strides = [1, 1, 1]} : vector<4x4x32xf32> to vector<4x4x1xf32>
    %c65 = arith.constant 65 : index
    %c0_90 = arith.constant 0 : index
    %472 = vector.load %arg2[%c65, %c0_90] : memref<144x32xf32, #tpu.memory_space<vmem>>, vector<1x32xf32>
    %473 = vector.shape_cast %472 : vector<1x32xf32> to vector<1x1x32xf32>
    %474 = vector.broadcast %471 : vector<4x4x1xf32> to vector<4x4x32xf32>
    %475 = vector.broadcast %473 : vector<1x1x32xf32> to vector<4x4x32xf32>
    %476 = arith.mulf %474, %475 : vector<4x4x32xf32>
    %477 = arith.addf %470, %476 : vector<4x4x32xf32>
    %478 = vector.extract_strided_slice %463 {offsets = [0, 0, 18], sizes = [4, 4, 1], strides = [1, 1, 1]} : vector<4x4x32xf32> to vector<4x4x1xf32>
    %c66 = arith.constant 66 : index
    %c0_91 = arith.constant 0 : index
    %479 = vector.load %arg2[%c66, %c0_91] : memref<144x32xf32, #tpu.memory_space<vmem>>, vector<1x32xf32>
    %480 = vector.shape_cast %479 : vector<1x32xf32> to vector<1x1x32xf32>
    %481 = vector.broadcast %478 : vector<4x4x1xf32> to vector<4x4x32xf32>
    %482 = vector.broadcast %480 : vector<1x1x32xf32> to vector<4x4x32xf32>
    %483 = arith.mulf %481, %482 : vector<4x4x32xf32>
    %484 = arith.addf %477, %483 : vector<4x4x32xf32>
    %485 = vector.extract_strided_slice %463 {offsets = [0, 0, 19], sizes = [4, 4, 1], strides = [1, 1, 1]} : vector<4x4x32xf32> to vector<4x4x1xf32>
    %c67 = arith.constant 67 : index
    %c0_92 = arith.constant 0 : index
    %486 = vector.load %arg2[%c67, %c0_92] : memref<144x32xf32, #tpu.memory_space<vmem>>, vector<1x32xf32>
    %487 = vector.shape_cast %486 : vector<1x32xf32> to vector<1x1x32xf32>
    %488 = vector.broadcast %485 : vector<4x4x1xf32> to vector<4x4x32xf32>
    %489 = vector.broadcast %487 : vector<1x1x32xf32> to vector<4x4x32xf32>
    %490 = arith.mulf %488, %489 : vector<4x4x32xf32>
    %491 = arith.addf %484, %490 : vector<4x4x32xf32>
    %492 = vector.extract_strided_slice %463 {offsets = [0, 0, 20], sizes = [4, 4, 1], strides = [1, 1, 1]} : vector<4x4x32xf32> to vector<4x4x1xf32>
    %c68 = arith.constant 68 : index
    %c0_93 = arith.constant 0 : index
    %493 = vector.load %arg2[%c68, %c0_93] : memref<144x32xf32, #tpu.memory_space<vmem>>, vector<1x32xf32>
    %494 = vector.shape_cast %493 : vector<1x32xf32> to vector<1x1x32xf32>
    %495 = vector.broadcast %492 : vector<4x4x1xf32> to vector<4x4x32xf32>
    %496 = vector.broadcast %494 : vector<1x1x32xf32> to vector<4x4x32xf32>
    %497 = arith.mulf %495, %496 : vector<4x4x32xf32>
    %498 = arith.addf %491, %497 : vector<4x4x32xf32>
    %499 = vector.extract_strided_slice %463 {offsets = [0, 0, 21], sizes = [4, 4, 1], strides = [1, 1, 1]} : vector<4x4x32xf32> to vector<4x4x1xf32>
    %c69 = arith.constant 69 : index
    %c0_94 = arith.constant 0 : index
    %500 = vector.load %arg2[%c69, %c0_94] : memref<144x32xf32, #tpu.memory_space<vmem>>, vector<1x32xf32>
    %501 = vector.shape_cast %500 : vector<1x32xf32> to vector<1x1x32xf32>
    %502 = vector.broadcast %499 : vector<4x4x1xf32> to vector<4x4x32xf32>
    %503 = vector.broadcast %501 : vector<1x1x32xf32> to vector<4x4x32xf32>
    %504 = arith.mulf %502, %503 : vector<4x4x32xf32>
    %505 = arith.addf %498, %504 : vector<4x4x32xf32>
    %506 = vector.extract_strided_slice %463 {offsets = [0, 0, 22], sizes = [4, 4, 1], strides = [1, 1, 1]} : vector<4x4x32xf32> to vector<4x4x1xf32>
    %c70 = arith.constant 70 : index
    %c0_95 = arith.constant 0 : index
    %507 = vector.load %arg2[%c70, %c0_95] : memref<144x32xf32, #tpu.memory_space<vmem>>, vector<1x32xf32>
    %508 = vector.shape_cast %507 : vector<1x32xf32> to vector<1x1x32xf32>
    %509 = vector.broadcast %506 : vector<4x4x1xf32> to vector<4x4x32xf32>
    %510 = vector.broadcast %508 : vector<1x1x32xf32> to vector<4x4x32xf32>
    %511 = arith.mulf %509, %510 : vector<4x4x32xf32>
    %512 = arith.addf %505, %511 : vector<4x4x32xf32>
    %513 = vector.extract_strided_slice %463 {offsets = [0, 0, 23], sizes = [4, 4, 1], strides = [1, 1, 1]} : vector<4x4x32xf32> to vector<4x4x1xf32>
    %c71 = arith.constant 71 : index
    %c0_96 = arith.constant 0 : index
    %514 = vector.load %arg2[%c71, %c0_96] : memref<144x32xf32, #tpu.memory_space<vmem>>, vector<1x32xf32>
    %515 = vector.shape_cast %514 : vector<1x32xf32> to vector<1x1x32xf32>
    %516 = vector.broadcast %513 : vector<4x4x1xf32> to vector<4x4x32xf32>
    %517 = vector.broadcast %515 : vector<1x1x32xf32> to vector<4x4x32xf32>
    %518 = arith.mulf %516, %517 : vector<4x4x32xf32>
    %519 = arith.addf %512, %518 : vector<4x4x32xf32>
    %520 = vector.extract_strided_slice %463 {offsets = [0, 0, 24], sizes = [4, 4, 1], strides = [1, 1, 1]} : vector<4x4x32xf32> to vector<4x4x1xf32>
    %c72 = arith.constant 72 : index
    %c0_97 = arith.constant 0 : index
    %521 = vector.load %arg2[%c72, %c0_97] : memref<144x32xf32, #tpu.memory_space<vmem>>, vector<1x32xf32>
    %522 = vector.shape_cast %521 : vector<1x32xf32> to vector<1x1x32xf32>
    %523 = vector.broadcast %520 : vector<4x4x1xf32> to vector<4x4x32xf32>
    %524 = vector.broadcast %522 : vector<1x1x32xf32> to vector<4x4x32xf32>
    %525 = arith.mulf %523, %524 : vector<4x4x32xf32>
    %526 = arith.addf %519, %525 : vector<4x4x32xf32>
    %527 = vector.extract_strided_slice %463 {offsets = [0, 0, 25], sizes = [4, 4, 1], strides = [1, 1, 1]} : vector<4x4x32xf32> to vector<4x4x1xf32>
    %c73 = arith.constant 73 : index
    %c0_98 = arith.constant 0 : index
    %528 = vector.load %arg2[%c73, %c0_98] : memref<144x32xf32, #tpu.memory_space<vmem>>, vector<1x32xf32>
    %529 = vector.shape_cast %528 : vector<1x32xf32> to vector<1x1x32xf32>
    %530 = vector.broadcast %527 : vector<4x4x1xf32> to vector<4x4x32xf32>
    %531 = vector.broadcast %529 : vector<1x1x32xf32> to vector<4x4x32xf32>
    %532 = arith.mulf %530, %531 : vector<4x4x32xf32>
    %533 = arith.addf %526, %532 : vector<4x4x32xf32>
    %534 = vector.extract_strided_slice %463 {offsets = [0, 0, 26], sizes = [4, 4, 1], strides = [1, 1, 1]} : vector<4x4x32xf32> to vector<4x4x1xf32>
    %c74 = arith.constant 74 : index
    %c0_99 = arith.constant 0 : index
    %535 = vector.load %arg2[%c74, %c0_99] : memref<144x32xf32, #tpu.memory_space<vmem>>, vector<1x32xf32>
    %536 = vector.shape_cast %535 : vector<1x32xf32> to vector<1x1x32xf32>
    %537 = vector.broadcast %534 : vector<4x4x1xf32> to vector<4x4x32xf32>
    %538 = vector.broadcast %536 : vector<1x1x32xf32> to vector<4x4x32xf32>
    %539 = arith.mulf %537, %538 : vector<4x4x32xf32>
    %540 = arith.addf %533, %539 : vector<4x4x32xf32>
    %541 = vector.extract_strided_slice %463 {offsets = [0, 0, 27], sizes = [4, 4, 1], strides = [1, 1, 1]} : vector<4x4x32xf32> to vector<4x4x1xf32>
    %c75 = arith.constant 75 : index
    %c0_100 = arith.constant 0 : index
    %542 = vector.load %arg2[%c75, %c0_100] : memref<144x32xf32, #tpu.memory_space<vmem>>, vector<1x32xf32>
    %543 = vector.shape_cast %542 : vector<1x32xf32> to vector<1x1x32xf32>
    %544 = vector.broadcast %541 : vector<4x4x1xf32> to vector<4x4x32xf32>
    %545 = vector.broadcast %543 : vector<1x1x32xf32> to vector<4x4x32xf32>
    %546 = arith.mulf %544, %545 : vector<4x4x32xf32>
    %547 = arith.addf %540, %546 : vector<4x4x32xf32>
    %548 = vector.extract_strided_slice %463 {offsets = [0, 0, 28], sizes = [4, 4, 1], strides = [1, 1, 1]} : vector<4x4x32xf32> to vector<4x4x1xf32>
    %c76 = arith.constant 76 : index
    %c0_101 = arith.constant 0 : index
    %549 = vector.load %arg2[%c76, %c0_101] : memref<144x32xf32, #tpu.memory_space<vmem>>, vector<1x32xf32>
    %550 = vector.shape_cast %549 : vector<1x32xf32> to vector<1x1x32xf32>
    %551 = vector.broadcast %548 : vector<4x4x1xf32> to vector<4x4x32xf32>
    %552 = vector.broadcast %550 : vector<1x1x32xf32> to vector<4x4x32xf32>
    %553 = arith.mulf %551, %552 : vector<4x4x32xf32>
    %554 = arith.addf %547, %553 : vector<4x4x32xf32>
    %555 = vector.extract_strided_slice %463 {offsets = [0, 0, 29], sizes = [4, 4, 1], strides = [1, 1, 1]} : vector<4x4x32xf32> to vector<4x4x1xf32>
    %c77 = arith.constant 77 : index
    %c0_102 = arith.constant 0 : index
    %556 = vector.load %arg2[%c77, %c0_102] : memref<144x32xf32, #tpu.memory_space<vmem>>, vector<1x32xf32>
    %557 = vector.shape_cast %556 : vector<1x32xf32> to vector<1x1x32xf32>
    %558 = vector.broadcast %555 : vector<4x4x1xf32> to vector<4x4x32xf32>
    %559 = vector.broadcast %557 : vector<1x1x32xf32> to vector<4x4x32xf32>
    %560 = arith.mulf %558, %559 : vector<4x4x32xf32>
    %561 = arith.addf %554, %560 : vector<4x4x32xf32>
    %562 = vector.extract_strided_slice %463 {offsets = [0, 0, 30], sizes = [4, 4, 1], strides = [1, 1, 1]} : vector<4x4x32xf32> to vector<4x4x1xf32>
    %c78 = arith.constant 78 : index
    %c0_103 = arith.constant 0 : index
    %563 = vector.load %arg2[%c78, %c0_103] : memref<144x32xf32, #tpu.memory_space<vmem>>, vector<1x32xf32>
    %564 = vector.shape_cast %563 : vector<1x32xf32> to vector<1x1x32xf32>
    %565 = vector.broadcast %562 : vector<4x4x1xf32> to vector<4x4x32xf32>
    %566 = vector.broadcast %564 : vector<1x1x32xf32> to vector<4x4x32xf32>
    %567 = arith.mulf %565, %566 : vector<4x4x32xf32>
    %568 = arith.addf %561, %567 : vector<4x4x32xf32>
    %569 = vector.extract_strided_slice %463 {offsets = [0, 0, 31], sizes = [4, 4, 1], strides = [1, 1, 1]} : vector<4x4x32xf32> to vector<4x4x1xf32>
    %c79 = arith.constant 79 : index
    %c0_104 = arith.constant 0 : index
    %570 = vector.load %arg2[%c79, %c0_104] : memref<144x32xf32, #tpu.memory_space<vmem>>, vector<1x32xf32>
    %571 = vector.shape_cast %570 : vector<1x32xf32> to vector<1x1x32xf32>
    %572 = vector.broadcast %569 : vector<4x4x1xf32> to vector<4x4x32xf32>
    %573 = vector.broadcast %571 : vector<1x1x32xf32> to vector<4x4x32xf32>
    %574 = arith.mulf %572, %573 : vector<4x4x32xf32>
    %575 = arith.addf %568, %574 : vector<4x4x32xf32>
    %c0_105 = arith.constant 0 : index
    %c0_106 = arith.constant 0 : index
    %c1_107 = arith.constant 1 : index
    %c1_108 = arith.constant 1 : index
    %c0_109 = arith.constant 0 : index
    %576 = vector.load %arg1[%c0_105, %c0_106, %c1_107, %c1_108, %c0_109] : memref<1x5x2x5x32xbf16, #tpu.memory_space<vmem>>, vector<1x4x1x4x32xbf16>
    %577 = vector.shape_cast %576 : vector<1x4x1x4x32xbf16> to vector<4x4x32xbf16>
    %578 = arith.extf %577 : vector<4x4x32xbf16> to vector<4x4x32xf32>
    %579 = vector.extract_strided_slice %578 {offsets = [0, 0, 0], sizes = [4, 4, 1], strides = [1, 1, 1]} : vector<4x4x32xf32> to vector<4x4x1xf32>
    %c80 = arith.constant 80 : index
    %c0_110 = arith.constant 0 : index
    %580 = vector.load %arg2[%c80, %c0_110] : memref<144x32xf32, #tpu.memory_space<vmem>>, vector<1x32xf32>
    %581 = vector.shape_cast %580 : vector<1x32xf32> to vector<1x1x32xf32>
    %582 = vector.broadcast %579 : vector<4x4x1xf32> to vector<4x4x32xf32>
    %583 = vector.broadcast %581 : vector<1x1x32xf32> to vector<4x4x32xf32>
    %584 = arith.mulf %582, %583 : vector<4x4x32xf32>
    %585 = arith.addf %575, %584 : vector<4x4x32xf32>
    %586 = vector.extract_strided_slice %578 {offsets = [0, 0, 1], sizes = [4, 4, 1], strides = [1, 1, 1]} : vector<4x4x32xf32> to vector<4x4x1xf32>
    %c81 = arith.constant 81 : index
    %c0_111 = arith.constant 0 : index
    %587 = vector.load %arg2[%c81, %c0_111] : memref<144x32xf32, #tpu.memory_space<vmem>>, vector<1x32xf32>
    %588 = vector.shape_cast %587 : vector<1x32xf32> to vector<1x1x32xf32>
    %589 = vector.broadcast %586 : vector<4x4x1xf32> to vector<4x4x32xf32>
    %590 = vector.broadcast %588 : vector<1x1x32xf32> to vector<4x4x32xf32>
    %591 = arith.mulf %589, %590 : vector<4x4x32xf32>
    %592 = arith.addf %585, %591 : vector<4x4x32xf32>
    %593 = vector.extract_strided_slice %578 {offsets = [0, 0, 2], sizes = [4, 4, 1], strides = [1, 1, 1]} : vector<4x4x32xf32> to vector<4x4x1xf32>
    %c82 = arith.constant 82 : index
    %c0_112 = arith.constant 0 : index
    %594 = vector.load %arg2[%c82, %c0_112] : memref<144x32xf32, #tpu.memory_space<vmem>>, vector<1x32xf32>
    %595 = vector.shape_cast %594 : vector<1x32xf32> to vector<1x1x32xf32>
    %596 = vector.broadcast %593 : vector<4x4x1xf32> to vector<4x4x32xf32>
    %597 = vector.broadcast %595 : vector<1x1x32xf32> to vector<4x4x32xf32>
    %598 = arith.mulf %596, %597 : vector<4x4x32xf32>
    %599 = arith.addf %592, %598 : vector<4x4x32xf32>
    %600 = vector.extract_strided_slice %578 {offsets = [0, 0, 3], sizes = [4, 4, 1], strides = [1, 1, 1]} : vector<4x4x32xf32> to vector<4x4x1xf32>
    %c83 = arith.constant 83 : index
    %c0_113 = arith.constant 0 : index
    %601 = vector.load %arg2[%c83, %c0_113] : memref<144x32xf32, #tpu.memory_space<vmem>>, vector<1x32xf32>
    %602 = vector.shape_cast %601 : vector<1x32xf32> to vector<1x1x32xf32>
    %603 = vector.broadcast %600 : vector<4x4x1xf32> to vector<4x4x32xf32>
    %604 = vector.broadcast %602 : vector<1x1x32xf32> to vector<4x4x32xf32>
    %605 = arith.mulf %603, %604 : vector<4x4x32xf32>
    %606 = arith.addf %599, %605 : vector<4x4x32xf32>
    %607 = vector.extract_strided_slice %578 {offsets = [0, 0, 4], sizes = [4, 4, 1], strides = [1, 1, 1]} : vector<4x4x32xf32> to vector<4x4x1xf32>
    %c84 = arith.constant 84 : index
    %c0_114 = arith.constant 0 : index
    %608 = vector.load %arg2[%c84, %c0_114] : memref<144x32xf32, #tpu.memory_space<vmem>>, vector<1x32xf32>
    %609 = vector.shape_cast %608 : vector<1x32xf32> to vector<1x1x32xf32>
    %610 = vector.broadcast %607 : vector<4x4x1xf32> to vector<4x4x32xf32>
    %611 = vector.broadcast %609 : vector<1x1x32xf32> to vector<4x4x32xf32>
    %612 = arith.mulf %610, %611 : vector<4x4x32xf32>
    %613 = arith.addf %606, %612 : vector<4x4x32xf32>
    %614 = vector.extract_strided_slice %578 {offsets = [0, 0, 5], sizes = [4, 4, 1], strides = [1, 1, 1]} : vector<4x4x32xf32> to vector<4x4x1xf32>
    %c85 = arith.constant 85 : index
    %c0_115 = arith.constant 0 : index
    %615 = vector.load %arg2[%c85, %c0_115] : memref<144x32xf32, #tpu.memory_space<vmem>>, vector<1x32xf32>
    %616 = vector.shape_cast %615 : vector<1x32xf32> to vector<1x1x32xf32>
    %617 = vector.broadcast %614 : vector<4x4x1xf32> to vector<4x4x32xf32>
    %618 = vector.broadcast %616 : vector<1x1x32xf32> to vector<4x4x32xf32>
    %619 = arith.mulf %617, %618 : vector<4x4x32xf32>
    %620 = arith.addf %613, %619 : vector<4x4x32xf32>
    %621 = vector.extract_strided_slice %578 {offsets = [0, 0, 6], sizes = [4, 4, 1], strides = [1, 1, 1]} : vector<4x4x32xf32> to vector<4x4x1xf32>
    %c86 = arith.constant 86 : index
    %c0_116 = arith.constant 0 : index
    %622 = vector.load %arg2[%c86, %c0_116] : memref<144x32xf32, #tpu.memory_space<vmem>>, vector<1x32xf32>
    %623 = vector.shape_cast %622 : vector<1x32xf32> to vector<1x1x32xf32>
    %624 = vector.broadcast %621 : vector<4x4x1xf32> to vector<4x4x32xf32>
    %625 = vector.broadcast %623 : vector<1x1x32xf32> to vector<4x4x32xf32>
    %626 = arith.mulf %624, %625 : vector<4x4x32xf32>
    %627 = arith.addf %620, %626 : vector<4x4x32xf32>
    %628 = vector.extract_strided_slice %578 {offsets = [0, 0, 7], sizes = [4, 4, 1], strides = [1, 1, 1]} : vector<4x4x32xf32> to vector<4x4x1xf32>
    %c87 = arith.constant 87 : index
    %c0_117 = arith.constant 0 : index
    %629 = vector.load %arg2[%c87, %c0_117] : memref<144x32xf32, #tpu.memory_space<vmem>>, vector<1x32xf32>
    %630 = vector.shape_cast %629 : vector<1x32xf32> to vector<1x1x32xf32>
    %631 = vector.broadcast %628 : vector<4x4x1xf32> to vector<4x4x32xf32>
    %632 = vector.broadcast %630 : vector<1x1x32xf32> to vector<4x4x32xf32>
    %633 = arith.mulf %631, %632 : vector<4x4x32xf32>
    %634 = arith.addf %627, %633 : vector<4x4x32xf32>
    %635 = vector.extract_strided_slice %578 {offsets = [0, 0, 8], sizes = [4, 4, 1], strides = [1, 1, 1]} : vector<4x4x32xf32> to vector<4x4x1xf32>
    %c88 = arith.constant 88 : index
    %c0_118 = arith.constant 0 : index
    %636 = vector.load %arg2[%c88, %c0_118] : memref<144x32xf32, #tpu.memory_space<vmem>>, vector<1x32xf32>
    %637 = vector.shape_cast %636 : vector<1x32xf32> to vector<1x1x32xf32>
    %638 = vector.broadcast %635 : vector<4x4x1xf32> to vector<4x4x32xf32>
    %639 = vector.broadcast %637 : vector<1x1x32xf32> to vector<4x4x32xf32>
    %640 = arith.mulf %638, %639 : vector<4x4x32xf32>
    %641 = arith.addf %634, %640 : vector<4x4x32xf32>
    %642 = vector.extract_strided_slice %578 {offsets = [0, 0, 9], sizes = [4, 4, 1], strides = [1, 1, 1]} : vector<4x4x32xf32> to vector<4x4x1xf32>
    %c89 = arith.constant 89 : index
    %c0_119 = arith.constant 0 : index
    %643 = vector.load %arg2[%c89, %c0_119] : memref<144x32xf32, #tpu.memory_space<vmem>>, vector<1x32xf32>
    %644 = vector.shape_cast %643 : vector<1x32xf32> to vector<1x1x32xf32>
    %645 = vector.broadcast %642 : vector<4x4x1xf32> to vector<4x4x32xf32>
    %646 = vector.broadcast %644 : vector<1x1x32xf32> to vector<4x4x32xf32>
    %647 = arith.mulf %645, %646 : vector<4x4x32xf32>
    %648 = arith.addf %641, %647 : vector<4x4x32xf32>
    %649 = vector.extract_strided_slice %578 {offsets = [0, 0, 10], sizes = [4, 4, 1], strides = [1, 1, 1]} : vector<4x4x32xf32> to vector<4x4x1xf32>
    %c90 = arith.constant 90 : index
    %c0_120 = arith.constant 0 : index
    %650 = vector.load %arg2[%c90, %c0_120] : memref<144x32xf32, #tpu.memory_space<vmem>>, vector<1x32xf32>
    %651 = vector.shape_cast %650 : vector<1x32xf32> to vector<1x1x32xf32>
    %652 = vector.broadcast %649 : vector<4x4x1xf32> to vector<4x4x32xf32>
    %653 = vector.broadcast %651 : vector<1x1x32xf32> to vector<4x4x32xf32>
    %654 = arith.mulf %652, %653 : vector<4x4x32xf32>
    %655 = arith.addf %648, %654 : vector<4x4x32xf32>
    %656 = vector.extract_strided_slice %578 {offsets = [0, 0, 11], sizes = [4, 4, 1], strides = [1, 1, 1]} : vector<4x4x32xf32> to vector<4x4x1xf32>
    %c91 = arith.constant 91 : index
    %c0_121 = arith.constant 0 : index
    %657 = vector.load %arg2[%c91, %c0_121] : memref<144x32xf32, #tpu.memory_space<vmem>>, vector<1x32xf32>
    %658 = vector.shape_cast %657 : vector<1x32xf32> to vector<1x1x32xf32>
    %659 = vector.broadcast %656 : vector<4x4x1xf32> to vector<4x4x32xf32>
    %660 = vector.broadcast %658 : vector<1x1x32xf32> to vector<4x4x32xf32>
    %661 = arith.mulf %659, %660 : vector<4x4x32xf32>
    %662 = arith.addf %655, %661 : vector<4x4x32xf32>
    %663 = vector.extract_strided_slice %578 {offsets = [0, 0, 12], sizes = [4, 4, 1], strides = [1, 1, 1]} : vector<4x4x32xf32> to vector<4x4x1xf32>
    %c92 = arith.constant 92 : index
    %c0_122 = arith.constant 0 : index
    %664 = vector.load %arg2[%c92, %c0_122] : memref<144x32xf32, #tpu.memory_space<vmem>>, vector<1x32xf32>
    %665 = vector.shape_cast %664 : vector<1x32xf32> to vector<1x1x32xf32>
    %666 = vector.broadcast %663 : vector<4x4x1xf32> to vector<4x4x32xf32>
    %667 = vector.broadcast %665 : vector<1x1x32xf32> to vector<4x4x32xf32>
    %668 = arith.mulf %666, %667 : vector<4x4x32xf32>
    %669 = arith.addf %662, %668 : vector<4x4x32xf32>
    %670 = vector.extract_strided_slice %578 {offsets = [0, 0, 13], sizes = [4, 4, 1], strides = [1, 1, 1]} : vector<4x4x32xf32> to vector<4x4x1xf32>
    %c93 = arith.constant 93 : index
    %c0_123 = arith.constant 0 : index
    %671 = vector.load %arg2[%c93, %c0_123] : memref<144x32xf32, #tpu.memory_space<vmem>>, vector<1x32xf32>
    %672 = vector.shape_cast %671 : vector<1x32xf32> to vector<1x1x32xf32>
    %673 = vector.broadcast %670 : vector<4x4x1xf32> to vector<4x4x32xf32>
    %674 = vector.broadcast %672 : vector<1x1x32xf32> to vector<4x4x32xf32>
    %675 = arith.mulf %673, %674 : vector<4x4x32xf32>
    %676 = arith.addf %669, %675 : vector<4x4x32xf32>
    %677 = vector.extract_strided_slice %578 {offsets = [0, 0, 14], sizes = [4, 4, 1], strides = [1, 1, 1]} : vector<4x4x32xf32> to vector<4x4x1xf32>
    %c94 = arith.constant 94 : index
    %c0_124 = arith.constant 0 : index
    %678 = vector.load %arg2[%c94, %c0_124] : memref<144x32xf32, #tpu.memory_space<vmem>>, vector<1x32xf32>
    %679 = vector.shape_cast %678 : vector<1x32xf32> to vector<1x1x32xf32>
    %680 = vector.broadcast %677 : vector<4x4x1xf32> to vector<4x4x32xf32>
    %681 = vector.broadcast %679 : vector<1x1x32xf32> to vector<4x4x32xf32>
    %682 = arith.mulf %680, %681 : vector<4x4x32xf32>
    %683 = arith.addf %676, %682 : vector<4x4x32xf32>
    %684 = vector.extract_strided_slice %578 {offsets = [0, 0, 15], sizes = [4, 4, 1], strides = [1, 1, 1]} : vector<4x4x32xf32> to vector<4x4x1xf32>
    %c95 = arith.constant 95 : index
    %c0_125 = arith.constant 0 : index
    %685 = vector.load %arg2[%c95, %c0_125] : memref<144x32xf32, #tpu.memory_space<vmem>>, vector<1x32xf32>
    %686 = vector.shape_cast %685 : vector<1x32xf32> to vector<1x1x32xf32>
    %687 = vector.broadcast %684 : vector<4x4x1xf32> to vector<4x4x32xf32>
    %688 = vector.broadcast %686 : vector<1x1x32xf32> to vector<4x4x32xf32>
    %689 = arith.mulf %687, %688 : vector<4x4x32xf32>
    %690 = arith.addf %683, %689 : vector<4x4x32xf32>
    %c0_126 = arith.constant 0 : index
    %c1_127 = arith.constant 1 : index
    %c0_128 = arith.constant 0 : index
    %c0_129 = arith.constant 0 : index
    %c0_130 = arith.constant 0 : index
    %691 = vector.load %arg1[%c0_126, %c1_127, %c0_128, %c0_129, %c0_130] : memref<1x5x2x5x32xbf16, #tpu.memory_space<vmem>>, vector<1x4x1x4x32xbf16>
    %692 = vector.shape_cast %691 : vector<1x4x1x4x32xbf16> to vector<4x4x32xbf16>
    %693 = arith.extf %692 : vector<4x4x32xbf16> to vector<4x4x32xf32>
    %694 = vector.extract_strided_slice %693 {offsets = [0, 0, 0], sizes = [4, 4, 1], strides = [1, 1, 1]} : vector<4x4x32xf32> to vector<4x4x1xf32>
    %c96 = arith.constant 96 : index
    %c0_131 = arith.constant 0 : index
    %695 = vector.load %arg2[%c96, %c0_131] : memref<144x32xf32, #tpu.memory_space<vmem>>, vector<1x32xf32>
    %696 = vector.shape_cast %695 : vector<1x32xf32> to vector<1x1x32xf32>
    %697 = vector.broadcast %694 : vector<4x4x1xf32> to vector<4x4x32xf32>
    %698 = vector.broadcast %696 : vector<1x1x32xf32> to vector<4x4x32xf32>
    %699 = arith.mulf %697, %698 : vector<4x4x32xf32>
    %700 = arith.addf %690, %699 : vector<4x4x32xf32>
    %701 = vector.extract_strided_slice %693 {offsets = [0, 0, 1], sizes = [4, 4, 1], strides = [1, 1, 1]} : vector<4x4x32xf32> to vector<4x4x1xf32>
    %c97 = arith.constant 97 : index
    %c0_132 = arith.constant 0 : index
    %702 = vector.load %arg2[%c97, %c0_132] : memref<144x32xf32, #tpu.memory_space<vmem>>, vector<1x32xf32>
    %703 = vector.shape_cast %702 : vector<1x32xf32> to vector<1x1x32xf32>
    %704 = vector.broadcast %701 : vector<4x4x1xf32> to vector<4x4x32xf32>
    %705 = vector.broadcast %703 : vector<1x1x32xf32> to vector<4x4x32xf32>
    %706 = arith.mulf %704, %705 : vector<4x4x32xf32>
    %707 = arith.addf %700, %706 : vector<4x4x32xf32>
    %708 = vector.extract_strided_slice %693 {offsets = [0, 0, 2], sizes = [4, 4, 1], strides = [1, 1, 1]} : vector<4x4x32xf32> to vector<4x4x1xf32>
    %c98 = arith.constant 98 : index
    %c0_133 = arith.constant 0 : index
    %709 = vector.load %arg2[%c98, %c0_133] : memref<144x32xf32, #tpu.memory_space<vmem>>, vector<1x32xf32>
    %710 = vector.shape_cast %709 : vector<1x32xf32> to vector<1x1x32xf32>
    %711 = vector.broadcast %708 : vector<4x4x1xf32> to vector<4x4x32xf32>
    %712 = vector.broadcast %710 : vector<1x1x32xf32> to vector<4x4x32xf32>
    %713 = arith.mulf %711, %712 : vector<4x4x32xf32>
    %714 = arith.addf %707, %713 : vector<4x4x32xf32>
    %715 = vector.extract_strided_slice %693 {offsets = [0, 0, 3], sizes = [4, 4, 1], strides = [1, 1, 1]} : vector<4x4x32xf32> to vector<4x4x1xf32>
    %c99 = arith.constant 99 : index
    %c0_134 = arith.constant 0 : index
    %716 = vector.load %arg2[%c99, %c0_134] : memref<144x32xf32, #tpu.memory_space<vmem>>, vector<1x32xf32>
    %717 = vector.shape_cast %716 : vector<1x32xf32> to vector<1x1x32xf32>
    %718 = vector.broadcast %715 : vector<4x4x1xf32> to vector<4x4x32xf32>
    %719 = vector.broadcast %717 : vector<1x1x32xf32> to vector<4x4x32xf32>
    %720 = arith.mulf %718, %719 : vector<4x4x32xf32>
    %721 = arith.addf %714, %720 : vector<4x4x32xf32>
    %722 = vector.extract_strided_slice %693 {offsets = [0, 0, 4], sizes = [4, 4, 1], strides = [1, 1, 1]} : vector<4x4x32xf32> to vector<4x4x1xf32>
    %c100 = arith.constant 100 : index
    %c0_135 = arith.constant 0 : index
    %723 = vector.load %arg2[%c100, %c0_135] : memref<144x32xf32, #tpu.memory_space<vmem>>, vector<1x32xf32>
    %724 = vector.shape_cast %723 : vector<1x32xf32> to vector<1x1x32xf32>
    %725 = vector.broadcast %722 : vector<4x4x1xf32> to vector<4x4x32xf32>
    %726 = vector.broadcast %724 : vector<1x1x32xf32> to vector<4x4x32xf32>
    %727 = arith.mulf %725, %726 : vector<4x4x32xf32>
    %728 = arith.addf %721, %727 : vector<4x4x32xf32>
    %729 = vector.extract_strided_slice %693 {offsets = [0, 0, 5], sizes = [4, 4, 1], strides = [1, 1, 1]} : vector<4x4x32xf32> to vector<4x4x1xf32>
    %c101 = arith.constant 101 : index
    %c0_136 = arith.constant 0 : index
    %730 = vector.load %arg2[%c101, %c0_136] : memref<144x32xf32, #tpu.memory_space<vmem>>, vector<1x32xf32>
    %731 = vector.shape_cast %730 : vector<1x32xf32> to vector<1x1x32xf32>
    %732 = vector.broadcast %729 : vector<4x4x1xf32> to vector<4x4x32xf32>
    %733 = vector.broadcast %731 : vector<1x1x32xf32> to vector<4x4x32xf32>
    %734 = arith.mulf %732, %733 : vector<4x4x32xf32>
    %735 = arith.addf %728, %734 : vector<4x4x32xf32>
    %736 = vector.extract_strided_slice %693 {offsets = [0, 0, 6], sizes = [4, 4, 1], strides = [1, 1, 1]} : vector<4x4x32xf32> to vector<4x4x1xf32>
    %c102 = arith.constant 102 : index
    %c0_137 = arith.constant 0 : index
    %737 = vector.load %arg2[%c102, %c0_137] : memref<144x32xf32, #tpu.memory_space<vmem>>, vector<1x32xf32>
    %738 = vector.shape_cast %737 : vector<1x32xf32> to vector<1x1x32xf32>
    %739 = vector.broadcast %736 : vector<4x4x1xf32> to vector<4x4x32xf32>
    %740 = vector.broadcast %738 : vector<1x1x32xf32> to vector<4x4x32xf32>
    %741 = arith.mulf %739, %740 : vector<4x4x32xf32>
    %742 = arith.addf %735, %741 : vector<4x4x32xf32>
    %743 = vector.extract_strided_slice %693 {offsets = [0, 0, 7], sizes = [4, 4, 1], strides = [1, 1, 1]} : vector<4x4x32xf32> to vector<4x4x1xf32>
    %c103 = arith.constant 103 : index
    %c0_138 = arith.constant 0 : index
    %744 = vector.load %arg2[%c103, %c0_138] : memref<144x32xf32, #tpu.memory_space<vmem>>, vector<1x32xf32>
    %745 = vector.shape_cast %744 : vector<1x32xf32> to vector<1x1x32xf32>
    %746 = vector.broadcast %743 : vector<4x4x1xf32> to vector<4x4x32xf32>
    %747 = vector.broadcast %745 : vector<1x1x32xf32> to vector<4x4x32xf32>
    %748 = arith.mulf %746, %747 : vector<4x4x32xf32>
    %749 = arith.addf %742, %748 : vector<4x4x32xf32>
    %750 = vector.extract_strided_slice %693 {offsets = [0, 0, 8], sizes = [4, 4, 1], strides = [1, 1, 1]} : vector<4x4x32xf32> to vector<4x4x1xf32>
    %c104 = arith.constant 104 : index
    %c0_139 = arith.constant 0 : index
    %751 = vector.load %arg2[%c104, %c0_139] : memref<144x32xf32, #tpu.memory_space<vmem>>, vector<1x32xf32>
    %752 = vector.shape_cast %751 : vector<1x32xf32> to vector<1x1x32xf32>
    %753 = vector.broadcast %750 : vector<4x4x1xf32> to vector<4x4x32xf32>
    %754 = vector.broadcast %752 : vector<1x1x32xf32> to vector<4x4x32xf32>
    %755 = arith.mulf %753, %754 : vector<4x4x32xf32>
    %756 = arith.addf %749, %755 : vector<4x4x32xf32>
    %757 = vector.extract_strided_slice %693 {offsets = [0, 0, 9], sizes = [4, 4, 1], strides = [1, 1, 1]} : vector<4x4x32xf32> to vector<4x4x1xf32>
    %c105 = arith.constant 105 : index
    %c0_140 = arith.constant 0 : index
    %758 = vector.load %arg2[%c105, %c0_140] : memref<144x32xf32, #tpu.memory_space<vmem>>, vector<1x32xf32>
    %759 = vector.shape_cast %758 : vector<1x32xf32> to vector<1x1x32xf32>
    %760 = vector.broadcast %757 : vector<4x4x1xf32> to vector<4x4x32xf32>
    %761 = vector.broadcast %759 : vector<1x1x32xf32> to vector<4x4x32xf32>
    %762 = arith.mulf %760, %761 : vector<4x4x32xf32>
    %763 = arith.addf %756, %762 : vector<4x4x32xf32>
    %764 = vector.extract_strided_slice %693 {offsets = [0, 0, 10], sizes = [4, 4, 1], strides = [1, 1, 1]} : vector<4x4x32xf32> to vector<4x4x1xf32>
    %c106 = arith.constant 106 : index
    %c0_141 = arith.constant 0 : index
    %765 = vector.load %arg2[%c106, %c0_141] : memref<144x32xf32, #tpu.memory_space<vmem>>, vector<1x32xf32>
    %766 = vector.shape_cast %765 : vector<1x32xf32> to vector<1x1x32xf32>
    %767 = vector.broadcast %764 : vector<4x4x1xf32> to vector<4x4x32xf32>
    %768 = vector.broadcast %766 : vector<1x1x32xf32> to vector<4x4x32xf32>
    %769 = arith.mulf %767, %768 : vector<4x4x32xf32>
    %770 = arith.addf %763, %769 : vector<4x4x32xf32>
    %771 = vector.extract_strided_slice %693 {offsets = [0, 0, 11], sizes = [4, 4, 1], strides = [1, 1, 1]} : vector<4x4x32xf32> to vector<4x4x1xf32>
    %c107 = arith.constant 107 : index
    %c0_142 = arith.constant 0 : index
    %772 = vector.load %arg2[%c107, %c0_142] : memref<144x32xf32, #tpu.memory_space<vmem>>, vector<1x32xf32>
    %773 = vector.shape_cast %772 : vector<1x32xf32> to vector<1x1x32xf32>
    %774 = vector.broadcast %771 : vector<4x4x1xf32> to vector<4x4x32xf32>
    %775 = vector.broadcast %773 : vector<1x1x32xf32> to vector<4x4x32xf32>
    %776 = arith.mulf %774, %775 : vector<4x4x32xf32>
    %777 = arith.addf %770, %776 : vector<4x4x32xf32>
    %778 = vector.extract_strided_slice %693 {offsets = [0, 0, 12], sizes = [4, 4, 1], strides = [1, 1, 1]} : vector<4x4x32xf32> to vector<4x4x1xf32>
    %c108 = arith.constant 108 : index
    %c0_143 = arith.constant 0 : index
    %779 = vector.load %arg2[%c108, %c0_143] : memref<144x32xf32, #tpu.memory_space<vmem>>, vector<1x32xf32>
    %780 = vector.shape_cast %779 : vector<1x32xf32> to vector<1x1x32xf32>
    %781 = vector.broadcast %778 : vector<4x4x1xf32> to vector<4x4x32xf32>
    %782 = vector.broadcast %780 : vector<1x1x32xf32> to vector<4x4x32xf32>
    %783 = arith.mulf %781, %782 : vector<4x4x32xf32>
    %784 = arith.addf %777, %783 : vector<4x4x32xf32>
    %785 = vector.extract_strided_slice %693 {offsets = [0, 0, 13], sizes = [4, 4, 1], strides = [1, 1, 1]} : vector<4x4x32xf32> to vector<4x4x1xf32>
    %c109 = arith.constant 109 : index
    %c0_144 = arith.constant 0 : index
    %786 = vector.load %arg2[%c109, %c0_144] : memref<144x32xf32, #tpu.memory_space<vmem>>, vector<1x32xf32>
    %787 = vector.shape_cast %786 : vector<1x32xf32> to vector<1x1x32xf32>
    %788 = vector.broadcast %785 : vector<4x4x1xf32> to vector<4x4x32xf32>
    %789 = vector.broadcast %787 : vector<1x1x32xf32> to vector<4x4x32xf32>
    %790 = arith.mulf %788, %789 : vector<4x4x32xf32>
    %791 = arith.addf %784, %790 : vector<4x4x32xf32>
    %792 = vector.extract_strided_slice %693 {offsets = [0, 0, 14], sizes = [4, 4, 1], strides = [1, 1, 1]} : vector<4x4x32xf32> to vector<4x4x1xf32>
    %c110 = arith.constant 110 : index
    %c0_145 = arith.constant 0 : index
    %793 = vector.load %arg2[%c110, %c0_145] : memref<144x32xf32, #tpu.memory_space<vmem>>, vector<1x32xf32>
    %794 = vector.shape_cast %793 : vector<1x32xf32> to vector<1x1x32xf32>
    %795 = vector.broadcast %792 : vector<4x4x1xf32> to vector<4x4x32xf32>
    %796 = vector.broadcast %794 : vector<1x1x32xf32> to vector<4x4x32xf32>
    %797 = arith.mulf %795, %796 : vector<4x4x32xf32>
    %798 = arith.addf %791, %797 : vector<4x4x32xf32>
    %799 = vector.extract_strided_slice %693 {offsets = [0, 0, 15], sizes = [4, 4, 1], strides = [1, 1, 1]} : vector<4x4x32xf32> to vector<4x4x1xf32>
    %c111 = arith.constant 111 : index
    %c0_146 = arith.constant 0 : index
    %800 = vector.load %arg2[%c111, %c0_146] : memref<144x32xf32, #tpu.memory_space<vmem>>, vector<1x32xf32>
    %801 = vector.shape_cast %800 : vector<1x32xf32> to vector<1x1x32xf32>
    %802 = vector.broadcast %799 : vector<4x4x1xf32> to vector<4x4x32xf32>
    %803 = vector.broadcast %801 : vector<1x1x32xf32> to vector<4x4x32xf32>
    %804 = arith.mulf %802, %803 : vector<4x4x32xf32>
    %805 = arith.addf %798, %804 : vector<4x4x32xf32>
    %c0_147 = arith.constant 0 : index
    %c1_148 = arith.constant 1 : index
    %c0_149 = arith.constant 0 : index
    %c0_150 = arith.constant 0 : index
    %c0_151 = arith.constant 0 : index
    %806 = vector.load %arg1[%c0_147, %c1_148, %c0_149, %c0_150, %c0_151] : memref<1x5x2x5x32xbf16, #tpu.memory_space<vmem>>, vector<1x4x1x4x32xbf16>
    %807 = vector.shape_cast %806 : vector<1x4x1x4x32xbf16> to vector<4x4x32xbf16>
    %808 = arith.extf %807 : vector<4x4x32xbf16> to vector<4x4x32xf32>
    %809 = vector.extract_strided_slice %808 {offsets = [0, 0, 16], sizes = [4, 4, 1], strides = [1, 1, 1]} : vector<4x4x32xf32> to vector<4x4x1xf32>
    %c112 = arith.constant 112 : index
    %c0_152 = arith.constant 0 : index
    %810 = vector.load %arg2[%c112, %c0_152] : memref<144x32xf32, #tpu.memory_space<vmem>>, vector<1x32xf32>
    %811 = vector.shape_cast %810 : vector<1x32xf32> to vector<1x1x32xf32>
    %812 = vector.broadcast %809 : vector<4x4x1xf32> to vector<4x4x32xf32>
    %813 = vector.broadcast %811 : vector<1x1x32xf32> to vector<4x4x32xf32>
    %814 = arith.mulf %812, %813 : vector<4x4x32xf32>
    %815 = arith.addf %805, %814 : vector<4x4x32xf32>
    %816 = vector.extract_strided_slice %808 {offsets = [0, 0, 17], sizes = [4, 4, 1], strides = [1, 1, 1]} : vector<4x4x32xf32> to vector<4x4x1xf32>
    %c113 = arith.constant 113 : index
    %c0_153 = arith.constant 0 : index
    %817 = vector.load %arg2[%c113, %c0_153] : memref<144x32xf32, #tpu.memory_space<vmem>>, vector<1x32xf32>
    %818 = vector.shape_cast %817 : vector<1x32xf32> to vector<1x1x32xf32>
    %819 = vector.broadcast %816 : vector<4x4x1xf32> to vector<4x4x32xf32>
    %820 = vector.broadcast %818 : vector<1x1x32xf32> to vector<4x4x32xf32>
    %821 = arith.mulf %819, %820 : vector<4x4x32xf32>
    %822 = arith.addf %815, %821 : vector<4x4x32xf32>
    %823 = vector.extract_strided_slice %808 {offsets = [0, 0, 18], sizes = [4, 4, 1], strides = [1, 1, 1]} : vector<4x4x32xf32> to vector<4x4x1xf32>
    %c114 = arith.constant 114 : index
    %c0_154 = arith.constant 0 : index
    %824 = vector.load %arg2[%c114, %c0_154] : memref<144x32xf32, #tpu.memory_space<vmem>>, vector<1x32xf32>
    %825 = vector.shape_cast %824 : vector<1x32xf32> to vector<1x1x32xf32>
    %826 = vector.broadcast %823 : vector<4x4x1xf32> to vector<4x4x32xf32>
    %827 = vector.broadcast %825 : vector<1x1x32xf32> to vector<4x4x32xf32>
    %828 = arith.mulf %826, %827 : vector<4x4x32xf32>
    %829 = arith.addf %822, %828 : vector<4x4x32xf32>
    %830 = vector.extract_strided_slice %808 {offsets = [0, 0, 19], sizes = [4, 4, 1], strides = [1, 1, 1]} : vector<4x4x32xf32> to vector<4x4x1xf32>
    %c115 = arith.constant 115 : index
    %c0_155 = arith.constant 0 : index
    %831 = vector.load %arg2[%c115, %c0_155] : memref<144x32xf32, #tpu.memory_space<vmem>>, vector<1x32xf32>
    %832 = vector.shape_cast %831 : vector<1x32xf32> to vector<1x1x32xf32>
    %833 = vector.broadcast %830 : vector<4x4x1xf32> to vector<4x4x32xf32>
    %834 = vector.broadcast %832 : vector<1x1x32xf32> to vector<4x4x32xf32>
    %835 = arith.mulf %833, %834 : vector<4x4x32xf32>
    %836 = arith.addf %829, %835 : vector<4x4x32xf32>
    %837 = vector.extract_strided_slice %808 {offsets = [0, 0, 20], sizes = [4, 4, 1], strides = [1, 1, 1]} : vector<4x4x32xf32> to vector<4x4x1xf32>
    %c116 = arith.constant 116 : index
    %c0_156 = arith.constant 0 : index
    %838 = vector.load %arg2[%c116, %c0_156] : memref<144x32xf32, #tpu.memory_space<vmem>>, vector<1x32xf32>
    %839 = vector.shape_cast %838 : vector<1x32xf32> to vector<1x1x32xf32>
    %840 = vector.broadcast %837 : vector<4x4x1xf32> to vector<4x4x32xf32>
    %841 = vector.broadcast %839 : vector<1x1x32xf32> to vector<4x4x32xf32>
    %842 = arith.mulf %840, %841 : vector<4x4x32xf32>
    %843 = arith.addf %836, %842 : vector<4x4x32xf32>
    %844 = vector.extract_strided_slice %808 {offsets = [0, 0, 21], sizes = [4, 4, 1], strides = [1, 1, 1]} : vector<4x4x32xf32> to vector<4x4x1xf32>
    %c117 = arith.constant 117 : index
    %c0_157 = arith.constant 0 : index
    %845 = vector.load %arg2[%c117, %c0_157] : memref<144x32xf32, #tpu.memory_space<vmem>>, vector<1x32xf32>
    %846 = vector.shape_cast %845 : vector<1x32xf32> to vector<1x1x32xf32>
    %847 = vector.broadcast %844 : vector<4x4x1xf32> to vector<4x4x32xf32>
    %848 = vector.broadcast %846 : vector<1x1x32xf32> to vector<4x4x32xf32>
    %849 = arith.mulf %847, %848 : vector<4x4x32xf32>
    %850 = arith.addf %843, %849 : vector<4x4x32xf32>
    %851 = vector.extract_strided_slice %808 {offsets = [0, 0, 22], sizes = [4, 4, 1], strides = [1, 1, 1]} : vector<4x4x32xf32> to vector<4x4x1xf32>
    %c118 = arith.constant 118 : index
    %c0_158 = arith.constant 0 : index
    %852 = vector.load %arg2[%c118, %c0_158] : memref<144x32xf32, #tpu.memory_space<vmem>>, vector<1x32xf32>
    %853 = vector.shape_cast %852 : vector<1x32xf32> to vector<1x1x32xf32>
    %854 = vector.broadcast %851 : vector<4x4x1xf32> to vector<4x4x32xf32>
    %855 = vector.broadcast %853 : vector<1x1x32xf32> to vector<4x4x32xf32>
    %856 = arith.mulf %854, %855 : vector<4x4x32xf32>
    %857 = arith.addf %850, %856 : vector<4x4x32xf32>
    %858 = vector.extract_strided_slice %808 {offsets = [0, 0, 23], sizes = [4, 4, 1], strides = [1, 1, 1]} : vector<4x4x32xf32> to vector<4x4x1xf32>
    %c119 = arith.constant 119 : index
    %c0_159 = arith.constant 0 : index
    %859 = vector.load %arg2[%c119, %c0_159] : memref<144x32xf32, #tpu.memory_space<vmem>>, vector<1x32xf32>
    %860 = vector.shape_cast %859 : vector<1x32xf32> to vector<1x1x32xf32>
    %861 = vector.broadcast %858 : vector<4x4x1xf32> to vector<4x4x32xf32>
    %862 = vector.broadcast %860 : vector<1x1x32xf32> to vector<4x4x32xf32>
    %863 = arith.mulf %861, %862 : vector<4x4x32xf32>
    %864 = arith.addf %857, %863 : vector<4x4x32xf32>
    %865 = vector.extract_strided_slice %808 {offsets = [0, 0, 24], sizes = [4, 4, 1], strides = [1, 1, 1]} : vector<4x4x32xf32> to vector<4x4x1xf32>
    %c120 = arith.constant 120 : index
    %c0_160 = arith.constant 0 : index
    %866 = vector.load %arg2[%c120, %c0_160] : memref<144x32xf32, #tpu.memory_space<vmem>>, vector<1x32xf32>
    %867 = vector.shape_cast %866 : vector<1x32xf32> to vector<1x1x32xf32>
    %868 = vector.broadcast %865 : vector<4x4x1xf32> to vector<4x4x32xf32>
    %869 = vector.broadcast %867 : vector<1x1x32xf32> to vector<4x4x32xf32>
    %870 = arith.mulf %868, %869 : vector<4x4x32xf32>
    %871 = arith.addf %864, %870 : vector<4x4x32xf32>
    %872 = vector.extract_strided_slice %808 {offsets = [0, 0, 25], sizes = [4, 4, 1], strides = [1, 1, 1]} : vector<4x4x32xf32> to vector<4x4x1xf32>
    %c121 = arith.constant 121 : index
    %c0_161 = arith.constant 0 : index
    %873 = vector.load %arg2[%c121, %c0_161] : memref<144x32xf32, #tpu.memory_space<vmem>>, vector<1x32xf32>
    %874 = vector.shape_cast %873 : vector<1x32xf32> to vector<1x1x32xf32>
    %875 = vector.broadcast %872 : vector<4x4x1xf32> to vector<4x4x32xf32>
    %876 = vector.broadcast %874 : vector<1x1x32xf32> to vector<4x4x32xf32>
    %877 = arith.mulf %875, %876 : vector<4x4x32xf32>
    %878 = arith.addf %871, %877 : vector<4x4x32xf32>
    %879 = vector.extract_strided_slice %808 {offsets = [0, 0, 26], sizes = [4, 4, 1], strides = [1, 1, 1]} : vector<4x4x32xf32> to vector<4x4x1xf32>
    %c122 = arith.constant 122 : index
    %c0_162 = arith.constant 0 : index
    %880 = vector.load %arg2[%c122, %c0_162] : memref<144x32xf32, #tpu.memory_space<vmem>>, vector<1x32xf32>
    %881 = vector.shape_cast %880 : vector<1x32xf32> to vector<1x1x32xf32>
    %882 = vector.broadcast %879 : vector<4x4x1xf32> to vector<4x4x32xf32>
    %883 = vector.broadcast %881 : vector<1x1x32xf32> to vector<4x4x32xf32>
    %884 = arith.mulf %882, %883 : vector<4x4x32xf32>
    %885 = arith.addf %878, %884 : vector<4x4x32xf32>
    %886 = vector.extract_strided_slice %808 {offsets = [0, 0, 27], sizes = [4, 4, 1], strides = [1, 1, 1]} : vector<4x4x32xf32> to vector<4x4x1xf32>
    %c123 = arith.constant 123 : index
    %c0_163 = arith.constant 0 : index
    %887 = vector.load %arg2[%c123, %c0_163] : memref<144x32xf32, #tpu.memory_space<vmem>>, vector<1x32xf32>
    %888 = vector.shape_cast %887 : vector<1x32xf32> to vector<1x1x32xf32>
    %889 = vector.broadcast %886 : vector<4x4x1xf32> to vector<4x4x32xf32>
    %890 = vector.broadcast %888 : vector<1x1x32xf32> to vector<4x4x32xf32>
    %891 = arith.mulf %889, %890 : vector<4x4x32xf32>
    %892 = arith.addf %885, %891 : vector<4x4x32xf32>
    %893 = vector.extract_strided_slice %808 {offsets = [0, 0, 28], sizes = [4, 4, 1], strides = [1, 1, 1]} : vector<4x4x32xf32> to vector<4x4x1xf32>
    %c124 = arith.constant 124 : index
    %c0_164 = arith.constant 0 : index
    %894 = vector.load %arg2[%c124, %c0_164] : memref<144x32xf32, #tpu.memory_space<vmem>>, vector<1x32xf32>
    %895 = vector.shape_cast %894 : vector<1x32xf32> to vector<1x1x32xf32>
    %896 = vector.broadcast %893 : vector<4x4x1xf32> to vector<4x4x32xf32>
    %897 = vector.broadcast %895 : vector<1x1x32xf32> to vector<4x4x32xf32>
    %898 = arith.mulf %896, %897 : vector<4x4x32xf32>
    %899 = arith.addf %892, %898 : vector<4x4x32xf32>
    %900 = vector.extract_strided_slice %808 {offsets = [0, 0, 29], sizes = [4, 4, 1], strides = [1, 1, 1]} : vector<4x4x32xf32> to vector<4x4x1xf32>
    %c125 = arith.constant 125 : index
    %c0_165 = arith.constant 0 : index
    %901 = vector.load %arg2[%c125, %c0_165] : memref<144x32xf32, #tpu.memory_space<vmem>>, vector<1x32xf32>
    %902 = vector.shape_cast %901 : vector<1x32xf32> to vector<1x1x32xf32>
    %903 = vector.broadcast %900 : vector<4x4x1xf32> to vector<4x4x32xf32>
    %904 = vector.broadcast %902 : vector<1x1x32xf32> to vector<4x4x32xf32>
    %905 = arith.mulf %903, %904 : vector<4x4x32xf32>
    %906 = arith.addf %899, %905 : vector<4x4x32xf32>
    %907 = vector.extract_strided_slice %808 {offsets = [0, 0, 30], sizes = [4, 4, 1], strides = [1, 1, 1]} : vector<4x4x32xf32> to vector<4x4x1xf32>
    %c126 = arith.constant 126 : index
    %c0_166 = arith.constant 0 : index
    %908 = vector.load %arg2[%c126, %c0_166] : memref<144x32xf32, #tpu.memory_space<vmem>>, vector<1x32xf32>
    %909 = vector.shape_cast %908 : vector<1x32xf32> to vector<1x1x32xf32>
    %910 = vector.broadcast %907 : vector<4x4x1xf32> to vector<4x4x32xf32>
    %911 = vector.broadcast %909 : vector<1x1x32xf32> to vector<4x4x32xf32>
    %912 = arith.mulf %910, %911 : vector<4x4x32xf32>
    %913 = arith.addf %906, %912 : vector<4x4x32xf32>
    %914 = vector.extract_strided_slice %808 {offsets = [0, 0, 31], sizes = [4, 4, 1], strides = [1, 1, 1]} : vector<4x4x32xf32> to vector<4x4x1xf32>
    %c127 = arith.constant 127 : index
    %c0_167 = arith.constant 0 : index
    %915 = vector.load %arg2[%c127, %c0_167] : memref<144x32xf32, #tpu.memory_space<vmem>>, vector<1x32xf32>
    %916 = vector.shape_cast %915 : vector<1x32xf32> to vector<1x1x32xf32>
    %917 = vector.broadcast %914 : vector<4x4x1xf32> to vector<4x4x32xf32>
    %918 = vector.broadcast %916 : vector<1x1x32xf32> to vector<4x4x32xf32>
    %919 = arith.mulf %917, %918 : vector<4x4x32xf32>
    %920 = arith.addf %913, %919 : vector<4x4x32xf32>
    %c0_168 = arith.constant 0 : index
    %c1_169 = arith.constant 1 : index
    %c0_170 = arith.constant 0 : index
    %c1_171 = arith.constant 1 : index
    %c0_172 = arith.constant 0 : index
    %921 = vector.load %arg1[%c0_168, %c1_169, %c0_170, %c1_171, %c0_172] : memref<1x5x2x5x32xbf16, #tpu.memory_space<vmem>>, vector<1x4x1x4x32xbf16>
    %922 = vector.shape_cast %921 : vector<1x4x1x4x32xbf16> to vector<4x4x32xbf16>
    %923 = arith.extf %922 : vector<4x4x32xbf16> to vector<4x4x32xf32>
    %924 = vector.extract_strided_slice %923 {offsets = [0, 0, 0], sizes = [4, 4, 1], strides = [1, 1, 1]} : vector<4x4x32xf32> to vector<4x4x1xf32>
    %c128 = arith.constant 128 : index
    %c0_173 = arith.constant 0 : index
    %925 = vector.load %arg2[%c128, %c0_173] : memref<144x32xf32, #tpu.memory_space<vmem>>, vector<1x32xf32>
    %926 = vector.shape_cast %925 : vector<1x32xf32> to vector<1x1x32xf32>
    %927 = vector.broadcast %924 : vector<4x4x1xf32> to vector<4x4x32xf32>
    %928 = vector.broadcast %926 : vector<1x1x32xf32> to vector<4x4x32xf32>
    %929 = arith.mulf %927, %928 : vector<4x4x32xf32>
    %930 = arith.addf %920, %929 : vector<4x4x32xf32>
    %931 = vector.extract_strided_slice %923 {offsets = [0, 0, 1], sizes = [4, 4, 1], strides = [1, 1, 1]} : vector<4x4x32xf32> to vector<4x4x1xf32>
    %c129 = arith.constant 129 : index
    %c0_174 = arith.constant 0 : index
    %932 = vector.load %arg2[%c129, %c0_174] : memref<144x32xf32, #tpu.memory_space<vmem>>, vector<1x32xf32>
    %933 = vector.shape_cast %932 : vector<1x32xf32> to vector<1x1x32xf32>
    %934 = vector.broadcast %931 : vector<4x4x1xf32> to vector<4x4x32xf32>
    %935 = vector.broadcast %933 : vector<1x1x32xf32> to vector<4x4x32xf32>
    %936 = arith.mulf %934, %935 : vector<4x4x32xf32>
    %937 = arith.addf %930, %936 : vector<4x4x32xf32>
    %938 = vector.extract_strided_slice %923 {offsets = [0, 0, 2], sizes = [4, 4, 1], strides = [1, 1, 1]} : vector<4x4x32xf32> to vector<4x4x1xf32>
    %c130 = arith.constant 130 : index
    %c0_175 = arith.constant 0 : index
    %939 = vector.load %arg2[%c130, %c0_175] : memref<144x32xf32, #tpu.memory_space<vmem>>, vector<1x32xf32>
    %940 = vector.shape_cast %939 : vector<1x32xf32> to vector<1x1x32xf32>
    %941 = vector.broadcast %938 : vector<4x4x1xf32> to vector<4x4x32xf32>
    %942 = vector.broadcast %940 : vector<1x1x32xf32> to vector<4x4x32xf32>
    %943 = arith.mulf %941, %942 : vector<4x4x32xf32>
    %944 = arith.addf %937, %943 : vector<4x4x32xf32>
    %945 = vector.extract_strided_slice %923 {offsets = [0, 0, 3], sizes = [4, 4, 1], strides = [1, 1, 1]} : vector<4x4x32xf32> to vector<4x4x1xf32>
    %c131 = arith.constant 131 : index
    %c0_176 = arith.constant 0 : index
    %946 = vector.load %arg2[%c131, %c0_176] : memref<144x32xf32, #tpu.memory_space<vmem>>, vector<1x32xf32>
    %947 = vector.shape_cast %946 : vector<1x32xf32> to vector<1x1x32xf32>
    %948 = vector.broadcast %945 : vector<4x4x1xf32> to vector<4x4x32xf32>
    %949 = vector.broadcast %947 : vector<1x1x32xf32> to vector<4x4x32xf32>
    %950 = arith.mulf %948, %949 : vector<4x4x32xf32>
    %951 = arith.addf %944, %950 : vector<4x4x32xf32>
    %952 = vector.extract_strided_slice %923 {offsets = [0, 0, 4], sizes = [4, 4, 1], strides = [1, 1, 1]} : vector<4x4x32xf32> to vector<4x4x1xf32>
    %c132 = arith.constant 132 : index
    %c0_177 = arith.constant 0 : index
    %953 = vector.load %arg2[%c132, %c0_177] : memref<144x32xf32, #tpu.memory_space<vmem>>, vector<1x32xf32>
    %954 = vector.shape_cast %953 : vector<1x32xf32> to vector<1x1x32xf32>
    %955 = vector.broadcast %952 : vector<4x4x1xf32> to vector<4x4x32xf32>
    %956 = vector.broadcast %954 : vector<1x1x32xf32> to vector<4x4x32xf32>
    %957 = arith.mulf %955, %956 : vector<4x4x32xf32>
    %958 = arith.addf %951, %957 : vector<4x4x32xf32>
    %959 = vector.extract_strided_slice %923 {offsets = [0, 0, 5], sizes = [4, 4, 1], strides = [1, 1, 1]} : vector<4x4x32xf32> to vector<4x4x1xf32>
    %c133 = arith.constant 133 : index
    %c0_178 = arith.constant 0 : index
    %960 = vector.load %arg2[%c133, %c0_178] : memref<144x32xf32, #tpu.memory_space<vmem>>, vector<1x32xf32>
    %961 = vector.shape_cast %960 : vector<1x32xf32> to vector<1x1x32xf32>
    %962 = vector.broadcast %959 : vector<4x4x1xf32> to vector<4x4x32xf32>
    %963 = vector.broadcast %961 : vector<1x1x32xf32> to vector<4x4x32xf32>
    %964 = arith.mulf %962, %963 : vector<4x4x32xf32>
    %965 = arith.addf %958, %964 : vector<4x4x32xf32>
    %966 = vector.extract_strided_slice %923 {offsets = [0, 0, 6], sizes = [4, 4, 1], strides = [1, 1, 1]} : vector<4x4x32xf32> to vector<4x4x1xf32>
    %c134 = arith.constant 134 : index
    %c0_179 = arith.constant 0 : index
    %967 = vector.load %arg2[%c134, %c0_179] : memref<144x32xf32, #tpu.memory_space<vmem>>, vector<1x32xf32>
    %968 = vector.shape_cast %967 : vector<1x32xf32> to vector<1x1x32xf32>
    %969 = vector.broadcast %966 : vector<4x4x1xf32> to vector<4x4x32xf32>
    %970 = vector.broadcast %968 : vector<1x1x32xf32> to vector<4x4x32xf32>
    %971 = arith.mulf %969, %970 : vector<4x4x32xf32>
    %972 = arith.addf %965, %971 : vector<4x4x32xf32>
    %973 = vector.extract_strided_slice %923 {offsets = [0, 0, 7], sizes = [4, 4, 1], strides = [1, 1, 1]} : vector<4x4x32xf32> to vector<4x4x1xf32>
    %c135 = arith.constant 135 : index
    %c0_180 = arith.constant 0 : index
    %974 = vector.load %arg2[%c135, %c0_180] : memref<144x32xf32, #tpu.memory_space<vmem>>, vector<1x32xf32>
    %975 = vector.shape_cast %974 : vector<1x32xf32> to vector<1x1x32xf32>
    %976 = vector.broadcast %973 : vector<4x4x1xf32> to vector<4x4x32xf32>
    %977 = vector.broadcast %975 : vector<1x1x32xf32> to vector<4x4x32xf32>
    %978 = arith.mulf %976, %977 : vector<4x4x32xf32>
    %979 = arith.addf %972, %978 : vector<4x4x32xf32>
    %980 = vector.extract_strided_slice %923 {offsets = [0, 0, 8], sizes = [4, 4, 1], strides = [1, 1, 1]} : vector<4x4x32xf32> to vector<4x4x1xf32>
    %c136 = arith.constant 136 : index
    %c0_181 = arith.constant 0 : index
    %981 = vector.load %arg2[%c136, %c0_181] : memref<144x32xf32, #tpu.memory_space<vmem>>, vector<1x32xf32>
    %982 = vector.shape_cast %981 : vector<1x32xf32> to vector<1x1x32xf32>
    %983 = vector.broadcast %980 : vector<4x4x1xf32> to vector<4x4x32xf32>
    %984 = vector.broadcast %982 : vector<1x1x32xf32> to vector<4x4x32xf32>
    %985 = arith.mulf %983, %984 : vector<4x4x32xf32>
    %986 = arith.addf %979, %985 : vector<4x4x32xf32>
    %987 = vector.extract_strided_slice %923 {offsets = [0, 0, 9], sizes = [4, 4, 1], strides = [1, 1, 1]} : vector<4x4x32xf32> to vector<4x4x1xf32>
    %c137 = arith.constant 137 : index
    %c0_182 = arith.constant 0 : index
    %988 = vector.load %arg2[%c137, %c0_182] : memref<144x32xf32, #tpu.memory_space<vmem>>, vector<1x32xf32>
    %989 = vector.shape_cast %988 : vector<1x32xf32> to vector<1x1x32xf32>
    %990 = vector.broadcast %987 : vector<4x4x1xf32> to vector<4x4x32xf32>
    %991 = vector.broadcast %989 : vector<1x1x32xf32> to vector<4x4x32xf32>
    %992 = arith.mulf %990, %991 : vector<4x4x32xf32>
    %993 = arith.addf %986, %992 : vector<4x4x32xf32>
    %994 = vector.extract_strided_slice %923 {offsets = [0, 0, 10], sizes = [4, 4, 1], strides = [1, 1, 1]} : vector<4x4x32xf32> to vector<4x4x1xf32>
    %c138 = arith.constant 138 : index
    %c0_183 = arith.constant 0 : index
    %995 = vector.load %arg2[%c138, %c0_183] : memref<144x32xf32, #tpu.memory_space<vmem>>, vector<1x32xf32>
    %996 = vector.shape_cast %995 : vector<1x32xf32> to vector<1x1x32xf32>
    %997 = vector.broadcast %994 : vector<4x4x1xf32> to vector<4x4x32xf32>
    %998 = vector.broadcast %996 : vector<1x1x32xf32> to vector<4x4x32xf32>
    %999 = arith.mulf %997, %998 : vector<4x4x32xf32>
    %1000 = arith.addf %993, %999 : vector<4x4x32xf32>
    %1001 = vector.extract_strided_slice %923 {offsets = [0, 0, 11], sizes = [4, 4, 1], strides = [1, 1, 1]} : vector<4x4x32xf32> to vector<4x4x1xf32>
    %c139 = arith.constant 139 : index
    %c0_184 = arith.constant 0 : index
    %1002 = vector.load %arg2[%c139, %c0_184] : memref<144x32xf32, #tpu.memory_space<vmem>>, vector<1x32xf32>
    %1003 = vector.shape_cast %1002 : vector<1x32xf32> to vector<1x1x32xf32>
    %1004 = vector.broadcast %1001 : vector<4x4x1xf32> to vector<4x4x32xf32>
    %1005 = vector.broadcast %1003 : vector<1x1x32xf32> to vector<4x4x32xf32>
    %1006 = arith.mulf %1004, %1005 : vector<4x4x32xf32>
    %1007 = arith.addf %1000, %1006 : vector<4x4x32xf32>
    %1008 = vector.extract_strided_slice %923 {offsets = [0, 0, 12], sizes = [4, 4, 1], strides = [1, 1, 1]} : vector<4x4x32xf32> to vector<4x4x1xf32>
    %c140 = arith.constant 140 : index
    %c0_185 = arith.constant 0 : index
    %1009 = vector.load %arg2[%c140, %c0_185] : memref<144x32xf32, #tpu.memory_space<vmem>>, vector<1x32xf32>
    %1010 = vector.shape_cast %1009 : vector<1x32xf32> to vector<1x1x32xf32>
    %1011 = vector.broadcast %1008 : vector<4x4x1xf32> to vector<4x4x32xf32>
    %1012 = vector.broadcast %1010 : vector<1x1x32xf32> to vector<4x4x32xf32>
    %1013 = arith.mulf %1011, %1012 : vector<4x4x32xf32>
    %1014 = arith.addf %1007, %1013 : vector<4x4x32xf32>
    %1015 = vector.extract_strided_slice %923 {offsets = [0, 0, 13], sizes = [4, 4, 1], strides = [1, 1, 1]} : vector<4x4x32xf32> to vector<4x4x1xf32>
    %c141 = arith.constant 141 : index
    %c0_186 = arith.constant 0 : index
    %1016 = vector.load %arg2[%c141, %c0_186] : memref<144x32xf32, #tpu.memory_space<vmem>>, vector<1x32xf32>
    %1017 = vector.shape_cast %1016 : vector<1x32xf32> to vector<1x1x32xf32>
    %1018 = vector.broadcast %1015 : vector<4x4x1xf32> to vector<4x4x32xf32>
    %1019 = vector.broadcast %1017 : vector<1x1x32xf32> to vector<4x4x32xf32>
    %1020 = arith.mulf %1018, %1019 : vector<4x4x32xf32>
    %1021 = arith.addf %1014, %1020 : vector<4x4x32xf32>
    %1022 = vector.extract_strided_slice %923 {offsets = [0, 0, 14], sizes = [4, 4, 1], strides = [1, 1, 1]} : vector<4x4x32xf32> to vector<4x4x1xf32>
    %c142 = arith.constant 142 : index
    %c0_187 = arith.constant 0 : index
    %1023 = vector.load %arg2[%c142, %c0_187] : memref<144x32xf32, #tpu.memory_space<vmem>>, vector<1x32xf32>
    %1024 = vector.shape_cast %1023 : vector<1x32xf32> to vector<1x1x32xf32>
    %1025 = vector.broadcast %1022 : vector<4x4x1xf32> to vector<4x4x32xf32>
    %1026 = vector.broadcast %1024 : vector<1x1x32xf32> to vector<4x4x32xf32>
    %1027 = arith.mulf %1025, %1026 : vector<4x4x32xf32>
    %1028 = arith.addf %1021, %1027 : vector<4x4x32xf32>
    %1029 = vector.extract_strided_slice %923 {offsets = [0, 0, 15], sizes = [4, 4, 1], strides = [1, 1, 1]} : vector<4x4x32xf32> to vector<4x4x1xf32>
    %c143 = arith.constant 143 : index
    %c0_188 = arith.constant 0 : index
    %1030 = vector.load %arg2[%c143, %c0_188] : memref<144x32xf32, #tpu.memory_space<vmem>>, vector<1x32xf32>
    %1031 = vector.shape_cast %1030 : vector<1x32xf32> to vector<1x1x32xf32>
    %1032 = vector.broadcast %1029 : vector<4x4x1xf32> to vector<4x4x32xf32>
    %1033 = vector.broadcast %1031 : vector<1x1x32xf32> to vector<4x4x32xf32>
    %1034 = arith.mulf %1032, %1033 : vector<4x4x32xf32>
    %1035 = arith.addf %1028, %1034 : vector<4x4x32xf32>
    %c0_189 = arith.constant 0 : index
    %c0_190 = arith.constant 0 : index
    %1036 = vector.load %arg3[%c0_189, %c0_190] : memref<1x32xf32, #tpu.memory_space<vmem>>, vector<1x32xf32>
    %1037 = vector.shape_cast %1036 : vector<1x32xf32> to vector<1x1x32xf32>
    %1038 = vector.broadcast %1037 : vector<1x1x32xf32> to vector<4x4x32xf32>
    %1039 = arith.addf %1035, %1038 : vector<4x4x32xf32>
    %cst_191 = arith.constant 0.000000e+00 : f32
    %1040 = vector.broadcast %cst_191 : f32 to vector<4x4x32xf32>
    %1041 = arith.maximumf %1039, %1040 : vector<4x4x32xf32>
    %1042 = arith.truncf %1041 : vector<4x4x32xf32> to vector<4x4x32xbf16>
    %c0_192 = arith.constant 0 : index
    %c0_193 = arith.constant 0 : index
    %c0_194 = arith.constant 0 : index
    %c0_195 = arith.constant 0 : index
    %1043 = vector.load %arg4[%c0_192, %c0_193, %c0_194, %c0_195] : memref<1x4x4x32xbf16, #tpu.memory_space<vmem>>, vector<1x4x4x32xbf16>
    %1044 = vector.shape_cast %1043 : vector<1x4x4x32xbf16> to vector<4x4x32xbf16>
    %1045 = vector.shape_cast %1042 : vector<4x4x32xbf16> to vector<1x4x4x32xbf16>
    tpu.vector_store %arg4[%c0_192, %c0_193, %c0_194, %c0_195], %1045 {strides = array<i32>} : memref<1x4x4x32xbf16, #tpu.memory_space<vmem>>, vector<1x4x4x32xbf16>,
    return
  }
  func.func @transform_0(%arg0: i32) -> (i32, i32, i32, i32, i32) {
    %c0_i32 = arith.constant 0 : i32
    %c0_i32_0 = arith.constant 0 : i32
    %c0_i32_1 = arith.constant 0 : i32
    %c0_i32_2 = arith.constant 0 : i32
    %c0_i32_3 = arith.constant 0 : i32
    return %arg0, %c0_i32, %c0_i32_0, %c0_i32_1, %c0_i32_2 : i32, i32, i32, i32, i32
  }
  func.func @transform_1(%arg0: i32) -> (i32, i32) {
    %c0_i32 = arith.constant 0 : i32
    %c0_i32_0 = arith.constant 0 : i32
    %c0_i32_1 = arith.constant 0 : i32
    return %c0_i32, %c0_i32_0 : i32, i32
  }
  func.func @transform_2(%arg0: i32) -> (i32, i32) {
    %c0_i32 = arith.constant 0 : i32
    %c0_i32_0 = arith.constant 0 : i32
    %c0_i32_1 = arith.constant 0 : i32
    return %c0_i32, %c0_i32_0 : i32, i32
  }
  func.func @transform_3(%arg0: i32) -> (i32, i32, i32, i32) {
    %c0_i32 = arith.constant 0 : i32
    %c0_i32_0 = arith.constant 0 : i32
    %c0_i32_1 = arith.constant 0 : i32
    %c0_i32_2 = arith.constant 0 : i32
    return %arg0, %c0_i32, %c0_i32_0, %c0_i32_1 : i32, i32, i32, i32
  }
}

module attributes {stable_mosaic.version = 11 : i64} {
  func.func @lpips_compare_kernel(%arg0: i32, %arg1: i32, %arg2: memref<4x8x32xbf16, #tpu.memory_space<vmem>>, %arg3: memref<1x1x32xf32, #tpu.memory_space<vmem>>, %arg4: memref<1x2x1xf32, #tpu.memory_space<vmem>>) attributes {dimension_semantics = [#tpu.dimension_semantics<parallel>, #tpu.dimension_semantics<arbitrary>], iteration_bounds = array<i64: 2, 1>, scalar_prefetch = 0 : i64, scratch_operands = 0 : i64, tpu.core_type = #tpu.core_type<tc>, window_params = [{transform_indices = @transform_0, window_bounds = array<i64: 4, 8, 32>}, {pipeline_mode = #tpu.pipeline_mode<synchronous>, transform_indices = @transform_1, window_bounds = array<i64: 1, 1, 32>}, {transform_indices = @transform_2, window_bounds = array<i64: 1, 2, 1>}]} {
    %c0_i32 = arith.constant 0 : i32
    %0 = arith.cmpi eq, %arg1, %c0_i32 : i32
    %1 = arith.extui %0 : i1 to i32
    %c0_i32_0 = arith.constant 0 : i32
    %2 = arith.cmpi ne, %1, %c0_i32_0 : i32
    scf.if %2 {
      %cst_17 = arith.constant 0.000000e+00 : f32
      %35 = vector.broadcast %cst_17 : f32 to vector<1x2x1xf32>
      %c0_18 = arith.constant 0 : index
      %c0_19 = arith.constant 0 : index
      %c0_20 = arith.constant 0 : index
      %36 = vector.load %arg4[%c0_18, %c0_19, %c0_20] : memref<1x2x1xf32, #tpu.memory_space<vmem>>, vector<1x2x1xf32>
      tpu.vector_store %arg4[%c0_18, %c0_19, %c0_20], %35 {strides = array<i32>} : memref<1x2x1xf32, #tpu.memory_space<vmem>>, vector<1x2x1xf32>,
    } else {
    }
    %c0 = arith.constant 0 : index
    %c0_1 = arith.constant 0 : index
    %c0_2 = arith.constant 0 : index
    %3 = vector.load %arg2[%c0, %c0_1, %c0_2] : memref<4x8x32xbf16, #tpu.memory_space<vmem>>, vector<4x8x32xbf16>
    %4 = arith.extf %3 : vector<4x8x32xbf16> to vector<4x8x32xf32>
    %5 = vector.extract_strided_slice %4 {offsets = [0, 0, 0], sizes = [2, 8, 32], strides = [1, 1, 1]} : vector<4x8x32xf32> to vector<2x8x32xf32>
    %6 = vector.extract_strided_slice %4 {offsets = [2, 0, 0], sizes = [2, 8, 32], strides = [1, 1, 1]} : vector<4x8x32xf32> to vector<2x8x32xf32>
    %7 = arith.mulf %5, %5 : vector<2x8x32xf32>
    %cst = arith.constant dense<0.000000e+00> : vector<2x8xf32>
    %8 = vector.multi_reduction <add>, %7, %cst [2] : vector<2x8x32xf32> to vector<2x8xf32>
    %9 = vector.shape_cast %8 : vector<2x8xf32> to vector<2x8x1xf32>
    %10 = math.sqrt %9 : vector<2x8x1xf32>
    %cst_3 = arith.constant 1.000000e-10 : f32
    %11 = vector.broadcast %cst_3 : f32 to vector<2x8x1xf32>
    %12 = arith.addf %10, %11 : vector<2x8x1xf32>
    %13 = vector.broadcast %12 : vector<2x8x1xf32> to vector<2x8x32xf32>
    %14 = arith.divf %5, %13 : vector<2x8x32xf32>
    %15 = arith.mulf %6, %6 : vector<2x8x32xf32>
    %cst_4 = arith.constant dense<0.000000e+00> : vector<2x8xf32>
    %16 = vector.multi_reduction <add>, %15, %cst_4 [2] : vector<2x8x32xf32> to vector<2x8xf32>
    %17 = vector.shape_cast %16 : vector<2x8xf32> to vector<2x8x1xf32>
    %18 = math.sqrt %17 : vector<2x8x1xf32>
    %cst_5 = arith.constant 1.000000e-10 : f32
    %19 = vector.broadcast %cst_5 : f32 to vector<2x8x1xf32>
    %20 = arith.addf %18, %19 : vector<2x8x1xf32>
    %21 = vector.broadcast %20 : vector<2x8x1xf32> to vector<2x8x32xf32>
    %22 = arith.divf %6, %21 : vector<2x8x32xf32>
    %23 = arith.subf %14, %22 : vector<2x8x32xf32>
    %24 = arith.mulf %23, %23 : vector<2x8x32xf32>
    %c0_6 = arith.constant 0 : index
    %c0_7 = arith.constant 0 : index
    %c0_8 = arith.constant 0 : index
    %25 = vector.load %arg3[%c0_6, %c0_7, %c0_8] : memref<1x1x32xf32, #tpu.memory_space<vmem>>, vector<1x1x32xf32>
    %26 = vector.broadcast %25 : vector<1x1x32xf32> to vector<2x8x32xf32>
    %27 = arith.mulf %24, %26 : vector<2x8x32xf32>
    %cst_9 = arith.constant dense<0.000000e+00> : vector<2x8xf32>
    %28 = vector.multi_reduction <add>, %27, %cst_9 [2] : vector<2x8x32xf32> to vector<2x8xf32>
    %c0_10 = arith.constant 0 : index
    %c0_11 = arith.constant 0 : index
    %c0_12 = arith.constant 0 : index
    %29 = vector.load %arg4[%c0_10, %c0_11, %c0_12] : memref<1x2x1xf32, #tpu.memory_space<vmem>>, vector<1x2x1xf32>
    %cst_13 = arith.constant dense<0.000000e+00> : vector<2xf32>
    %30 = vector.multi_reduction <add>, %28, %cst_13 [1] : vector<2x8xf32> to vector<2xf32>
    %31 = vector.shape_cast %30 : vector<2xf32> to vector<2x1xf32>
    %32 = vector.shape_cast %31 : vector<2x1xf32> to vector<1x2x1xf32>
    %33 = arith.addf %29, %32 : vector<1x2x1xf32>
    %c0_14 = arith.constant 0 : index
    %c0_15 = arith.constant 0 : index
    %c0_16 = arith.constant 0 : index
    %34 = vector.load %arg4[%c0_14, %c0_15, %c0_16] : memref<1x2x1xf32, #tpu.memory_space<vmem>>, vector<1x2x1xf32>
    tpu.vector_store %arg4[%c0_14, %c0_15, %c0_16], %33 {strides = array<i32>} : memref<1x2x1xf32, #tpu.memory_space<vmem>>, vector<1x2x1xf32>,
    return
  }
  func.func @transform_0(%arg0: i32, %arg1: i32) -> (i32, i32, i32) {
    %c1_i32 = arith.constant 1 : i32
    %0 = arith.muli %arg0, %c1_i32 : i32
    %1 = arith.addi %0, %arg1 : i32
    %c0_i32 = arith.constant 0 : i32
    %c0_i32_0 = arith.constant 0 : i32
    %c0_i32_1 = arith.constant 0 : i32
    return %c0_i32, %1, %c0_i32_0 : i32, i32, i32
  }
  func.func @transform_1(%arg0: i32, %arg1: i32) -> (i32, i32, i32) {
    %c0_i32 = arith.constant 0 : i32
    %c0_i32_0 = arith.constant 0 : i32
    %c0_i32_1 = arith.constant 0 : i32
    %c0_i32_2 = arith.constant 0 : i32
    return %c0_i32, %c0_i32_0, %c0_i32_1 : i32, i32, i32
  }
  func.func @transform_2(%arg0: i32, %arg1: i32) -> (i32, i32, i32) {
    %c0_i32 = arith.constant 0 : i32
    %c0_i32_0 = arith.constant 0 : i32
    %c0_i32_1 = arith.constant 0 : i32
    return %arg0, %c0_i32, %c0_i32_0 : i32, i32, i32
  }
}

module attributes {stable_mosaic.version = 11 : i64} {
  func.func @lpips_compare_kernel(%arg0: i32, %arg1: i32, %arg2: memref<4x32x16xbf16, #tpu.memory_space<vmem>>, %arg3: memref<1x1x16xf32, #tpu.memory_space<vmem>>, %arg4: memref<1x2x1xf32, #tpu.memory_space<vmem>>) attributes {dimension_semantics = [#tpu.dimension_semantics<parallel>, #tpu.dimension_semantics<arbitrary>], iteration_bounds = array<i64: 2, 1>, scalar_prefetch = 0 : i64, scratch_operands = 0 : i64, tpu.core_type = #tpu.core_type<tc>, window_params = [{transform_indices = @transform_0, window_bounds = array<i64: 4, 32, 16>}, {pipeline_mode = #tpu.pipeline_mode<synchronous>, transform_indices = @transform_1, window_bounds = array<i64: 1, 1, 16>}, {transform_indices = @transform_2, window_bounds = array<i64: 1, 2, 1>}]} {
    %c0_i32 = arith.constant 0 : i32
    %0 = arith.cmpi eq, %arg1, %c0_i32 : i32
    %1 = arith.extui %0 : i1 to i32
    %c0_i32_0 = arith.constant 0 : i32
    %2 = arith.cmpi ne, %1, %c0_i32_0 : i32
    scf.if %2 {
      %cst_17 = arith.constant 0.000000e+00 : f32
      %35 = vector.broadcast %cst_17 : f32 to vector<1x2x1xf32>
      %c0_18 = arith.constant 0 : index
      %c0_19 = arith.constant 0 : index
      %c0_20 = arith.constant 0 : index
      %36 = vector.load %arg4[%c0_18, %c0_19, %c0_20] : memref<1x2x1xf32, #tpu.memory_space<vmem>>, vector<1x2x1xf32>
      tpu.vector_store %arg4[%c0_18, %c0_19, %c0_20], %35 {strides = array<i32>} : memref<1x2x1xf32, #tpu.memory_space<vmem>>, vector<1x2x1xf32>,
    } else {
    }
    %c0 = arith.constant 0 : index
    %c0_1 = arith.constant 0 : index
    %c0_2 = arith.constant 0 : index
    %3 = vector.load %arg2[%c0, %c0_1, %c0_2] : memref<4x32x16xbf16, #tpu.memory_space<vmem>>, vector<4x32x16xbf16>
    %4 = arith.extf %3 : vector<4x32x16xbf16> to vector<4x32x16xf32>
    %5 = vector.extract_strided_slice %4 {offsets = [0, 0, 0], sizes = [2, 32, 16], strides = [1, 1, 1]} : vector<4x32x16xf32> to vector<2x32x16xf32>
    %6 = vector.extract_strided_slice %4 {offsets = [2, 0, 0], sizes = [2, 32, 16], strides = [1, 1, 1]} : vector<4x32x16xf32> to vector<2x32x16xf32>
    %7 = arith.mulf %5, %5 : vector<2x32x16xf32>
    %cst = arith.constant dense<0.000000e+00> : vector<2x32xf32>
    %8 = vector.multi_reduction <add>, %7, %cst [2] : vector<2x32x16xf32> to vector<2x32xf32>
    %9 = vector.shape_cast %8 : vector<2x32xf32> to vector<2x32x1xf32>
    %10 = math.sqrt %9 : vector<2x32x1xf32>
    %cst_3 = arith.constant 1.000000e-10 : f32
    %11 = vector.broadcast %cst_3 : f32 to vector<2x32x1xf32>
    %12 = arith.addf %10, %11 : vector<2x32x1xf32>
    %13 = vector.broadcast %12 : vector<2x32x1xf32> to vector<2x32x16xf32>
    %14 = arith.divf %5, %13 : vector<2x32x16xf32>
    %15 = arith.mulf %6, %6 : vector<2x32x16xf32>
    %cst_4 = arith.constant dense<0.000000e+00> : vector<2x32xf32>
    %16 = vector.multi_reduction <add>, %15, %cst_4 [2] : vector<2x32x16xf32> to vector<2x32xf32>
    %17 = vector.shape_cast %16 : vector<2x32xf32> to vector<2x32x1xf32>
    %18 = math.sqrt %17 : vector<2x32x1xf32>
    %cst_5 = arith.constant 1.000000e-10 : f32
    %19 = vector.broadcast %cst_5 : f32 to vector<2x32x1xf32>
    %20 = arith.addf %18, %19 : vector<2x32x1xf32>
    %21 = vector.broadcast %20 : vector<2x32x1xf32> to vector<2x32x16xf32>
    %22 = arith.divf %6, %21 : vector<2x32x16xf32>
    %23 = arith.subf %14, %22 : vector<2x32x16xf32>
    %24 = arith.mulf %23, %23 : vector<2x32x16xf32>
    %c0_6 = arith.constant 0 : index
    %c0_7 = arith.constant 0 : index
    %c0_8 = arith.constant 0 : index
    %25 = vector.load %arg3[%c0_6, %c0_7, %c0_8] : memref<1x1x16xf32, #tpu.memory_space<vmem>>, vector<1x1x16xf32>
    %26 = vector.broadcast %25 : vector<1x1x16xf32> to vector<2x32x16xf32>
    %27 = arith.mulf %24, %26 : vector<2x32x16xf32>
    %cst_9 = arith.constant dense<0.000000e+00> : vector<2x32xf32>
    %28 = vector.multi_reduction <add>, %27, %cst_9 [2] : vector<2x32x16xf32> to vector<2x32xf32>
    %c0_10 = arith.constant 0 : index
    %c0_11 = arith.constant 0 : index
    %c0_12 = arith.constant 0 : index
    %29 = vector.load %arg4[%c0_10, %c0_11, %c0_12] : memref<1x2x1xf32, #tpu.memory_space<vmem>>, vector<1x2x1xf32>
    %cst_13 = arith.constant dense<0.000000e+00> : vector<2xf32>
    %30 = vector.multi_reduction <add>, %28, %cst_13 [1] : vector<2x32xf32> to vector<2xf32>
    %31 = vector.shape_cast %30 : vector<2xf32> to vector<2x1xf32>
    %32 = vector.shape_cast %31 : vector<2x1xf32> to vector<1x2x1xf32>
    %33 = arith.addf %29, %32 : vector<1x2x1xf32>
    %c0_14 = arith.constant 0 : index
    %c0_15 = arith.constant 0 : index
    %c0_16 = arith.constant 0 : index
    %34 = vector.load %arg4[%c0_14, %c0_15, %c0_16] : memref<1x2x1xf32, #tpu.memory_space<vmem>>, vector<1x2x1xf32>
    tpu.vector_store %arg4[%c0_14, %c0_15, %c0_16], %33 {strides = array<i32>} : memref<1x2x1xf32, #tpu.memory_space<vmem>>, vector<1x2x1xf32>,
    return
  }
  func.func @transform_0(%arg0: i32, %arg1: i32) -> (i32, i32, i32) {
    %c1_i32 = arith.constant 1 : i32
    %0 = arith.muli %arg0, %c1_i32 : i32
    %1 = arith.addi %0, %arg1 : i32
    %c0_i32 = arith.constant 0 : i32
    %c0_i32_0 = arith.constant 0 : i32
    %c0_i32_1 = arith.constant 0 : i32
    return %c0_i32, %1, %c0_i32_0 : i32, i32, i32
  }
  func.func @transform_1(%arg0: i32, %arg1: i32) -> (i32, i32, i32) {
    %c0_i32 = arith.constant 0 : i32
    %c0_i32_0 = arith.constant 0 : i32
    %c0_i32_1 = arith.constant 0 : i32
    %c0_i32_2 = arith.constant 0 : i32
    return %c0_i32, %c0_i32_0, %c0_i32_1 : i32, i32, i32
  }
  func.func @transform_2(%arg0: i32, %arg1: i32) -> (i32, i32, i32) {
    %c0_i32 = arith.constant 0 : i32
    %c0_i32_0 = arith.constant 0 : i32
    %c0_i32_1 = arith.constant 0 : i32
    return %arg0, %c0_i32, %c0_i32_0 : i32, i32, i32
  }
}

</mosaic_0001>

<bundles_post_ra>
// kernel: lpips_loss.4
= control target key start
LH: loop header
LB: loop body
LE: loop exit
PB: predicated region body
PF: predicated region fallthrough
CT: control target
= control target key end

     0   :  { %s1959_s12 = smov 0   ;;  %s3288_s0 = inlined_call_operand.vmem [shape: f32[4,9,2,9,6], index: 0, kind: input, shape index: {}]   ;;  %s3289_s1 = inlined_call_operand.vmem [shape: f32[27,16], index: 1, kind: input, shape index: {}]   ;;  %s3290_s2 = inlined_call_operand.vmem [shape: f32[1,16], index: 2, kind: input, shape index: {}]   ;;  %s3291_s3 = inlined_call_operand.vmem [shape: bf16[4,8,8,16], index: 3, kind: output, shape index: {}]  }
   0x1 LB: > { %s1795_s13 = sadd.s32 4294967295, %s1931_s12   ;;  %p1799_p0 = scmp.ge.s32.totalorder %s1931_s12, 1  ;;  %s1931_s12 = sphi %s1959_s12, %s13_s12  }
   0x2   : > { %p137_p1 = scmp.lt.s32.totalorder %s1931_s12, 5 }
   0x4   : > { %p138_p2 = pnand %p1799_p0, %p137_p1 }
   0x6   : > { %141 = sbr.rel (%p138_p2) target bundleno = 668 (0x29c), region = 32 }
   0xd   : > { %p161_p3 = scmp.lt.s32.totalorder %s1795_s13, 3  ;;  %v3298_v0 = vmov 3   ;;  %v3292_v1 = vmov 0   ;;  %v3302_v9 = vmov 1   ;;  %v3300_v14 = vmov 2  }
   0xe   : > { %1884 = vset.pattern.permute.xlu0 %v3298_v0  ;;  %1881 = vset.pattern.permute.xlu1 %v3292_v1  ;;  %v3296_v16 = vmov 4   ;;  %v3294_v21 = vmov 5   ;;  %vm1731_vm0 = vcmask 125952  }
   0xf   : > { %s3553_s13 = smov (!%p161_p3, %s1795_s13), 3 }
  0x10   : > { %s1866_s14 = smul.u32 288, %s3553_s13  ;;  %s1865_s25 = sshll.u32 %s3553_s13, 5 }
  0x11   : > { %s3244_s28 = scalar_lea.vmem %s3291_s3, %s1865_s25 }
  0x12   : > { %s1975_s17 = scalar_lea.vmem %s3288_s0, %s1866_s14 }
  0x13   : > { %v1978_v2 = vld [vmem:[%s1975_s17 + $0x40] sm:$0xff]  ;;  %v2001_v7 = vld [vmem:[%s1975_s17 + $0x30] sm:$0xff] }
  0x14   : > { %v1981_v3 = vld [vmem:[%s1975_s17] sm:$0xff]  ;;  %192 = vperm.xlu1 %1881, %v1978_v2   ;;  %v2010_v10 = vld [vmem:[%s1975_s17 + $0x90] sm:$0xff] }
  0x15   : > { %348 = vperm.xlu0 %1884, %v1981_v3   ;;  %v1986_v4 = vld [vmem:[%s1975_s17 + $0x60] sm:$0xff]  ;;  %v2015_v11 = vld [vmem:[%s1975_s17 + $0xd0] sm:$0xff] }
  0x16   : > { %v1991_v5 = vld [vmem:[%s1975_s17 + $0xa0] sm:$0xff]  ;;  %v2045_v17 = vld [vmem:[%s1975_s17 + $0x10] sm:$0xff] }
  0x17   : > { %v1996_v6 = vld [vmem:[%s1975_s17 + $0xe0] sm:$0xff]  ;;  %v2050_v18 = vld [vmem:[%s1975_s17 + $0x70] sm:$0xff] }
  0x18   : > { %197 = vperm.xlu1 %1881, %v1986_v4   ;;  %v2004_v8 = vld [vmem:[%s1975_s17 + $0x20] sm:$0xff]  ;;  %v2055_v19 = vld [vmem:[%s1975_s17 + $0xb0] sm:$0xff] }
  0x19   : > { %360 = vperm.xlu0 %1884, %v1986_v4   ;;  %v2018_v12 = vld [vmem:[%s1975_s17 + $0x80] sm:$0xff]  ;;  %v2060_v20 = vld [vmem:[%s1975_s17 + $0xf0] sm:$0xff] }
  0x1a   : > { %v2023_v13 = vld [vmem:[%s1975_s17 + $0xc0] sm:$0xff]  ;;  %v2189_v52 = vld [vmem:[%s1975_s17 + $0x50] sm:$0xff] }
  0x1b   : > { %v2032_v15 = vld [vmem:[%s1975_s17 + $0x100] sm:$0xff]  ;;  %v2195_v54 = vld [vmem:[%s1975_s17 + $0x11] sm:$0xff] }
  0x1c   : > { %207 = vperm.xlu1 %1881, %v1991_v5   ;;  %v2086_v22 = vld [vmem:[%s1975_s17 + $0x1] sm:$0xff]  ;;  %v2204_v57 = vld [vmem:[%s1975_s17 + $0x71] sm:$0xff] }
  0x1d   : > { %368 = vperm.xlu0 %1884, %v1991_v5   ;;  %v2092_v23 = vld [vmem:[%s1975_s17 + $0x41] sm:$0xff]  ;;  %v2213_v60 = vld [vmem:[%s1975_s17 + $0xb1] sm:$0xff] }
  0x1e   : > { %v2097_v24 = vld [vmem:[%s1975_s17 + $0x61] sm:$0xff]  ;;  %v2222_v63 = vld [vmem:[%s1975_s17 + $0xf1] sm:$0xff] }
  0x1f   : > { %v2102_v25 = vld [vmem:[%s1975_s17 + $0xa1] sm:$0xff] }
  0x20   : > { %217 = vperm.xlu1 %1881, %v1996_v6   ;;  %v2107_v26 = vld [vmem:[%s1975_s17 + $0xe1] sm:$0xff] }
  0x21   : > { %376 = vperm.xlu0 %1884, %v1996_v6   ;;  %v2116_v29 = vld [vmem:[%s1975_s17 + $0x21] sm:$0xff] }
  0x22   : > { %v2133_v34 = vld [vmem:[%s1975_s17 + $0x81] sm:$0xff] }
  0x23   : > { %v2142_v37 = vld [vmem:[%s1975_s17 + $0xc1] sm:$0xff] }
  0x24   : > { %1882 = vset.pattern.permute.xlu1 %v3302_v9 }
  0x25   : > { %862 = vperm.xlu0 %1884, %v2001_v7   ;;  %246 = vperm.xlu1 %1882, %v2004_v8  }
  0x29   : > { %874 = vperm.xlu0 %1884, %v2010_v10   ;;  %250 = vperm.xlu1 %1882, %v1978_v2  }
  0x2d   : > { %882 = vperm.xlu0 %1884, %v2015_v11   ;;  %258 = vperm.xlu1 %1882, %v2018_v12  }
  0x31   : > { %1368 = vperm.xlu0 %1884, %v2004_v8   ;;  %266 = vperm.xlu1 %1882, %v2023_v13  }
  0x35   : > { %1380 = vperm.xlu0 %1884, %v2018_v12   ;;  %1883 = vset.pattern.permute.xlu1 %v3300_v14 }
  0x36   : > { %295 = vperm.xlu1 %1883, %v1981_v3  }
  0x39   : > { %1388 = vperm.xlu0 %1884, %v2023_v13  }
  0x3a   : > { %303 = vperm.xlu1 %1883, %v1978_v2  }
  0x3d   : > { %1396 = vperm.xlu0 %1884, %v2032_v15  }
  0x3e   : > { %307 = vperm.xlu1 %1883, %v1986_v4  }
  0x41   : > { %1904 = vset.pattern.permute.xlu0 %v3296_v16 }
  0x42   : > { %405 = vperm.xlu0 %1904, %v2004_v8   ;;  %315 = vperm.xlu1 %1883, %v1991_v5  }
  0x46   : > { %417 = vperm.xlu0 %1904, %v2018_v12   ;;  %323 = vperm.xlu1 %1883, %v1996_v6  }
  0x4a   : > { %425 = vperm.xlu0 %1904, %v2023_v13   ;;  %1885 = vset.pattern.permute.xlu1 %v3298_v0 }
  0x4b   : > { %352 = vperm.xlu1 %1885, %v2004_v8  }
  0x4e   : > { %911 = vperm.xlu0 %1904, %v2045_v17  }
  0x4f   : > { %356 = vperm.xlu1 %1885, %v1978_v2  }
  0x52   : > { %923 = vperm.xlu0 %1904, %v2050_v18  }
  0x53   : > { %364 = vperm.xlu1 %1885, %v2018_v12  }
  0x56   : > { %931 = vperm.xlu0 %1904, %v2055_v19  }
  0x57   : > { %372 = vperm.xlu1 %1885, %v2023_v13  }
  0x5a   : > { %939 = vperm.xlu0 %1904, %v2060_v20  }
  0x5b   : > { %1886 = vset.pattern.permute.xlu1 %v3296_v16 }
  0x5c   : > { %401 = vperm.xlu1 %1886, %v1981_v3  }
  0x5e   : > { %1425 = vperm.xlu0 %1904, %v1978_v2  }
  0x60   : > { %409 = vperm.xlu1 %1886, %v1978_v2  }
  0x62   : > { %1437 = vperm.xlu0 %1904, %v1991_v5  }
  0x64   : > { %413 = vperm.xlu1 %1886, %v1986_v4  }
  0x66   : > { %1445 = vperm.xlu0 %1904, %v1996_v6  }
  0x68   : > { %421 = vperm.xlu1 %1886, %v1991_v5  }
  0x6a   : > { %1906 = vset.pattern.permute.xlu0 %v3294_v21 }
  0x6b   : > { %454 = vperm.xlu0 %1906, %v1981_v3  }
  0x6c   : > { %429 = vperm.xlu1 %1886, %v1996_v6  }
  0x6f   : > { %466 = vperm.xlu0 %1906, %v1986_v4  }
  0x70   : > { %1887 = vset.pattern.permute.xlu1 %v3294_v21 }
  0x71   : > { %458 = vperm.xlu1 %1887, %v2004_v8  }
  0x73   : > { %474 = vperm.xlu0 %1906, %v1991_v5  }
  0x75   : > { %462 = vperm.xlu1 %1887, %v1978_v2  }
  0x77   : > { %482 = vperm.xlu0 %1906, %v1996_v6  }
  0x79   : > { %470 = vperm.xlu1 %1887, %v2018_v12  }
  0x7b   : > { %968 = vperm.xlu0 %1906, %v2001_v7  }
  0x7d   : > { %478 = vperm.xlu1 %1887, %v2023_v13  }
  0x7f   : > { %980 = vperm.xlu0 %1906, %v2010_v10  }
  0x81   : > { %1888 = vset.pattern.permute.xlu1 %v3292_v1 }
  0x82   : > { %516 = vperm.xlu1 %1888, %v2086_v22  }
  0x83   : > { %988 = vperm.xlu0 %1906, %v2015_v11  }
  0x86   : > { %526 = vperm.xlu1 %1888, %v2092_v23  }
  0x87   : > { %1474 = vperm.xlu0 %1906, %v2004_v8  }
  0x8a   : > { %531 = vperm.xlu1 %1888, %v2097_v24  }
  0x8b   : > { %1486 = vperm.xlu0 %1906, %v2018_v12  }
  0x8e   : > { %541 = vperm.xlu1 %1888, %v2102_v25  }
  0x8f   : > { %1494 = vperm.xlu0 %1906, %v2023_v13  }
  0x92   : > { %551 = vperm.xlu1 %1888, %v2107_v26  }
  0x93   : > { %1502 = vperm.xlu0 %1906, %v2032_v15   ;;  %v2111_v27 = vpop.permute.xlu1 %192 }
  0x94   : > { %v2113_v28 = vpop.permute.xlu0 %348 }
  0x96   : > { %1889 = vset.pattern.permute.xlu1 %v3302_v9 }
  0x97   : > { %1908 = vset.pattern.permute.xlu0 %v3292_v1  ;;  %v2120_v30 = vpop.permute.xlu1 %197  ;;  %580 = vperm.xlu1 %1889, %v2116_v29  }
  0x98   : > { %182 = vperm.xlu0 %1908, %v1981_v3   ;;  %v2124_v31 = vpop.permute.xlu0 %360 }
  0x9b   : > { %v2126_v32 = vpop.permute.xlu1 %207  ;;  %584 = vperm.xlu1 %1889, %v2092_v23  }
  0x9c   : > { %187 = vperm.xlu0 %1908, %v2004_v8   ;;  %v2130_v33 = vpop.permute.xlu0 %368 }
  0x9f   : > { %v2135_v35 = vpop.permute.xlu1 %217  ;;  %592 = vperm.xlu1 %1889, %v2133_v34  }
  0xa0   : > { %202 = vperm.xlu0 %1908, %v2018_v12   ;;  %v2139_v36 = vpop.permute.xlu0 %376 }
  0xa3   : > { %600 = vperm.xlu1 %1889, %v2142_v37  }
  0xa4   : > { %212 = vperm.xlu0 %1908, %v2023_v13   ;;  %v2146_v38 = vpop.permute.xlu0 %862  ;;  %v2148_v39 = vpop.permute.xlu1 %246 }
  0xa5   : > { %3308 = vst [vmem:[#allocation2_spill] sm:$0xff] %v2146_v38  ;;  %3309 = vst [vmem:[#allocation3_spill] sm:$0xff] %v2148_v39  ;;  %v2343_v39 = vld [vmem:[%s1975_s17 + $0x91] sm:$0xff] }
  0xa7   : > { %1890 = vset.pattern.permute.xlu1 %v3300_v14 }
  0xa8   : > { %521 = vperm.xlu0 %1908, %v2116_v29   ;;  %v2152_v40 = vpop.permute.xlu0 %874  ;;  %v2154_v41 = vpop.permute.xlu1 %250  ;;  %629 = vperm.xlu1 %1890, %v2086_v22  }
  0xa9   : > { %3310 = vst [vmem:[#allocation4_spill] sm:$0xff] %v2152_v40 }
  0xac   : > { %536 = vperm.xlu0 %1908, %v2133_v34   ;;  %v2158_v42 = vpop.permute.xlu0 %882  ;;  %v2160_v43 = vpop.permute.xlu1 %258  ;;  %637 = vperm.xlu1 %1890, %v2092_v23  }
  0xad   : > { %3311 = vst [vmem:[#allocation5_spill] sm:$0xff] %v2158_v42  ;;  %3312 = vst [vmem:[#allocation6_spill] sm:$0xff] %v2160_v43 }
  0xb0   : > { %546 = vperm.xlu0 %1908, %v2142_v37   ;;  %v2164_v44 = vpop.permute.xlu0 %1368  ;;  %v2166_v45 = vpop.permute.xlu1 %266  ;;  %641 = vperm.xlu1 %1890, %v2097_v24  }
  0xb1   : > { %3313 = vst [vmem:[#allocation7_spill] sm:$0xff] %v2164_v44  ;;  %3314 = vst [vmem:[#allocation8_spill] sm:$0xff] %v2166_v45 }
  0xb4   : > { %692 = vperm.xlu0 %1908, %v2045_v17   ;;  %v2170_v46 = vpop.permute.xlu0 %1380  ;;  %649 = vperm.xlu1 %1890, %v2102_v25  }
  0xb5   : > { %3315 = vst [vmem:[#allocation9_spill] sm:$0xff] %v2170_v46  ;;  %v2173_v47 = vpop.permute.xlu1 %295 }
  0xb8   : > { %707 = vperm.xlu0 %1908, %v2050_v18   ;;  %v2176_v48 = vpop.permute.xlu0 %1388  ;;  %657 = vperm.xlu1 %1890, %v2107_v26  }
  0xb9   : > { %3316 = vst [vmem:[#allocation10_spill] sm:$0xff] %v2176_v48  ;;  %v2179_v49 = vpop.permute.xlu1 %303 }
  0xbc   : > { %717 = vperm.xlu0 %1908, %v2055_v19   ;;  %v2182_v50 = vpop.permute.xlu0 %1396  ;;  %1891 = vset.pattern.permute.xlu1 %v3292_v1 }
  0xbd   : > { %3317 = vst [vmem:[#allocation11_spill] sm:$0xff] %v2182_v50  ;;  %697 = vperm.xlu1 %1891, %v2001_v7   ;;  %v2186_v51 = vpop.permute.xlu1 %307 }
  0xc0   : > { %727 = vperm.xlu0 %1908, %v2060_v20  }
  0xc1   : > { %v2192_v53 = vpop.permute.xlu0 %405  ;;  %702 = vperm.xlu1 %1891, %v2189_v52   ;;  %v2198_v55 = vpop.permute.xlu1 %315 }
  0xc2   : > { %3318 = vst [vmem:[#allocation12_spill] sm:$0xff] %v2192_v53 }
  0xc4   : > { %1026 = vperm.xlu0 %1908, %v2195_v54  }
  0xc5   : > { %v2201_v56 = vpop.permute.xlu0 %417  ;;  %712 = vperm.xlu1 %1891, %v2010_v10   ;;  %v2207_v58 = vpop.permute.xlu1 %323 }
  0xc6   : > { %3319 = vst [vmem:[#allocation13_spill] sm:$0xff] %v2201_v56 }
  0xc8   : > { %1041 = vperm.xlu0 %1908, %v2204_v57  }
  0xc9   : > { %v2210_v59 = vpop.permute.xlu0 %425  ;;  %722 = vperm.xlu1 %1891, %v2015_v11  }
  0xca   : > { %3320 = vst [vmem:[#allocation14_spill] sm:$0xff] %v2210_v59  ;;  %v2216_v61 = vpop.permute.xlu1 %352  ;;  %v3336_v59 = vmov 3  }
  0xcb   : > { %3321 = vst [vmem:[#allocation15_spill] sm:$0xff] %v2216_v61 }
  0xcc   : > { %1051 = vperm.xlu0 %1908, %v2213_v60  }
  0xcd   : > { %v2219_v62 = vpop.permute.xlu0 %911  ;;  %1892 = vset.pattern.permute.xlu1 %v3302_v9 }
  0xce   : > { %3322 = vst [vmem:[#allocation16_spill] sm:$0xff] %v2219_v62  ;;  %752 = vperm.xlu1 %1892, %v2045_v17   ;;  %v2226_v1 = vpop.permute.xlu1 %356 }
  0xcf   : > { %3323 = vst [vmem:[#allocation17_spill] sm:$0xff] %v2226_v1 }
  0xd0   : > { %1061 = vperm.xlu0 %1908, %v2222_v63  }
  0xd1   : > { %v2229_v21 = vpop.permute.xlu0 %923 }
  0xd2   : > { %3324 = vst [vmem:[#allocation18_spill] sm:$0xff] %v2229_v21  ;;  %760 = vperm.xlu1 %1892, %v2189_v52   ;;  %v2232_v16 = vpop.permute.xlu1 %364  ;;  %v3334_v21 = vmov 1  }
  0xd3   : > { %3325 = vst [vmem:[#allocation19_spill] sm:$0xff] %v2232_v16 }
  0xd4   : > { %1207 = vperm.xlu0 %1908, %v1978_v2  }
  0xd5   : > { %v2235_v0 = vpop.permute.xlu0 %931 }
  0xd6   : > { %3326 = vst [vmem:[#allocation20_spill] sm:$0xff] %v2235_v0  ;;  %764 = vperm.xlu1 %1892, %v2050_v18   ;;  %v2238_v14 = vpop.permute.xlu1 %372 }
  0xd7   : > { %3327 = vst [vmem:[#allocation21_spill] sm:$0xff] %v2238_v14  ;;  %v3332_v14 = vmov 2  }
  0xd8   : > { %1222 = vperm.xlu0 %1908, %v1991_v5  }
  0xd9   : > { %v2241_v9 = vpop.permute.xlu0 %939 }
  0xda   : > { %3328 = vst [vmem:[#allocation22_spill] sm:$0xff] %v2241_v9  ;;  %772 = vperm.xlu1 %1892, %v2055_v19  }
  0xdb   : > { %v2245_v50 = vpop.permute.xlu1 %401 }
  0xdc   : > { %1232 = vperm.xlu0 %1908, %v1996_v6  }
  0xdd   : > { %v2247_v48 = vpop.permute.xlu0 %1425 }
  0xde   : > { %3329 = vst [vmem:[#allocation23_spill] sm:$0xff] %v2247_v48  ;;  %780 = vperm.xlu1 %1892, %v2060_v20  }
  0xdf   : > { %v2251_v46 = vpop.permute.xlu1 %409 }
  0xe0   : > { %1541 = vperm.xlu0 %1908, %v2092_v23   ;;  %3330 = vst [vmem:[#allocation24_spill] sm:$0xff] %v2251_v46 }
  0xe1   : > { %v2253_v44 = vpop.permute.xlu0 %1437 }
  0xe2   : > { %3331 = vst [vmem:[#allocation25_spill] sm:$0xff] %v2253_v44  ;;  %1893 = vset.pattern.permute.xlu1 %v3332_v14 }
  0xe3   : > { %809 = vperm.xlu1 %1893, %v2001_v7   ;;  %v2258_v9 = vpop.permute.xlu1 %413 }
  0xe4   : > { %1556 = vperm.xlu0 %1908, %v2102_v25  }
  0xe5   : > { %v2260_v0 = vpop.permute.xlu0 %1445 }
  0xe6   : > { %3333 = vst [vmem:[#allocation26_spill] sm:$0xff] %v2260_v0 }
  0xe7   : > { %813 = vperm.xlu1 %1893, %v2189_v52   ;;  %v2264_v48 = vpop.permute.xlu1 %421 }
  0xe8   : > { %1566 = vperm.xlu0 %1908, %v2107_v26  }
  0xea   : > { %v2266_v16 = vpop.permute.xlu0 %454 }
  0xeb   : > { %821 = vperm.xlu1 %1893, %v2010_v10   ;;  %v2270_v44 = vpop.permute.xlu1 %429 }
  0xec   : > { %1910 = vset.pattern.permute.xlu0 %v3334_v21 }
  0xed   : > { %242 = vperm.xlu0 %1910, %v1981_v3  }
  0xee   : > { %v2273_v62 = vpop.permute.xlu0 %466 }
  0xef   : > { %829 = vperm.xlu1 %1893, %v2015_v11  }
  0xf0   : > { %v2277_v0 = vpop.permute.xlu1 %458 }
  0xf1   : > { %254 = vperm.xlu0 %1910, %v1986_v4   ;;  %3335 = vst [vmem:[#allocation27_spill] sm:$0xff] %v2277_v0 }
  0xf2   : > { %v2279_v61 = vpop.permute.xlu0 %474 }
  0xf3   : > { %1894 = vset.pattern.permute.xlu1 %v3336_v59 }
  0xf4   : > { %858 = vperm.xlu1 %1894, %v2045_v17   ;;  %v2284_v56 = vpop.permute.xlu1 %462 }
  0xf5   : > { %262 = vperm.xlu0 %1910, %v1991_v5   ;;  %3337 = vst [vmem:[#allocation28_spill] sm:$0xff] %v2284_v56 }
  0xf6   : > { %v2286_v53 = vpop.permute.xlu0 %482 }
  0xf8   : > { %866 = vperm.xlu1 %1894, %v2189_v52   ;;  %v2290_v3 = vpop.permute.xlu1 %470 }
  0xf9   : > { %270 = vperm.xlu0 %1910, %v1996_v6   ;;  %3338 = vst [vmem:[#allocation29_spill] sm:$0xff] %v2290_v3 }
  0xfa   : > { %v2292_v45 = vpop.permute.xlu0 %968 }
  0xfb   : > { %3339 = vst [vmem:[#allocation30_spill] sm:$0xff] %v2292_v45 }
  0xfc   : > { %870 = vperm.xlu1 %1894, %v2050_v18   ;;  %v2296_v0 = vpop.permute.xlu1 %478 }
  0xfd   : > { %576 = vperm.xlu0 %1910, %v2086_v22   ;;  %3340 = vst [vmem:[#allocation31_spill] sm:$0xff] %v2296_v0 }
  0xfe   : > { %v2298_v42 = vpop.permute.xlu0 %980 }
  0xff   : > { %3341 = vst [vmem:[#allocation32_spill] sm:$0xff] %v2298_v42  ;;  %v3345_v42 = vmov 4  }
 0x100   : > { %878 = vperm.xlu1 %1894, %v2055_v19  }
 0x101   : > { %588 = vperm.xlu0 %1910, %v2097_v24   ;;  %v2302_v43 = vpop.permute.xlu1 %516 }
 0x102   : > { %v2304_v56 = vpop.permute.xlu0 %988 }
 0x103   : > { %3342 = vst [vmem:[#allocation33_spill] sm:$0xff] %v2304_v56 }
 0x104   : > { %886 = vperm.xlu1 %1894, %v2060_v20  }
 0x105   : > { %596 = vperm.xlu0 %1910, %v2102_v25   ;;  %v2308_v45 = vpop.permute.xlu1 %526 }
 0x106   : > { %3343 = vst [vmem:[#allocation34_spill] sm:$0xff] %v2308_v45  ;;  %v2310_v22 = vpop.permute.xlu0 %1474 }
 0x107   : > { %3344 = vst [vmem:[#allocation35_spill] sm:$0xff] %v2310_v22 }
 0x108   : > { %1895 = vset.pattern.permute.xlu1 %v3345_v42 }
 0x109   : > { %604 = vperm.xlu0 %1910, %v2107_v26   ;;  %915 = vperm.xlu1 %1895, %v2001_v7   ;;  %v2315_v24 = vpop.permute.xlu1 %531 }
 0x10a   : > { %v2317_v0 = vpop.permute.xlu0 %1486 }
 0x10b   : > { %3346 = vst [vmem:[#allocation36_spill] sm:$0xff] %v2317_v0 }
 0x10d   : > { %756 = vperm.xlu0 %1910, %v2001_v7   ;;  %919 = vperm.xlu1 %1895, %v2189_v52   ;;  %v2321_v56 = vpop.permute.xlu1 %541  ;;  %v2334_v7 = vld [vmem:[%s1975_s17 + $0x31] sm:$0xff] }
 0x10e   : > { %v2323_v3 = vpop.permute.xlu0 %1494 }
 0x10f   : > { %3347 = vst [vmem:[#allocation37_spill] sm:$0xff] %v2323_v3  ;;  %v3350_v3 = vmov 5  }
 0x111   : > { %768 = vperm.xlu0 %1910, %v2010_v10   ;;  %927 = vperm.xlu1 %1895, %v2010_v10   ;;  %v2327_v22 = vpop.permute.xlu1 %551 }
 0x112   : > { %v2329_v45 = vpop.permute.xlu0 %1502 }
 0x113   : > { %3348 = vst [vmem:[#allocation38_spill] sm:$0xff] %v2329_v45 }
 0x115   : > { %776 = vperm.xlu0 %1910, %v2015_v11   ;;  %935 = vperm.xlu1 %1895, %v2015_v11   ;;  %v2352_v11 = vld [vmem:[%s1975_s17 + $0xd1] sm:$0xff] }
 0x116   : > { %v2338_v40 = vpop.permute.xlu1 %580 }
 0x117   : > { %v2336_v0 = vpop.permute.xlu0 %182  ;;  %3349 = vst [vmem:[#allocation39_spill] sm:$0xff] %v2338_v40 }
 0x119   : > { %1090 = vperm.xlu0 %1910, %v2334_v7   ;;  %1896 = vset.pattern.permute.xlu1 %v3350_v3 }
 0x11a   : > { %964 = vperm.xlu1 %1896, %v2045_v17   ;;  %v2348_v45 = vpop.permute.xlu1 %584 }
 0x11b   : > { %v2345_v10 = vpop.permute.xlu0 %187  ;;  %3352 = vst [vmem:[#allocation41_spill] sm:$0xff] %v2348_v45 }
 0x11c   : > { %3351 = vst [vmem:[#allocation40_spill] sm:$0xff] %v2345_v10 }
 0x11d   : > { %1102 = vperm.xlu0 %1910, %v2343_v39  }
 0x11e   : > { %972 = vperm.xlu1 %1896, %v2189_v52   ;;  %v2357_v40 = vpop.permute.xlu1 %592 }
 0x11f   : > { %v2354_v38 = vpop.permute.xlu0 %202  ;;  %3354 = vst [vmem:[#allocation43_spill] sm:$0xff] %v2357_v40 }
 0x120   : > { %3353 = vst [vmem:[#allocation42_spill] sm:$0xff] %v2354_v38 }
 0x121   : > { %1110 = vperm.xlu0 %1910, %v2352_v11  }
 0x122   : > { %976 = vperm.xlu1 %1896, %v2050_v18   ;;  %v2363_v10 = vpop.permute.xlu1 %600 }
 0x123   : > { %v2360_v3 = vpop.permute.xlu0 %212  ;;  %3356 = vst [vmem:[#allocation45_spill] sm:$0xff] %v2363_v10 }
 0x124   : > { %3355 = vst [vmem:[#allocation44_spill] sm:$0xff] %v2360_v3  ;;  %v3361_v3 = vmov 0  }
 0x125   : > { %1262 = vperm.xlu0 %1910, %v2004_v8  }
 0x126   : > { %984 = vperm.xlu1 %1896, %v2055_v19  }
 0x127   : > { %v2367_v45 = vpop.permute.xlu0 %521  ;;  %v2369_v38 = vpop.permute.xlu1 %629 }
 0x128   : > { %3357 = vst [vmem:[#allocation46_spill] sm:$0xff] %v2367_v45  ;;  %3358 = vst [vmem:[#allocation47_spill] sm:$0xff] %v2369_v38  ;;  %v1828_v38 = vld [vmem:[%s1975_s17 + $0x51] sm:$0xff] }
 0x129   : > { %1274 = vperm.xlu0 %1910, %v2018_v12  }
 0x12a   : > { %992 = vperm.xlu1 %1896, %v2060_v20  }
 0x12b   : > { %v2373_v52 = vpop.permute.xlu0 %536  ;;  %v2375_v40 = vpop.permute.xlu1 %637 }
 0x12c   : > { %3359 = vst [vmem:[#allocation48_spill] sm:$0xff] %v2373_v52  ;;  %3360 = vst [vmem:[#allocation49_spill] sm:$0xff] %v2375_v40 }
 0x12d   : > { %1282 = vperm.xlu0 %1910, %v2023_v13  }
 0x12e   : > { %1897 = vset.pattern.permute.xlu1 %v3361_v3 }
 0x12f   : > { %v2379_v10 = vpop.permute.xlu0 %546  ;;  %1031 = vperm.xlu1 %1897, %v2334_v7   ;;  %v2382_v45 = vpop.permute.xlu1 %641 }
 0x130   : > { %3362 = vst [vmem:[#allocation50_spill] sm:$0xff] %v2379_v10  ;;  %3363 = vst [vmem:[#allocation51_spill] sm:$0xff] %v2382_v45  ;;  %v2404_v45 = vld [vmem:[%s1975_s17 + $0x101] sm:$0xff] }
 0x131   : > { %1290 = vperm.xlu0 %1910, %v2032_v15   ;;  %3370 = vst [vmem:[#allocation58_spill] sm:$0xff] %v2404_v45 }
 0x133   : > { %v2386_v46 = vpop.permute.xlu0 %692  ;;  %1036 = vperm.xlu1 %1897, %v1828_v38   ;;  %v2388_v52 = vpop.permute.xlu1 %649 }
 0x134   : > { %3364 = vst [vmem:[#allocation52_spill] sm:$0xff] %v2386_v46  ;;  %3365 = vst [vmem:[#allocation53_spill] sm:$0xff] %v2388_v52 }
 0x135   : > { %1596 = vperm.xlu0 %1910, %v2116_v29  }
 0x137   : > { %v2391_v40 = vpop.permute.xlu0 %707  ;;  %1046 = vperm.xlu1 %1897, %v2343_v39   ;;  %v2394_v10 = vpop.permute.xlu1 %657 }
 0x138   : > { %3366 = vst [vmem:[#allocation54_spill] sm:$0xff] %v2391_v40  ;;  %3367 = vst [vmem:[#allocation55_spill] sm:$0xff] %v2394_v10 }
 0x139   : > { %1608 = vperm.xlu0 %1910, %v2133_v34  }
 0x13b   : > { %v2397_v1 = vpop.permute.xlu0 %717  ;;  %1056 = vperm.xlu1 %1897, %v2352_v11  }
 0x13c   : > { %3368 = vst [vmem:[#allocation56_spill] sm:$0xff] %v2397_v1  ;;  %v2401_v46 = vpop.permute.xlu1 %697 }
 0x13d   : > { %1616 = vperm.xlu0 %1910, %v2142_v37   ;;  %3369 = vst [vmem:[#allocation57_spill] sm:$0xff] %v2401_v46 }
 0x13f   : > { %v2406_v52 = vpop.permute.xlu0 %727  ;;  %1898 = vset.pattern.permute.xlu1 %v3334_v21 }
 0x140   : > { %3371 = vst [vmem:[#allocation59_spill] sm:$0xff] %v2406_v52  ;;  %1086 = vperm.xlu1 %1898, %v2195_v54   ;;  %v2411_v10 = vpop.permute.xlu1 %702 }
 0x141   : > { %1624 = vperm.xlu0 %1910, %v2404_v45   ;;  %3372 = vst [vmem:[#allocation60_spill] sm:$0xff] %v2411_v10 }
 0x143   : > { %v2413_v40 = vpop.permute.xlu0 %1026 }
 0x144   : > { %3373 = vst [vmem:[#allocation61_spill] sm:$0xff] %v2413_v40  ;;  %1094 = vperm.xlu1 %1898, %v1828_v38   ;;  %v2416_v1 = vpop.permute.xlu1 %712 }
 0x145   : > { %1912 = vset.pattern.permute.xlu0 %v3332_v14  ;;  %3374 = vst [vmem:[#allocation62_spill] sm:$0xff] %v2416_v1 }
 0x146   : > { %299 = vperm.xlu0 %1912, %v2004_v8  }
 0x147   : > { %v2419_v46 = vpop.permute.xlu0 %1041 }
 0x148   : > { %3375 = vst [vmem:[#allocation63_spill] sm:$0xff] %v2419_v46  ;;  %1098 = vperm.xlu1 %1898, %v2204_v57   ;;  %v2422_v52 = vpop.permute.xlu1 %722 }
 0x149   : > { %3376 = vst [vmem:[#allocation64_spill] sm:$0xff] %v2422_v52 }
 0x14a   : > { %311 = vperm.xlu0 %1912, %v2018_v12  }
 0x14b   : > { %v2425_v45 = vpop.permute.xlu0 %1051 }
 0x14c   : > { %3377 = vst [vmem:[#allocation65_spill] sm:$0xff] %v2425_v45  ;;  %1106 = vperm.xlu1 %1898, %v2213_v60  }
 0x14d   : > { %v2429_v40 = vpop.permute.xlu1 %752 }
 0x14e   : > { %319 = vperm.xlu0 %1912, %v2023_v13  }
 0x14f   : > { %v2431_v10 = vpop.permute.xlu0 %1061 }
 0x150   : > { %3378 = vst [vmem:[#allocation66_spill] sm:$0xff] %v2431_v10  ;;  %1114 = vperm.xlu1 %1898, %v2222_v63  }
 0x151   : > { %v2435_v46 = vpop.permute.xlu1 %760 }
 0x152   : > { %633 = vperm.xlu0 %1912, %v2116_v29  }
 0x153   : > { %v2437_v1 = vpop.permute.xlu0 %1207 }
 0x154   : > { %3379 = vst [vmem:[#allocation67_spill] sm:$0xff] %v2437_v1  ;;  %1899 = vset.pattern.permute.xlu1 %v3332_v14 }
 0x155   : > { %1143 = vperm.xlu1 %1899, %v2334_v7   ;;  %v2442_v45 = vpop.permute.xlu1 %764 }
 0x156   : > { %645 = vperm.xlu0 %1912, %v2133_v34  }
 0x157   : > { %v2444_v52 = vpop.permute.xlu0 %1222 }
 0x158   : > { %3380 = vst [vmem:[#allocation68_spill] sm:$0xff] %v2444_v52 }
 0x159   : > { %1147 = vperm.xlu1 %1899, %v1828_v38   ;;  %v2447_v10 = vpop.permute.xlu1 %772 }
 0x15a   : > { %653 = vperm.xlu0 %1912, %v2142_v37   ;;  %3381 = vst [vmem:[#allocation69_spill] sm:$0xff] %v2447_v10 }
 0x15b   : > { %v2449_v29 = vpop.permute.xlu0 %1232 }
 0x15c   : > { %3382 = vst [vmem:[#allocation70_spill] sm:$0xff] %v2449_v29 }
 0x15d   : > { %1155 = vperm.xlu1 %1899, %v2343_v39   ;;  %v2453_v1 = vpop.permute.xlu1 %780 }
 0x15e   : > { %805 = vperm.xlu0 %1912, %v2045_v17   ;;  %3383 = vst [vmem:[#allocation71_spill] sm:$0xff] %v2453_v1 }
 0x15f   : > { %v2455_v34 = vpop.permute.xlu0 %1541 }
 0x160   : > { %3384 = vst [vmem:[#allocation72_spill] sm:$0xff] %v2455_v34 }
 0x161   : > { %1163 = vperm.xlu1 %1899, %v2352_v11   ;;  %v2484_v11 = vld [vmem:[%s3289_s1 + $0x1] ss:$0 sm:$0xff] }
 0x162   : > { %817 = vperm.xlu0 %1912, %v2050_v18   ;;  %v2459_v7 = vpop.permute.xlu1 %809  ;;  %v2473_v18 = vld [vmem:[%s3289_s1] ss:$0 sm:$0xff] }
 0x163   : > { %3385 = vst [vmem:[#allocation73_spill] sm:$0xff] %v2459_v7  ;;  %v2461_v37 = vpop.permute.xlu0 %1556  ;;  %v224_v39 = vmul.f32 %v2473_v18, %v2336_v0 }
 0x164   : > { %3386 = vst [vmem:[#allocation74_spill] sm:$0xff] %v2461_v37 }
 0x165   : > { %1900 = vset.pattern.permute.xlu1 %v3361_v3  ;;  %v2501_v3 = vld [vmem:[%s3289_s1 + $0x3] ss:$0 sm:$0xff] }
 0x166   : > { %825 = vperm.xlu0 %1912, %v2055_v19   ;;  %1202 = vperm.xlu1 %1900, %v2004_v8   ;;  %v2466_v17 = vpop.permute.xlu1 %813 }
 0x167   : > { %v2468_v38 = vpop.permute.xlu0 %1566 }
 0x168   : > { %3387 = vst [vmem:[#allocation75_spill] sm:$0xff] %v2468_v38  ;;  %v2489_v38 = vld [vmem:[%s3289_s1 + $0x2] ss:$0 sm:$0xff] }
 0x169   : > { %v330_v0 = vmul.f32 %v2489_v38, %v2173_v47  ;;  %v227_v47 = vmul.f32 %v2473_v18, %v2120_v30 }
 0x16a   : > { %833 = vperm.xlu0 %1912, %v2060_v20   ;;  %1212 = vperm.xlu1 %1900, %v1986_v4   ;;  %v2479_v19 = vpop.permute.xlu1 %821 }
 0x16b   : > { %3388 = vst [vmem:[#allocation76_spill] sm:$0xff] %v2479_v19  ;;  %v2506_v19 = vld [vmem:[%s3289_s1 + $0x4] ss:$0 sm:$0xff] }
 0x16c   : > { %v243_v37 = vpop.permute.xlu0 %242  ;;  %v436_v7 = vmul.f32 %v2506_v19, %v2245_v50 }
 0x16d   : > { %v277_v20 = vmul.f32 %v2484_v11, %v243_v37 }
 0x16e   : > { %1139 = vperm.xlu0 %1912, %v2195_v54   ;;  %1217 = vperm.xlu1 %1900, %v2018_v12   ;;  %v2496_v29 = vpop.permute.xlu1 %829  ;;  %v383_v54 = vmul.f32 %v2501_v3, %v2113_v28  ;;  %v386_v28 = vmul.f32 %v2501_v3, %v2124_v31  ;;  %v335_v31 = vmul.f32 %v2489_v38, %v2198_v55 }
 0x16f   : > { %v285_v34 = vadd.f32 %v277_v20, %v224_v39  ;;  %3389 = vst [vmem:[#allocation77_spill] sm:$0xff] %v2496_v29  ;;  %v333_v29 = vmul.f32 %v2489_v38, %v2186_v51  ;;  %v2528_v51 = vld [vmem:[%s3289_s1 + $0x5] ss:$0 sm:$0xff]  ;;  %v231_v55 = vmul.f32 %v2473_v18, %v2135_v35 }
 0x170   : > { %v255_v37 = vpop.permute.xlu0 %254 }
 0x171   : > { %v338_v39 = vadd.f32 %v330_v0, %v285_v34  ;;  %v280_v20 = vmul.f32 %v2484_v11, %v255_v37  ;;  %v229_v34 = vmul.f32 %v2473_v18, %v2126_v32  ;;  %v489_v37 = vmul.f32 %v2528_v51, %v2266_v16  ;;  %v2539_v32 = vld [vmem:[%s3289_s1 + $0x6] ss:$0 sm:$0xff] }
 0x172   : > { %1151 = vperm.xlu0 %1912, %v2204_v57   ;;  %1227 = vperm.xlu1 %1900, %v2023_v13  }
 0x173   : > { %v391_v1 = vadd.f32 %v383_v54, %v338_v39  ;;  %v288_v10 = vadd.f32 %v280_v20, %v227_v47  ;;  %v2521_v30 = vpop.permute.xlu1 %858  ;;  %v337_v39 = vmul.f32 %v2489_v38, %v2207_v58  ;;  %v558_v20 = vmul.f32 %v2539_v32, %v2302_v43  ;;  %v2566_v43 = vld [vmem:[%s3289_s1 + $0x7] ss:$0 sm:$0xff] }
 0x174   : > { %v263_v52 = vpop.permute.xlu0 %262 }
 0x175   : > { %v341_v57 = vadd.f32 %v333_v29, %v288_v10  ;;  %v282_v50 = vmul.f32 %v2484_v11, %v263_v52  ;;  %v444_v0 = vadd.f32 %v436_v7, %v391_v1  ;;  %v439_v1 = vmul.f32 %v2506_v19, %v2258_v9 }
 0x176   : > { %1159 = vperm.xlu0 %1912, %v2213_v60   ;;  %1237 = vperm.xlu1 %1900, %v2032_v15   ;;  %v388_v60 = vmul.f32 %v2501_v3, %v2130_v33  ;;  %v492_v33 = vmul.f32 %v2528_v51, %v2273_v62 }
 0x177   : > { %v394_v54 = vadd.f32 %v386_v28, %v341_v57  ;;  %v290_v47 = vadd.f32 %v282_v50, %v229_v34  ;;  %v2544_v52 = vpop.permute.xlu1 %866  ;;  %v497_v16 = vadd.f32 %v489_v37, %v444_v0  ;;  %v441_v28 = vmul.f32 %v2506_v19, %v2264_v48 }
 0x178   : > { %v271_v10 = vpop.permute.xlu0 %270  ;;  %v390_v57 = vmul.f32 %v2501_v3, %v2139_v36  ;;  %v494_v36 = vmul.f32 %v2528_v51, %v2279_v61 }
 0x179   : > { %v343_v29 = vadd.f32 %v335_v31, %v290_v47  ;;  %v284_v7 = vmul.f32 %v2484_v11, %v271_v10  ;;  %v447_v9 = vadd.f32 %v439_v1, %v394_v54  ;;  %v561_v31 = vmul.f32 %v2539_v32, %v2315_v24 }
 0x17a   : > { %1167 = vperm.xlu0 %1912, %v2222_v63   ;;  %1901 = vset.pattern.permute.xlu1 %v3334_v21  ;;  %v566_v63 = vadd.f32 %v558_v20, %v497_v16  ;;  %v443_v1 = vmul.f32 %v2506_v19, %v2270_v44  ;;  %v496_v24 = vmul.f32 %v2528_v51, %v2286_v53  ;;  %v3432_v21 = vld [vmem:[#allocation18_spill] sm:$0xff] }
 0x17b   : > { %v396_v34 = vadd.f32 %v388_v60, %v343_v29  ;;  %v292_v35 = vadd.f32 %v284_v7, %v231_v55  ;;  %1266 = vperm.xlu1 %1901, %v1978_v2   ;;  %v2569_v48 = vpop.permute.xlu1 %870  ;;  %v500_v0 = vadd.f32 %v492_v33, %v447_v9  ;;  %v563_v7 = vmul.f32 %v2539_v32, %v2321_v56 }
 0x17c   : > { %v577_v58 = vpop.permute.xlu0 %576 }
 0x17d   : > { %v345_v50 = vadd.f32 %v337_v39, %v292_v35  ;;  %v611_v62 = vmul.f32 %v2566_v43, %v577_v58  ;;  %v449_v37 = vadd.f32 %v441_v28, %v396_v34  ;;  %v569_v60 = vadd.f32 %v561_v31, %v500_v0 }
 0x17e   : > { %1319 = vperm.xlu0 %1912, %v1978_v2   ;;  %v565_v34 = vmul.f32 %v2539_v32, %v2327_v22 }
 0x17f   : > { %v398_v54 = vadd.f32 %v390_v57, %v345_v50  ;;  %v2577_v47 = vadd.f32 %v611_v62, %v566_v63  ;;  %1270 = vperm.xlu1 %1901, %v1986_v4   ;;  %v2582_v16 = vpop.permute.xlu1 %878  ;;  %v502_v29 = vadd.f32 %v494_v36, %v449_v37 }
 0x180   : > { %v589_v10 = vpop.permute.xlu0 %588  ;;  %3390 = vst [vmem:[#allocation78_spill] sm:$0xff] %v2582_v16  ;;  %v3483_v16 = vld [vmem:[#allocation65_spill] sm:$0xff] }
 0x181   : > { %v614_v55 = vmul.f32 %v2566_v43, %v589_v10  ;;  %v451_v61 = vadd.f32 %v443_v1, %v398_v54  ;;  %v571_v9 = vadd.f32 %v563_v7, %v502_v29 }
 0x182   : > { %1331 = vperm.xlu0 %1912, %v1991_v5  }
 0x183   : > { %v2590_v39 = vadd.f32 %v614_v55, %v569_v60  ;;  %1278 = vperm.xlu1 %1901, %v1991_v5   ;;  %v2593_v20 = vpop.permute.xlu1 %886  ;;  %v504_v33 = vadd.f32 %v496_v24, %v451_v61 }
 0x184   : > { %v597_v44 = vpop.permute.xlu0 %596  ;;  %3391 = vst [vmem:[#allocation79_spill] sm:$0xff] %v2593_v20  ;;  %v3475_v20 = vld [vmem:[#allocation57_spill] sm:$0xff] }
 0x185   : > { %v616_v28 = vmul.f32 %v2566_v43, %v597_v44  ;;  %v573_v56 = vadd.f32 %v565_v34, %v504_v33  ;;  %v226_v44 = vmul.f32 %v2473_v18, %v2111_v27  ;;  %v3411_v33 = vld [vmem:[#allocation17_spill] sm:$0xff]  ;;  %v3412_v27 = vld [vmem:[#allocation24_spill] sm:$0xff] }
 0x186   : > { %1339 = vperm.xlu0 %1912, %v1996_v6  }
 0x187   : > { %v2599_v53 = vadd.f32 %v616_v28, %v571_v9  ;;  %1286 = vperm.xlu1 %1901, %v1996_v6  }
 0x188   : > { %v605_v35 = vpop.permute.xlu0 %604  ;;  %v2603_v58 = vpop.permute.xlu1 %915 }
 0x189   : > { %v618_v57 = vmul.f32 %v2566_v43, %v605_v35  ;;  %3392 = vst [vmem:[#allocation80_spill] sm:$0xff] %v2603_v58  ;;  %v438_v35 = vmul.f32 %v2506_v19, %v3412_v27 }
 0x18a   : > { %1653 = vperm.xlu0 %1912, %v2092_v23  }
 0x18b   : > { %v2606_v63 = vadd.f32 %v618_v57, %v573_v56  ;;  %1902 = vset.pattern.permute.xlu1 %v3332_v14 }
 0x18c   : > { %v2609_v50 = vpop.permute.xlu0 %756  ;;  %1315 = vperm.xlu1 %1902, %v2004_v8   ;;  %v2612_v22 = vpop.permute.xlu1 %919 }
 0x18e   : > { %1665 = vperm.xlu0 %1912, %v2102_v25  }
 0x190   : > { %v2615_v62 = vpop.permute.xlu0 %768  ;;  %1323 = vperm.xlu1 %1902, %v1986_v4   ;;  %v2618_v0 = vpop.permute.xlu1 %927 }
 0x191   : > { %3393 = vst [vmem:[#allocation81_spill] sm:$0xff] %v2618_v0 }
 0x192   : > { %1673 = vperm.xlu0 %1912, %v2107_v26  }
 0x194   : > { %v2621_v23 = vpop.permute.xlu0 %776  ;;  %1327 = vperm.xlu1 %1902, %v2018_v12   ;;  %v2624_v37 = vpop.permute.xlu1 %935 }
 0x195   : > { %3394 = vst [vmem:[#allocation82_spill] sm:$0xff] %v2621_v23  ;;  %3395 = vst [vmem:[#allocation83_spill] sm:$0xff] %v2624_v37  ;;  %v3456_v37 = vld [vmem:[#allocation39_spill] sm:$0xff] }
 0x198   : > { %v2626_v36 = vpop.permute.xlu0 %1090  ;;  %1335 = vperm.xlu1 %1902, %v2023_v13  }
 0x199   : > { %3396 = vst [vmem:[#allocation84_spill] sm:$0xff] %v2626_v36  ;;  %v2629_v31 = vpop.permute.xlu1 %964 }
 0x19a   : > { %3397 = vst [vmem:[#allocation85_spill] sm:$0xff] %v2629_v31 }
 0x19c   : > { %v2631_v25 = vpop.permute.xlu0 %1102  ;;  %1343 = vperm.xlu1 %1902, %v2032_v15  }
 0x19d   : > { %3398 = vst [vmem:[#allocation86_spill] sm:$0xff] %v2631_v25  ;;  %v2634_v54 = vpop.permute.xlu1 %972 }
 0x1a0   : > { %v2636_v1 = vpop.permute.xlu0 %1110  ;;  %1903 = vset.pattern.permute.xlu1 %v3336_v59 }
 0x1a1   : > { %3399 = vst [vmem:[#allocation87_spill] sm:$0xff] %v2636_v1  ;;  %1372 = vperm.xlu1 %1903, %v1978_v2   ;;  %v2640_v26 = vpop.permute.xlu1 %976 }
 0x1a2   : > { %3400 = vst [vmem:[#allocation88_spill] sm:$0xff] %v2640_v26 }
 0x1a4   : > { %v2642_v10 = vpop.permute.xlu0 %1262 }
 0x1a5   : > { %3401 = vst [vmem:[#allocation89_spill] sm:$0xff] %v2642_v10  ;;  %1376 = vperm.xlu1 %1903, %v1986_v4   ;;  %v2645_v60 = vpop.permute.xlu1 %984  ;;  %v3428_v10 = vld [vmem:[#allocation34_spill] sm:$0xff] }
 0x1a6   : > { %3402 = vst [vmem:[#allocation90_spill] sm:$0xff] %v2645_v60  ;;  %v3440_v60 = vld [vmem:[#allocation41_spill] sm:$0xff] }
 0x1a8   : > { %v2647_v55 = vpop.permute.xlu0 %1274 }
 0x1a9   : > { %3403 = vst [vmem:[#allocation91_spill] sm:$0xff] %v2647_v55  ;;  %1384 = vperm.xlu1 %1903, %v1991_v5   ;;  %v2650_v29 = vpop.permute.xlu1 %992  ;;  %v279_v5 = vmul.f32 %v2484_v11, %v2154_v41  ;;  %v385_v41 = vmul.f32 %v2501_v3, %v3411_v33  ;;  %v3426_v55 = vld [vmem:[#allocation13_spill] sm:$0xff] }
 0x1aa   : > { %3404 = vst [vmem:[#allocation92_spill] sm:$0xff] %v2650_v29  ;;  %v3429_v29 = vld [vmem:[#allocation15_spill] sm:$0xff] }
 0x1ab   : > { %v287_v28 = vadd.f32 %v279_v5, %v226_v44  ;;  %v3418_v44 = vld [vmem:[#allocation4_spill] sm:$0xff] }
 0x1ac   : > { %v2652_v61 = vpop.permute.xlu0 %1282 }
 0x1ad   : > { %3405 = vst [vmem:[#allocation93_spill] sm:$0xff] %v2652_v61  ;;  %1392 = vperm.xlu1 %1903, %v1996_v6   ;;  %v332_v6 = vmul.f32 %v2489_v38, %v2179_v49  ;;  %v3414_v49 = vld [vmem:[#allocation2_spill] sm:$0xff] }
 0x1ae   : > { %v2655_v59 = vpop.permute.xlu1 %1031 }
 0x1af   : > { %3406 = vst [vmem:[#allocation94_spill] sm:$0xff] %v2655_v59  ;;  %v340_v34 = vadd.f32 %v332_v6, %v287_v28  ;;  %v2703_v6 = vld [vmem:[%s3289_s1 + $0xd] ss:$0 sm:$0xff]  ;;  %v3420_v28 = vld [vmem:[#allocation28_spill] sm:$0xff]  ;;  %v2864_v59 = vld [vmem:[%s3289_s1 + $0xf] ss:$0 sm:$0xff] }
 0x1b0   : > { %v2657_v2 = vpop.permute.xlu0 %1290  ;;  %v491_v27 = vmul.f32 %v2528_v51, %v3420_v28 }
 0x1b1   : > { %3407 = vst [vmem:[#allocation95_spill] sm:$0xff] %v2657_v2  ;;  %1905 = vset.pattern.permute.xlu1 %v3345_v42  ;;  %v3425_v2 = vld [vmem:[#allocation12_spill] sm:$0xff] }
 0x1b2   : > { %1421 = vperm.xlu1 %1905, %v2004_v8   ;;  %v2661_v24 = vpop.permute.xlu1 %1036  ;;  %v2679_v8 = vld [vmem:[%s3289_s1 + $0xc] ss:$0 sm:$0xff]  ;;  %v2717_v61 = vmul.f32 %v2506_v19, %v3425_v2 }
 0x1b3   : > { %v2690_v56 = vmul.f32 %v2679_v8, %v3414_v49  ;;  %v2698_v33 = vmul.f32 %v2679_v8, %v3418_v44  ;;  %v3421_v49 = vld [vmem:[#allocation6_spill] sm:$0xff] }
 0x1b4   : > { %v2663_v7 = vpop.permute.xlu0 %1596 }
 0x1b5   : > { %3408 = vst [vmem:[#allocation96_spill] sm:$0xff] %v2663_v7  ;;  %3415 = vst [vmem:[#allocation24_spill] sm:$0xff] %v2690_v56  ;;  %v281_v7 = vmul.f32 %v2484_v11, %v3421_v49 }
 0x1b6   : > { %1429 = vperm.xlu1 %1905, %v1986_v4   ;;  %v2672_v9 = vpop.permute.xlu1 %1046 }
 0x1b7   : > { %3409 = vst [vmem:[#allocation97_spill] sm:$0xff] %v2672_v9 }
 0x1b8   : > { %v2674_v42 = vpop.permute.xlu0 %1608 }
 0x1b9   : > { %3410 = vst [vmem:[#allocation98_spill] sm:$0xff] %v2674_v42  ;;  %v3417_v42 = vld [vmem:[#allocation3_spill] sm:$0xff] }
 0x1ba   : > { %1433 = vperm.xlu1 %1905, %v2018_v12   ;;  %v2686_v4 = vpop.permute.xlu1 %1056  ;;  %v278_v5 = vmul.f32 %v2484_v11, %v3417_v42  ;;  %3419 = vst [vmem:[#allocation3_spill] sm:$0xff] %v2698_v33  ;;  %v393_v12 = vadd.f32 %v385_v41, %v340_v34  ;;  %v3424_v42 = vld [vmem:[#allocation8_spill] sm:$0xff]  ;;  %v2721_v41 = vmul.f32 %v2506_v19, %v3426_v55  ;;  %v3427_v34 = vld [vmem:[#allocation14_spill] sm:$0xff] }
 0x1bb   : > { %3413 = vst [vmem:[#allocation17_spill] sm:$0xff] %v2686_v4  ;;  %v283_v44 = vmul.f32 %v2484_v11, %v3424_v42  ;;  %v2725_v28 = vmul.f32 %v2506_v19, %v3427_v34  ;;  %v384_v11 = vmul.f32 %v2501_v3, %v3429_v29  ;;  %v3430_v42 = vld [vmem:[#allocation16_spill] sm:$0xff]  ;;  %v2738_v55 = vmul.f32 %v2703_v6, %v3432_v21  ;;  %v3434_v4 = vld [vmem:[#allocation19_spill] sm:$0xff]  ;;  %v1914_v33 = vld [vmem:[%s1975_s17 + $0x40] sm:$0xff] }
 0x1bc   : > { %v2692_v57 = vpop.permute.xlu0 %1616  ;;  %v446_v49 = vadd.f32 %v438_v35, %v393_v12  ;;  %v2734_v2 = vmul.f32 %v2703_v6, %v3430_v42  ;;  %v2742_v19 = vmul.f32 %v2501_v3, %v3434_v4  ;;  %v3437_v35 = vld [vmem:[#allocation20_spill] sm:$0xff]  ;;  %v613_v4 = vmul.f32 %v2566_v43, %v3440_v60 }
 0x1bd   : > { %3416 = vst [vmem:[#allocation2_spill] sm:$0xff] %v2692_v57  ;;  %v3422_v57 = vld [vmem:[#allocation5_spill] sm:$0xff]  ;;  %3433 = vst [vmem:[#allocation6_spill] sm:$0xff] %v2738_v55  ;;  %v2755_v12 = vmul.f32 %v2703_v6, %v3437_v35  ;;  %v3439_v21 = vld [vmem:[#allocation40_spill] sm:$0xff] }
 0x1be   : > { %v2711_v14 = vmul.f32 %v2679_v8, %v3422_v57  ;;  %v560_v57 = vmul.f32 %v2539_v32, %v3428_v10  ;;  %1441 = vperm.xlu1 %1905, %v2023_v13   ;;  %3431 = vst [vmem:[#allocation28_spill] sm:$0xff] %v2734_v2  ;;  %v2747_v10 = vld [vmem:[%s3289_s1 + $0xe] ss:$0 sm:$0xff]  ;;  %v499_v34 = vadd.f32 %v491_v27, %v446_v49  ;;  %v3441_v55 = vld [vmem:[#allocation21_spill] sm:$0xff]  ;;  %v3445_v35 = vld [vmem:[#allocation44_spill] sm:$0xff] }
 0x1bf   : > { %v2749_v13 = vpop.permute.xlu1 %1086  ;;  %3438 = vst [vmem:[#allocation12_spill] sm:$0xff] %v2755_v12  ;;  %v225_v42 = vmul.f32 %v2473_v18, %v3439_v21  ;;  %v2763_v26 = vmul.f32 %v2501_v3, %v3441_v55  ;;  %v230_v27 = vmul.f32 %v2473_v18, %v3445_v35  ;;  %v3446_v49 = vld [vmem:[#allocation27_spill] sm:$0xff]  ;;  %v3447_v12 = vld [vmem:[#allocation29_spill] sm:$0xff]  ;;  %v3448_v3 = vld [vmem:[#allocation30_spill] sm:$0xff] }
 0x1c0   : > { %3423 = vst [vmem:[#allocation4_spill] sm:$0xff] %v2711_v14  ;;  %3435 = vst [vmem:[#allocation5_spill] sm:$0xff] %v2749_v13  ;;  %v2751_v29 = vpop.permute.xlu0 %1624  ;;  %v3442_v14 = vld [vmem:[#allocation22_spill] sm:$0xff]  ;;  %v2775_v21 = vmul.f32 %v2528_v51, %v3446_v49  ;;  %v2779_v60 = vmul.f32 %v2528_v51, %v3447_v12  ;;  %v2783_v55 = vmul.f32 %v2747_v10, %v3448_v3  ;;  %v3451_v49 = vld [vmem:[#allocation32_spill] sm:$0xff] }
 0x1c1   : > { %3436 = vst [vmem:[#allocation8_spill] sm:$0xff] %v2751_v29  ;;  %v2767_v13 = vmul.f32 %v2703_v6, %v3442_v14  ;;  %v3444_v29 = vld [vmem:[#allocation42_spill] sm:$0xff]  ;;  %v568_v14 = vadd.f32 %v560_v57, %v499_v34  ;;  %v2797_v12 = vmul.f32 %v2747_v10, %v3451_v49  ;;  %v3455_v57 = vld [vmem:[#allocation49_spill] sm:$0xff]  ;;  %v286_v2 = vadd.f32 %v278_v5, %v225_v42 }
 0x1c2   : > { %v228_v1 = vmul.f32 %v2473_v18, %v3444_v29  ;;  %3449 = vst [vmem:[#allocation14_spill] sm:$0xff] %v2783_v55  ;;  %v2788_v29 = vld [vmem:[%s3289_s1 + $0x8] ss:$0 sm:$0xff]  ;;  %1449 = vperm.xlu1 %1905, %v2032_v15   ;;  %v2809_v15 = vmul.f32 %v2566_v43, %v3456_v37  ;;  %v3460_v5 = vld [vmem:[#allocation46_spill] sm:$0xff] }
 0x1c3   : > { %3443 = vst [vmem:[#allocation13_spill] sm:$0xff] %v2767_v13  ;;  %v3450_v18 = vld [vmem:[#allocation31_spill] sm:$0xff]  ;;  %3452 = vst [vmem:[#allocation34_spill] sm:$0xff] %v2797_v12  ;;  %v3453_v13 = vld [vmem:[#allocation33_spill] sm:$0xff]  ;;  %v666_v34 = vmul.f32 %v2788_v29, %v3455_v57  ;;  %v2805_v31 = vpop.permute.xlu1 %1094  ;;  %v559_v42 = vmul.f32 %v2539_v32, %v3460_v5 }
 0x1c4   : > { %v2793_v35 = vmul.f32 %v2528_v51, %v3450_v18  ;;  %v2801_v3 = vmul.f32 %v2747_v10, %v3453_v13  ;;  %v621_v51 = vadd.f32 %v613_v4, %v568_v14  ;;  %v3457_v18 = vld [vmem:[#allocation43_spill] sm:$0xff]  ;;  %v289_v12 = vadd.f32 %v281_v7, %v228_v1  ;;  %v3463_v7 = vld [vmem:[#allocation60_spill] sm:$0xff] }
 0x1c5   : > { %v2813_v9 = vmul.f32 %v2566_v43, %v3457_v18  ;;  %v300_v49 = vpop.permute.xlu0 %299  ;;  %v291_v13 = vadd.f32 %v283_v44, %v230_v27  ;;  %v1820_v57 = vld [vmem:[%s3289_s1 + $0x9] ss:$0 sm:$0xff]  ;;  %v3462_v18 = vld [vmem:[#allocation48_spill] sm:$0xff]  ;;  %v3464_v44 = vmov 5  }
 0x1c6   : > { %3454 = vst [vmem:[#allocation15_spill] sm:$0xff] %v2801_v3  ;;  %v3458_v3 = vld [vmem:[#allocation45_spill] sm:$0xff]  ;;  %v331_v37 = vmul.f32 %v2489_v38, %v300_v49  ;;  %v3461_v4 = vld [vmem:[#allocation47_spill] sm:$0xff]  ;;  %v2831_v1 = vmul.f32 %v2539_v32, %v3462_v18  ;;  %1907 = vset.pattern.permute.xlu1 %v3464_v44  ;;  %v674_v27 = vadd.f32 %v666_v34, %v621_v51  ;;  %v3468_v44 = vld [vmem:[#allocation52_spill] sm:$0xff] }
 0x1c7   : > { %v2817_v25 = vmul.f32 %v2566_v43, %v3458_v3  ;;  %v2827_v14 = vmul.f32 %v2788_v29, %v3461_v4  ;;  %v736_v43 = vmul.f32 %v1820_v57, %v3463_v7  ;;  %v3465_v3 = vld [vmem:[#allocation50_spill] sm:$0xff]  ;;  %v3466_v49 = vld [vmem:[#allocation51_spill] sm:$0xff]  ;;  %1478 = vperm.xlu1 %1907, %v1914_v33   ;;  %v2849_v7 = vpop.permute.xlu1 %1098  ;;  %v2852_v34 = vmul.f32 %v1820_v57, %v3468_v44  ;;  %v3469_v51 = vld [vmem:[#allocation53_spill] sm:$0xff] }
 0x1c8   : > { %v2837_v55 = vmul.f32 %v2539_v32, %v3465_v3  ;;  %v2841_v5 = vmul.f32 %v2788_v29, %v3466_v49  ;;  %v2846_v4 = vld [vmem:[%s3289_s1 + $0xa] ss:$0 sm:$0xff]  ;;  %v339_v18 = vadd.f32 %v331_v37, %v286_v2  ;;  %3467 = vst [vmem:[#allocation18_spill] sm:$0xff] %v2849_v7  ;;  %v2856_v32 = vmul.f32 %v2788_v29, %v3469_v51  ;;  %v3470_v3 = vld [vmem:[#allocation54_spill] sm:$0xff]  ;;  %v3473_v7 = vld [vmem:[#allocation56_spill] sm:$0xff] }
 0x1c9   : > { %3459 = vst [vmem:[#allocation16_spill] sm:$0xff] %v2817_v25  ;;  %v2859_v49 = vmul.f32 %v1820_v57, %v3470_v3  ;;  %v789_v33 = vmul.f32 %v2846_v4, %v2435_v46  ;;  %v312_v2 = vpop.permute.xlu0 %311  ;;  %v3472_v37 = vld [vmem:[#allocation55_spill] sm:$0xff]  ;;  %v2873_v51 = vmul.f32 %v1820_v57, %v3473_v7  ;;  %v735_v23 = vmul.f32 %v1820_v57, %v3475_v20 }
 0x1ca   : > { %v2870_v44 = vmul.f32 %v2788_v29, %v3472_v37  ;;  %v2878_v3 = vld [vmem:[%s3289_s1 + $0xb] ss:$0 sm:$0xff]  ;;  %v392_v36 = vadd.f32 %v384_v11, %v339_v18  ;;  %v334_v0 = vmul.f32 %v2489_v38, %v312_v2  ;;  %v744_v58 = vadd.f32 %v736_v43, %v674_v27  ;;  %v2897_v11 = vld [vmem:[%s3289_s1 + $0x12] ss:$0 sm:$0xff]  ;;  %v1915_v2 = vld [vmem:[%s1975_s17 + $0x60] sm:$0xff] }
 0x1cb   : > { %3471 = vst [vmem:[#allocation19_spill] sm:$0xff] %v2859_v49  ;;  %3474 = vst [vmem:[#allocation20_spill] sm:$0xff] %v2873_v51  ;;  %v3476_v46 = vld [vmem:[#allocation59_spill] sm:$0xff]  ;;  %v842_v37 = vmul.f32 %v2878_v3, %v2466_v17  ;;  %v3478_v49 = vld [vmem:[#allocation61_spill] sm:$0xff]  ;;  %1482 = vperm.xlu1 %1907, %v1915_v2   ;;  %v2901_v43 = vpop.permute.xlu1 %1106  ;;  %v2921_v2 = vmul.f32 %v2846_v4, %v2429_v40 }
 0x1cc   : > { %v2883_v56 = vmul.f32 %v1820_v57, %v3476_v46  ;;  %v2889_v7 = vmul.f32 %v2864_v59, %v3478_v49  ;;  %v3480_v51 = vld [vmem:[#allocation62_spill] sm:$0xff]  ;;  %v445_v20 = vadd.f32 %v2717_v61, %v392_v36  ;;  %v342_v18 = vadd.f32 %v334_v0, %v289_v12  ;;  %v3481_v17 = vld [vmem:[#allocation63_spill] sm:$0xff]  ;;  %v3482_v49 = vld [vmem:[#allocation64_spill] sm:$0xff] }
 0x1cd   : > { %v2892_v25 = vmul.f32 %v1820_v57, %v3480_v51  ;;  %v2905_v27 = vmul.f32 %v2864_v59, %v3481_v17  ;;  %v2908_v51 = vmul.f32 %v1820_v57, %v3482_v49  ;;  %v797_v46 = vadd.f32 %v789_v33, %v744_v58  ;;  %v3484_v57 = vld [vmem:[#allocation67_spill] sm:$0xff] }
 0x1ce   : > { %3477 = vst [vmem:[#allocation40_spill] sm:$0xff] %v2883_v56  ;;  %3479 = vst [vmem:[#allocation41_spill] sm:$0xff] %v2889_v7  ;;  %v895_v7 = vmul.f32 %v2679_v8, %v2544_v52  ;;  %v320_v56 = vpop.permute.xlu0 %319  ;;  %v2914_v0 = vmul.f32 %v2864_v59, %v3483_v16  ;;  %v395_v36 = vadd.f32 %v2742_v19, %v342_v18  ;;  %v1916_v19 = vld [vmem:[%s1975_s17 + $0xa0] sm:$0xff] }
 0x1cf   : > { %v336_v61 = vmul.f32 %v2489_v38, %v320_v56  ;;  %v498_v12 = vadd.f32 %v2775_v21, %v445_v20  ;;  %v2925_v58 = vmul.f32 %v2897_v11, %v3484_v57  ;;  %v850_v52 = vadd.f32 %v842_v37, %v797_v46  ;;  %1490 = vperm.xlu1 %1907, %v1916_v19   ;;  %v2935_v21 = vpop.permute.xlu1 %1114  ;;  %v3485_v20 = vld [vmem:[#allocation68_spill] sm:$0xff]  ;;  %v3486_v37 = vld [vmem:[#allocation69_spill] sm:$0xff] }
 0x1d0   : > { %v948_v33 = vmul.f32 %v2703_v6, %v2612_v22  ;;  %v2931_v16 = vmul.f32 %v2846_v4, %v2442_v45  ;;  %v448_v38 = vadd.f32 %v2721_v41, %v395_v36  ;;  %v2939_v18 = vmul.f32 %v2897_v11, %v3485_v20  ;;  %v3487_v36 = vld [vmem:[#allocation71_spill] sm:$0xff]  ;;  %v3490_v20 = vld [vmem:[#allocation77_spill] sm:$0xff] }
 0x1d1   : > { %v344_v56 = vadd.f32 %v336_v61, %v291_v13  ;;  %v567_v40 = vadd.f32 %v559_v42, %v498_v12  ;;  %v2943_v17 = vmul.f32 %v2846_v4, %v3486_v37  ;;  %v903_v22 = vadd.f32 %v895_v7, %v850_v52  ;;  %v1917_v52 = vld [vmem:[%s1975_s17 + $0xe0] sm:$0xff] }
 0x1d2   : > { %v1001_v45 = vmul.f32 %v2747_v10, %v2634_v54  ;;  %v634_v41 = vpop.permute.xlu0 %633  ;;  %v501_v46 = vadd.f32 %v2779_v60, %v448_v38  ;;  %v2953_v61 = vmul.f32 %v2846_v4, %v3487_v36  ;;  %v672_v12 = vadd.f32 %v2827_v14, %v2577_v47  ;;  %v3488_v47 = vld [vmem:[#allocation73_spill] sm:$0xff] }
 0x1d3   : > { %v397_v13 = vadd.f32 %v2763_v26, %v344_v56  ;;  %v620_v49 = vadd.f32 %v2809_v15, %v567_v40  ;;  %v665_v42 = vmul.f32 %v2788_v29, %v634_v41  ;;  %v956_v7 = vadd.f32 %v948_v33, %v903_v22  ;;  %v2964_v15 = vld [vmem:[%s3289_s1 + $0x10] ss:$0 sm:$0xff]  ;;  %1498 = vperm.xlu1 %1907, %v1917_v52   ;;  %v3494_v52 = vld [vmem:[#allocation19_spill] sm:$0xff] }
 0x1d4   : > { %v1070_v54 = vmul.f32 %v2864_v59, %v2661_v24  ;;  %v788_v26 = vmul.f32 %v2846_v4, %v2609_v50  ;;  %v570_v38 = vadd.f32 %v2831_v1, %v501_v46  ;;  %v841_v14 = vmul.f32 %v2878_v3, %v3488_v47  ;;  %v3489_v33 = vld [vmem:[#allocation76_spill] sm:$0xff]  ;;  %v2975_v40 = vpop.permute.xlu1 %1143 }
 0x1d5   : > { %v450_v60 = vadd.f32 %v2725_v28, %v397_v13  ;;  %v673_v57 = vadd.f32 %v665_v42, %v620_v49  ;;  %v844_v24 = vmul.f32 %v2878_v3, %v3489_v33  ;;  %v1009_v56 = vadd.f32 %v1001_v45, %v956_v7  ;;  %v3003_v7 = vld [vmem:[%s1975_s17 + $0x21] sm:$0xff]  ;;  %v3495_v47 = vld [vmem:[#allocation80_spill] sm:$0xff] }
 0x1d6   : > { %v1123_v50 = vmul.f32 %v2964_v15, %v2805_v31  ;;  %v646_v19 = vpop.permute.xlu0 %645  ;;  %v2979_v28 = vmul.f32 %v2878_v3, %v3490_v20  ;;  %v623_v1 = vadd.f32 %v2813_v9, %v570_v38  ;;  %v893_v41 = vmul.f32 %v2679_v8, %v2521_v30 }
 0x1d7   : > { %v743_v37 = vadd.f32 %v735_v23, %v673_v57  ;;  %v668_v22 = vmul.f32 %v2788_v29, %v646_v19  ;;  %v675_v45 = vadd.f32 %v2841_v5, %v2590_v39  ;;  %v1078_v31 = vadd.f32 %v1070_v54, %v1009_v56 }
 0x1d8   : > { %v503_v13 = vadd.f32 %v2793_v35, %v450_v60  ;;  %v791_v49 = vmul.f32 %v2846_v4, %v2615_v62  ;;  %v3491_v23 = vmov 0   ;;  %v742_v9 = vadd.f32 %v2852_v34, %v672_v12  ;;  %v2999_v35 = vld [vmem:[%s3289_s1 + $0x11] ss:$0 sm:$0xff]  ;;  %v1148_v34 = vpop.permute.xlu1 %1147 }
 0x1d9   : > { %v796_v42 = vadd.f32 %v788_v26, %v743_v37  ;;  %v676_v46 = vadd.f32 %v668_v22, %v623_v1  ;;  %1909 = vset.pattern.permute.xlu1 %v3491_v23  ;;  %v677_v36 = vadd.f32 %v2856_v32, %v2599_v53  ;;  %v679_v30 = vadd.f32 %v2870_v44, %v2606_v63  ;;  %v3010_v44 = vld [vmem:[%s1975_s17 + $0x61] sm:$0xff]  ;;  %v3493_v60 = vld [vmem:[#allocation16_spill] sm:$0xff] }
 0x1da   : > { %v1131_v39 = vadd.f32 %v1123_v50, %v1078_v31  ;;  %v654_v62 = vpop.permute.xlu0 %653  ;;  %v572_v5 = vadd.f32 %v2837_v55, %v503_v13  ;;  %1536 = vperm.xlu1 %1909, %v3003_v7   ;;  %v1176_v63 = vmul.f32 %v2999_v35, %v1148_v34  ;;  %v896_v54 = vmul.f32 %v2679_v8, %v2569_v48  ;;  %v3492_v26 = vld [vmem:[#allocation78_spill] sm:$0xff]  ;;  %v3498_v1 = vld [vmem:[#allocation20_spill] sm:$0xff]  ;;  %v3500_v23 = vld [vmem:[#allocation79_spill] sm:$0xff] }
 0x1db   : > { %v849_v12 = vadd.f32 %v841_v14, %v796_v42  ;;  %v746_v53 = vadd.f32 %v2892_v25, %v676_v46  ;;  %v670_v32 = vmul.f32 %v2788_v29, %v654_v62  ;;  %v3016_v55 = vmul.f32 %v2679_v8, %v3492_v26  ;;  %v3496_v14 = vld [vmem:[#allocation24_spill] sm:$0xff]  ;;  %v3497_v50 = vld [vmem:[#allocation82_spill] sm:$0xff] }
 0x1dc   : > { %v625_v57 = vadd.f32 %v3493_v60, %v572_v5  ;;  %v745_v38 = vadd.f32 %v3494_v52, %v675_v45  ;;  %v947_v25 = vmul.f32 %v2703_v6, %v3495_v47  ;;  %v3023_v56 = vadd.f32 %v1176_v63, %v1131_v39  ;;  %v1156_v37 = vpop.permute.xlu1 %1155  ;;  %v3499_v31 = vld [vmem:[#allocation40_spill] sm:$0xff]  ;;  %v3047_v60 = vld [vmem:[%s1975_s17 + $0x81] sm:$0xff] }
 0x1dd   : > { %v902_v29 = vadd.f32 %v3496_v14, %v849_v12  ;;  %v799_v33 = vadd.f32 %v791_v49, %v746_v53  ;;  %v793_v19 = vmul.f32 %v2846_v4, %v3497_v50  ;;  %v747_v22 = vadd.f32 %v3498_v1, %v677_v36  ;;  %v3501_v4 = vld [vmem:[#allocation81_spill] sm:$0xff]  ;;  %v3502_v5 = vld [vmem:[#allocation84_spill] sm:$0xff]  ;;  %v3504_v12 = vld [vmem:[#allocation3_spill] sm:$0xff] }
 0x1de   : > { %v678_v48 = vadd.f32 %v670_v32, %v625_v57  ;;  %v806_v20 = vpop.permute.xlu0 %805  ;;  %1546 = vperm.xlu1 %1909, %v3010_v44   ;;  %v749_v45 = vadd.f32 %v3499_v31, %v679_v30  ;;  %v795_v46 = vadd.f32 %v2921_v2, %v742_v9  ;;  %v3034_v39 = vmul.f32 %v2679_v8, %v3500_v23  ;;  %v3503_v30 = vld [vmem:[#allocation94_spill] sm:$0xff]  ;;  %v3510_v31 = vld [vmem:[#allocation83_spill] sm:$0xff]  ;;  %v3513_v23 = vld [vmem:[#allocation4_spill] sm:$0xff] }
 0x1df   : > { %v852_v13 = vadd.f32 %v844_v24, %v799_v33  ;;  %v955_v42 = vadd.f32 %v947_v25, %v902_v29  ;;  %v840_v49 = vmul.f32 %v2878_v3, %v806_v20  ;;  %v950_v62 = vmul.f32 %v2703_v6, %v3501_v4  ;;  %v3505_v2 = vld [vmem:[#allocation14_spill] sm:$0xff]  ;;  %v3508_v20 = vld [vmem:[#allocation28_spill] sm:$0xff] }
 0x1e0   : > { %v1122_v34 = vmul.f32 %v2964_v15, %v3502_v5  ;;  %v748_v36 = vadd.f32 %v2908_v51, %v678_v48  ;;  %v1069_v24 = vmul.f32 %v2864_v59, %v3503_v30  ;;  %v798_v8 = vadd.f32 %v2931_v16, %v745_v38  ;;  %v1164_v57 = vpop.permute.xlu1 %1163  ;;  %v3506_v33 = vld [vmem:[#allocation86_spill] sm:$0xff] }
 0x1e1   : > { %v905_v53 = vadd.f32 %v3504_v12, %v852_v13  ;;  %v1008_v9 = vadd.f32 %v3505_v2, %v955_v42  ;;  %v848_v32 = vadd.f32 %v840_v49, %v795_v46  ;;  %v800_v52 = vadd.f32 %v2943_v17, %v747_v22  ;;  %v3509_v1 = vld [vmem:[#allocation34_spill] sm:$0xff]  ;;  %v3511_v13 = vld [vmem:[#allocation85_spill] sm:$0xff]  ;;  %v3512_v46 = vld [vmem:[#allocation87_spill] sm:$0xff] }
 0x1e2   : > { %v801_v63 = vadd.f32 %v793_v19, %v748_v36  ;;  %v818_v26 = vpop.permute.xlu0 %817  ;;  %1551 = vperm.xlu1 %1909, %v3047_v60   ;;  %v802_v51 = vadd.f32 %v2953_v61, %v749_v45  ;;  %v1125_v50 = vmul.f32 %v2964_v15, %v3506_v33  ;;  %v3507_v19 = vld [vmem:[#allocation97_spill] sm:$0xff]  ;;  %v1175_v38 = vmul.f32 %v2999_v35, %v2975_v40 }
 0x1e3   : > { %v1077_v47 = vadd.f32 %v1069_v24, %v1008_v9  ;;  %v901_v25 = vadd.f32 %v893_v41, %v848_v32  ;;  %v958_v14 = vadd.f32 %v950_v62, %v905_v53  ;;  %v843_v29 = vmul.f32 %v2878_v3, %v818_v26  ;;  %v3070_v62 = vld [vmem:[%s1975_s17 + $0xc1] sm:$0xff] }
 0x1e4   : > { %v1072_v16 = vmul.f32 %v2864_v59, %v3507_v19  ;;  %v854_v48 = vadd.f32 %v2979_v28, %v801_v63  ;;  %v952_v45 = vmul.f32 %v2703_v6, %v3510_v31  ;;  %v999_v42 = vmul.f32 %v2747_v10, %v3511_v13  ;;  %v3514_v6 = vld [vmem:[#allocation88_spill] sm:$0xff]  ;;  %v3515_v32 = vld [vmem:[#allocation6_spill] sm:$0xff] }
 0x1e5   : > { %v1130_v17 = vadd.f32 %v1122_v34, %v1077_v47  ;;  %v954_v61 = vadd.f32 %v3508_v20, %v901_v25  ;;  %v1011_v41 = vadd.f32 %v3509_v1, %v958_v14  ;;  %v851_v22 = vadd.f32 %v843_v29, %v798_v8  ;;  %v1203_v30 = vpop.permute.xlu1 %1202  ;;  %v3516_v47 = vld [vmem:[#allocation90_spill] sm:$0xff]  ;;  %v3517_v25 = vld [vmem:[#allocation17_spill] sm:$0xff]  ;;  %v3518_v29 = vld [vmem:[#allocation15_spill] sm:$0xff] }
 0x1e6   : > { %v1127_v49 = vmul.f32 %v2964_v15, %v3512_v46  ;;  %v907_v4 = vadd.f32 %v3513_v23, %v854_v48  ;;  %v826_v40 = vpop.permute.xlu0 %825  ;;  %1561 = vperm.xlu1 %1909, %v3070_v62   ;;  %v1002_v24 = vmul.f32 %v2747_v10, %v3514_v6  ;;  %v1178_v12 = vmul.f32 %v2999_v35, %v1156_v37  ;;  %v3520_v37 = vld [vmem:[#allocation41_spill] sm:$0xff]  ;;  %v3522_v1 = vld [vmem:[#allocation18_spill] sm:$0xff] }
 0x1e7   : > { %v1183_v28 = vadd.f32 %v1175_v38, %v1130_v17  ;;  %v1080_v5 = vadd.f32 %v1072_v16, %v1011_v41  ;;  %v904_v34 = vadd.f32 %v896_v54, %v851_v22  ;;  %v845_v36 = vmul.f32 %v2878_v3, %v826_v40  ;;  %v3519_v16 = vld [vmem:[#allocation58_spill] sm:$0xff]  ;;  %v3521_v20 = vld [vmem:[#allocation5_spill] sm:$0xff] }
 0x1e8   : > { %v960_v53 = vadd.f32 %v952_v45, %v907_v4  ;;  %v1007_v2 = vadd.f32 %v999_v42, %v954_v61  ;;  %v1004_v54 = vmul.f32 %v2747_v10, %v3516_v47  ;;  %v1074_v14 = vmul.f32 %v2864_v59, %v3517_v25  ;;  %v3523_v45 = vld [vmem:[#allocation12_spill] sm:$0xff]  ;;  %v3528_v47 = vld [vmem:[#allocation66_spill] sm:$0xff]  ;;  %v3529_v25 = vld [vmem:[#allocation89_spill] sm:$0xff] }
 0x1e9   : > { %v1133_v9 = vadd.f32 %v1125_v50, %v1080_v5  ;;  %v957_v63 = vadd.f32 %v3515_v32, %v904_v34  ;;  %v853_v26 = vadd.f32 %v845_v36, %v800_v52  ;;  %v3079_v8 = vadd.f32 %v2925_v58, %v1183_v28  ;;  %v1213_v58 = vpop.permute.xlu1 %1212  ;;  %v3108_v34 = vld [vmem:[%s3289_s1 + $0x13] ss:$0 sm:$0xff] }
 0x1ea   : > { %v1013_v33 = vadd.f32 %v3518_v29, %v960_v53  ;;  %v834_v19 = vpop.permute.xlu0 %833  ;;  %1571 = vperm.xlu1 %1909, %v3519_v16   ;;  %v1076_v38 = vadd.f32 %v3520_v37, %v1007_v2  ;;  %v1121_v61 = vmul.f32 %v2964_v15, %v3521_v20  ;;  %v1124_v41 = vmul.f32 %v2964_v15, %v3522_v1 }
 0x1eb   : > { %v1186_v50 = vadd.f32 %v1178_v12, %v1133_v9  ;;  %v906_v48 = vadd.f32 %v3016_v55, %v853_v26  ;;  %v847_v52 = vmul.f32 %v2878_v3, %v834_v19  ;;  %v1010_v17 = vadd.f32 %v1002_v24, %v957_v63  ;;  %v3526_v24 = vld [vmem:[#allocation92_spill] sm:$0xff] }
 0x1ec   : > { %v1082_v22 = vadd.f32 %v1074_v14, %v1013_v33  ;;  %v1246_v31 = vmul.f32 %v2897_v11, %v1213_v58  ;;  %v1180_v23 = vmul.f32 %v2999_v35, %v1164_v57  ;;  %v1129_v28 = vadd.f32 %v1121_v61, %v1076_v38  ;;  %v1922_v61 = vld [vmem:[%s1975_s17 + $0xa1] sm:$0xff] }
 0x1ed   : > { %v959_v13 = vadd.f32 %v3523_v45, %v906_v48  ;;  %v855_v42 = vadd.f32 %v847_v52, %v802_v51  ;;  %v1079_v46 = vadd.f32 %v2905_v27, %v1010_v17  ;;  %v3098_v55 = vadd.f32 %v2939_v18, %v1186_v50  ;;  %v1921_v51 = vld [vmem:[%s1975_s17 + $0x41] sm:$0xff]  ;;  %v3531_v45 = vld [vmem:[#allocation93_spill] sm:$0xff] }
 0x1ee   : > { %v1135_v3 = vadd.f32 %v1127_v49, %v1082_v22  ;;  %v3102_v4 = vadd.f32 %v1246_v31, %v3023_v56  ;;  %v1140_v40 = vpop.permute.xlu0 %1139  ;;  %v3524_v5 = vmov 1   ;;  %v1218_v49 = vpop.permute.xlu1 %1217  ;;  %v3525_v56 = vld [vmem:[#allocation70_spill] sm:$0xff]  ;;  %v1006_v12 = vmul.f32 %v2747_v10, %v3526_v24  ;;  %v3530_v52 = vld [vmem:[#allocation91_spill] sm:$0xff] }
 0x1ef   : > { %1911 = vset.pattern.permute.xlu1 %v3524_v5  ;;  %v908_v27 = vadd.f32 %v3034_v39, %v855_v42  ;;  %v1174_v18 = vmul.f32 %v2999_v35, %v1140_v40  ;;  %v1132_v57 = vadd.f32 %v1124_v41, %v1079_v46  ;;  %v1012_v36 = vadd.f32 %v1004_v54, %v959_v13  ;;  %v3527_v39 = vld [vmem:[#allocation13_spill] sm:$0xff] }
 0x1f0   : > { %1600 = vperm.xlu1 %1911, %v1921_v51   ;;  %v1250_v6 = vmul.f32 %v2897_v11, %v3525_v56  ;;  %v1126_v53 = vmul.f32 %v2964_v15, %v2901_v43  ;;  %v1188_v2 = vadd.f32 %v1180_v23, %v1135_v3  ;;  %v1244_v9 = vmul.f32 %v2897_v11, %v1203_v30  ;;  %v1923_v3 = vld [vmem:[%s1975_s17 + $0xe1] sm:$0xff] }
 0x1f1   : > { %v961_v32 = vadd.f32 %v3527_v39, %v908_v27  ;;  %v1182_v63 = vadd.f32 %v1174_v18, %v1129_v28  ;;  %v1081_v26 = vadd.f32 %v2914_v0, %v1012_v36  ;;  %v1075_v54 = vmul.f32 %v2864_v59, %v3528_v47  ;;  %v3532_v18 = vld [vmem:[#allocation95_spill] sm:$0xff] }
 0x1f2   : > { %v1297_v14 = vmul.f32 %v3108_v34, %v3529_v25  ;;  %v1152_v29 = vpop.permute.xlu0 %1151  ;;  %v1258_v33 = vadd.f32 %v1250_v6, %v1188_v2  ;;  %v1228_v30 = vpop.permute.xlu1 %1227  ;;  %v1128_v0 = vmul.f32 %v2964_v15, %v2935_v21  ;;  %v1247_v37 = vmul.f32 %v2897_v11, %v1218_v49 }
 0x1f3   : > { %v1252_v10 = vadd.f32 %v1244_v9, %v1182_v63  ;;  %v1177_v43 = vmul.f32 %v2999_v35, %v1152_v29  ;;  %v1134_v19 = vadd.f32 %v1126_v53, %v1081_v26  ;;  %v1014_v16 = vadd.f32 %v1006_v12, %v961_v32  ;;  %v1847_v9 = vld [vmem:[%s3289_s1 + $0x14] ss:$0 sm:$0xff]  ;;  %v1924_v32 = vld [vmem:[%s1975_s17 + $0x101] sm:$0xff] }
 0x1f4   : > { %1604 = vperm.xlu1 %1911, %v3010_v44   ;;  %v1300_v58 = vmul.f32 %v3108_v34, %v3530_v52  ;;  %v1249_v22 = vmul.f32 %v2897_v11, %v1228_v30  ;;  %v1302_v13 = vmul.f32 %v3108_v34, %v3531_v45  ;;  %v1304_v51 = vmul.f32 %v3108_v34, %v3532_v18  ;;  %v1848_v30 = vld [vmem:[%s3289_s1 + $0x15] ss:$0 sm:$0xff]  ;;  %v3534_v45 = vld [vmem:[#allocation7_spill] sm:$0xff] }
 0x1f5   : > { %v1185_v59 = vadd.f32 %v1177_v43, %v1132_v57  ;;  %v1083_v38 = vadd.f32 %v1075_v54, %v1014_v16  ;;  %v1305_v50 = vadd.f32 %v1297_v14, %v1252_v10  ;;  %v3533_v36 = vmov 2  }
 0x1f6   : > { %v1160_v48 = vpop.permute.xlu0 %1159  ;;  %v1238_v1 = vpop.permute.xlu1 %1237 }
 0x1f7   : > { %v1255_v17 = vadd.f32 %v1247_v37, %v1185_v59  ;;  %v1179_v20 = vmul.f32 %v2999_v35, %v1160_v48  ;;  %v1136_v41 = vadd.f32 %v1128_v0, %v1083_v38  ;;  %v1251_v40 = vmul.f32 %v2897_v11, %v1238_v1 }
 0x1f8   : > { %1612 = vperm.xlu1 %1911, %v1922_v61  }
 0x1f9   : > { %v1187_v21 = vadd.f32 %v1179_v20, %v1134_v19  ;;  %v1308_v15 = vadd.f32 %v1300_v58, %v1255_v17 }
 0x1fa   : > { %v1168_v31 = vpop.permute.xlu0 %1167  ;;  %v1267_v23 = vpop.permute.xlu1 %1266 }
 0x1fb   : > { %v1257_v42 = vadd.f32 %v1249_v22, %v1187_v21  ;;  %v1181_v46 = vmul.f32 %v2999_v35, %v1168_v31  ;;  %v1298_v5 = vmul.f32 %v3108_v34, %v1267_v23 }
 0x1fc   : > { %1620 = vperm.xlu1 %1911, %v1923_v3  }
 0x1fd   : > { %v1189_v28 = vadd.f32 %v1181_v46, %v1136_v41  ;;  %v1310_v27 = vadd.f32 %v1302_v13, %v1257_v42  ;;  %v1306_v57 = vadd.f32 %v1298_v5, %v3079_v8  ;;  %v1403_v13 = vmul.f32 %v1848_v30, %v3534_v45  ;;  %v1849_v42 = vld [vmem:[%s3289_s1 + $0x16] ss:$0 sm:$0xff] }
 0x1fe   : > { %v1271_v35 = vpop.permute.xlu1 %1270  ;;  %v1320_v14 = vpop.permute.xlu0 %1319  ;;  %v3545_v45 = vld [vmem:[#allocation96_spill] sm:$0xff] }
 0x1ff   : > { %v1259_v49 = vadd.f32 %v1251_v40, %v1189_v28  ;;  %v1299_v56 = vmul.f32 %v3108_v34, %v1271_v35  ;;  %v1351_v10 = vmul.f32 %v1847_v9, %v1320_v14  ;;  %v3536_v35 = vld [vmem:[#allocation10_spill] sm:$0xff] }
 0x200   : > { %1913 = vset.pattern.permute.xlu1 %v3533_v36 }
 0x201   : > { %1649 = vperm.xlu1 %1913, %v3003_v7   ;;  %v1312_v6 = vadd.f32 %v1304_v51, %v1259_v49  ;;  %v1307_v11 = vadd.f32 %v1299_v56, %v3102_v4  ;;  %v1359_v0 = vadd.f32 %v1351_v10, %v1306_v57  ;;  %v1408_v56 = vmul.f32 %v1848_v30, %v3536_v35 }
 0x202   : > { %v1279_v24 = vpop.permute.xlu1 %1278  ;;  %v1332_v19 = vpop.permute.xlu0 %1331 }
 0x203   : > { %v1301_v12 = vmul.f32 %v3108_v34, %v1279_v24 }
 0x205   : > { %1657 = vperm.xlu1 %1913, %v3010_v44   ;;  %v1309_v53 = vadd.f32 %v1301_v12, %v3098_v55 }
 0x206   : > { %v1287_v8 = vpop.permute.xlu1 %1286  ;;  %v1340_v52 = vpop.permute.xlu0 %1339 }
 0x207   : > { %v1303_v2 = vmul.f32 %v3108_v34, %v1287_v8  ;;  %v1356_v61 = vmul.f32 %v1847_v9, %v1340_v52 }
 0x209   : > { %1661 = vperm.xlu1 %1913, %v3047_v60   ;;  %v1311_v7 = vadd.f32 %v1303_v2, %v1258_v33 }
 0x20b   : > { %v1316_v4 = vpop.permute.xlu1 %1315  ;;  %v1364_v21 = vadd.f32 %v1356_v61, %v1311_v7  ;;  %v3544_v61 = vld [vmem:[#allocation35_spill] sm:$0xff] }
 0x20c   : > { %v1350_v39 = vmul.f32 %v1847_v9, %v1316_v4 }
 0x20d   : > { %1669 = vperm.xlu1 %1913, %v3070_v62  }
 0x20e   : > { %v1358_v44 = vadd.f32 %v1350_v39, %v1305_v50  ;;  %v1354_v50 = vmul.f32 %v1847_v9, %v1332_v19  ;;  %v3541_v19 = vld [vmem:[#allocation26_spill] sm:$0xff] }
 0x20f   : > { %v1324_v63 = vpop.permute.xlu1 %1323 }
 0x210   : > { %v1352_v26 = vmul.f32 %v1847_v9, %v1324_v63  ;;  %v1362_v20 = vadd.f32 %v1354_v50, %v1309_v53  ;;  %v1411_v3 = vadd.f32 %v1403_v13, %v1358_v44  ;;  %v3537_v53 = vld [vmem:[#allocation11_spill] sm:$0xff]  ;;  %v3175_v63 = vld [vmem:[%s3289_s1 + $0x17] ss:$0 sm:$0xff] }
 0x211   : > { %1677 = vperm.xlu1 %1913, %v1924_v32   ;;  %v1410_v8 = vmul.f32 %v1848_v30, %v3537_v53  ;;  %v3538_v44 = vld [vmem:[#allocation23_spill] sm:$0xff]  ;;  %v3549_v53 = vld [vmem:[#allocation38_spill] sm:$0xff] }
 0x212   : > { %v1360_v55 = vadd.f32 %v1352_v26, %v1307_v11  ;;  %v1457_v32 = vmul.f32 %v1849_v42, %v3538_v44  ;;  %v3180_v26 = vld [vmem:[%s3289_s1 + $0x18] ss:$0 sm:$0xff] }
 0x213   : > { %v1328_v47 = vpop.permute.xlu1 %1327 }
 0x214   : > { %v1353_v60 = vmul.f32 %v1847_v9, %v1328_v47 }
 0x216   : > { %v1361_v54 = vadd.f32 %v1353_v60, %v1308_v15 }
 0x217   : > { %v1336_v25 = vpop.permute.xlu1 %1335 }
 0x218   : > { %v1355_v34 = vmul.f32 %v1847_v9, %v1336_v25 }
 0x21a   : > { %v1363_v29 = vadd.f32 %v1355_v34, %v1310_v27  ;;  %v3535_v27 = vld [vmem:[#allocation9_spill] sm:$0xff] }
 0x21b   : > { %v1344_v62 = vpop.permute.xlu1 %1343  ;;  %v1406_v18 = vmul.f32 %v1848_v30, %v3535_v27 }
 0x21c   : > { %v1357_v33 = vmul.f32 %v1847_v9, %v1344_v62  ;;  %v1416_v24 = vadd.f32 %v1408_v56, %v1363_v29  ;;  %v3540_v62 = vld [vmem:[#allocation25_spill] sm:$0xff] }
 0x21d   : > { %v1414_v57 = vadd.f32 %v1406_v18, %v1361_v54  ;;  %v3539_v54 = vld [vmem:[#allocation72_spill] sm:$0xff] }
 0x21e   : > { %v1365_v43 = vadd.f32 %v1357_v33, %v1312_v6  ;;  %v1579_v25 = vmul.f32 %v3180_v26, %v3539_v54  ;;  %v1460_v33 = vmul.f32 %v1849_v42, %v3540_v62  ;;  %v3227_v54 = vld [vmem:[%s3289_s1 + $0x1a] ss:$0 sm:$0xff] }
 0x220   : > { %v1373_v16 = vpop.permute.xlu1 %1372  ;;  %v1418_v9 = vadd.f32 %v1410_v8, %v1365_v43  ;;  %v1516_v8 = vmul.f32 %v3175_v63, %v3549_v53 }
 0x221   : > { %v1404_v37 = vmul.f32 %v1848_v30, %v1373_v16  ;;  %v1462_v16 = vmul.f32 %v1849_v42, %v3541_v19 }
 0x223   : > { %v1412_v59 = vadd.f32 %v1404_v37, %v1359_v0  ;;  %v3542_v0 = vld [vmem:[#allocation74_spill] sm:$0xff] }
 0x224   : > { %v1377_v38 = vpop.permute.xlu1 %1376  ;;  %v1582_v37 = vmul.f32 %v3180_v26, %v3542_v0 }
 0x225   : > { %v1405_v48 = vmul.f32 %v1848_v30, %v1377_v38  ;;  %v1465_v47 = vadd.f32 %v1457_v32, %v1412_v59 }
 0x227   : > { %v1413_v58 = vadd.f32 %v1405_v48, %v1360_v55 }
 0x228   : > { %v1385_v17 = vpop.permute.xlu1 %1384 }
 0x229   : > { %v1407_v1 = vmul.f32 %v1848_v30, %v1385_v17 }
 0x22b   : > { %v1415_v41 = vadd.f32 %v1407_v1, %v1362_v20  ;;  %v1509_v1 = vmul.f32 %v3175_v63, %v3544_v61 }
 0x22c   : > { %v1393_v22 = vpop.permute.xlu1 %1392 }
 0x22d   : > { %v1409_v15 = vmul.f32 %v1848_v30, %v1393_v22  ;;  %v1468_v43 = vadd.f32 %v1460_v33, %v1415_v41  ;;  %v3200_v41 = vld [vmem:[%s3289_s1 + $0x19] ss:$0 sm:$0xff] }
 0x22e   : > { %v1631_v13 = vmul.f32 %v3200_v41, %v3545_v45 }
 0x22f   : > { %v1417_v31 = vadd.f32 %v1409_v15, %v1364_v21 }
 0x231   : > { %v1422_v46 = vpop.permute.xlu1 %1421  ;;  %v1470_v50 = vadd.f32 %v1462_v16, %v1417_v31 }
 0x232   : > { %v1456_v23 = vmul.f32 %v1849_v42, %v1422_v46 }
 0x234   : > { %v1464_v40 = vadd.f32 %v1456_v23, %v1411_v3  ;;  %v3546_v23 = vld [vmem:[#allocation36_spill] sm:$0xff] }
 0x235   : > { %v1430_v28 = vpop.permute.xlu1 %1429 }
 0x236   : > { %v1458_v5 = vmul.f32 %v1849_v42, %v1430_v28  ;;  %v1517_v15 = vadd.f32 %v1509_v1, %v1464_v40  ;;  %v1512_v28 = vmul.f32 %v3175_v63, %v3546_v23 }
 0x238   : > { %v3167_v51 = vadd.f32 %v1458_v5, %v1413_v58  ;;  %v3543_v58 = vld [vmem:[#allocation75_spill] sm:$0xff] }
 0x239   : > { %v1434_v49 = vpop.permute.xlu1 %1433  ;;  %v1584_v17 = vmul.f32 %v3180_v26, %v3543_v58 }
 0x23a   : > { %v1459_v36 = vmul.f32 %v1849_v42, %v1434_v49  ;;  %v3547_v49 = vld [vmem:[#allocation37_spill] sm:$0xff] }
 0x23c   : > { %v1467_v6 = vadd.f32 %v1459_v36, %v1414_v57  ;;  %v1514_v57 = vmul.f32 %v3175_v63, %v3547_v49  ;;  %v3548_v36 = vld [vmem:[#allocation98_spill] sm:$0xff] }
 0x23d   : > { %v1442_v11 = vpop.permute.xlu1 %1441  ;;  %v1634_v40 = vmul.f32 %v3200_v41, %v3548_v36 }
 0x23e   : > { %v1461_v12 = vmul.f32 %v1849_v42, %v1442_v11  ;;  %v1520_v27 = vadd.f32 %v1512_v28, %v1467_v6 }
 0x240   : > { %v1469_v2 = vadd.f32 %v1461_v12, %v1416_v24 }
 0x241   : > { %v1450_v7 = vpop.permute.xlu1 %1449 }
 0x242   : > { %v1463_v4 = vmul.f32 %v1849_v42, %v1450_v7  ;;  %v1522_v11 = vadd.f32 %v1514_v57, %v1469_v2  ;;  %v3550_v7 = vld [vmem:[#allocation2_spill] sm:$0xff] }
 0x243   : > { %v1636_v6 = vmul.f32 %v3200_v41, %v3550_v7 }
 0x244   : > { %v1471_v39 = vadd.f32 %v1463_v4, %v1418_v9 }
 0x246   : > { %v1479_v55 = vpop.permute.xlu1 %1478  ;;  %v1524_v44 = vadd.f32 %v1516_v8, %v1471_v39 }
 0x247   : > { %v1510_v60 = vmul.f32 %v3175_v63, %v1479_v55 }
 0x249   : > { %v1518_v34 = vadd.f32 %v1510_v60, %v1465_v47  ;;  %v3551_v47 = vld [vmem:[#allocation8_spill] sm:$0xff] }
 0x24a   : > { %v3185_v14 = vpop.permute.xlu1 %1482  ;;  %v1638_v2 = vmul.f32 %v3200_v41, %v3551_v47 }
 0x24b   : > { %v1587_v29 = vadd.f32 %v1579_v25, %v1518_v34  ;;  %v1654_v25 = vpop.permute.xlu0 %1653  ;;  %v1511_v1 = vmul.f32 %v3175_v63, %v3185_v14 }
 0x24c   : > { %v1685_v33 = vmul.f32 %v3227_v54, %v1654_v25 }
 0x24d   : > { %v1519_v23 = vadd.f32 %v1511_v1, %v3167_v51 }
 0x24e   : > { %v1491_v10 = vpop.permute.xlu1 %1490 }
 0x24f   : > { %v1513_v30 = vmul.f32 %v3175_v63, %v1491_v10  ;;  %v1666_v16 = vpop.permute.xlu0 %1665 }
 0x251   : > { %v1521_v59 = vadd.f32 %v1513_v30, %v1468_v43  ;;  %v3236_v43 = vld [vmem:[%s3290_s2] ss:$0 sm:$0xff] }
 0x252   : > { %v1499_v38 = vpop.permute.xlu1 %1498 }
 0x253   : > { %v1515_v48 = vmul.f32 %v3175_v63, %v1499_v38  ;;  %v1590_v52 = vadd.f32 %v1582_v37, %v1521_v59  ;;  %v1674_v58 = vpop.permute.xlu0 %1673 }
 0x255   : > { %v1523_v20 = vadd.f32 %v1515_v48, %v1470_v50 }
 0x257   : > { %v1592_v21 = vadd.f32 %v1584_v17, %v1523_v20 }
 0x259   : > { %v1537_v22 = vpop.permute.xlu1 %1536 }
 0x25a   : > { %v1578_v31 = vmul.f32 %v3180_v26, %v1537_v22  ;;  %v1690_v22 = vmul.f32 %v3227_v54, %v1674_v58 }
 0x25c   : > { %v1586_v42 = vadd.f32 %v1578_v31, %v1517_v15 }
 0x25d   : > { %v1547_v46 = vpop.permute.xlu1 %1546 }
 0x25e   : > { %v1639_v3 = vadd.f32 %v1631_v13, %v1586_v42  ;;  %v1580_v45 = vmul.f32 %v3180_v26, %v1547_v46 }
 0x260   : > { %v1588_v14 = vadd.f32 %v1580_v45, %v1519_v23 }
 0x261   : > { %v1552_v5 = vpop.permute.xlu1 %1551 }
 0x262   : > { %v1581_v18 = vmul.f32 %v3180_v26, %v1552_v5 }
 0x264   : > { %v1589_v35 = vadd.f32 %v1581_v18, %v1520_v27 }
 0x265   : > { %v1562_v56 = vpop.permute.xlu1 %1561 }
 0x266   : > { %v1583_v24 = vmul.f32 %v3180_v26, %v1562_v56  ;;  %v3213_v12 = vadd.f32 %v1634_v40, %v1589_v35 }
 0x268   : > { %v1591_v9 = vadd.f32 %v1583_v24, %v1522_v11 }
 0x269   : > { %v1572_v4 = vpop.permute.xlu1 %1571 }
 0x26a   : > { %v1585_v32 = vmul.f32 %v3180_v26, %v1572_v4  ;;  %v3220_v55 = vadd.f32 %v1636_v6, %v1591_v9 }
 0x26c   : > { %v1593_v60 = vadd.f32 %v1585_v32, %v1524_v44 }
 0x26e   : > { %v3229_v62 = vadd.f32 %v1638_v2, %v1593_v60 }
 0x26f   : > { %v1601_v34 = vpop.permute.xlu1 %1600 }
 0x270   : > { %v1632_v39 = vmul.f32 %v3200_v41, %v1601_v34 }
 0x272   : > { %v1640_v10 = vadd.f32 %v1632_v39, %v1587_v29  ;;  %v1688_v29 = vmul.f32 %v3227_v54, %v1666_v16 }
 0x273   : > { %v1605_v30 = vpop.permute.xlu1 %1604 }
 0x274   : > { %v1693_v19 = vadd.f32 %v1685_v33, %v1640_v10  ;;  %v1633_v28 = vmul.f32 %v3200_v41, %v1605_v30 }
 0x276   : > { %v1708_v0 = vadd.f32 %v3236_v43, %v1693_v19  ;;  %v1641_v46 = vadd.f32 %v1633_v28, %v1588_v14 }
 0x277   : > { %v1613_v37 = vpop.permute.xlu1 %1612 }
 0x278   : > { %v1716_v59 = vmax.f32 %v1708_v0, 0.0  ;;  %v1635_v38 = vmul.f32 %v3200_v41, %v1613_v37 }
 0x27a   : > { %v1724_v50 = vpack.c.bf16 %v1716_v59, %v1716_v59  ;;  %v1643_v48 = vadd.f32 %v1635_v38, %v1590_v52 }
 0x27b   : > { %v1621_v17 = vpop.permute.xlu1 %1620 }
 0x27c   : > { %1733 = vst.msk [vmem:[%s3244_s28 + $0x4] sm:$0xf] %vm1731_vm0, %v1724_v50  ;;  %v1696_v20 = vadd.f32 %v1688_v29, %v1643_v48  ;;  %v1637_v61 = vmul.f32 %v3200_v41, %v1621_v17 }
 0x27e   : > { %v1711_v15 = vadd.f32 %v3236_v43, %v1696_v20  ;;  %v1645_v31 = vadd.f32 %v1637_v61, %v1592_v21 }
 0x280   : > { %v1719_v13 = vmax.f32 %v1711_v15, 0.0  ;;  %v1698_v52 = vadd.f32 %v1690_v22, %v1645_v31  ;;  %v1650_v42 = vpop.permute.xlu1 %1649 }
 0x281   : > { %v1684_v5 = vmul.f32 %v3227_v54, %v1650_v42 }
 0x282   : > { %v1727_v27 = vpack.c.bf16 %v1719_v13, %v1719_v13  ;;  %v1713_v63 = vadd.f32 %v3236_v43, %v1698_v52 }
 0x283   : > { %v1692_v18 = vadd.f32 %v1684_v5, %v1639_v3 }
 0x284   : > { %1736 = vst.msk [vmem:[%s3244_s28 + $0x10] sm:$0xf] %vm1731_vm0, %v1727_v27  ;;  %v1721_v21 = vmax.f32 %v1713_v63, 0.0  ;;  %v1658_v26 = vpop.permute.xlu1 %1657 }
 0x285   : > { %v1707_v49 = vadd.f32 %v3236_v43, %v1692_v18  ;;  %v1686_v51 = vmul.f32 %v3227_v54, %v1658_v26 }
 0x286   : > { %v1729_v57 = vpack.c.bf16 %v1721_v21, %v1721_v21 }
 0x287   : > { %v1715_v41 = vmax.f32 %v1707_v49, 0.0  ;;  %v1694_v36 = vadd.f32 %v1686_v51, %v1641_v46 }
 0x288   : > { %1738 = vst.msk [vmem:[%s3244_s28 + $0x18] sm:$0xf] %vm1731_vm0, %v1729_v57  ;;  %v1662_v40 = vpop.permute.xlu1 %1661 }
 0x289   : > { %v1723_v35 = vpack.c.bf16 %v1715_v41, %v1715_v41  ;;  %v1709_v56 = vadd.f32 %v3236_v43, %v1694_v36  ;;  %v1687_v3 = vmul.f32 %v3227_v54, %v1662_v40 }
 0x28b   : > { %1732 = vst.msk [vmem:[%s3244_s28] sm:$0xf] %vm1731_vm0, %v1723_v35  ;;  %v1717_v11 = vmax.f32 %v1709_v56, 0.0  ;;  %v1695_v24 = vadd.f32 %v1687_v3, %v3213_v12 }
 0x28c   : > { %v1670_v53 = vpop.permute.xlu1 %1669 }
 0x28d   : > { %v1725_v8 = vpack.c.bf16 %v1717_v11, %v1717_v11  ;;  %v1710_v7 = vadd.f32 %v3236_v43, %v1695_v24  ;;  %v1689_v6 = vmul.f32 %v3227_v54, %v1670_v53 }
 0x28f   : > { %1734 = vst.msk [vmem:[%s3244_s28 + $0x8] sm:$0xf] %vm1731_vm0, %v1725_v8  ;;  %v1718_v9 = vmax.f32 %v1710_v7, 0.0  ;;  %v1697_v4 = vadd.f32 %v1689_v6, %v3220_v55 }
 0x290   : > { %v1678_v44 = vpop.permute.xlu1 %1677 }
 0x291   : > { %v1726_v32 = vpack.c.bf16 %v1718_v9, %v1718_v9  ;;  %v1712_v47 = vadd.f32 %v3236_v43, %v1697_v4  ;;  %v1691_v2 = vmul.f32 %v3227_v54, %v1678_v44 }
 0x293   : > { %1735 = vst.msk [vmem:[%s3244_s28 + $0xc] sm:$0xf] %vm1731_vm0, %v1726_v32  ;;  %v1720_v12 = vmax.f32 %v1712_v47, 0.0  ;;  %v1699_v60 = vadd.f32 %v1691_v2, %v3229_v62 }
 0x295   : > { %v1728_v25 = vpack.c.bf16 %v1720_v12, %v1720_v12  ;;  %v1714_v34 = vadd.f32 %v3236_v43, %v1699_v60 }
 0x297   : > { %1737 = vst.msk [vmem:[%s3244_s28 + $0x14] sm:$0xf] %vm1731_vm0, %v1728_v25  ;;  %v1722_v39 = vmax.f32 %v1714_v34, 0.0 }
 0x299   : > { %v1730_v33 = vpack.c.bf16 %v1722_v39, %v1722_v39 }
 0x29b   : > { %1739 = vst.msk [vmem:[%s3244_s28 + $0x1c] sm:$0xf] %vm1731_vm0, %v1730_v33 }
 0x29c PF: > { %s13_s12 = sadd.s32 1, %s1931_s12  }
 0x29d   : > { %p10_p4 = scmp.ge.s32.totalorder %s13_s12, 6  }
 0x29f   :  { %12 = sbr.rel (!%p10_p4) target bundleno = 1 (0x1), region = 64 }

// kernel: lpips_loss.7
= control target key start
LH: loop header
LB: loop body
LE: loop exit
PB: predicated region body
PF: predicated region fallthrough
CT: control target
= control target key end

     0   :  { %s526_s9 = smov 0   ;;  %s528_s10 = smov 0   ;;  %s623_s0 = inlined_call_operand.vmem [shape: bf16[4,16,32], index: 0, kind: input, shape index: {}]   ;;  %s624_s1 = inlined_call_operand.vmem [shape: f32[1,1,32], index: 1, kind: input, shape index: {}]   ;;  %s625_s2 = inlined_call_operand.vmem [shape: f32[2,2,1], index: 2, kind: output, shape index: {}]  }
   0x1   :  { %s530_s11 = smov 0   ;;  %s532_s12 = smov 0  }
   0x2   :  { %s534_s13 = smov 0  }
   0x3 LB: > { %s24_s14 = sadd.s32 1, %s504_s12  ;;  %p40_p1 = scmp.ne.s32.totalorder %s496_s10, %s492_s9  ;;  %s508_s13 = sphi %s534_s13, %s12_s13   ;;  %s504_s12 = sphi %s532_s12, %s629_s12   ;;  %s500_s11 = sphi %s530_s11, %s628_s11   ;;  %s496_s10 = sphi %s528_s10, %s627_s10   ;;  %s492_s9 = sphi %s526_s9, %s626_s9  }
   0x4   : > { %p26_p0 = scmp.ge.s32.totalorder %s24_s14, 2  ;;  %p41_p2 = scmp.eq.s32.totalorder %s508_s13, 0 }
   0x5   : > { %s33_s16 = sadd.s32 1, %s496_s10  ;;  %p395_p5 = scmp.ge.s32.totalorder %s508_s13, 2 }
   0x6   : > { %s631_s14 = smov (%p26_p0, %s24_s14), 0  ;;  %p42_p3 = por %p41_p2, %p40_p1 }
   0x7   : > { %s30_s15 = ssub.s32 %s504_s12, %s631_s14  ;;  %116 = sbr.rel (%p395_p5) target bundleno = 21 (0x15), region = 20 }
   0x8   : > { %p31_p4 = scmp.eq.s32.totalorder %s30_s15, 0 }
   0xa   : > { %s561_s17 = scalar_select %p31_p4, %s496_s10, %s33_s16  }
   0xe   : > { %119 = sbr.rel (!%p42_p3) target bundleno = 21 (0x15), region = 24  ;;  %s121_s18 = sand.u32 (%p42_p3), 1, %s496_s10  }
   0xf   : > { %s397_s19 = sshll.u32 (%p42_p3), %s504_s12, 2  ;;  %s396_s20 = sshll.u32 (%p42_p3), %s121_s18, 4 }
  0x10   : > { %s126_s23 = scalar_lea.vmem (%p42_p3), %s623_s0, %s397_s19  ;;  %s123_s24 = scalar_lea.vmem (%p42_p3), [#allocation2], %s396_s20 }
  0x11   : > { %v142_v0 = vld [vmem:[%s126_s23] sm:$0xf] (%p42_p3)  ;;  %v144_v1 = vld [vmem:[%s126_s23 + $0x8] sm:$0xf] (%p42_p3)  ;;  %v146_v2 = vld [vmem:[%s126_s23 + $0x10] sm:$0xf] (%p42_p3) }
  0x12   : > { %143 = vst [vmem:[%s123_s24] sm:$0xf] (%p42_p3), %v142_v0  ;;  %145 = vst [vmem:[%s123_s24 + $0x4] sm:$0xf] (%p42_p3), %v144_v1  ;;  %v148_v3 = vld [vmem:[%s126_s23 + $0x18] sm:$0xf] (%p42_p3) }
  0x13   : > { %147 = vst [vmem:[%s123_s24 + $0x8] sm:$0xf] (%p42_p3), %v146_v2  ;;  %149 = vst [vmem:[%s123_s24 + $0xc] sm:$0xf] (%p42_p3), %v148_v3 }
  0x15 PF: > { %p398_p6 = scmp.ge.s32.totalorder %s508_s13, 1  ;;  %p179_p7 = scmp.lt.s32.totalorder %s508_s13, 3 }
  0x17   : > { %p180_p8 = pnand %p398_p6, %p179_p7 }
  0x18   : > { %s186_s25 = sand.u32 (!%p180_p8), 1, %s492_s9   ;;  %vm227_vm0 = vcmask (!%p180_p8), 261120   ;;  %v401_v53 = vld [vmem:[%s624_s1] ss:$0 sm:$0xff] (!%p180_p8)  ;;  %p207_p9 = scmp.lt.s32.totalorder (!%p180_p8), %s500_s11, 1  ;;  %vm215_vm9 = vcmask (!%p180_p8), 1024   ;;  %v304_v0 = vlaneseq (!%p180_p8) }
  0x19   : > { %183 = sbr.rel (%p180_p8) target bundleno = 508 (0x1fc), region = 65  ;;  %s399_s26 = sshll.u32 (!%p180_p8), %s186_s25, 4  ;;  %v510_v63 = vmov (!%p180_p8), 0.0   ;;  %vm314_vm10 = vcmask (!%p180_p8), 1041409   ;;  %vm317_vm11 = vcmask (!%p180_p8), 58368  }
  0x1a   : > { %s188_s27 = scalar_lea.vmem (!%p180_p8), [#allocation2], %s399_s26  ;;  %v305_v1 = vand.u32 (!%p180_p8), 127, %v304_v0  ;;  %v307_v2 = vshrl.u32 (!%p180_p8), %v304_v0, 7 }
  0x1b   : > { %v412_v4 = vld [vmem:[%s188_s27 + $0x8] sm:$0xff] (!%p180_p8)   ;;  %v405_v5 = vld [vmem:[%s188_s27] sm:$0xff] (!%p180_p8)  }
  0x1c   : > { %v572_v6 = vunpack.c.l.bf16 (!%p180_p8), %v412_v4  ;;  %v574_v7 = vunpack.c.l.bf16 (!%p180_p8), %v405_v5  ;;  %v576_v8 = vunpack.c.h.bf16 (!%p180_p8), %v412_v4  ;;  %v578_v9 = vunpack.c.h.bf16 (!%p180_p8), %v405_v5 }
  0x1d   : > { %v308_v3 = vsub.s32 (!%p180_p8), %v305_v1, %v307_v2 }
  0x1e   : > { %v254_v10 = vmul.f32 (!%p180_p8), %v572_v6, %v572_v6  ;;  %v225_v11 = vmul.f32 (!%p180_p8), %v574_v7, %v574_v7  ;;  %v255_v12 = vmul.f32 (!%p180_p8), %v576_v8, %v576_v8  ;;  %v226_v13 = vmul.f32 (!%p180_p8), %v578_v9, %v578_v9 }
  0x20   : > { %v256_v14 = vsel %vm227_vm0, %v254_v10, 0.0  ;;  %v228_v15 = vsel %vm227_vm0, %v225_v11, 0.0  ;;  %v259_v16 = vsel %vm227_vm0, %v255_v12, 0.0  ;;  %v231_v17 = vsel %vm227_vm0, %v226_v13, 0.0  ;;  %s633_s11 = smov (!%p207_p9, %s500_s11), 1 }
  0x21   : > { %257 = vadd.xlane.f32.xlu1 %v256_v14  ;;  %229 = vadd.xlane.f32.xlu0 %v228_v15  ;;  %s400_s30 = sshll.u32 %s633_s11, 1 }
  0x22   : > { %s210_s5 = scalar_lea.vmem %s625_s2, %s400_s30 }
  0x23   : > { %216 = vst.msk [vmem:[%s210_s5] sm:$0x3] %vm215_vm9, %v510_v63 }
  0x25   : > { %260 = vadd.xlane.f32.xlu1 %v259_v16  ;;  %232 = vadd.xlane.f32.xlu0 %v231_v17 }
  0x2a   : > { %v301_v10 = vld [vmem:[%s210_s5] sm:$0x3] }
  0xae   : > { %v258_v18 = vpop.xlane.xlu1 %257  ;;  %v230_v19 = vpop.xlane.xlu0 %229 }
  0xaf   : > { %454 = vrsqrt.f32 %v258_v18  ;;  %vm264_vm1 = vcmp.eq.f32.partialorder %v258_v18, inf  ;;  %v267_v25 = vand.u32 2147483648, %v258_v18  ;;  %vm266_vm2 = vcmp.eq.f32.partialorder %v258_v18, 0.0 }
  0xb0   : > { %456 = vrsqrt.f32 %v230_v19  ;;  %vm236_vm3 = vcmp.eq.f32.partialorder %v230_v19, inf  ;;  %v239_v28 = vand.u32 2147483648, %v230_v19  ;;  %vm238_vm4 = vcmp.eq.f32.partialorder %v230_v19, 0.0 }
  0xb2   : > { %v261_v20 = vpop.xlane.xlu1 %260  ;;  %v233_v21 = vpop.xlane.xlu0 %232 }
  0xb3   : > { %458 = vrsqrt.f32 %v261_v20  ;;  %vm271_vm5 = vcmp.eq.f32.partialorder %v261_v20, inf  ;;  %vm273_vm6 = vcmp.eq.f32.partialorder %v261_v20, 0.0  ;;  %v274_v37 = vand.u32 2147483648, %v261_v20 }
  0xb4   : > { %460 = vrsqrt.f32 %v233_v21  ;;  %vm243_vm7 = vcmp.eq.f32.partialorder %v233_v21, inf  ;;  %v246_v40 = vand.u32 2147483648, %v233_v21  ;;  %vm245_vm8 = vcmp.eq.f32.partialorder %v233_v21, 0.0 }
  0xb9   : > { %v455_v22 = vpop.eup %454 }
  0xba   : > { %v457_v23 = vpop.eup %456  ;;  %v263_v24 = vmul.f32 %v455_v22, %v258_v18 }
  0xbb   : > { %v235_v26 = vmul.f32 %v457_v23, %v230_v19 }
  0xbc   : > { %v265_v27 = vsel %vm264_vm1, %v258_v18, %v263_v24 }
  0xbd   : > { %v459_v29 = vpop.eup %458  ;;  %v268_v30 = vsel %vm266_vm2, %v267_v25, %v265_v27  ;;  %v237_v31 = vsel %vm236_vm3, %v230_v19, %v235_v26 }
  0xbe   : > { %v461_v32 = vpop.eup %460  ;;  %v276_v33 = vadd.f32 1e-10, %v268_v30  ;;  %v240_v34 = vsel %vm238_vm4, %v239_v28, %v237_v31  ;;  %v270_v35 = vmul.f32 %v459_v29, %v261_v20 }
  0xbf   : > { %v248_v36 = vadd.f32 1e-10, %v240_v34  ;;  %v242_v38 = vmul.f32 %v461_v32, %v233_v21 }
  0xc0   : > { %462 = vrcp.f32 %v276_v33  ;;  %v272_v39 = vsel %vm271_vm5, %v261_v20, %v270_v35 }
  0xc1   : > { %464 = vrcp.f32 %v248_v36  ;;  %v275_v41 = vsel %vm273_vm6, %v274_v37, %v272_v39  ;;  %v244_v42 = vsel %vm243_vm7, %v233_v21, %v242_v38 }
  0xc2   : > { %v277_v43 = vadd.f32 1e-10, %v275_v41  ;;  %v247_v44 = vsel %vm245_vm8, %v246_v40, %v244_v42 }
  0xc3   : > { %v249_v45 = vadd.f32 1e-10, %v247_v44 }
  0xc4   : > { %466 = vrcp.f32 %v277_v43 }
  0xc5   : > { %468 = vrcp.f32 %v249_v45 }
  0xca   : > { %v463_v46 = vpop.eup %462 }
  0xcb   : > { %v465_v47 = vpop.eup %464  ;;  %v279_v48 = vmul.f32 %v463_v46, %v572_v6 }
  0xcc   : > { %v251_v49 = vmul.f32 %v465_v47, %v574_v7 }
  0xce   : > { %v467_v50 = vpop.eup %466  ;;  %v282_v51 = vsub.f32 %v251_v49, %v279_v48 }
  0xcf   : > { %v469_v52 = vpop.eup %468  ;;  %v281_v54 = vmul.f32 %v467_v50, %v576_v8 }
  0xd0   : > { %v284_v55 = vmul.f32 %v282_v51, %v282_v51  ;;  %v253_v56 = vmul.f32 %v469_v52, %v578_v9 }
  0xd2   : > { %v293_v57 = vmul.f32 %v401_v53, %v284_v55  ;;  %v283_v58 = vsub.f32 %v253_v56, %v281_v54 }
  0xd4   : > { %v295_v59 = vsel %vm227_vm0, %v293_v57, 0.0  ;;  %v285_v60 = vmul.f32 %v283_v58, %v283_v58 }
  0xd5   : > { %296 = vadd.xlane.f32.xlu0 %v295_v59 }
  0xd6   : > { %v294_v61 = vmul.f32 %v401_v53, %v285_v60 }
  0xd8   : > { %v298_v62 = vsel %vm227_vm0, %v294_v61, 0.0 }
  0xd9   : > { %299 = vadd.xlane.f32.xlu1 %v298_v62 }
 0x162   : > { %v297_v4 = vpop.xlane.xlu0 %296 }
 0x163   : > { %v309_v6 = vrot.slane %v297_v4, %v308_v3 }
 0x166   : > { %v300_v5 = vpop.xlane.xlu1 %299 }
 0x167   : > { %v313_v7 = vrot.slane %v300_v5, %v308_v3 }
 0x169   : > { %v315_v8 = vsel %vm314_vm10, %v313_v7, %v309_v6 }
 0x16a   : > { %v318_v9 = vsel %vm317_vm11, %v315_v8, 0.0 }
 0x16b   : > { %319 = vadd.xlane.f32.xlu0 %v318_v9 }
 0x1f8   : > { %v320_v11 = vpop.xlane.xlu0 %319 }
 0x1f9   : > { %v321_v12 = vadd.f32 %v320_v11, %v301_v10 }
 0x1fb   : > { %323 = vst.msk [vmem:[%s210_s5] sm:$0x3] %vm215_vm9, %v321_v12 }
 0x1fc PF: > { %s12_s13 = sadd.s32 1, %s508_s13   ;;  %s626_s9 = smov %s496_s10 }
 0x1fd   : > { %p9_p10 = scmp.ge.s32.totalorder %s12_s13, 4   ;;  %s627_s10 = smov %s561_s17 }
 0x1fe   : > { %s628_s11 = smov %s504_s12  ;;  %s629_s12 = smov %s631_s14 }
 0x1ff   :  { %11 = sbr.rel (!%p9_p10) target bundleno = 3 (0x3), region = 108 }

// kernel: lpips_loss.6
= control target key start
LH: loop header
LB: loop body
LE: loop exit
PB: predicated region body
PF: predicated region fallthrough
CT: control target
= control target key end

     0   :  { %s926_s9 = smov 0   ;;  %s928_s10 = smov 0   ;;  %s1281_s0 = inlined_call_operand.vmem [shape: bf16[4,64,16], index: 0, kind: input, shape index: {}]   ;;  %s1282_s1 = inlined_call_operand.vmem [shape: f32[1,1,16], index: 1, kind: input, shape index: {}]   ;;  %s1283_s2 = inlined_call_operand.vmem [shape: f32[2,2,1], index: 2, kind: output, shape index: {}]  }
   0x1   :  { %s930_s11 = smov 0   ;;  %s932_s12 = smov 0  }
   0x2   :  { %s934_s13 = smov 0  }
   0x3 LB: > { %s24_s14 = sadd.s32 1, %s904_s12  ;;  %p40_p1 = scmp.ne.s32.totalorder %s896_s10, %s892_s9  ;;  %s908_s13 = sphi %s934_s13, %s12_s13   ;;  %s904_s12 = sphi %s932_s12, %s1287_s12   ;;  %s900_s11 = sphi %s930_s11, %s1286_s11   ;;  %s896_s10 = sphi %s928_s10, %s1285_s10   ;;  %s892_s9 = sphi %s926_s9, %s1284_s9  }
   0x4   : > { %p26_p0 = scmp.ge.s32.totalorder %s24_s14, 2  ;;  %p41_p2 = scmp.eq.s32.totalorder %s908_s13, 0 }
   0x5   : > { %s33_s16 = sadd.s32 1, %s896_s10  ;;  %p715_p5 = scmp.ge.s32.totalorder %s908_s13, 2 }
   0x6   : > { %s1289_s14 = smov (%p26_p0, %s24_s14), 0  ;;  %p42_p3 = por %p41_p2, %p40_p1 }
   0x7   : > { %s30_s15 = ssub.s32 %s904_s12, %s1289_s14  ;;  %116 = sbr.rel (%p715_p5) target bundleno = 22 (0x16), region = 20 }
   0x8   : > { %p31_p4 = scmp.eq.s32.totalorder %s30_s15, 0 }
   0xa   : > { %s961_s17 = scalar_select %p31_p4, %s896_s10, %s33_s16  }
   0xe   : > { %119 = sbr.rel (!%p42_p3) target bundleno = 22 (0x16), region = 24  ;;  %s121_s18 = sand.u32 (%p42_p3), 1, %s896_s10  }
   0xf   : > { %s725_s19 = sshll.u32 (%p42_p3), %s904_s12, 4  ;;  %s716_s20 = sshll.u32 (%p42_p3), %s121_s18, 6 }
  0x10   : > { %s127_s23 = scalar_lea.vmem (%p42_p3), %s1281_s0, %s725_s19  ;;  %s123_s24 = scalar_lea.vmem (%p42_p3), [#allocation2], %s716_s20 }
  0x11   : > { %v143_v0 = vld [vmem:[%s127_s23] sm:$0xff] (%p42_p3)   ;;  %v147_v1 = vld [vmem:[%s127_s23 + $0x8] sm:$0xff] (%p42_p3)  }
  0x12   : > { %v151_v2 = vld [vmem:[%s127_s23 + $0x20] sm:$0xff] (%p42_p3)   ;;  %144 = vst [vmem:[%s123_s24] sm:$0xff] (%p42_p3), %v143_v0   ;;  %148 = vst [vmem:[%s123_s24 + $0x8] sm:$0xff] (%p42_p3), %v147_v1   ;;  %v155_v3 = vld [vmem:[%s127_s23 + $0x28] sm:$0xff] (%p42_p3)  }
  0x13   : > { %152 = vst [vmem:[%s123_s24 + $0x10] sm:$0xff] (%p42_p3), %v151_v2   ;;  %v159_v4 = vld [vmem:[%s127_s23 + $0x40] sm:$0xff] (%p42_p3)   ;;  %v163_v5 = vld [vmem:[%s127_s23 + $0x48] sm:$0xff] (%p42_p3)   ;;  %156 = vst [vmem:[%s123_s24 + $0x18] sm:$0xff] (%p42_p3), %v155_v3  }
  0x14   : > { %160 = vst [vmem:[%s123_s24 + $0x20] sm:$0xff] (%p42_p3), %v159_v4   ;;  %164 = vst [vmem:[%s123_s24 + $0x28] sm:$0xff] (%p42_p3), %v163_v5   ;;  %v167_v6 = vld [vmem:[%s127_s23 + $0x60] sm:$0xff] (%p42_p3)   ;;  %v171_v7 = vld [vmem:[%s127_s23 + $0x68] sm:$0xff] (%p42_p3)  }
  0x15   : > { %168 = vst [vmem:[%s123_s24 + $0x30] sm:$0xff] %v167_v6   ;;  %172 = vst [vmem:[%s123_s24 + $0x38] sm:$0xff] %v171_v7  }
  0x16 PF: > { %p719_p6 = scmp.ge.s32.totalorder %s908_s13, 1  ;;  %p228_p7 = scmp.lt.s32.totalorder %s908_s13, 3 }
  0x18   : > { %p229_p8 = pnand %p719_p6, %p228_p7 }
  0x19   : > { %s235_s25 = sand.u32 (!%p229_p8), 1, %s892_s9   ;;  %vm307_vm0 = vcmask (!%p229_p8), 130048   ;;  %p257_p9 = scmp.lt.s32.totalorder (!%p229_p8), %s900_s11, 1 }
  0x1a   : > { %232 = sbr.rel (%p229_p8) target bundleno = 537 (0x219), region = 65  ;;  %s720_s26 = sshll.u32 (!%p229_p8), %s235_s25, 6 }
  0x1b   : > { %s972_s27 = scalar_lea.vmem (!%p229_p8), [#allocation2], %s720_s26 }
  0x1c   : > { %v759_v8 = vld [vmem:[%s972_s27 + $0x10] sm:$0xff] (!%p229_p8)   ;;  %v727_v9 = vld [vmem:[%s972_s27] sm:$0xff] (!%p229_p8)   ;;  %v760_v30 = vld [vmem:[%s972_s27 + $0x18] sm:$0xff] (!%p229_p8)  }
  0x1d   : > { %v761_v10 = vld [vmem:[%s972_s27 + $0x20] sm:$0xff] (!%p229_p8)   ;;  %v977_v11 = vunpack.c.l.bf16 (!%p229_p8), %v759_v8  ;;  %v979_v12 = vunpack.c.l.bf16 (!%p229_p8), %v727_v9  ;;  %v981_v13 = vunpack.c.h.bf16 (!%p229_p8), %v759_v8  ;;  %v983_v14 = vunpack.c.h.bf16 (!%p229_p8), %v727_v9  ;;  %v763_v21 = vld [vmem:[%s972_s27 + $0x30] sm:$0xff] (!%p229_p8)   ;;  %v758_v31 = vld [vmem:[%s972_s27 + $0x8] sm:$0xff] (!%p229_p8)  }
  0x1e   : > { %v985_v15 = vunpack.c.h.bf16 (!%p229_p8), %v761_v10  ;;  %v987_v16 = vunpack.c.l.bf16 (!%p229_p8), %v761_v10  ;;  %v1000_v24 = vunpack.c.h.bf16 (!%p229_p8), %v763_v21  ;;  %v1002_v25 = vunpack.c.l.bf16 (!%p229_p8), %v763_v21  ;;  %v764_v38 = vld [vmem:[%s972_s27 + $0x38] sm:$0xff] (!%p229_p8)   ;;  %v762_v39 = vld [vmem:[%s972_s27 + $0x28] sm:$0xff] (!%p229_p8)  }
  0x1f   : > { %v303_v17 = vmul.f32 (!%p229_p8), %v977_v11, %v977_v11  ;;  %v299_v18 = vmul.f32 (!%p229_p8), %v979_v12, %v979_v12  ;;  %v304_v19 = vmul.f32 (!%p229_p8), %v981_v13, %v981_v13  ;;  %v300_v20 = vmul.f32 (!%p229_p8), %v983_v14, %v983_v14 }
  0x20   : > { %v413_v28 = vmul.f32 (!%p229_p8), %v985_v15, %v985_v15  ;;  %v412_v29 = vmul.f32 (!%p229_p8), %v987_v16, %v987_v16  ;;  %v417_v32 = vmul.f32 (!%p229_p8), %v1000_v24, %v1000_v24  ;;  %v416_v33 = vmul.f32 (!%p229_p8), %v1002_v25, %v1002_v25 }
  0x21   : > { %v320_v22 = vsel %vm307_vm0, %v303_v17, 0.0  ;;  %v308_v23 = vsel %vm307_vm0, %v299_v18, 0.0  ;;  %v323_v26 = vsel %vm307_vm0, %v304_v19, 0.0  ;;  %v311_v27 = vsel %vm307_vm0, %v300_v20, 0.0  ;;  %s1291_s11 = smov (!%p257_p9, %s900_s11), 1 }
  0x22   : > { %321 = vadd.xlane.f32.xlu1 %v320_v22  ;;  %309 = vadd.xlane.f32.xlu0 %v308_v23  ;;  %v423_v34 = vsel %vm307_vm0, %v413_v28, 0.0  ;;  %v420_v35 = vsel %vm307_vm0, %v412_v29, 0.0  ;;  %v1018_v36 = vunpack.c.l.bf16 %v760_v30  ;;  %v1020_v37 = vunpack.c.l.bf16 %v758_v31  ;;  %s721_s30 = sshll.u32 %s1291_s11, 1 }
  0x23   : > { %v435_v40 = vsel %vm307_vm0, %v417_v32, 0.0  ;;  %v432_v41 = vsel %vm307_vm0, %v416_v33, 0.0  ;;  %v1030_v44 = vunpack.c.l.bf16 %v764_v38  ;;  %v1032_v45 = vunpack.c.l.bf16 %v762_v39  ;;  %s1259_s5 = scalar_lea.vmem %s1283_s2, %s721_s30 }
  0x24   : > { %v305_v42 = vmul.f32 %v1018_v36, %v1018_v36  ;;  %v301_v43 = vmul.f32 %v1020_v37, %v1020_v37  ;;  %v1034_v46 = vunpack.c.h.bf16 %v760_v30  ;;  %v1036_v47 = vunpack.c.h.bf16 %v758_v31 }
  0x25   : > { %v418_v50 = vmul.f32 %v1030_v44, %v1030_v44  ;;  %v414_v51 = vmul.f32 %v1032_v45, %v1032_v45  ;;  %v1044_v52 = vunpack.c.h.bf16 %v764_v38  ;;  %v1046_v53 = vunpack.c.h.bf16 %v762_v39 }
  0x26   : > { %324 = vadd.xlane.f32.xlu1 %v323_v26  ;;  %312 = vadd.xlane.f32.xlu0 %v311_v27  ;;  %v326_v48 = vsel %vm307_vm0, %v305_v42, 0.0  ;;  %v314_v49 = vsel %vm307_vm0, %v301_v43, 0.0  ;;  %v306_v56 = vmul.f32 %v1034_v46, %v1034_v46  ;;  %v302_v57 = vmul.f32 %v1036_v47, %v1036_v47 }
  0x27   : > { %v438_v54 = vsel %vm307_vm0, %v418_v50, 0.0  ;;  %v426_v55 = vsel %vm307_vm0, %v414_v51, 0.0  ;;  %v419_v60 = vmul.f32 %v1044_v52, %v1044_v52  ;;  %v415_v61 = vmul.f32 %v1046_v53, %v1046_v53 }
  0x28   : > { %v329_v58 = vsel %vm307_vm0, %v306_v56, 0.0  ;;  %v317_v59 = vsel %vm307_vm0, %v302_v57, 0.0 }
  0x29   : > { %v441_v62 = vsel %vm307_vm0, %v419_v60, 0.0  ;;  %v429_v63 = vsel %vm307_vm0, %v415_v61, 0.0 }
  0x2a   : > { %424 = vadd.xlane.f32.xlu1 %v423_v34  ;;  %421 = vadd.xlane.f32.xlu0 %v420_v35 }
  0x2e   : > { %436 = vadd.xlane.f32.xlu1 %v435_v40  ;;  %433 = vadd.xlane.f32.xlu0 %v432_v41 }
  0x32   : > { %327 = vadd.xlane.f32.xlu1 %v326_v48  ;;  %315 = vadd.xlane.f32.xlu0 %v314_v49 }
  0x36   : > { %439 = vadd.xlane.f32.xlu1 %v438_v54  ;;  %427 = vadd.xlane.f32.xlu0 %v426_v55 }
  0x3a   : > { %330 = vadd.xlane.f32.xlu1 %v329_v58  ;;  %318 = vadd.xlane.f32.xlu0 %v317_v59 }
  0x3e   : > { %442 = vadd.xlane.f32.xlu1 %v441_v62  ;;  %430 = vadd.xlane.f32.xlu0 %v429_v63 }
  0xaf   : > { %v322_v0 = vpop.xlane.xlu1 %321  ;;  %v310_v1 = vpop.xlane.xlu0 %309 }
  0xb0   : > { %806 = vrsqrt.f32 %v322_v0  ;;  %vm362_vm1 = vcmp.eq.f32.partialorder %v322_v0, inf  ;;  %vm364_vm2 = vcmp.eq.f32.partialorder %v322_v0, 0.0  ;;  %v365_v7 = vand.u32 2147483648, %v322_v0 }
  0xb1   : > { %808 = vrsqrt.f32 %v310_v1  ;;  %vm334_vm3 = vcmp.eq.f32.partialorder %v310_v1, inf  ;;  %vm336_vm4 = vcmp.eq.f32.partialorder %v310_v1, 0.0  ;;  %v337_v10 = vand.u32 2147483648, %v310_v1 }
  0xb3   : > { %v325_v2 = vpop.xlane.xlu1 %324  ;;  %v313_v3 = vpop.xlane.xlu0 %312 }
  0xb4   : > { %810 = vrsqrt.f32 %v325_v2  ;;  %vm369_vm5 = vcmp.eq.f32.partialorder %v325_v2, inf  ;;  %vm371_vm6 = vcmp.eq.f32.partialorder %v325_v2, 0.0  ;;  %v372_v20 = vand.u32 2147483648, %v325_v2 }
  0xb5   : > { %812 = vrsqrt.f32 %v313_v3  ;;  %vm341_vm7 = vcmp.eq.f32.partialorder %v313_v3, inf  ;;  %vm343_vm8 = vcmp.eq.f32.partialorder %v313_v3, 0.0  ;;  %v344_v22 = vand.u32 2147483648, %v313_v3 }
  0xb7   : > { %v1062_v4 = vpop.xlane.xlu1 %424  ;;  %v1064_v5 = vpop.xlane.xlu0 %421 }
  0xb8   : > { %814 = vrsqrt.f32 %v1062_v4  ;;  %vm453_vm9 = vcmp.eq.f32.partialorder %v1062_v4, inf  ;;  %vm455_vm10 = vcmp.eq.f32.partialorder %v1062_v4, 0.0  ;;  %v456_v32 = vand.u32 2147483648, %v1062_v4 }
  0xb9   : > { %816 = vrsqrt.f32 %v1064_v5  ;;  %vm446_vm11 = vcmp.eq.f32.partialorder %v1064_v5, inf  ;;  %vm448_vm12 = vcmp.eq.f32.partialorder %v1064_v5, 0.0  ;;  %v449_v40 = vand.u32 2147483648, %v1064_v5 }
  0xba   : > { %v807_v6 = vpop.eup %806 }
  0xbb   : > { %v809_v8 = vpop.eup %808  ;;  %v361_v9 = vmul.f32 %v807_v6, %v322_v0  ;;  %v1068_v17 = vpop.xlane.xlu1 %436 }
  0xbc   : > { %v1070_v18 = vpop.xlane.xlu0 %433  ;;  %v333_v19 = vmul.f32 %v809_v8, %v310_v1  ;;  %818 = vrsqrt.f32 %v1068_v17  ;;  %vm481_vm13 = vcmp.eq.f32.partialorder %v1068_v17, inf  ;;  %vm483_vm14 = vcmp.eq.f32.partialorder %v1068_v17, 0.0 }
  0xbd   : > { %v363_v21 = vsel %vm362_vm1, %v322_v0, %v361_v9  ;;  %820 = vrsqrt.f32 %v1070_v18  ;;  %v484_v58 = vand.u32 2147483648, %v1068_v17  ;;  %vm474_vm15 = vcmp.eq.f32.partialorder %v1070_v18, inf }
  0xbe   : > { %v811_v23 = vpop.eup %810  ;;  %v366_v26 = vsel %vm364_vm2, %v365_v7, %v363_v21  ;;  %v335_v27 = vsel %vm334_vm3, %v310_v1, %v333_v19  ;;  %vm476_vm1 = vcmp.eq.f32.partialorder %v1070_v18, 0.0  ;;  %v477_v63 = vand.u32 2147483648, %v1070_v18 }
  0xbf   : > { %v813_v28 = vpop.eup %812  ;;  %v392_v29 = vadd.f32 1e-10, %v366_v26  ;;  %v338_v30 = vsel %vm336_vm4, %v337_v10, %v335_v27  ;;  %v368_v31 = vmul.f32 %v811_v23, %v325_v2  ;;  %v1081_v33 = vpop.xlane.xlu1 %327 }
  0xc0   : > { %v1083_v34 = vpop.xlane.xlu0 %315  ;;  %v388_v35 = vadd.f32 1e-10, %v338_v30  ;;  %v340_v38 = vmul.f32 %v813_v28, %v313_v3  ;;  %822 = vrsqrt.f32 %v1081_v33  ;;  %vm376_vm2 = vcmp.eq.f32.partialorder %v1081_v33, inf }
  0xc1   : > { %v370_v39 = vsel %vm369_vm5, %v325_v2, %v368_v31  ;;  %824 = vrcp.f32 %v392_v29  ;;  %vm378_vm3 = vcmp.eq.f32.partialorder %v1081_v33, 0.0  ;;  %v379_v9 = vand.u32 2147483648, %v1081_v33 }
  0xc2   : > { %v815_v41 = vpop.eup %814  ;;  %v373_v42 = vsel %vm371_vm6, %v372_v20, %v370_v39  ;;  %v342_v43 = vsel %vm341_vm7, %v313_v3, %v340_v38  ;;  %826 = vrsqrt.f32 %v1083_v34  ;;  %vm348_vm4 = vcmp.eq.f32.partialorder %v1083_v34, inf }
  0xc3   : > { %v817_v48 = vpop.eup %816  ;;  %v393_v49 = vadd.f32 1e-10, %v373_v42  ;;  %v345_v50 = vsel %vm343_vm8, %v344_v22, %v342_v43  ;;  %v452_v51 = vmul.f32 %v815_v41, %v1062_v4  ;;  %v1097_v54 = vpop.xlane.xlu1 %439  ;;  %828 = vrcp.f32 %v388_v35 }
  0xc4   : > { %v1099_v55 = vpop.xlane.xlu0 %427  ;;  %v389_v56 = vadd.f32 1e-10, %v345_v50  ;;  %v445_v57 = vmul.f32 %v817_v48, %v1064_v5  ;;  %vm350_vm5 = vcmp.eq.f32.partialorder %v1083_v34, 0.0  ;;  %vm488_vm6 = vcmp.eq.f32.partialorder %v1097_v54, inf }
  0xc5   : > { %830 = vrcp.f32 %v393_v49  ;;  %v454_v59 = vsel %vm453_vm9, %v1062_v4, %v452_v51  ;;  %vm490_vm7 = vcmp.eq.f32.partialorder %v1097_v54, 0.0  ;;  %v491_v38 = vand.u32 2147483648, %v1097_v54 }
  0xc6   : > { %v819_v60 = vpop.eup %818  ;;  %832 = vrcp.f32 %v389_v56  ;;  %v457_v61 = vsel %vm455_vm10, %v456_v32, %v454_v59  ;;  %v447_v62 = vsel %vm446_vm11, %v1064_v5, %v445_v57  ;;  %vm460_vm8 = vcmp.eq.f32.partialorder %v1099_v55, inf }
  0xc7   : > { %v821_v0 = vpop.eup %820  ;;  %v501_v1 = vadd.f32 1e-10, %v457_v61  ;;  %v450_v2 = vsel %vm448_vm12, %v449_v40, %v447_v62  ;;  %v480_v3 = vmul.f32 %v819_v60, %v1068_v17  ;;  %834 = vrsqrt.f32 %v1097_v54  ;;  %v1118_v6 = vpop.xlane.xlu1 %330 }
  0xc8   : > { %v1120_v7 = vpop.xlane.xlu0 %318  ;;  %v500_v4 = vadd.f32 1e-10, %v450_v2  ;;  %v473_v8 = vmul.f32 %v821_v0, %v1070_v18  ;;  %836 = vrsqrt.f32 %v1099_v55  ;;  %vm462_vm9 = vcmp.eq.f32.partialorder %v1099_v55, 0.0 }
  0xc9   : > { %838 = vrcp.f32 %v501_v1  ;;  %v482_v5 = vsel %vm481_vm13, %v1068_v17, %v480_v3  ;;  %v351_v17 = vand.u32 2147483648, %v1083_v34  ;;  %vm383_vm10 = vcmp.eq.f32.partialorder %v1118_v6, inf }
  0xca   : > { %v823_v10 = vpop.eup %822  ;;  %840 = vrcp.f32 %v500_v4  ;;  %v485_v19 = vsel %vm483_vm14, %v484_v58, %v482_v5  ;;  %v475_v20 = vsel %vm474_vm15, %v1070_v18, %v473_v8  ;;  %vm385_vm11 = vcmp.eq.f32.partialorder %v1118_v6, 0.0 }
  0xcb   : > { %v505_v21 = vadd.f32 1e-10, %v485_v19  ;;  %v478_v22 = vsel %vm476_vm1, %v477_v63, %v475_v20  ;;  %v375_v23 = vmul.f32 %v823_v10, %v1081_v33  ;;  %842 = vrsqrt.f32 %v1118_v6  ;;  %v1140_v26 = vpop.eup %824  ;;  %v1145_v28 = vpop.xlane.xlu1 %442 }
  0xcc   : > { %v504_v27 = vadd.f32 1e-10, %v478_v22  ;;  %844 = vrsqrt.f32 %v1120_v7  ;;  %v827_v29 = vpop.eup %826  ;;  %v1152_v30 = vpop.xlane.xlu0 %430  ;;  %v386_v49 = vand.u32 2147483648, %v1118_v6  ;;  %vm355_vm12 = vcmp.eq.f32.partialorder %v1120_v7, inf }
  0xcd   : > { %846 = vrcp.f32 %v505_v21  ;;  %v377_v18 = vsel %vm376_vm2, %v1081_v33, %v375_v23  ;;  %v829_v31 = vpop.eup %828  ;;  %v347_v35 = vmul.f32 %v827_v29, %v1083_v34  ;;  %v463_v33 = vand.u32 2147483648, %v1099_v55  ;;  %v1202_v21 = vld [vmem:[%s1282_s1] ss:$0 sm:$0xff] }
  0xce   : > { %848 = vrcp.f32 %v504_v27  ;;  %v380_v32 = vsel %vm378_vm3, %v379_v9, %v377_v18  ;;  %vm357_vm13 = vcmp.eq.f32.partialorder %v1120_v7, 0.0  ;;  %v358_v56 = vand.u32 2147483648, %v1120_v7 }
  0xcf   : > { %v831_v39 = vpop.eup %830  ;;  %v394_v40 = vadd.f32 1e-10, %v380_v32  ;;  %850 = vrsqrt.f32 %v1145_v28  ;;  %v349_v42 = vsel %vm348_vm4, %v1083_v34, %v347_v35  ;;  %v498_v57 = vand.u32 2147483648, %v1145_v28 }
  0xd0   : > { %v833_v41 = vpop.eup %832  ;;  %852 = vrsqrt.f32 %v1152_v30  ;;  %v352_v48 = vsel %vm350_vm5, %v351_v17, %v349_v42  ;;  %vm495_vm14 = vcmp.eq.f32.partialorder %v1145_v28, inf  ;;  %v470_v60 = vand.u32 2147483648, %v1152_v30 }
  0xd1   : > { %v835_v43 = vpop.eup %834  ;;  %854 = vrcp.f32 %v394_v40  ;;  %v390_v59 = vadd.f32 1e-10, %v352_v48  ;;  %vm497_vm15 = vcmp.eq.f32.partialorder %v1145_v28, 0.0  ;;  %vm467_vm1 = vcmp.eq.f32.partialorder %v1152_v30, inf }
  0xd2   : > { %v837_v50 = vpop.eup %836  ;;  %v487_v51 = vmul.f32 %v835_v43, %v1097_v54  ;;  %v399_v63 = vmul.f32 %v833_v41, %v983_v14  ;;  %v397_v1 = vmul.f32 %v829_v31, %v979_v12  ;;  %vm469_vm2 = vcmp.eq.f32.partialorder %v1152_v30, 0.0 }
  0xd3   : > { %v839_v58 = vpop.eup %838  ;;  %v459_v34 = vmul.f32 %v837_v50, %v1099_v55  ;;  %v407_v5 = vmul.f32 %v831_v39, %v981_v13  ;;  %856 = vrcp.f32 %v390_v59  ;;  %vm265_vm3 = vcmask 1024  }
  0xd4   : > { %v841_v61 = vpop.eup %840  ;;  %v489_v62 = vsel %vm488_vm6, %v1097_v54, %v487_v51  ;;  %v511_v0 = vmul.f32 %v839_v58, %v985_v15  ;;  %vm606_vm4 = vcmask 195712   ;;  %vm613_vm5 = vcmask 261312  }
  0xd5   : > { %v843_v2 = vpop.eup %842  ;;  %v492_v3 = vsel %vm490_vm7, %v491_v38, %v489_v62  ;;  %v461_v4 = vsel %vm460_vm8, %v1099_v55, %v459_v34  ;;  %v509_v8 = vmul.f32 %v841_v61, %v987_v16  ;;  %vm634_vm6 = vcmask 1041409  }
  0xd6   : > { %v845_v9 = vpop.eup %844  ;;  %v506_v14 = vadd.f32 1e-10, %v492_v3  ;;  %v464_v15 = vsel %vm462_vm9, %v463_v33, %v461_v4  ;;  %v382_v12 = vmul.f32 %v843_v2, %v1118_v6  ;;  %v525_v10 = vsub.f32 %v399_v63, %v511_v0 }
  0xd7   : > { %v847_v54 = vpop.eup %846  ;;  %v502_v19 = vadd.f32 1e-10, %v464_v15  ;;  %v354_v20 = vmul.f32 %v845_v9, %v1120_v7  ;;  %v524_v16 = vsub.f32 %v397_v1, %v509_v8  ;;  %vm637_vm7 = vcmask 254976  }
  0xd8   : > { %v849_v13 = vpop.eup %848  ;;  %858 = vrcp.f32 %v506_v14  ;;  %v384_v55 = vsel %vm383_vm10, %v1118_v6, %v382_v12  ;;  %v533_v22 = vmul.f32 %v525_v10, %v525_v10  ;;  %v519_v23 = vmul.f32 %v847_v54, %v1000_v24 }
  0xd9   : > { %v851_v27 = vpop.eup %850  ;;  %860 = vrcp.f32 %v502_v19  ;;  %v387_v17 = vsel %vm385_vm11, %v386_v49, %v384_v55  ;;  %v356_v29 = vsel %vm355_vm12, %v1120_v7, %v354_v20  ;;  %v532_v18 = vmul.f32 %v524_v16, %v524_v16 }
  0xda   : > { %v853_v31 = vpop.eup %852  ;;  %v395_v32 = vadd.f32 1e-10, %v387_v17  ;;  %v359_v35 = vsel %vm357_vm13, %v358_v56, %v356_v29  ;;  %v494_v38 = vmul.f32 %v851_v27, %v1145_v28  ;;  %v548_v39 = vmul.f32 %v1202_v21, %v533_v22 }
  0xdb   : > { %v391_v24 = vadd.f32 1e-10, %v359_v35  ;;  %v466_v40 = vmul.f32 %v853_v31, %v1152_v30  ;;  %v547_v6 = vmul.f32 %v1202_v21, %v532_v18  ;;  %v529_v41 = vsub.f32 %v407_v5, %v519_v23  ;;  %v855_v48 = vpop.eup %854 }
  0xdc   : > { %v496_v42 = vsel %vm495_vm14, %v1145_v28, %v494_v38  ;;  %v558_v33 = vsel %vm307_vm0, %v548_v39, 0.0  ;;  %v405_v7 = vmul.f32 %v1140_v26, %v977_v11  ;;  %v517_v43 = vmul.f32 %v849_v13, %v1002_v25 }
  0xdd   : > { %862 = vrcp.f32 %v395_v32  ;;  %v499_v49 = vsel %vm497_vm15, %v498_v57, %v496_v42  ;;  %v468_v50 = vsel %vm467_vm1, %v1152_v30, %v466_v40  ;;  %559 = vadd.xlane.f32.xlu1 %v558_v33  ;;  %v555_v51 = vsel %vm307_vm0, %v547_v6, 0.0  ;;  %v857_v59 = vpop.eup %856 }
  0xde   : > { %v507_v56 = vadd.f32 1e-10, %v499_v49  ;;  %v471_v58 = vsel %vm469_vm2, %v470_v60, %v468_v50  ;;  %556 = vadd.xlane.f32.xlu0 %v555_v51  ;;  %v537_v11 = vmul.f32 %v529_v41, %v529_v41  ;;  %v528_v26 = vsub.f32 %v405_v7, %v517_v43 }
  0xdf   : > { %864 = vrcp.f32 %v391_v24  ;;  %v503_v25 = vadd.f32 1e-10, %v471_v58  ;;  %v409_v30 = vmul.f32 %v855_v48, %v1018_v36  ;;  %v401_v1 = vmul.f32 %v857_v59, %v1020_v37 }
  0xe0   : > { %866 = vrcp.f32 %v507_v56  ;;  %v552_v28 = vmul.f32 %v1202_v21, %v537_v11  ;;  %v536_v57 = vmul.f32 %v528_v26, %v528_v26 }
  0xe1   : > { %868 = vrcp.f32 %v503_v25 }
  0xe2   : > { %v859_v34 = vpop.eup %858  ;;  %v570_v61 = vsel %vm307_vm0, %v552_v28, 0.0  ;;  %v551_v62 = vmul.f32 %v1202_v21, %v536_v57 }
  0xe3   : > { %v861_v63 = vpop.eup %860  ;;  %571 = vadd.xlane.f32.xlu1 %v570_v61  ;;  %v521_v60 = vmul.f32 %v859_v34, %v1030_v44 }
  0xe4   : > { %v567_v0 = vsel %vm307_vm0, %v551_v62, 0.0  ;;  %v513_v2 = vmul.f32 %v861_v63, %v1032_v45 }
  0xe5   : > { %568 = vadd.xlane.f32.xlu0 %v567_v0  ;;  %v530_v3 = vsub.f32 %v409_v30, %v521_v60 }
  0xe6   : > { %v526_v4 = vsub.f32 %v401_v1, %v513_v2 }
  0xe7   : > { %v863_v8 = vpop.eup %862  ;;  %v538_v5 = vmul.f32 %v530_v3, %v530_v3 }
  0xe8   : > { %v534_v9 = vmul.f32 %v526_v4, %v526_v4  ;;  %v411_v54 = vmul.f32 %v863_v8, %v1034_v46 }
  0xe9   : > { %v865_v14 = vpop.eup %864  ;;  %v553_v15 = vmul.f32 %v1202_v21, %v538_v5 }
  0xea   : > { %v867_v12 = vpop.eup %866  ;;  %v549_v36 = vmul.f32 %v1202_v21, %v534_v9  ;;  %v403_v19 = vmul.f32 %v865_v14, %v1036_v47  ;;  %v910_v47 = vmov 0.0  }
  0xeb   : > { %v869_v10 = vpop.eup %868  ;;  %v573_v44 = vsel %vm307_vm0, %v553_v15, 0.0  ;;  %v523_v37 = vmul.f32 %v867_v12, %v1044_v52  ;;  %266 = vst.msk [vmem:[%s1259_s5] sm:$0x3] %vm265_vm3, %v910_v47 }
  0xec   : > { %574 = vadd.xlane.f32.xlu1 %v573_v44  ;;  %v561_v45 = vsel %vm307_vm0, %v549_v36, 0.0  ;;  %v515_v20 = vmul.f32 %v869_v10, %v1046_v53  ;;  %v588_v53 = vlaneseq }
  0xed   : > { %562 = vadd.xlane.f32.xlu0 %v561_v45  ;;  %v531_v16 = vsub.f32 %v411_v54, %v523_v37 }
  0xee   : > { %v527_v13 = vsub.f32 %v403_v19, %v515_v20  ;;  %v589_v17 = vand.u32 127, %v588_v53  ;;  %v591_v18 = vshrl.u32 %v588_v53, 7 }
  0xef   : > { %v539_v55 = vmul.f32 %v531_v16, %v531_v16 }
  0xf0   : > { %v535_v22 = vmul.f32 %v527_v13, %v527_v13  ;;  %v594_v31 = vadd.s32 4294967288, %v589_v17  ;;  %v601_v32 = vadd.s32 4294967280, %v589_v17  ;;  %v608_v39 = vadd.s32 4294967272, %v589_v17 }
  0xf1   : > { %v554_v23 = vmul.f32 %v1202_v21, %v539_v55  ;;  %v592_v40 = vsub.s32 %v589_v17, %v591_v18 }
  0xf2   : > { %v550_v46 = vmul.f32 %v1202_v21, %v535_v22  ;;  %v597_v24 = vsub.s32 %v594_v31, %v591_v18  ;;  %v604_v6 = vsub.s32 %v601_v32, %v591_v18  ;;  %v611_v43 = vsub.s32 %v608_v39, %v591_v18  ;;  %v579_v30 = vld [vmem:[%s1259_s5] sm:$0x3] }
  0xf3   : > { %v576_v52 = vsel %vm307_vm0, %v554_v23, 0.0 }
  0xf4   : > { %577 = vadd.xlane.f32.xlu1 %v576_v52  ;;  %v564_v27 = vsel %vm307_vm0, %v550_v46, 0.0  ;;  %vm599_vm0 = vcmask 130112  }
  0xf5   : > { %565 = vadd.xlane.f32.xlu0 %v564_v27 }
 0x16a   : > { %v560_v21 = vpop.xlane.xlu1 %559 }
 0x16b   : > { %v557_v29 = vpop.xlane.xlu0 %556  ;;  %v598_v48 = vrot.slane %v560_v21, %v597_v24 }
 0x16c   : > { %v593_v49 = vrot.slane %v557_v29, %v592_v40 }
 0x16e   : > { %v600_v25 = vsel %vm599_vm0, %v598_v48, %v593_v49 }
 0x170   : > { %v572_v35 = vpop.xlane.xlu1 %571 }
 0x171   : > { %v622_v33 = vrot.slane %v572_v35, %v597_v24 }
 0x172   : > { %v569_v38 = vpop.xlane.xlu0 %568 }
 0x173   : > { %v618_v7 = vrot.slane %v569_v38, %v592_v40 }
 0x175   : > { %v623_v58 = vsel %vm599_vm0, %v622_v33, %v618_v7 }
 0x179   : > { %v575_v41 = vpop.xlane.xlu1 %574 }
 0x17a   : > { %v563_v42 = vpop.xlane.xlu0 %562  ;;  %v627_v50 = vrot.slane %v575_v41, %v604_v6 }
 0x17b   : > { %v605_v51 = vrot.slane %v563_v42, %v604_v6 }
 0x17c   : > { %v628_v28 = vsel %vm606_vm4, %v627_v50, %v623_v58 }
 0x17d   : > { %v607_v59 = vsel %vm606_vm4, %v605_v51, %v600_v25 }
 0x181   : > { %v578_v56 = vpop.xlane.xlu1 %577 }
 0x182   : > { %v632_v11 = vrot.slane %v578_v56, %v611_v43  ;;  %v566_v26 = vpop.xlane.xlu0 %565 }
 0x183   : > { %v612_v57 = vrot.slane %v566_v26, %v611_v43 }
 0x184   : > { %v633_v34 = vsel %vm613_vm5, %v632_v11, %v628_v28 }
 0x185   : > { %v614_v61 = vsel %vm613_vm5, %v612_v57, %v607_v59 }
 0x186   : > { %v635_v62 = vsel %vm634_vm6, %v633_v34, %v614_v61 }
 0x187   : > { %v638_v63 = vsel %vm637_vm7, %v635_v62, 0.0 }
 0x188   : > { %639 = vadd.xlane.f32.xlu0 %v638_v63 }
 0x215   : > { %v640_v60 = vpop.xlane.xlu0 %639 }
 0x216   : > { %v641_v0 = vadd.f32 %v640_v60, %v579_v30 }
 0x218   : > { %643 = vst.msk [vmem:[%s1259_s5] sm:$0x3] %vm265_vm3, %v641_v0 }
 0x219 PF: > { %s12_s13 = sadd.s32 1, %s908_s13   ;;  %s1284_s9 = smov %s896_s10 }
 0x21a   : > { %p9_p10 = scmp.ge.s32.totalorder %s12_s13, 4   ;;  %s1285_s10 = smov %s961_s17 }
 0x21b   : > { %s1286_s11 = smov %s904_s12  ;;  %s1287_s12 = smov %s1289_s14 }
 0x21c   :  { %11 = sbr.rel (!%p9_p10) target bundleno = 3 (0x3), region = 108 }

// kernel: lpips_loss.5
= control target key start
LH: loop header
LB: loop body
LE: loop exit
PB: predicated region body
PF: predicated region fallthrough
CT: control target
= control target key end

     0   :  { %s6984_s12 = smov 0   ;;  %s10066_s0 = inlined_call_operand.vmem [shape: bf16[4,5,2,5,32], index: 0, kind: input, shape index: {}]   ;;  %s10067_s1 = inlined_call_operand.vmem [shape: f32[144,32], index: 1, kind: input, shape index: {}]   ;;  %s10068_s2 = inlined_call_operand.vmem [shape: f32[1,32], index: 2, kind: input, shape index: {}]   ;;  %s10069_s3 = inlined_call_operand.vmem [shape: bf16[4,4,4,32], index: 3, kind: output, shape index: {}]  }
   0x1 LB: > { %s5076_s13 = sadd.s32 4294967295, %s6930_s12   ;;  %p5080_p0 = scmp.ge.s32.totalorder %s6930_s12, 1  ;;  %s6930_s12 = sphi %s6984_s12, %s13_s12  }
   0x2   : > { %p137_p1 = scmp.lt.s32.totalorder %s6930_s12, 5 }
   0x4   : > { %p138_p2 = pnand %p5080_p0, %p137_p1 }
   0x6   : > { %141 = sbr.rel (%p138_p2) target bundleno = 1077 (0x435), region = 32 }
   0xd   : > { %p161_p3 = scmp.lt.s32.totalorder %s5076_s13, 3  ;;  %v10128_v0 = vmov 9   ;;  %v10102_v1 = vmov 1   ;;  %v10122_v12 = vmov 11   ;;  %v10106_v13 = vmov 2  }
   0xe   : > { %5358 = vset.pattern.permute.xlu0 %v10128_v0  ;;  %5289 = vset.pattern.permute.xlu1 %v10102_v1  ;;  %v10118_v14 = vmov 12   ;;  %v10112_v15 = vmov 3   ;;  %v10110_v16 = vmov 14   ;;  %v10116_v17 = vmov 4  }
   0xf   : > { %s10774_s13 = smov (!%p161_p3, %s5076_s13), 3  ;;  %v10108_v18 = vmov 15   ;;  %v10100_v19 = vmov 17   ;;  %v10120_v20 = vmov 5   ;;  %v10098_v21 = vmov 18  }
  0x10   : > { %s5248_s14 = smul.u32 40, %s10774_s13  ;;  %v10126_v22 = vmov 6   ;;  %v10096_v25 = vmov 20   ;;  %v10130_v28 = vmov 7   ;;  %v10088_v29 = vmov 21  }
  0x11   : > { %v10134_v35 = vmov 8   ;;  %v10084_v36 = vmov 23   ;;  %v10124_v38 = vmov 10   ;;  %v10078_v39 = vmov 24  }
  0x12   : > { %s7000_s17 = scalar_lea.vmem %s10066_s0, %s5248_s14  ;;  %v10072_v40 = vmov 26   ;;  %v10070_v41 = vmov 27   ;;  %v10114_v42 = vmov 13   ;;  %v10080_v43 = vmov 29   ;;  %s5247_s14 = sshll.u32 %s10774_s13, 3 }
  0x13   : > { %v173_v2 = vld [vmem:[%s7000_s17 + $0x10] sm:$0x3]  ;;  %v174_v3 = vld [vmem:[%s7000_s17 + $0x18] sm:$0x3]  ;;  %v171_v4 = vld [vmem:[%s7000_s17] sm:$0x3]  ;;  %s170_s18 = scalar_lea.vmem %s10069_s3, %s5247_s14 }
  0x14   : > { %v177_v5 = vunpack.c.l.bf16 %v173_v2  ;;  %v178_v6 = vunpack.c.l.bf16 %v174_v3  ;;  %v172_v7 = vld [vmem:[%s7000_s17 + $0x8] sm:$0x3]  ;;  %v175_v8 = vunpack.c.l.bf16 %v171_v4  ;;  %v5134_v23 = vld [vmem:[%s7000_s17 + $0x14] sm:$0x3]  ;;  %v5135_v24 = vld [vmem:[%s7000_s17 + $0x1c] sm:$0x3] }
  0x15   : > { %v176_v9 = vunpack.c.l.bf16 %v172_v7  ;;  %v1786_v26 = vunpack.c.l.bf16 %v5134_v23  ;;  %v1787_v27 = vunpack.c.l.bf16 %v5135_v24  ;;  %v5132_v31 = vld [vmem:[%s7000_s17 + $0x4] sm:$0x3]  ;;  %v5133_v32 = vld [vmem:[%s7000_s17 + $0xc] sm:$0x3]  ;;  %v1113_v44 = vld [vmem:[%s7000_s17 + $0x10] sm:$0x7] }
  0x16   : > { %v7006_v10 = vpack.i.bf16 %v178_v6, %v177_v5  ;;  %v1784_v33 = vunpack.c.l.bf16 %v5132_v31  ;;  %v1785_v34 = vunpack.c.l.bf16 %v5133_v32  ;;  %v1114_v45 = vld [vmem:[%s7000_s17 + $0x18] sm:$0x7]  ;;  %v10082_v46 = vmov 30   ;;  %v5170_v50 = vld [vmem:[%s7000_s17 + $0x14] sm:$0x7] }
  0x17   : > { %v7008_v11 = vpack.i.bf16 %v176_v9, %v175_v8  ;;  %v7044_v30 = vpack.i.bf16 %v1787_v27, %v1786_v26  ;;  %v10094_v47 = vmov 16   ;;  %v1117_v48 = vunpack.c.l.bf16 %v1113_v44  ;;  %v5171_v51 = vld [vmem:[%s7000_s17 + $0x1c] sm:$0x7]  ;;  %v1111_v4 = vld [vmem:[%s7000_s17] sm:$0x7] }
  0x18   : > { %5360 = vperm.xlu0 %5358, %v7006_v10   ;;  %v7054_v37 = vpack.i.bf16 %v1785_v34, %v1784_v33  ;;  %v1118_v49 = vunpack.c.l.bf16 %v1114_v45  ;;  %v2726_v53 = vunpack.c.l.bf16 %v5170_v50  ;;  %v2727_v54 = vunpack.c.l.bf16 %v5171_v51  ;;  %v1112_v5 = vld [vmem:[%s7000_s17 + $0x8] sm:$0x7]  ;;  %v5168_v32 = vld [vmem:[%s7000_s17 + $0x4] sm:$0x7]  ;;  %v5169_v33 = vld [vmem:[%s7000_s17 + $0xc] sm:$0x7] }
  0x19   : > { %5291 = vperm.xlu1 %5289, %v7008_v11   ;;  %v10092_v56 = vmov 19   ;;  %v10086_v61 = vmov 22   ;;  %v10104_v7 = vmov 0   ;;  %v1115_v9 = vunpack.c.l.bf16 %v1111_v4 }
  0x1a   : > { %v7094_v52 = vpack.i.bf16 %v1118_v49, %v1117_v48  ;;  %v7099_v55 = vpack.i.bf16 %v2727_v54, %v2726_v53  ;;  %v1116_v23 = vunpack.c.l.bf16 %v1112_v5  ;;  %v10074_v26 = vmov 25   ;;  %v5190_v48 = vld [vmem:[%s7000_s17 + $0x18] sm:$0x3]  ;;  %v5191_v49 = vld [vmem:[%s7000_s17 + $0x20] sm:$0x3] }
  0x1b   : > { %v2724_v44 = vunpack.c.l.bf16 %v5168_v32  ;;  %v2725_v45 = vunpack.c.l.bf16 %v5169_v33  ;;  %v3395_v53 = vunpack.c.l.bf16 %v5190_v48  ;;  %v3396_v54 = vunpack.c.l.bf16 %v5191_v49 }
  0x1c   : > { %5375 = vset.pattern.permute.xlu0 %v10122_v12  ;;  %10290 = vst [vmem:[#allocation2_spill] sm:$0xff] %v7099_v55  ;;  %v7160_v27 = vpack.i.bf16 %v1116_v23, %v1115_v9  ;;  %v10076_v48 = vmov 28   ;;  %vm5016_vm0 = vcmask 254976  }
  0x1d   : > { %5296 = vperm.xlu1 %5289, %v7006_v10   ;;  %5377 = vperm.xlu0 %5375, %v7008_v11   ;;  %v7176_v51 = vpack.i.bf16 %v2725_v45, %v2724_v44  ;;  %v7185_v9 = vpack.i.bf16 %v3396_v54, %v3395_v53  ;;  %v5188_v44 = vld [vmem:[%s7000_s17 + $0x8] sm:$0x3]  ;;  %v5189_v45 = vld [vmem:[%s7000_s17 + $0x10] sm:$0x3] }
  0x1e   : > { %v3393_v53 = vunpack.c.l.bf16 %v5188_v44  ;;  %v3394_v54 = vunpack.c.l.bf16 %v5189_v45 }
  0x1f   : > { %10291 = vst [vmem:[#allocation3_spill] sm:$0xff] %v7176_v51  ;;  %10292 = vst [vmem:[#allocation4_spill] sm:$0xff] %v7185_v9 }
  0x21   : > { %5300 = vset.pattern.permute.xlu1 %v10106_v13  ;;  %5393 = vset.pattern.permute.xlu0 %v10118_v14 }
  0x22   : > { %5302 = vperm.xlu1 %5300, %v7006_v10   ;;  %5395 = vperm.xlu0 %5393, %v7006_v10  }
  0x26   : > { %5306 = vset.pattern.permute.xlu1 %v10112_v15  ;;  %5410 = vset.pattern.permute.xlu0 %v10110_v16 }
  0x27   : > { %5308 = vperm.xlu1 %5306, %v7008_v11   ;;  %5412 = vperm.xlu0 %5410, %v7008_v11  }
  0x2b   : > { %5312 = vset.pattern.permute.xlu1 %v10116_v17  ;;  %5428 = vset.pattern.permute.xlu0 %v10108_v18 }
  0x2c   : > { %5314 = vperm.xlu1 %5312, %v7008_v11   ;;  %5430 = vperm.xlu0 %5428, %v7006_v10  }
  0x30   : > { %5319 = vperm.xlu1 %5312, %v7006_v10   ;;  %5445 = vset.pattern.permute.xlu0 %v10100_v19 }
  0x31   : > { %5447 = vperm.xlu0 %5445, %v7008_v11  }
  0x34   : > { %5323 = vset.pattern.permute.xlu1 %v10120_v20 }
  0x35   : > { %5325 = vperm.xlu1 %5323, %v7006_v10   ;;  %5463 = vset.pattern.permute.xlu0 %v10098_v21 }
  0x36   : > { %5465 = vperm.xlu0 %5463, %v7006_v10  }
  0x39   : > { %5329 = vset.pattern.permute.xlu1 %v10126_v22 }
  0x3a   : > { %5331 = vperm.xlu1 %5329, %v7008_v11   ;;  %5480 = vset.pattern.permute.xlu0 %v10096_v25 }
  0x3b   : > { %5482 = vperm.xlu0 %5480, %v7008_v11  }
  0x3e   : > { %5335 = vset.pattern.permute.xlu1 %v10130_v28 }
  0x3f   : > { %5337 = vperm.xlu1 %5335, %v7008_v11   ;;  %5498 = vset.pattern.permute.xlu0 %v10088_v29 }
  0x40   : > { %5500 = vperm.xlu0 %5498, %v7006_v10  }
  0x43   : > { %5342 = vperm.xlu1 %5335, %v7006_v10  }
  0x44   : > { %5873 = vperm.xlu0 %5498, %v7044_v30  }
  0x47   : > { %5346 = vset.pattern.permute.xlu1 %v10134_v35 }
  0x48   : > { %5348 = vperm.xlu1 %5346, %v7006_v10   ;;  %5877 = vset.pattern.permute.xlu0 %v10084_v36 }
  0x49   : > { %5879 = vperm.xlu0 %5877, %v7008_v11  }
  0x4c   : > { %5352 = vset.pattern.permute.xlu1 %v10128_v0 }
  0x4d   : > { %5354 = vperm.xlu1 %5352, %v7008_v11   ;;  %5895 = vperm.xlu0 %5877, %v7054_v37  }
  0x51   : > { %5364 = vset.pattern.permute.xlu1 %v10124_v38  ;;  %5899 = vset.pattern.permute.xlu0 %v10078_v39 }
  0x52   : > { %5366 = vperm.xlu1 %5364, %v7008_v11   ;;  %5901 = vperm.xlu0 %5899, %v7006_v10  }
  0x56   : > { %5371 = vperm.xlu1 %5364, %v7006_v10   ;;  %5918 = vperm.xlu0 %5899, %v7044_v30  }
  0x5a   : > { %5381 = vset.pattern.permute.xlu1 %v10122_v12  ;;  %5922 = vset.pattern.permute.xlu0 %v10072_v40 }
  0x5b   : > { %5383 = vperm.xlu1 %5381, %v7006_v10   ;;  %5924 = vperm.xlu0 %5922, %v7008_v11  }
  0x5f   : > { %5387 = vset.pattern.permute.xlu1 %v10118_v14  ;;  %5940 = vperm.xlu0 %5922, %v7054_v37  }
  0x60   : > { %5389 = vperm.xlu1 %5387, %v7008_v11  }
  0x63   : > { %5944 = vset.pattern.permute.xlu0 %v10070_v41 }
  0x64   : > { %5399 = vset.pattern.permute.xlu1 %v10114_v42  ;;  %5946 = vperm.xlu0 %5944, %v7006_v10  }
  0x65   : > { %5401 = vperm.xlu1 %5399, %v7008_v11  }
  0x68   : > { %5963 = vperm.xlu0 %5944, %v7044_v30  }
  0x69   : > { %5406 = vperm.xlu1 %5399, %v7006_v10  }
  0x6c   : > { %5967 = vset.pattern.permute.xlu0 %v10080_v43 }
  0x6d   : > { %5416 = vset.pattern.permute.xlu1 %v10110_v16  ;;  %5969 = vperm.xlu0 %5967, %v7008_v11  }
  0x6e   : > { %5418 = vperm.xlu1 %5416, %v7006_v10  }
  0x71   : > { %5985 = vperm.xlu0 %5967, %v7054_v37  }
  0x72   : > { %5422 = vset.pattern.permute.xlu1 %v10108_v18 }
  0x73   : > { %5424 = vperm.xlu1 %5422, %v7008_v11  }
  0x75   : > { %5989 = vset.pattern.permute.xlu0 %v10082_v46 }
  0x76   : > { %5991 = vperm.xlu0 %5989, %v7006_v10  }
  0x77   : > { %5434 = vset.pattern.permute.xlu1 %v10094_v47 }
  0x78   : > { %5436 = vperm.xlu1 %5434, %v7008_v11  }
  0x7a   : > { %6008 = vperm.xlu0 %5989, %v7044_v30  }
  0x7c   : > { %5441 = vperm.xlu1 %5434, %v7006_v10  }
  0x7e   : > { %6012 = vset.pattern.permute.xlu0 %v10102_v1 }
  0x7f   : > { %6014 = vperm.xlu0 %6012, %v7094_v52  }
  0x80   : > { %5451 = vset.pattern.permute.xlu1 %v10100_v19 }
  0x81   : > { %5453 = vperm.xlu1 %5451, %v7006_v10  }
  0x83   : > { %6042 = vperm.xlu0 %6012, %v7099_v55  }
  0x85   : > { %5457 = vset.pattern.permute.xlu1 %v10098_v21 }
  0x86   : > { %5459 = vperm.xlu1 %5457, %v7008_v11  }
  0x87   : > { %6046 = vset.pattern.permute.xlu0 %v10116_v17 }
  0x88   : > { %6048 = vperm.xlu0 %6046, %v7094_v52  }
  0x8a   : > { %5469 = vset.pattern.permute.xlu1 %v10092_v56 }
  0x8b   : > { %5471 = vperm.xlu1 %5469, %v7008_v11  }
  0x8c   : > { %6076 = vperm.xlu0 %6046, %v7099_v55  }
  0x8f   : > { %5476 = vperm.xlu1 %5469, %v7006_v10  }
  0x90   : > { %6080 = vset.pattern.permute.xlu0 %v10130_v28 }
  0x91   : > { %6082 = vperm.xlu0 %6080, %v7094_v52  }
  0x93   : > { %5486 = vset.pattern.permute.xlu1 %v10096_v25 }
  0x94   : > { %5488 = vperm.xlu1 %5486, %v7006_v10  }
  0x95   : > { %6110 = vperm.xlu0 %6080, %v7099_v55  }
  0x97   : > { %v7117_v57 = vpop.permute.xlu0 %5360 }
  0x98   : > { %5492 = vset.pattern.permute.xlu1 %v10088_v29  ;;  %v7120_v58 = vpop.permute.xlu1 %5291 }
  0x99   : > { %5494 = vperm.xlu1 %5492, %v7008_v11   ;;  %6114 = vset.pattern.permute.xlu0 %v10124_v38 }
  0x9a   : > { %6116 = vperm.xlu0 %6114, %v7094_v52  }
  0x9c   : > { %v7125_v59 = vpop.permute.xlu1 %5296  ;;  %v7127_v60 = vpop.permute.xlu0 %5377 }
  0x9d   : > { %5504 = vset.pattern.permute.xlu1 %v10086_v61 }
  0x9e   : > { %5506 = vperm.xlu1 %5504, %v7008_v11   ;;  %6144 = vperm.xlu0 %6114, %v7099_v55  }
  0xa1   : > { %v7132_v62 = vpop.permute.xlu1 %5302  ;;  %v7134_v63 = vpop.permute.xlu0 %5395 }
  0xa2   : > { %5511 = vperm.xlu1 %5504, %v7006_v10   ;;  %6148 = vset.pattern.permute.xlu0 %v10114_v42 }
  0xa3   : > { %6150 = vperm.xlu0 %6148, %v7094_v52  }
  0xa6   : > { %5515 = vset.pattern.permute.xlu1 %v10084_v36  ;;  %v7140_v2 = vpop.permute.xlu1 %5308  ;;  %v7142_v3 = vpop.permute.xlu0 %5412 }
  0xa7   : > { %5517 = vperm.xlu1 %5515, %v7006_v10   ;;  %6178 = vperm.xlu0 %6148, %v7099_v55  }
  0xab   : > { %5521 = vset.pattern.permute.xlu1 %v10078_v39  ;;  %v7149_v6 = vpop.permute.xlu1 %5314  ;;  %6182 = vset.pattern.permute.xlu0 %v10104_v7  ;;  %v7152_v8 = vpop.permute.xlu0 %5430 }
  0xac   : > { %5523 = vperm.xlu1 %5521, %v7008_v11   ;;  %6184 = vperm.xlu0 %6182, %v7008_v11  }
  0xaf   : > { %v7156_v24 = vpop.permute.xlu1 %5319 }
  0xb0   : > { %5527 = vset.pattern.permute.xlu1 %v10074_v26  ;;  %6189 = vperm.xlu0 %6182, %v7006_v10   ;;  %v7162_v31 = vpop.permute.xlu0 %5447  ;;  %v7210_v26 = vpack.i.bf16 %v3394_v54, %v3393_v53 }
  0xb1   : > { %5529 = vperm.xlu1 %5527, %v7008_v11  }
  0xb2   : > { %10294 = vst [vmem:[#allocation6_spill] sm:$0xff] %v7210_v26 }
  0xb4   : > { %v7167_v34 = vpop.permute.xlu1 %5325  ;;  %6194 = vperm.xlu0 %6182, %v7160_v27  }
  0xb5   : > { %5534 = vperm.xlu1 %5527, %v7006_v10   ;;  %v7173_v50 = vpop.permute.xlu0 %5465 }
  0xb8   : > { %6199 = vperm.xlu0 %6182, %v7044_v30  }
  0xb9   : > { %5538 = vset.pattern.permute.xlu1 %v10072_v40  ;;  %v7179_v4 = vpop.permute.xlu1 %5331 }
  0xba   : > { %5540 = vperm.xlu1 %5538, %v7006_v10   ;;  %v7182_v5 = vpop.permute.xlu0 %5482 }
  0xbc   : > { %6204 = vperm.xlu0 %6182, %v7176_v51  }
  0xbe   : > { %5544 = vset.pattern.permute.xlu1 %v10070_v41  ;;  %v7188_v23 = vpop.permute.xlu1 %5337 }
  0xbf   : > { %5546 = vperm.xlu1 %5544, %v7008_v11   ;;  %v7191_v32 = vpop.permute.xlu0 %5500 }
  0xc0   : > { %6232 = vperm.xlu0 %6182, %v7185_v9  }
  0xc2   : > { %v7194_v33 = vpop.permute.xlu1 %5342 }
  0xc3   : > { %5550 = vset.pattern.permute.xlu1 %v10076_v48  ;;  %v7199_v49 = vpop.permute.xlu0 %5873 }
  0xc4   : > { %10293 = vst [vmem:[#allocation5_spill] sm:$0xff] %v7199_v49  ;;  %5552 = vperm.xlu1 %5550, %v7008_v11   ;;  %6236 = vset.pattern.permute.xlu0 %v10106_v13  ;;  %v10315_v49 = vmov 11  }
  0xc5   : > { %6238 = vperm.xlu0 %6236, %v7008_v11  }
  0xc7   : > { %v7204_v41 = vpop.permute.xlu1 %5348 }
  0xc8   : > { %5557 = vperm.xlu1 %5550, %v7006_v10   ;;  %v7207_v40 = vpop.permute.xlu0 %5879 }
  0xc9   : > { %6243 = vperm.xlu0 %6236, %v7054_v37  }
  0xcc   : > { %5561 = vset.pattern.permute.xlu1 %v10080_v43  ;;  %v7213_v48 = vpop.permute.xlu1 %5354  ;;  %v7215_v39 = vpop.permute.xlu0 %5895  ;;  %v10090_v43 = vmov 31  }
  0xcd   : > { %10295 = vst [vmem:[#allocation7_spill] sm:$0xff] %v7215_v39  ;;  %5563 = vperm.xlu1 %5561, %v7006_v10   ;;  %6259 = vperm.xlu0 %6236, %v7210_v26  }
  0xd1   : > { %5567 = vset.pattern.permute.xlu1 %v10082_v46  ;;  %v7220_v44 = vpop.permute.xlu1 %5366  ;;  %6263 = vset.pattern.permute.xlu0 %v10112_v15  ;;  %v7223_v45 = vpop.permute.xlu0 %5901 }
  0xd2   : > { %5569 = vperm.xlu1 %5567, %v7008_v11   ;;  %6265 = vperm.xlu0 %6263, %v7006_v10  }
  0xd5   : > { %v7227_v53 = vpop.permute.xlu1 %5371  ;;  %v7229_v54 = vpop.permute.xlu0 %5918 }
  0xd6   : > { %10296 = vst [vmem:[#allocation8_spill] sm:$0xff] %v7229_v54  ;;  %5573 = vset.pattern.permute.xlu1 %v10090_v43  ;;  %6270 = vperm.xlu0 %6263, %v7160_v27  }
  0xd7   : > { %5575 = vperm.xlu1 %5573, %v7008_v11  }
  0xda   : > { %v7234_v46 = vpop.permute.xlu1 %5383  ;;  %6275 = vperm.xlu0 %6263, %v7044_v30   ;;  %v7237_v36 = vpop.permute.xlu0 %5924 }
  0xdb   : > { %5580 = vperm.xlu1 %5573, %v7006_v10  }
  0xde   : > { %6280 = vperm.xlu0 %6263, %v7176_v51   ;;  %v7241_v61 = vpop.permute.xlu0 %5940 }
  0xdf   : > { %10297 = vst [vmem:[#allocation9_spill] sm:$0xff] %v7241_v61  ;;  %5584 = vset.pattern.permute.xlu1 %v10104_v7  ;;  %v7244_v29 = vpop.permute.xlu1 %5389 }
  0xe0   : > { %5586 = vperm.xlu1 %5584, %v7094_v52  }
  0xe2   : > { %6297 = vperm.xlu0 %6263, %v7185_v9  }
  0xe3   : > { %v7248_v43 = vpop.permute.xlu0 %5946 }
  0xe4   : > { %5590 = vset.pattern.permute.xlu1 %v10102_v1  ;;  %v7251_v56 = vpop.permute.xlu1 %5401 }
  0xe5   : > { %5592 = vperm.xlu1 %5590, %v7160_v27  }
  0xe6   : > { %6301 = vset.pattern.permute.xlu0 %v10120_v20 }
  0xe7   : > { %6303 = vperm.xlu0 %6301, %v7008_v11   ;;  %v7256_v47 = vpop.permute.xlu0 %5963 }
  0xe8   : > { %10298 = vst [vmem:[#allocation10_spill] sm:$0xff] %v7256_v47  ;;  %v7258_v25 = vpop.permute.xlu1 %5406 }
  0xe9   : > { %5596 = vset.pattern.permute.xlu1 %v10106_v13 }
  0xea   : > { %5598 = vperm.xlu1 %5596, %v7160_v27  }
  0xeb   : > { %6308 = vperm.xlu0 %6301, %v7054_v37  }
  0xec   : > { %v7263_v21 = vpop.permute.xlu0 %5969 }
  0xed   : > { %v7265_v19 = vpop.permute.xlu1 %5418 }
  0xee   : > { %5603 = vperm.xlu1 %5596, %v7094_v52  }
  0xef   : > { %6324 = vperm.xlu0 %6301, %v7210_v26  }
  0xf0   : > { %v7269_v1 = vpop.permute.xlu0 %5985 }
  0xf1   : > { %10299 = vst [vmem:[#allocation11_spill] sm:$0xff] %v7269_v1 }
  0xf2   : > { %5607 = vset.pattern.permute.xlu1 %v10112_v15  ;;  %v7272_v7 = vpop.permute.xlu1 %5424 }
  0xf3   : > { %5609 = vperm.xlu1 %5607, %v7094_v52   ;;  %6328 = vset.pattern.permute.xlu0 %v10126_v22 }
  0xf4   : > { %6330 = vperm.xlu0 %6328, %v7006_v10  }
  0xf5   : > { %v7277_v13 = vpop.permute.xlu0 %5991 }
  0xf7   : > { %5613 = vset.pattern.permute.xlu1 %v10116_v17  ;;  %v7280_v18 = vpop.permute.xlu1 %5436 }
  0xf8   : > { %5615 = vperm.xlu1 %5613, %v7160_v27   ;;  %6335 = vperm.xlu0 %6328, %v7160_v27  }
  0xf9   : > { %v7284_v16 = vpop.permute.xlu0 %6008 }
  0xfa   : > { %10300 = vst [vmem:[#allocation12_spill] sm:$0xff] %v7284_v16  ;;  %v10311_v16 = vmov 10  }
  0xfb   : > { %v7286_v15 = vpop.permute.xlu1 %5441 }
  0xfc   : > { %5619 = vset.pattern.permute.xlu1 %v10120_v20  ;;  %6340 = vperm.xlu0 %6328, %v7044_v30  }
  0xfd   : > { %5621 = vperm.xlu1 %5619, %v7160_v27  }
  0xfe   : > { %v7291_v10 = vpop.permute.xlu0 %6014 }
 0x100   : > { %v7293_v42 = vpop.permute.xlu1 %5453  ;;  %6345 = vperm.xlu0 %6328, %v7176_v51  }
 0x101   : > { %5626 = vperm.xlu1 %5619, %v7094_v52  }
 0x102   : > { %v7297_v17 = vpop.permute.xlu0 %6042 }
 0x103   : > { %10301 = vst [vmem:[#allocation13_spill] sm:$0xff] %v7297_v17  ;;  %v10308_v17 = vmov 9  }
 0x104   : > { %6362 = vperm.xlu0 %6328, %v7185_v9  }
 0x105   : > { %5630 = vset.pattern.permute.xlu1 %v10126_v22  ;;  %v7301_v14 = vpop.permute.xlu1 %5459 }
 0x106   : > { %5632 = vperm.xlu1 %5630, %v7094_v52  }
 0x107   : > { %v7304_v20 = vpop.permute.xlu0 %6048 }
 0x108   : > { %6366 = vset.pattern.permute.xlu0 %v10134_v35 }
 0x109   : > { %6368 = vperm.xlu0 %6366, %v7008_v11  }
 0x10a   : > { %5636 = vset.pattern.permute.xlu1 %v10130_v28  ;;  %v7309_v12 = vpop.permute.xlu1 %5471 }
 0x10b   : > { %10302 = vst [vmem:[#allocation14_spill] sm:$0xff] %v7309_v12  ;;  %5638 = vperm.xlu1 %5636, %v7160_v27   ;;  %v7312_v38 = vpop.permute.xlu0 %6076 }
 0x10c   : > { %10303 = vst [vmem:[#allocation15_spill] sm:$0xff] %v7312_v38 }
 0x10d   : > { %6373 = vperm.xlu0 %6366, %v7054_v37  }
 0x10e   : > { %v7315_v22 = vpop.permute.xlu1 %5476 }
 0x10f   : > { %10304 = vst [vmem:[#allocation16_spill] sm:$0xff] %v7315_v22  ;;  %5642 = vset.pattern.permute.xlu1 %v10134_v35 }
 0x110   : > { %5644 = vperm.xlu1 %5642, %v7160_v27   ;;  %v7319_v0 = vpop.permute.xlu0 %6082 }
 0x111   : > { %10305 = vst [vmem:[#allocation17_spill] sm:$0xff] %v7319_v0  ;;  %6389 = vperm.xlu0 %6366, %v7210_v26  }
 0x113   : > { %v7322_v11 = vpop.permute.xlu1 %5488 }
 0x114   : > { %10306 = vst [vmem:[#allocation18_spill] sm:$0xff] %v7322_v11  ;;  %5649 = vperm.xlu1 %5642, %v7094_v52   ;;  %v7325_v28 = vpop.permute.xlu0 %6110  ;;  %v5398_v11 = vunpack.i.h.bf16 %v7134_v63 }
 0x115   : > { %10307 = vst [vmem:[#allocation19_spill] sm:$0xff] %v7325_v28  ;;  %6393 = vset.pattern.permute.xlu0 %v10308_v17 }
 0x116   : > { %6395 = vperm.xlu0 %6393, %v7160_v27  }
 0x118   : > { %5653 = vset.pattern.permute.xlu1 %v10308_v17  ;;  %v7330_v38 = vpop.permute.xlu1 %5494  ;;  %v5363_v17 = vunpack.i.h.bf16 %v7117_v57 }
 0x119   : > { %10309 = vst [vmem:[#allocation20_spill] sm:$0xff] %v7330_v38  ;;  %5655 = vperm.xlu1 %5653, %v7094_v52   ;;  %v7333_v35 = vpop.permute.xlu0 %6116  ;;  %v5305_v38 = vunpack.i.h.bf16 %v7132_v62 }
 0x11a   : > { %10310 = vst [vmem:[#allocation21_spill] sm:$0xff] %v7333_v35  ;;  %6400 = vperm.xlu0 %6393, %v7044_v30   ;;  %v5304_v35 = vunpack.i.l.bf16 %v7132_v62 }
 0x11d   : > { %5659 = vset.pattern.permute.xlu1 %v10311_v16  ;;  %v7337_v47 = vpop.permute.xlu1 %5506  ;;  %v7339_v54 = vpop.permute.xlu0 %6144 }
 0x11e   : > { %10312 = vst [vmem:[#allocation22_spill] sm:$0xff] %v7337_v47  ;;  %10313 = vst [vmem:[#allocation23_spill] sm:$0xff] %v7339_v54  ;;  %5661 = vperm.xlu1 %5659, %v7160_v27   ;;  %6405 = vperm.xlu0 %6393, %v7176_v51   ;;  %v10319_v54 = vmov 12   ;;  %v10323_v47 = vmov 13  }
 0x121   : > { %v7343_v28 = vpop.permute.xlu1 %5511 }
 0x122   : > { %10314 = vst [vmem:[#allocation24_spill] sm:$0xff] %v7343_v28  ;;  %5665 = vset.pattern.permute.xlu1 %v10315_v49  ;;  %v7346_v1 = vpop.permute.xlu0 %6150  ;;  %6422 = vperm.xlu0 %6393, %v7185_v9   ;;  %v5293_v28 = vunpack.i.l.bf16 %v7120_v58 }
 0x123   : > { %10316 = vst [vmem:[#allocation25_spill] sm:$0xff] %v7346_v1  ;;  %5667 = vperm.xlu1 %5665, %v7160_v27   ;;  %v5298_v1 = vunpack.i.l.bf16 %v7125_v59 }
 0x126   : > { %v7350_v61 = vpop.permute.xlu1 %5517  ;;  %v7352_v39 = vpop.permute.xlu0 %6178  ;;  %6426 = vset.pattern.permute.xlu0 %v10315_v49  ;;  %v5294_v49 = vunpack.i.h.bf16 %v7120_v58  ;;  %v5380_v58 = vunpack.i.h.bf16 %v7127_v60 }
 0x127   : > { %10317 = vst [vmem:[#allocation26_spill] sm:$0xff] %v7350_v61  ;;  %10318 = vst [vmem:[#allocation27_spill] sm:$0xff] %v7352_v39  ;;  %5672 = vperm.xlu1 %5665, %v7094_v52   ;;  %6428 = vperm.xlu0 %6426, %v7054_v37   ;;  %v5362_v39 = vunpack.i.l.bf16 %v7117_v57  ;;  %v5085_v57 = vld [vmem:[%s10067_s1 + $0x1] ss:$0 sm:$0xff] }
 0x128   : > { %v7401_v0 = vmul.f32 %v5293_v28, %v5085_v57  ;;  %v7418_v62 = vmul.f32 %v5298_v1, %v5085_v57  ;;  %v5311_v28 = vunpack.i.h.bf16 %v7140_v2  ;;  %v7435_v1 = vld [vmem:[%s10067_s1 + $0xc] ss:$0 sm:$0xff] }
 0x12a   : > { %10329 = vst [vmem:[#allocation36_spill] sm:$0xff] %v7401_v0  ;;  %v5317_v0 = vunpack.i.h.bf16 %v7149_v6 }
 0x12b   : > { %5676 = vset.pattern.permute.xlu1 %v10319_v54  ;;  %v7358_v55 = vpop.permute.xlu1 %5523  ;;  %v7360_v16 = vpop.permute.xlu0 %6184  ;;  %6444 = vperm.xlu0 %6426, %v7210_v26  }
 0x12c   : > { %10320 = vst [vmem:[#allocation28_spill] sm:$0xff] %v7358_v55  ;;  %10321 = vst [vmem:[#allocation29_spill] sm:$0xff] %v7360_v16  ;;  %5678 = vperm.xlu1 %5676, %v7094_v52   ;;  %v5299_v55 = vunpack.i.h.bf16 %v7125_v59  ;;  %v5379_v59 = vunpack.i.l.bf16 %v7127_v60 }
 0x12e   : > { %v7403_v12 = vmul.f32 %v5299_v55, %v5085_v57 }
 0x12f   : > { %v7366_v61 = vpop.permute.xlu0 %6189  ;;  %6448 = vset.pattern.permute.xlu0 %v10319_v54  ;;  %v7383_v54 = vld [vmem:[%s10067_s1 + $0x9] ss:$0 sm:$0xff] }
 0x130   : > { %10322 = vst [vmem:[#allocation30_spill] sm:$0xff] %v7366_v61  ;;  %5682 = vset.pattern.permute.xlu1 %v10323_v47  ;;  %v7373_v16 = vpop.permute.xlu1 %5529  ;;  %6450 = vperm.xlu0 %6448, %v7160_v27   ;;  %v7388_v47 = vmul.f32 %v5363_v17, %v7383_v54  ;;  %v7399_v61 = vmul.f32 %v5294_v49, %v5085_v57  ;;  %10330 = vst [vmem:[#allocation37_spill] sm:$0xff] %v7403_v12  ;;  %v7408_v17 = vld [vmem:[%s10067_s1 + $0x2] ss:$0 sm:$0xff]  ;;  %v5397_v49 = vunpack.i.l.bf16 %v7134_v63 }
 0x131   : > { %10324 = vst [vmem:[#allocation31_spill] sm:$0xff] %v7373_v16  ;;  %5684 = vperm.xlu1 %5682, %v7160_v27   ;;  %v7391_v16 = vmul.f32 %v5362_v39, %v7383_v54  ;;  %10331 = vst [vmem:[#allocation38_spill] sm:$0xff] %v7408_v17  ;;  %v7413_v39 = vld [vmem:[%s10067_s1 + $0xb] ss:$0 sm:$0xff]  ;;  %v5415_v57 = vunpack.i.h.bf16 %v7142_v3  ;;  %v7441_v63 = vmul.f32 %v5305_v38, %v7408_v17  ;;  %v5433_v12 = vunpack.i.h.bf16 %v7152_v8 }
 0x132   : > { %10325 = vst [vmem:[#allocation32_spill] sm:$0xff] %v7388_v47  ;;  %10328 = vst [vmem:[#allocation35_spill] sm:$0xff] %v7399_v61  ;;  %v7422_v55 = vmul.f32 %v5380_v58, %v7413_v39  ;;  %v10334_v47 = vmov 14   ;;  %v5414_v58 = vunpack.i.l.bf16 %v7142_v3  ;;  %v5316_v3 = vunpack.i.l.bf16 %v7149_v6  ;;  %v7471_v6 = vld [vmem:[%s10067_s1 + $0xe] ss:$0 sm:$0xff] }
 0x133   : > { %10326 = vst [vmem:[#allocation33_spill] sm:$0xff] %v7391_v16  ;;  %v7397_v22 = vpop.permute.xlu0 %6194  ;;  %v7429_v16 = vld [vmem:[%s10067_s1 + $0x3] ss:$0 sm:$0xff] }
 0x134   : > { %10327 = vst [vmem:[#allocation34_spill] sm:$0xff] %v7397_v22  ;;  %v7415_v60 = vpop.permute.xlu1 %5534  ;;  %6455 = vperm.xlu0 %6448, %v7044_v30   ;;  %10333 = vst [vmem:[#allocation40_spill] sm:$0xff] %v7422_v55  ;;  %v7444_v55 = vmul.f32 %v5304_v35, %v7408_v17  ;;  %v7447_v22 = vmul.f32 %v5379_v59, %v7413_v39  ;;  %v7459_v38 = vmul.f32 %v5311_v28, %v7429_v16  ;;  %v5088_v35 = vld [vmem:[%s10067_s1 + $0x4] ss:$0 sm:$0xff] }
 0x135   : > { %10332 = vst [vmem:[#allocation39_spill] sm:$0xff] %v7415_v60  ;;  %5688 = vset.pattern.permute.xlu1 %v10334_v47  ;;  %v5310_v60 = vunpack.i.l.bf16 %v7140_v2  ;;  %v7450_v2 = vmul.f32 %v5398_v11, %v7435_v1  ;;  %v5322_v11 = vunpack.i.h.bf16 %v7156_v24  ;;  %v7466_v59 = vmul.f32 %v5397_v49, %v7435_v1 }
 0x136   : > { %5690 = vperm.xlu1 %5688, %v7160_v27   ;;  %10335 = vst [vmem:[#allocation41_spill] sm:$0xff] %v7447_v22  ;;  %10338 = vst [vmem:[#allocation44_spill] sm:$0xff] %v7459_v38  ;;  %v5432_v22 = vunpack.i.l.bf16 %v7152_v8  ;;  %v7481_v38 = vmul.f32 %v5415_v57, %v7471_v6  ;;  %v7484_v49 = vmul.f32 %v5414_v58, %v7471_v6  ;;  %v7491_v8 = vld [vmem:[%s10067_s1 + $0xf] ss:$0 sm:$0xff]  ;;  %v7504_v58 = vld [vmem:[%s10067_s1 + $0x5] ss:$0 sm:$0xff] }
 0x137   : > { %10336 = vst [vmem:[#allocation42_spill] sm:$0xff] %v7450_v2  ;;  %v7452_v61 = vpop.permute.xlu0 %6199  ;;  %10339 = vst [vmem:[#allocation45_spill] sm:$0xff] %v7466_v59  ;;  %v7477_v28 = vmul.f32 %v5310_v60, %v7429_v16  ;;  %v5328_v59 = vunpack.i.h.bf16 %v7167_v34  ;;  %v5450_v60 = vunpack.i.h.bf16 %v7162_v31  ;;  %v7497_v57 = vmul.f32 %v5317_v0, %v5088_v35 }
 0x138   : > { %10337 = vst [vmem:[#allocation43_spill] sm:$0xff] %v7452_v61  ;;  %6460 = vperm.xlu0 %6448, %v7176_v51   ;;  %v5321_v61 = vunpack.i.l.bf16 %v7156_v24  ;;  %10342 = vst [vmem:[#allocation48_spill] sm:$0xff] %v7481_v38  ;;  %v7499_v38 = vmul.f32 %v5316_v3, %v5088_v35  ;;  %v7511_v17 = vmul.f32 %v5322_v11, %v5088_v35  ;;  %v5468_v0 = vunpack.i.h.bf16 %v7173_v50 }
 0x139   : > { %v7474_v2 = vpop.permute.xlu1 %5540  ;;  %10341 = vst [vmem:[#allocation47_spill] sm:$0xff] %v7477_v28  ;;  %10343 = vst [vmem:[#allocation49_spill] sm:$0xff] %v7484_v49  ;;  %v5327_v49 = vunpack.i.l.bf16 %v7167_v34  ;;  %v7508_v28 = vmul.f32 %v5433_v12, %v7491_v8  ;;  %v7524_v12 = vld [vmem:[%s10067_s1 + $0x11] ss:$0 sm:$0xff]  ;;  %v5467_v34 = vunpack.i.l.bf16 %v7173_v50  ;;  %v10350_v11 = vmov 15  }
 0x13a   : > { %10340 = vst [vmem:[#allocation46_spill] sm:$0xff] %v7474_v2  ;;  %5695 = vperm.xlu1 %5688, %v7094_v52   ;;  %v5449_v2 = vunpack.i.l.bf16 %v7162_v31  ;;  %10345 = vst [vmem:[#allocation51_spill] sm:$0xff] %v7497_v57  ;;  %v7514_v31 = vmul.f32 %v5432_v22, %v7491_v8  ;;  %v7517_v3 = vmul.f32 %v5321_v61, %v5088_v35  ;;  %v5333_v57 = vunpack.i.l.bf16 %v7179_v4  ;;  %v7536_v61 = vld [vmem:[%s10067_s1 + $0x6] ss:$0 sm:$0xff] }
 0x13b   : > { %v7495_v24 = vpop.permute.xlu0 %6204  ;;  %10346 = vst [vmem:[#allocation52_spill] sm:$0xff] %v7499_v38  ;;  %10347 = vst [vmem:[#allocation53_spill] sm:$0xff] %v7504_v58  ;;  %v7531_v22 = vmul.f32 %v5328_v59, %v7504_v58  ;;  %v5485_v50 = vunpack.i.h.bf16 %v7182_v5  ;;  %v7549_v59 = vmul.f32 %v5327_v49, %v7504_v58  ;;  %v7555_v38 = vld [vmem:[%s10067_s1 + $0x12] ss:$0 sm:$0xff] }
 0x13c   : > { %10344 = vst [vmem:[#allocation50_spill] sm:$0xff] %v7495_v24  ;;  %10348 = vst [vmem:[#allocation54_spill] sm:$0xff] %v7508_v28  ;;  %6477 = vperm.xlu0 %6448, %v7185_v9   ;;  %v5334_v24 = vunpack.i.h.bf16 %v7179_v4  ;;  %v7539_v4 = vmul.f32 %v5450_v60, %v7524_v12  ;;  %v7542_v35 = vmul.f32 %v5449_v2, %v7524_v12  ;;  %v5484_v60 = vunpack.i.l.bf16 %v7182_v5 }
 0x13d   : > { %10349 = vst [vmem:[#allocation55_spill] sm:$0xff] %v7514_v31  ;;  %10352 = vst [vmem:[#allocation57_spill] sm:$0xff] %v7531_v22  ;;  %v5339_v2 = vunpack.i.l.bf16 %v7188_v23  ;;  %v7564_v49 = vmul.f32 %v5468_v0, %v7555_v38  ;;  %v7572_v5 = vmul.f32 %v5333_v57, %v7536_v61  ;;  %v5502_v0 = vunpack.i.l.bf16 %v7191_v32 }
 0x13e   : > { %5699 = vset.pattern.permute.xlu1 %v10350_v11  ;;  %v7528_v28 = vpop.permute.xlu1 %5546  ;;  %10353 = vst [vmem:[#allocation58_spill] sm:$0xff] %v7539_v4  ;;  %10354 = vst [vmem:[#allocation59_spill] sm:$0xff] %v7542_v35  ;;  %v7569_v4 = vmul.f32 %v5334_v24, %v7536_v61  ;;  %v7575_v35 = vmul.f32 %v5467_v34, %v7555_v38  ;;  %v5351_v24 = vunpack.i.h.bf16 %v7204_v41  ;;  %v10361_v57 = vmov 0  }
 0x13f   : > { %10351 = vst [vmem:[#allocation56_spill] sm:$0xff] %v7528_v28  ;;  %5701 = vperm.xlu1 %5699, %v7094_v52   ;;  %v7546_v31 = vpop.permute.xlu0 %6232  ;;  %v5340_v28 = vunpack.i.h.bf16 %v7188_v23  ;;  %v5091_v52 = vld [vmem:[%s10067_s1 + $0x7] ss:$0 sm:$0xff]  ;;  %10356 = vst [vmem:[#allocation61_spill] sm:$0xff] %v7564_v49  ;;  %v7580_v23 = vld [vmem:[%s10067_s1 + $0x14] ss:$0 sm:$0xff]  ;;  %v5344_v49 = vunpack.i.l.bf16 %v7194_v33 }
 0x140   : > { %10355 = vst [vmem:[#allocation60_spill] sm:$0xff] %v7546_v31  ;;  %6481 = vset.pattern.permute.xlu0 %v10334_v47  ;;  %v5503_v31 = vunpack.i.h.bf16 %v7191_v32  ;;  %10357 = vst [vmem:[#allocation62_spill] sm:$0xff] %v7569_v4  ;;  %v5345_v47 = vunpack.i.h.bf16 %v7194_v33  ;;  %v7587_v4 = vmul.f32 %v5485_v50, %v7580_v23  ;;  %v5350_v32 = vunpack.i.l.bf16 %v7204_v41  ;;  %v7606_v50 = vld [vmem:[%s10067_s1 + $0x15] ss:$0 sm:$0xff] }
 0x141   : > { %6483 = vperm.xlu0 %6481, %v7054_v37   ;;  %10358 = vst [vmem:[#allocation63_spill] sm:$0xff] %v7572_v5  ;;  %10359 = vst [vmem:[#allocation64_spill] sm:$0xff] %v7575_v35  ;;  %v7592_v35 = vmul.f32 %v5340_v28, %v5091_v52  ;;  %v7597_v5 = vld [vmem:[%s10067_s1 + $0x8] ss:$0 sm:$0xff]  ;;  %v7601_v33 = vmul.f32 %v5484_v60, %v7580_v23  ;;  %v5881_v41 = vunpack.i.l.bf16 %v7207_v40 }
 0x142   : > { %10360 = vst [vmem:[#allocation65_spill] sm:$0xff] %v7587_v4  ;;  %10364 = vst [vmem:[#allocation68_spill] sm:$0xff] %v7597_v5  ;;  %v7612_v4 = vmul.f32 %v5339_v2, %v5091_v52  ;;  %v7620_v60 = vmul.f32 %v5502_v0, %v7606_v50  ;;  %v7624_v58 = vmul.f32 %v5345_v47, %v5091_v52  ;;  %v5094_v47 = vld [vmem:[%s10067_s1 + $0xa] ss:$0 sm:$0xff] }
 0x143   : > { %5705 = vset.pattern.permute.xlu1 %v10361_v57  ;;  %v7590_v34 = vpop.permute.xlu1 %5552  ;;  %10363 = vst [vmem:[#allocation67_spill] sm:$0xff] %v7592_v35  ;;  %10365 = vst [vmem:[#allocation69_spill] sm:$0xff] %v7601_v33  ;;  %v5882_v57 = vunpack.i.h.bf16 %v7207_v40  ;;  %v7615_v35 = vmul.f32 %v5503_v31, %v7606_v50  ;;  %v5357_v33 = vunpack.i.h.bf16 %v7213_v48  ;;  %v7626_v22 = vmul.f32 %v5344_v49, %v5091_v52  ;;  %v7635_v40 = vld [vmem:[%s10067_s1 + $0x17] ss:$0 sm:$0xff] }
 0x144   : > { %10362 = vst [vmem:[#allocation66_spill] sm:$0xff] %v7590_v34  ;;  %5707 = vperm.xlu1 %5705, %v7054_v37   ;;  %v7610_v28 = vpop.permute.xlu0 %6238  ;;  %10366 = vst [vmem:[#allocation70_spill] sm:$0xff] %v7612_v4  ;;  %v5356_v34 = vunpack.i.l.bf16 %v7213_v48  ;;  %v7629_v2 = vmul.f32 %v5351_v24, %v7597_v5  ;;  %v5369_v31 = vunpack.i.h.bf16 %v7220_v44  ;;  %v5368_v48 = vunpack.i.l.bf16 %v7220_v44 }
 0x145   : > { %10367 = vst [vmem:[#allocation71_spill] sm:$0xff] %v7615_v35  ;;  %6499 = vperm.xlu0 %6481, %v7210_v26   ;;  %10368 = vst [vmem:[#allocation72_spill] sm:$0xff] %v7620_v60  ;;  %v7640_v35 = vmul.f32 %v5350_v32, %v7597_v5  ;;  %v7647_v52 = vmul.f32 %v5882_v57, %v7635_v40  ;;  %v5904_v49 = vunpack.i.h.bf16 %v7223_v45  ;;  %v10370_v24 = vmov 1  }
 0x146   : > { %v7654_v4 = vmul.f32 %v5881_v41, %v7635_v40  ;;  %v5374_v32 = vunpack.i.h.bf16 %v7227_v53  ;;  %v5903_v5 = vunpack.i.l.bf16 %v7223_v45  ;;  %v7661_v44 = vmul.f32 %v5357_v33, %v7383_v54 }
 0x147   : > { %v7637_v0 = vpop.permute.xlu1 %5557  ;;  %10369 = vst [vmem:[#allocation73_spill] sm:$0xff] %v7647_v52  ;;  %v7664_v57 = vmul.f32 %v5356_v34, %v7383_v54  ;;  %v7668_v41 = vmul.f32 %v5369_v31, %v5094_v47  ;;  %v5386_v52 = vunpack.i.h.bf16 %v7234_v46  ;;  %v5385_v45 = vunpack.i.l.bf16 %v7234_v46 }
 0x148   : > { %5711 = vset.pattern.permute.xlu1 %v10370_v24  ;;  %v7651_v60 = vpop.permute.xlu0 %6243  ;;  %10372 = vst [vmem:[#allocation75_spill] sm:$0xff] %v7654_v4  ;;  %10373 = vst [vmem:[#allocation76_spill] sm:$0xff] %v7661_v44  ;;  %v5373_v24 = vunpack.i.l.bf16 %v7227_v53  ;;  %v7675_v4 = vld [vmem:[%s10067_s1 + $0x18] ss:$0 sm:$0xff]  ;;  %v7677_v33 = vmul.f32 %v5368_v48, %v5094_v47  ;;  %v5927_v53 = vunpack.i.h.bf16 %v7237_v36 }
 0x149   : > { %10371 = vst [vmem:[#allocation74_spill] sm:$0xff] %v7651_v60  ;;  %5713 = vperm.xlu1 %5711, %v7054_v37   ;;  %6503 = vset.pattern.permute.xlu0 %v10350_v11  ;;  %10374 = vst [vmem:[#allocation77_spill] sm:$0xff] %v7668_v41  ;;  %v7680_v54 = vmul.f32 %v5904_v49, %v7675_v4  ;;  %v7688_v11 = vmul.f32 %v5374_v32, %v5094_v47  ;;  %v5392_v41 = vunpack.i.h.bf16 %v7244_v29 }
 0x14a   : > { %6505 = vperm.xlu0 %6503, %v7160_v27   ;;  %10375 = vst [vmem:[#allocation78_spill] sm:$0xff] %v7677_v33  ;;  %v5926_v27 = vunpack.i.l.bf16 %v7237_v36  ;;  %v7691_v46 = vmul.f32 %v5903_v5, %v7675_v4  ;;  %v7695_v48 = vmul.f32 %v5373_v24, %v5094_v47  ;;  %v5391_v49 = vunpack.i.l.bf16 %v7244_v29  ;;  %v7708_v5 = vld [vmem:[%s10067_s1 + $0x1a] ss:$0 sm:$0xff] }
 0x14b   : > { %10376 = vst [vmem:[#allocation79_spill] sm:$0xff] %v7680_v54  ;;  %v7700_v36 = vmul.f32 %v5386_v52, %v7413_v39  ;;  %v5949_v32 = vunpack.i.h.bf16 %v7248_v43  ;;  %v5948_v47 = vunpack.i.l.bf16 %v7248_v43  ;;  %v7713_v24 = vmul.f32 %v5927_v53, %v7708_v5  ;;  %v5097_v54 = vld [vmem:[%s10067_s1 + $0xd] ss:$0 sm:$0xff] }
 0x14c   : > { %v7684_v34 = vpop.permute.xlu1 %5563  ;;  %v7686_v31 = vpop.permute.xlu0 %6259  ;;  %10378 = vst [vmem:[#allocation81_spill] sm:$0xff] %v7691_v46  ;;  %v7716_v29 = vmul.f32 %v5926_v27, %v7708_v5  ;;  %v5404_v52 = vunpack.i.h.bf16 %v7251_v56  ;;  %v5409_v46 = vunpack.i.h.bf16 %v7258_v25  ;;  %v5408_v43 = vunpack.i.l.bf16 %v7258_v25 }
 0x14d   : > { %10377 = vst [vmem:[#allocation80_spill] sm:$0xff] %v7686_v31  ;;  %5718 = vperm.xlu1 %5711, %v7044_v30   ;;  %v7703_v31 = vmul.f32 %v5385_v45, %v7413_v39  ;;  %10379 = vst [vmem:[#allocation82_spill] sm:$0xff] %v7713_v24  ;;  %v5403_v39 = vunpack.i.l.bf16 %v7251_v56  ;;  %v7721_v45 = vmul.f32 %v5392_v41, %v7435_v1  ;;  %v10382_v53 = vmov 2   ;;  %v7739_v56 = vld [vmem:[%s10067_s1 + $0x1b] ss:$0 sm:$0xff] }
 0x14e   : > { %6510 = vperm.xlu0 %6503, %v7044_v30   ;;  %10380 = vst [vmem:[#allocation83_spill] sm:$0xff] %v7716_v29  ;;  %v7734_v29 = vmul.f32 %v5391_v49, %v7435_v1  ;;  %v5972_v41 = vunpack.i.h.bf16 %v7263_v21  ;;  %v7746_v25 = vmul.f32 %v5949_v32, %v7739_v56  ;;  %v5421_v1 = vunpack.i.h.bf16 %v7265_v19 }
 0x14f   : > { %10381 = vst [vmem:[#allocation84_spill] sm:$0xff] %v7721_v45  ;;  %v5971_v45 = vunpack.i.l.bf16 %v7263_v21  ;;  %v7752_v49 = vmul.f32 %v5404_v52, %v5097_v54  ;;  %v5420_v33 = vunpack.i.l.bf16 %v7265_v19  ;;  %v7759_v21 = vmul.f32 %v5408_v43, %v5097_v54 }
 0x150   : > { %10384 = vst [vmem:[#allocation86_spill] sm:$0xff] %v7734_v29  ;;  %10385 = vst [vmem:[#allocation87_spill] sm:$0xff] %v7746_v25  ;;  %v7754_v29 = vmul.f32 %v5403_v39, %v5097_v54  ;;  %v5426_v32 = vunpack.i.l.bf16 %v7272_v7  ;;  %v5439_v43 = vunpack.i.h.bf16 %v7280_v18 }
 0x151   : > { %5722 = vset.pattern.permute.xlu1 %v10382_v53  ;;  %v7729_v24 = vpop.permute.xlu1 %5569  ;;  %v7731_v27 = vpop.permute.xlu0 %6265  ;;  %v7749_v53 = vmul.f32 %v5948_v47, %v7739_v56  ;;  %10387 = vst [vmem:[#allocation89_spill] sm:$0xff] %v7752_v49  ;;  %v7766_v47 = vld [vmem:[%s10067_s1 + $0x1d] ss:$0 sm:$0xff]  ;;  %v5443_v49 = vunpack.i.l.bf16 %v7286_v15 }
 0x152   : > { %10383 = vst [vmem:[#allocation85_spill] sm:$0xff] %v7729_v24  ;;  %5724 = vperm.xlu1 %5722, %v7044_v30   ;;  %6515 = vperm.xlu0 %6503, %v7176_v51   ;;  %10388 = vst [vmem:[#allocation90_spill] sm:$0xff] %v7754_v29  ;;  %v7757_v24 = vmul.f32 %v5409_v46, %v5097_v54  ;;  %v5427_v51 = vunpack.i.h.bf16 %v7272_v7  ;;  %v7771_v52 = vmul.f32 %v5972_v41, %v7766_v47  ;;  %v10391_v46 = vmov 3   ;;  %v5100_v41 = vld [vmem:[%s10067_s1 + $0x10] ss:$0 sm:$0xff] }
 0x153   : > { %10386 = vst [vmem:[#allocation88_spill] sm:$0xff] %v7749_v53  ;;  %v7774_v19 = vmul.f32 %v5971_v45, %v7766_v47  ;;  %v5994_v54 = vunpack.i.h.bf16 %v7277_v13  ;;  %v7782_v7 = vmul.f32 %v5421_v1, %v7471_v6  ;;  %v5993_v53 = vunpack.i.l.bf16 %v7277_v13 }
 0x154   : > { %10389 = vst [vmem:[#allocation91_spill] sm:$0xff] %v7771_v52  ;;  %v7788_v45 = vmul.f32 %v5420_v33, %v7471_v6  ;;  %v5444_v52 = vunpack.i.h.bf16 %v7286_v15  ;;  %v6017_v1 = vunpack.i.h.bf16 %v7291_v10  ;;  %v7800_v13 = vmul.f32 %v5426_v32, %v7491_v8  ;;  %v7806_v6 = vld [vmem:[%s10067_s1 + $0x1e] ss:$0 sm:$0xff] }
 0x155   : > { %v7768_v25 = vpop.permute.xlu0 %6270  ;;  %10390 = vst [vmem:[#allocation92_spill] sm:$0xff] %v7774_v19  ;;  %v7797_v19 = vmul.f32 %v5427_v51, %v7491_v8  ;;  %10395 = vst [vmem:[#allocation96_spill] sm:$0xff] %v7806_v6  ;;  %v5456_v29 = vunpack.i.h.bf16 %v7293_v42  ;;  %v6016_v51 = vunpack.i.l.bf16 %v7291_v10  ;;  %v10399_v8 = vmov 17  }
 0x156   : > { %5728 = vset.pattern.permute.xlu1 %v10391_v46  ;;  %v7778_v39 = vpop.permute.xlu1 %5575  ;;  %6532 = vperm.xlu0 %6503, %v7185_v9   ;;  %v5438_v46 = vunpack.i.l.bf16 %v7280_v18  ;;  %10394 = vst [vmem:[#allocation95_spill] sm:$0xff] %v7800_v13  ;;  %v7811_v18 = vmul.f32 %v5994_v54, %v7806_v6  ;;  %v7818_v32 = vmul.f32 %v5439_v43, %v5100_v41  ;;  %v5455_v13 = vunpack.i.l.bf16 %v7293_v42  ;;  %v7827_v54 = vld [vmem:[%s10067_s1 + $0x21] ss:$0 sm:$0xff] }
 0x157   : > { %10392 = vst [vmem:[#allocation93_spill] sm:$0xff] %v7778_v39  ;;  %5730 = vperm.xlu1 %5728, %v7054_v37   ;;  %10393 = vst [vmem:[#allocation94_spill] sm:$0xff] %v7797_v19  ;;  %v7821_v15 = vmul.f32 %v5993_v53, %v7806_v6  ;;  %v7836_v43 = vmul.f32 %v6017_v1, %v7827_v54  ;;  %v7839_v53 = vmul.f32 %v5443_v49, %v5100_v41  ;;  %v10408_v49 = vld [vmem:[#allocation14_spill] sm:$0xff]  ;;  %v10418_v39 = vld [vmem:[#allocation16_spill] sm:$0xff] }
 0x158   : > { %10397 = vst [vmem:[#allocation98_spill] sm:$0xff] %v7811_v18  ;;  %10400 = vst [vmem:[#allocation100_spill] sm:$0xff] %v7818_v32  ;;  %v7831_v10 = vmul.f32 %v5438_v46, %v5100_v41  ;;  %v7833_v18 = vmul.f32 %v5444_v52, %v5100_v41  ;;  %v6051_v42 = vunpack.i.h.bf16 %v7304_v20  ;;  %v7849_v46 = vmul.f32 %v6016_v51, %v7827_v54  ;;  %v5103_v51 = vld [vmem:[%s10067_s1 + $0x13] ss:$0 sm:$0xff] }
 0x159   : > { %v7808_v33 = vpop.permute.xlu0 %6275  ;;  %10401 = vst [vmem:[#allocation101_spill] sm:$0xff] %v7821_v15  ;;  %10402 = vst [vmem:[#allocation102_spill] sm:$0xff] %v7827_v54  ;;  %v5462_v52 = vunpack.i.h.bf16 %v7301_v14  ;;  %v5461_v1 = vunpack.i.l.bf16 %v7301_v14  ;;  %v7854_v32 = vmul.f32 %v5455_v13, %v7524_v12  ;;  %v5474_v41 = vunpack.i.h.bf16 %v10408_v49  ;;  %v7869_v14 = vld [vmem:[%s10067_s1 + $0x24] ss:$0 sm:$0xff] }
 0x15a   : > { %10396 = vst [vmem:[#allocation97_spill] sm:$0xff] %v7808_v33  ;;  %v7815_v19 = vpop.permute.xlu1 %5580  ;;  %6536 = vset.pattern.permute.xlu0 %v10399_v8  ;;  %v10403_v33 = vmov 4   ;;  %10404 = vst [vmem:[#allocation103_spill] sm:$0xff] %v7831_v10  ;;  %v6050_v8 = vunpack.i.l.bf16 %v7304_v20  ;;  %v5473_v10 = vunpack.i.l.bf16 %v10408_v49  ;;  %v10409_v20 = vld [vmem:[#allocation17_spill] sm:$0xff]  ;;  %v7875_v54 = vmul.f32 %v6051_v42, %v7869_v14  ;;  %v7893_v42 = vld [vmem:[%s10067_s1 + $0x27] ss:$0 sm:$0xff] }
 0x15b   : > { %10398 = vst [vmem:[#allocation99_spill] sm:$0xff] %v7815_v19  ;;  %5734 = vset.pattern.permute.xlu1 %v10403_v33  ;;  %6538 = vperm.xlu0 %6536, %v7054_v37   ;;  %10405 = vst [vmem:[#allocation104_spill] sm:$0xff] %v7836_v43  ;;  %v7846_v33 = vmul.f32 %v5456_v29, %v7524_v12  ;;  %v6085_v19 = vunpack.i.h.bf16 %v10409_v20  ;;  %v10412_v12 = vld [vmem:[#allocation30_spill] sm:$0xff]  ;;  %v7887_v6 = vmul.f32 %v5461_v1, %v7555_v38 }
 0x15c   : > { %5736 = vperm.xlu1 %5734, %v7054_v37   ;;  %10407 = vst [vmem:[#allocation106_spill] sm:$0xff] %v7849_v46  ;;  %10411 = vst [vmem:[#allocation17_spill] sm:$0xff] %v7869_v14  ;;  %v6192_v13 = vunpack.i.h.bf16 %v10412_v12  ;;  %v6191_v49 = vunpack.i.l.bf16 %v10412_v12  ;;  %v7878_v29 = vmul.f32 %v6050_v8, %v7869_v14  ;;  %v5479_v12 = vunpack.i.h.bf16 %v10418_v39 }
 0x15d   : > { %v7843_v15 = vpop.permute.xlu0 %6280  ;;  %10413 = vst [vmem:[#allocation30_spill] sm:$0xff] %v7875_v54  ;;  %10417 = vst [vmem:[#allocation110_spill] sm:$0xff] %v7887_v6  ;;  %v7895_v44 = vmul.f32 %v5474_v41, %v5103_v51  ;;  %v7897_v8 = vmul.f32 %v5473_v10, %v5103_v51  ;;  %v10424_v10 = vmov 5  }
 0x15e   : > { %10406 = vst [vmem:[#allocation105_spill] sm:$0xff] %v7843_v15  ;;  %10414 = vst [vmem:[#allocation107_spill] sm:$0xff] %v7878_v29  ;;  %v7922_v1 = vmul.f32 %v5479_v12, %v5103_v51  ;;  %v10430_v29 = vld [vmem:[#allocation37_spill] sm:$0xff] }
 0x15f   : > { %v7859_v15 = vpop.permute.xlu1 %5586  ;;  %6554 = vperm.xlu0 %6536, %v7210_v26   ;;  %v6084_v26 = vunpack.i.l.bf16 %v10409_v20  ;;  %10419 = vst [vmem:[#allocation16_spill] sm:$0xff] %v7893_v42  ;;  %10420 = vst [vmem:[#allocation111_spill] sm:$0xff] %v7895_v44  ;;  %v5478_v20 = vunpack.i.l.bf16 %v10418_v39  ;;  %v10429_v39 = vld [vmem:[#allocation21_spill] sm:$0xff] }
 0x160   : > { %10410 = vst [vmem:[#allocation14_spill] sm:$0xff] %v7859_v15  ;;  %5741 = vperm.xlu1 %5734, %v7044_v30   ;;  %v7884_v15 = vmul.f32 %v5462_v52, %v7555_v38  ;;  %10421 = vst [vmem:[#allocation112_spill] sm:$0xff] %v7897_v8  ;;  %v7906_v38 = vld [vmem:[%s10067_s1] ss:$0 sm:$0xff]  ;;  %v10423_v52 = vmov 18   ;;  %v6119_v54 = vunpack.i.h.bf16 %v10429_v39 }
 0x161   : > { %v7881_v43 = vpop.permute.xlu0 %6297  ;;  %v207_v14 = vmul.f32 %v6192_v13, %v7906_v38  ;;  %v206_v41 = vmul.f32 %v6191_v49, %v7906_v38  ;;  %v7919_v8 = vmul.f32 %v6084_v26, %v7893_v42  ;;  %10427 = vst [vmem:[#allocation116_spill] sm:$0xff] %v7922_v1  ;;  %v10428_v13 = vld [vmem:[#allocation18_spill] sm:$0xff]  ;;  %v6268_v49 = vunpack.i.h.bf16 %v7731_v27 }
 0x162   : > { %10415 = vst [vmem:[#allocation108_spill] sm:$0xff] %v7881_v43  ;;  %10416 = vst [vmem:[#allocation109_spill] sm:$0xff] %v7884_v15  ;;  %v7901_v43 = vmul.f32 %v6085_v19, %v7893_v42  ;;  %v7929_v15 = vmul.f32 %v5478_v20, %v5103_v51  ;;  %v5490_v19 = vunpack.i.l.bf16 %v10428_v13  ;;  %v6118_v26 = vunpack.i.l.bf16 %v10429_v39 }
 0x163   : > { %6558 = vset.pattern.permute.xlu0 %v10423_v52  ;;  %10426 = vst [vmem:[#allocation115_spill] sm:$0xff] %v7919_v8  ;;  %v5491_v52 = vunpack.i.h.bf16 %v10428_v13  ;;  %v239_v12 = vadd.f32 %v7418_v62, %v206_v41  ;;  %v240_v6 = vadd.f32 %v10430_v29, %v207_v14  ;;  %v10432_v20 = vmov 6   ;;  %v7950_v62 = vld [vmem:[%s10067_s1 + $0x2a] ss:$0 sm:$0xff]  ;;  %v10434_v29 = vld [vmem:[#allocation25_spill] sm:$0xff] }
 0x164   : > { %10422 = vst [vmem:[#allocation113_spill] sm:$0xff] %v7901_v43  ;;  %5745 = vset.pattern.permute.xlu1 %v10424_v10  ;;  %v7913_v44 = vpop.permute.xlu1 %5592  ;;  %6560 = vperm.xlu0 %6558, %v7044_v30   ;;  %v6267_v10 = vunpack.i.l.bf16 %v7731_v27  ;;  %10433 = vst [vmem:[#allocation18_spill] sm:$0xff] %v7950_v62  ;;  %v6153_v14 = vunpack.i.h.bf16 %v10434_v29  ;;  %v294_v41 = vmul.f32 %v6268_v49, %v7429_v16  ;;  %v6152_v49 = vunpack.i.l.bf16 %v10434_v29 }
 0x165   : > { %10425 = vst [vmem:[#allocation114_spill] sm:$0xff] %v7913_v44  ;;  %5747 = vperm.xlu1 %5745, %v7044_v30   ;;  %v10431_v44 = vld [vmem:[#allocation20_spill] sm:$0xff]  ;;  %v7945_v39 = vmul.f32 %v5491_v52, %v7580_v23  ;;  %v7959_v27 = vmul.f32 %v5490_v19, %v7580_v23  ;;  %v7962_v52 = vmul.f32 %v6119_v54, %v7950_v62 }
 0x166   : > { %v7927_v46 = vpop.permute.xlu0 %6303  ;;  %v5497_v1 = vunpack.i.h.bf16 %v10431_v44  ;;  %v5496_v51 = vunpack.i.l.bf16 %v10431_v44  ;;  %v293_v42 = vmul.f32 %v6267_v10, %v7429_v16  ;;  %v268_v16 = vadd.f32 %v7444_v55, %v239_v12  ;;  %v5106_v19 = vld [vmem:[%s10067_s1 + $0x16] ss:$0 sm:$0xff]  ;;  %v7986_v55 = vld [vmem:[%s10067_s1 + $0x2d] ss:$0 sm:$0xff] }
 0x167   : > { %10436 = vst [vmem:[#allocation37_spill] sm:$0xff] %v7962_v52  ;;  %v269_v10 = vadd.f32 %v7441_v63, %v240_v6 }
 0x168   : > { %6577 = vperm.xlu0 %6558, %v7185_v9   ;;  %v7965_v9 = vmul.f32 %v6118_v26, %v7950_v62  ;;  %v7974_v23 = vmul.f32 %v5497_v1, %v7606_v50  ;;  %v7977_v54 = vmul.f32 %v5496_v51, %v7606_v50  ;;  %v10442_v26 = vld [vmem:[#allocation24_spill] sm:$0xff]  ;;  %v7993_v50 = vmul.f32 %v6153_v14, %v7986_v55  ;;  %v10448_v62 = vld [vmem:[#allocation29_spill] sm:$0xff] }
 0x169   : > { %5751 = vset.pattern.permute.xlu1 %v10432_v20  ;;  %v7942_v13 = vpop.permute.xlu1 %5598  ;;  %v10438_v20 = vld [vmem:[#allocation22_spill] sm:$0xff]  ;;  %10443 = vst [vmem:[#allocation24_spill] sm:$0xff] %v7986_v55  ;;  %v5513_v6 = vunpack.i.l.bf16 %v10442_v26  ;;  %v297_v1 = vadd.f32 %v293_v42, %v268_v16  ;;  %v298_v12 = vadd.f32 %v294_v41, %v269_v10  ;;  %v10446_v51 = vmov 7  }
 0x16a   : > { %5753 = vperm.xlu1 %5751, %v7054_v37   ;;  %v7956_v44 = vpop.permute.xlu0 %6308  ;;  %10437 = vst [vmem:[#allocation20_spill] sm:$0xff] %v7965_v9  ;;  %v5509_v43 = vunpack.i.h.bf16 %v10438_v20  ;;  %v5508_v8 = vunpack.i.l.bf16 %v10438_v20  ;;  %10440 = vst [vmem:[#allocation25_spill] sm:$0xff] %v7974_v23  ;;  %v5514_v20 = vunpack.i.h.bf16 %v10442_v26  ;;  %v6187_v23 = vunpack.i.h.bf16 %v10448_v62 }
 0x16b   : > { %10435 = vst [vmem:[#allocation21_spill] sm:$0xff] %v7956_v44  ;;  %v10439_v44 = vmov 20   ;;  %10441 = vst [vmem:[#allocation22_spill] sm:$0xff] %v7977_v54  ;;  %v6186_v54 = vunpack.i.l.bf16 %v10448_v62  ;;  %v8008_v42 = vmul.f32 %v6152_v49, %v7986_v55  ;;  %v6241_v16 = vunpack.i.h.bf16 %v7610_v28 }
 0x16c   : > { %6581 = vset.pattern.permute.xlu0 %v10439_v44  ;;  %10445 = vst [vmem:[#allocation118_spill] sm:$0xff] %v7993_v50  ;;  %v8003_v26 = vmul.f32 %v5509_v43, %v5106_v19  ;;  %v8005_v14 = vmul.f32 %v5508_v8, %v5106_v19  ;;  %v8010_v41 = vmul.f32 %v5514_v20, %v5106_v19  ;;  %v6240_v10 = vunpack.i.l.bf16 %v7610_v28  ;;  %v10452_v8 = vld [vmem:[#allocation26_spill] sm:$0xff] }
 0x16d   : > { %v7988_v63 = vpop.permute.xlu1 %5603  ;;  %6583 = vperm.xlu0 %6581, %v7054_v37   ;;  %10451 = vst [vmem:[#allocation121_spill] sm:$0xff] %v8008_v42  ;;  %v8014_v44 = vmul.f32 %v5513_v6, %v5106_v19  ;;  %v327_v43 = vadd.f32 %v7511_v17, %v298_v12  ;;  %v5519_v49 = vunpack.i.l.bf16 %v10452_v8  ;;  %v205_v20 = vmul.f32 %v6187_v23, %v7906_v38  ;;  %v10454_v12 = vld [vmem:[#allocation38_spill] sm:$0xff]  ;;  %v10456_v42 = vld [vmem:[#allocation36_spill] sm:$0xff] }
 0x16e   : > { %10444 = vst [vmem:[#allocation117_spill] sm:$0xff] %v7988_v63  ;;  %5757 = vset.pattern.permute.xlu1 %v10446_v51  ;;  %v7996_v29 = vpop.permute.xlu0 %6324  ;;  %10449 = vst [vmem:[#allocation29_spill] sm:$0xff] %v8003_v26  ;;  %v5520_v51 = vunpack.i.h.bf16 %v10452_v8  ;;  %v204_v55 = vmul.f32 %v6186_v54, %v7906_v38  ;;  %v263_v50 = vmul.f32 %v6241_v16, %v10454_v12  ;;  %v10455_v38 = vld [vmem:[#allocation57_spill] sm:$0xff]  ;;  %v10457_v26 = vld [vmem:[#allocation35_spill] sm:$0xff] }
 0x16f   : > { %10447 = vst [vmem:[#allocation119_spill] sm:$0xff] %v7996_v29  ;;  %5759 = vperm.xlu1 %5757, %v7054_v37   ;;  %10450 = vst [vmem:[#allocation120_spill] sm:$0xff] %v8005_v14  ;;  %v326_v29 = vadd.f32 %v7517_v3, %v297_v1  ;;  %v10453_v3 = vld [vmem:[#allocation28_spill] sm:$0xff]  ;;  %v262_v52 = vmul.f32 %v6240_v10, %v10454_v12  ;;  %v356_v54 = vadd.f32 %v10455_v38, %v327_v43  ;;  %v10458_v14 = vmov 8  }
 0x170   : > { %v5526_v1 = vunpack.i.h.bf16 %v10453_v3  ;;  %v5525_v17 = vunpack.i.l.bf16 %v10453_v3  ;;  %v8036_v19 = vmul.f32 %v5520_v51, %v7635_v40  ;;  %v237_v3 = vadd.f32 %v10456_v42, %v204_v55 }
 0x171   : > { %v355_v23 = vadd.f32 %v7549_v59, %v326_v29  ;;  %v238_v16 = vadd.f32 %v10457_v26, %v205_v20  ;;  %v10459_v59 = vld [vmem:[#allocation34_spill] sm:$0xff] }
 0x172   : > { %v8019_v63 = vpop.permute.xlu1 %5609  ;;  %v6197_v29 = vunpack.i.h.bf16 %v10459_v59  ;;  %v8051_v51 = vmul.f32 %v5526_v1, %v7675_v4  ;;  %v266_v55 = vadd.f32 %v262_v52, %v237_v3  ;;  %v8055_v26 = vmul.f32 %v5525_v17, %v7675_v4  ;;  %v8067_v52 = vld [vmem:[%s10067_s1 + $0x20] ss:$0 sm:$0xff] }
 0x173   : > { %5764 = vperm.xlu1 %5757, %v7044_v30   ;;  %v6331_v28 = vpop.permute.xlu0 %6330  ;;  %v267_v42 = vadd.f32 %v263_v50, %v238_v16  ;;  %v6196_v4 = vunpack.i.l.bf16 %v10459_v59  ;;  %v6306_v50 = vunpack.i.h.bf16 %v7927_v46  ;;  %v6305_v17 = vunpack.i.l.bf16 %v7927_v46  ;;  %v10467_v46 = vld [vmem:[#allocation44_spill] sm:$0xff] }
 0x174   : > { %v6333_v6 = vunpack.i.h.bf16 %v6331_v28  ;;  %v6332_v62 = vunpack.i.l.bf16 %v6331_v28  ;;  %v8039_v28 = vmul.f32 %v5519_v49, %v7635_v40  ;;  %v10460_v40 = vld [vmem:[#allocation31_spill] sm:$0xff]  ;;  %v5109_v49 = vld [vmem:[%s10067_s1 + $0x19] ss:$0 sm:$0xff]  ;;  %v10464_v3 = vmov 9  }
 0x175   : > { %v5531_v20 = vunpack.i.l.bf16 %v10460_v40 }
 0x176   : > { %v381_v8 = vmul.f32 %v6333_v6, %v7536_v61  ;;  %v380_v9 = vmul.f32 %v6332_v62, %v7536_v61  ;;  %v5532_v62 = vunpack.i.h.bf16 %v10460_v40  ;;  %v296_v40 = vadd.f32 %v10467_v46, %v267_v42  ;;  %v10473_v46 = vld [vmem:[#allocation52_spill] sm:$0xff] }
 0x177   : > { %5768 = vset.pattern.permute.xlu1 %v10458_v14  ;;  %v8044_v10 = vpop.permute.xlu1 %5615  ;;  %v8046_v6 = vpop.permute.xlu0 %6335 }
 0x178   : > { %v384_v43 = vadd.f32 %v380_v9, %v355_v23  ;;  %v385_v61 = vadd.f32 %v381_v8, %v356_v54  ;;  %5770 = vperm.xlu1 %5768, %v7044_v30   ;;  %v10461_v8 = vld [vmem:[#allocation39_spill] sm:$0xff]  ;;  %v8083_v59 = vmul.f32 %v5532_v62, %v5109_v49 }
 0x179   : > { %v5537_v1 = vunpack.i.h.bf16 %v10461_v8  ;;  %v5536_v38 = vunpack.i.l.bf16 %v10461_v8  ;;  %v8088_v8 = vmul.f32 %v5531_v20, %v5109_v49 }
 0x17a   : > { %v413_v9 = vadd.f32 %v7626_v22, %v384_v43  ;;  %v414_v12 = vadd.f32 %v7624_v58, %v385_v61  ;;  %v8076_v22 = vmul.f32 %v6197_v29, %v8067_v52  ;;  %v10466_v43 = vld [vmem:[#allocation47_spill] sm:$0xff]  ;;  %v10468_v29 = vld [vmem:[#allocation33_spill] sm:$0xff] }
 0x17b   : > { %v8072_v23 = vpop.permute.xlu0 %6340  ;;  %v295_v61 = vadd.f32 %v10466_v43, %v266_v55  ;;  %v8101_v42 = vmul.f32 %v5536_v38, %v5109_v49 }
 0x17c   : > { %10462 = vst [vmem:[#allocation26_spill] sm:$0xff] %v8072_v23  ;;  %10463 = vst [vmem:[#allocation28_spill] sm:$0xff] %v8076_v22  ;;  %v442_v58 = vadd.f32 %v7640_v35, %v413_v9  ;;  %v443_v54 = vadd.f32 %v7629_v2, %v414_v12  ;;  %5774 = vset.pattern.permute.xlu1 %v10464_v3  ;;  %v8081_v16 = vpop.permute.xlu1 %5621  ;;  %v10469_v23 = vld [vmem:[#allocation32_spill] sm:$0xff]  ;;  %v8092_v9 = vmul.f32 %v5537_v1, %v5109_v49  ;;  %v10470_v12 = vld [vmem:[#allocation53_spill] sm:$0xff] }
 0x17d   : > { %10465 = vst [vmem:[#allocation38_spill] sm:$0xff] %v8081_v16  ;;  %5776 = vperm.xlu1 %5774, %v7054_v37   ;;  %v8095_v2 = vmul.f32 %v6196_v4, %v8067_v52  ;;  %v350_v62 = vmul.f32 %v6306_v50, %v10470_v12  ;;  %v349_v3 = vmul.f32 %v6305_v17, %v10470_v12  ;;  %v10472_v1 = vld [vmem:[#allocation46_spill] sm:$0xff]  ;;  %v10475_v12 = vmov 10   ;;  %v10476_v49 = vld [vmem:[#allocation56_spill] sm:$0xff]  ;;  %v10480_v22 = vld [vmem:[#allocation45_spill] sm:$0xff] }
 0x17e   : > { %v471_v14 = vadd.f32 %v10468_v29, %v442_v58  ;;  %v472_v35 = vadd.f32 %v10469_v23, %v443_v54  ;;  %v5543_v54 = vunpack.i.h.bf16 %v10472_v1  ;;  %v5542_v4 = vunpack.i.l.bf16 %v10472_v1  ;;  %v10474_v29 = vld [vmem:[#allocation51_spill] sm:$0xff]  ;;  %v10481_v16 = vld [vmem:[#allocation42_spill] sm:$0xff] }
 0x17f   : > { %v8099_v55 = vpop.permute.xlu0 %6345  ;;  %v324_v50 = vadd.f32 %v10473_v46, %v295_v61  ;;  %v325_v17 = vadd.f32 %v10474_v29, %v296_v40  ;;  %v5549_v38 = vunpack.i.h.bf16 %v10476_v49  ;;  %v5548_v20 = vunpack.i.l.bf16 %v10476_v49  ;;  %v10479_v29 = vld [vmem:[#allocation66_spill] sm:$0xff] }
 0x180   : > { %10471 = vst [vmem:[#allocation57_spill] sm:$0xff] %v8099_v55  ;;  %v500_v43 = vadd.f32 %v7695_v48, %v471_v14  ;;  %v501_v58 = vadd.f32 %v7688_v11, %v472_v35  ;;  %v8106_v23 = vpop.permute.xlu1 %5626  ;;  %v10486_v1 = vmov 11   ;;  %v10489_v14 = vld [vmem:[#allocation67_spill] sm:$0xff] }
 0x181   : > { %5780 = vset.pattern.permute.xlu1 %v10475_v12  ;;  %v353_v55 = vadd.f32 %v349_v3, %v324_v50  ;;  %v354_v61 = vadd.f32 %v350_v62, %v325_v17  ;;  %v5555_v12 = vunpack.i.h.bf16 %v10479_v29  ;;  %v5112_v3 = vld [vmem:[%s10067_s1 + $0x1c] ss:$0 sm:$0xff]  ;;  %v5554_v62 = vunpack.i.l.bf16 %v10479_v29  ;;  %v10483_v17 = vld [vmem:[#allocation62_spill] sm:$0xff] }
 0x182   : > { %v529_v48 = vadd.f32 %v7703_v31, %v500_v43  ;;  %v530_v11 = vadd.f32 %v7700_v36, %v501_v58  ;;  %5782 = vperm.xlu1 %5780, %v7054_v37   ;;  %v8127_v36 = vmul.f32 %v5543_v54, %v7708_v5  ;;  %v8130_v43 = vmul.f32 %v5542_v4, %v7708_v5  ;;  %v10482_v5 = vld [vmem:[#allocation63_spill] sm:$0xff] }
 0x183   : > { %v8120_v46 = vpop.permute.xlu0 %6362  ;;  %v8139_v50 = vmul.f32 %v5549_v38, %v7739_v56  ;;  %v382_v4 = vadd.f32 %v10482_v5, %v353_v55  ;;  %v5560_v29 = vunpack.i.h.bf16 %v7637_v0  ;;  %v5565_v55 = vunpack.i.l.bf16 %v7684_v34  ;;  %v10485_v5 = vld [vmem:[#allocation54_spill] sm:$0xff] }
 0x184   : > { %10478 = vst [vmem:[#allocation36_spill] sm:$0xff] %v8120_v46  ;;  %v558_v49 = vadd.f32 %v10480_v22, %v529_v48  ;;  %v559_v31 = vadd.f32 %v10481_v16, %v530_v11  ;;  %v8142_v22 = vmul.f32 %v5548_v20, %v7739_v56  ;;  %v383_v48 = vadd.f32 %v10483_v17, %v354_v61  ;;  %v10484_v61 = vld [vmem:[#allocation55_spill] sm:$0xff] }
 0x185   : > { %v8136_v58 = vpop.permute.xlu1 %5632  ;;  %v8149_v11 = vmul.f32 %v5555_v12, %v5112_v3  ;;  %v8154_v20 = vmul.f32 %v5554_v62, %v5112_v3  ;;  %v10488_v62 = vld [vmem:[#allocation70_spill] sm:$0xff]  ;;  %v8169_v46 = vmul.f32 %v5560_v29, %v5112_v3 }
 0x186   : > { %v587_v16 = vadd.f32 %v7759_v21, %v558_v49  ;;  %v588_v54 = vadd.f32 %v7757_v24, %v559_v31  ;;  %5787 = vperm.xlu1 %5780, %v7044_v30   ;;  %v5559_v21 = vunpack.i.l.bf16 %v7637_v0  ;;  %v5566_v31 = vunpack.i.h.bf16 %v7684_v34  ;;  %v10504_v34 = vld [vmem:[#allocation96_spill] sm:$0xff] }
 0x187   : > { %v412_v0 = vadd.f32 %v10489_v14, %v383_v48  ;;  %v8182_v48 = vmul.f32 %v5565_v55, %v7766_v47  ;;  %v10494_v55 = vld [vmem:[#allocation64_spill] sm:$0xff] }
 0x188   : > { %v616_v38 = vadd.f32 %v7788_v45, %v587_v16  ;;  %v617_v40 = vadd.f32 %v7782_v7, %v588_v54  ;;  %v6369_v56 = vpop.permute.xlu0 %6368  ;;  %v10487_v7 = vld [vmem:[#allocation68_spill] sm:$0xff]  ;;  %v411_v54 = vadd.f32 %v10488_v62, %v382_v4  ;;  %v8179_v14 = vmul.f32 %v5566_v31, %v7766_v47  ;;  %v10493_v31 = vld [vmem:[#allocation85_spill] sm:$0xff] }
 0x189   : > { %v6371_v24 = vunpack.i.h.bf16 %v6369_v56  ;;  %v6370_v49 = vunpack.i.l.bf16 %v6369_v56  ;;  %v5571_v47 = vunpack.i.l.bf16 %v10493_v31  ;;  %v10495_v62 = vld [vmem:[#allocation61_spill] sm:$0xff] }
 0x18a   : > { %v645_v12 = vadd.f32 %v10484_v61, %v616_v38  ;;  %v646_v17 = vadd.f32 %v10485_v5, %v617_v40  ;;  %5791 = vset.pattern.permute.xlu1 %v10486_v1  ;;  %v8162_v45 = vpop.permute.xlu1 %5638  ;;  %v8176_v5 = vmul.f32 %v5559_v21, %v5112_v3  ;;  %v10491_v3 = vld [vmem:[#allocation76_spill] sm:$0xff] }
 0x18b   : > { %v437_v16 = vmul.f32 %v6371_v24, %v10487_v7  ;;  %v436_v56 = vmul.f32 %v6370_v49, %v10487_v7  ;;  %5793 = vperm.xlu1 %5791, %v7044_v30  }
 0x18c   : > { %v674_v40 = vadd.f32 %v7839_v53, %v645_v12  ;;  %v675_v38 = vadd.f32 %v7833_v18, %v646_v17  ;;  %v8174_v61 = vpop.permute.xlu0 %6373  ;;  %v6273_v53 = vunpack.i.h.bf16 %v7768_v25  ;;  %v6272_v18 = vunpack.i.l.bf16 %v7768_v25  ;;  %v10497_v25 = vld [vmem:[#allocation93_spill] sm:$0xff] }
 0x18d   : > { %10490 = vst [vmem:[#allocation35_spill] sm:$0xff] %v8174_v61  ;;  %v440_v24 = vadd.f32 %v436_v56, %v411_v54  ;;  %v441_v4 = vadd.f32 %v437_v16, %v412_v0  ;;  %v10492_v17 = vmov 12   ;;  %v5572_v16 = vunpack.i.h.bf16 %v10493_v31  ;;  %v10498_v0 = vld [vmem:[#allocation78_spill] sm:$0xff]  ;;  %v10512_v61 = vld [vmem:[#allocation89_spill] sm:$0xff] }
 0x18e   : > { %v703_v29 = vadd.f32 %v7854_v32, %v674_v40  ;;  %v704_v49 = vadd.f32 %v7846_v33, %v675_v38  ;;  %v10499_v40 = vld [vmem:[#allocation77_spill] sm:$0xff] }
 0x18f   : > { %v469_v12 = vadd.f32 %v7664_v57, %v440_v24  ;;  %v470_v21 = vadd.f32 %v10491_v3, %v441_v4  ;;  %5797 = vset.pattern.permute.xlu1 %v10492_v17  ;;  %v8191_v7 = vpop.permute.xlu1 %5644  ;;  %v5578_v57 = vunpack.i.h.bf16 %v10497_v25  ;;  %v5115_v24 = vld [vmem:[%s10067_s1 + $0x1f] ss:$0 sm:$0xff]  ;;  %v5577_v4 = vunpack.i.l.bf16 %v10497_v25  ;;  %v10500_v3 = vld [vmem:[#allocation116_spill] sm:$0xff] }
 0x190   : > { %v732_v32 = vadd.f32 %v10494_v55, %v703_v29  ;;  %v733_v33 = vadd.f32 %v10495_v62, %v704_v49  ;;  %5799 = vperm.xlu1 %5797, %v7054_v37   ;;  %v8198_v54 = vpop.permute.xlu0 %6389  ;;  %v8210_v29 = vld [vmem:[%s10067_s1 + $0x23] ss:$0 sm:$0xff]  ;;  %v8228_v17 = vmul.f32 %v5571_v47, %v10504_v34  ;;  %v10509_v47 = vld [vmem:[#allocation72_spill] sm:$0xff] }
 0x191   : > { %10496 = vst [vmem:[#allocation34_spill] sm:$0xff] %v8198_v54  ;;  %v498_v56 = vadd.f32 %v10498_v0, %v469_v12  ;;  %v499_v38 = vadd.f32 %v10499_v40, %v470_v21  ;;  %v8215_v55 = vmul.f32 %v6273_v53, %v8210_v29  ;;  %v8218_v12 = vmul.f32 %v6272_v18, %v8210_v29  ;;  %v10502_v21 = vld [vmem:[#allocation41_spill] sm:$0xff]  ;;  %v10503_v0 = vld [vmem:[#allocation40_spill] sm:$0xff] }
 0x192   : > { %v761_v49 = vadd.f32 %v7929_v15, %v732_v32  ;;  %v762_v31 = vadd.f32 %v10500_v3, %v733_v33  ;;  %v8225_v54 = vmul.f32 %v5572_v16, %v10504_v34  ;;  %v10505_v32 = vmov 13   ;;  %v10506_v33 = vld [vmem:[#allocation99_spill] sm:$0xff]  ;;  %v10507_v3 = vld [vmem:[#allocation86_spill] sm:$0xff] }
 0x193   : > { %10501 = vst [vmem:[#allocation31_spill] sm:$0xff] %v8215_v55  ;;  %v527_v62 = vadd.f32 %v10502_v21, %v498_v56  ;;  %v528_v40 = vadd.f32 %v10503_v0, %v499_v38  ;;  %v8222_v25 = vpop.permute.xlu1 %5649  ;;  %v8233_v18 = vmul.f32 %v5578_v57, %v5115_v24  ;;  %v5583_v56 = vunpack.i.h.bf16 %v10506_v33  ;;  %v10508_v21 = vld [vmem:[#allocation84_spill] sm:$0xff] }
 0x194   : > { %v790_v15 = vadd.f32 %v7959_v27, %v761_v49  ;;  %v791_v53 = vadd.f32 %v7945_v39, %v762_v31  ;;  %5803 = vset.pattern.permute.xlu1 %v10505_v32  ;;  %v8241_v34 = vmul.f32 %v5577_v4, %v5115_v24  ;;  %v10510_v49 = vld [vmem:[#allocation71_spill] sm:$0xff]  ;;  %v10511_v32 = vld [vmem:[#allocation90_spill] sm:$0xff]  ;;  %v10515_v31 = vld [vmem:[#allocation48_spill] sm:$0xff] }
 0x195   : > { %v556_v38 = vadd.f32 %v10507_v3, %v527_v62  ;;  %v557_v0 = vadd.f32 %v10508_v21, %v528_v40  ;;  %5805 = vperm.xlu1 %5803, %v7054_v37   ;;  %v8239_v16 = vpop.permute.xlu0 %6395  ;;  %v10513_v3 = vld [vmem:[#allocation14_spill] sm:$0xff] }
 0x196   : > { %v819_v27 = vadd.f32 %v10509_v47, %v790_v15  ;;  %v820_v39 = vadd.f32 %v10510_v49, %v791_v53  ;;  %v5589_v40 = vunpack.i.h.bf16 %v10513_v3  ;;  %v5588_v21 = vunpack.i.l.bf16 %v10513_v3  ;;  %v10514_v47 = vld [vmem:[#allocation49_spill] sm:$0xff]  ;;  %v10519_v3 = vld [vmem:[#allocation94_spill] sm:$0xff] }
 0x197   : > { %v585_v1 = vadd.f32 %v10511_v32, %v556_v38  ;;  %v586_v62 = vadd.f32 %v10512_v61, %v557_v0  ;;  %v8255_v15 = vmul.f32 %v5583_v56, %v5115_v24  ;;  %v5582_v53 = vunpack.i.l.bf16 %v10506_v33  ;;  %v10517_v38 = vld [vmem:[#allocation114_spill] sm:$0xff] }
 0x198   : > { %v848_v35 = vadd.f32 %v8014_v44, %v819_v27  ;;  %v849_v4 = vadd.f32 %v8010_v41, %v820_v39  ;;  %v8253_v60 = vpop.permute.xlu1 %5655  ;;  %v5595_v0 = vunpack.i.h.bf16 %v10517_v38  ;;  %v5594_v44 = vunpack.i.l.bf16 %v10517_v38  ;;  %v10518_v39 = vld [vmem:[#allocation95_spill] sm:$0xff] }
 0x199   : > { %v614_v49 = vadd.f32 %v10514_v47, %v585_v1  ;;  %v615_v32 = vadd.f32 %v10515_v31, %v586_v62  ;;  %5810 = vperm.xlu1 %5803, %v7044_v30   ;;  %v8261_v61 = vpop.permute.xlu0 %6400  ;;  %v5601_v56 = vunpack.i.h.bf16 %v7942_v13  ;;  %v5600_v33 = vunpack.i.l.bf16 %v7942_v13  ;;  %v10522_v13 = vld [vmem:[#allocation103_spill] sm:$0xff] }
 0x19a   : > { %10516 = vst [vmem:[#allocation39_spill] sm:$0xff] %v8261_v61  ;;  %v877_v41 = vadd.f32 %v8039_v28, %v848_v35  ;;  %v878_v27 = vadd.f32 %v8036_v19, %v849_v4  ;;  %v8272_v62 = vmul.f32 %v5589_v40, %v8067_v52  ;;  %v8275_v47 = vmul.f32 %v5588_v21, %v8067_v52  ;;  %v5118_v28 = vld [vmem:[%s10067_s1 + $0x22] ss:$0 sm:$0xff]  ;;  %v10520_v35 = vld [vmem:[#allocation81_spill] sm:$0xff]  ;;  %v10521_v4 = vld [vmem:[#allocation79_spill] sm:$0xff] }
 0x19b   : > { %v643_v1 = vadd.f32 %v10518_v39, %v614_v49  ;;  %v644_v31 = vadd.f32 %v10519_v3, %v615_v32  ;;  %v8282_v57 = vmul.f32 %v5582_v53, %v5115_v24  ;;  %v10523_v39 = vld [vmem:[#allocation100_spill] sm:$0xff]  ;;  %v10524_v3 = vmov 14   ;;  %v10526_v21 = vld [vmem:[#allocation102_spill] sm:$0xff] }
 0x19c   : > { %v906_v19 = vadd.f32 %v10520_v35, %v877_v41  ;;  %v907_v38 = vadd.f32 %v10521_v4, %v878_v27  ;;  %v8292_v61 = vmul.f32 %v5595_v0, %v10526_v21  ;;  %v8295_v55 = vmul.f32 %v5594_v44, %v10526_v21  ;;  %v10528_v35 = vld [vmem:[#allocation58_spill] sm:$0xff] }
 0x19d   : > { %v672_v49 = vadd.f32 %v10522_v13, %v643_v1  ;;  %v673_v32 = vadd.f32 %v10523_v39, %v644_v31  ;;  %5814 = vset.pattern.permute.xlu1 %v10524_v3  ;;  %v8287_v40 = vpop.permute.xlu1 %5661  ;;  %v8289_v52 = vpop.permute.xlu0 %6405  ;;  %v8300_v53 = vmul.f32 %v5601_v56, %v5118_v28  ;;  %v8302_v27 = vmul.f32 %v5600_v33, %v5118_v28  ;;  %v10527_v1 = vld [vmem:[#allocation59_spill] sm:$0xff]  ;;  %v10530_v56 = vld [vmem:[#allocation110_spill] sm:$0xff]  ;;  %v10531_v33 = vld [vmem:[#allocation109_spill] sm:$0xff] }
 0x19e   : > { %10525 = vst [vmem:[#allocation47_spill] sm:$0xff] %v8289_v52  ;;  %v935_v41 = vadd.f32 %v8101_v42, %v906_v19  ;;  %v936_v24 = vadd.f32 %v8092_v9, %v907_v38  ;;  %5816 = vperm.xlu1 %5814, %v7044_v30   ;;  %v1155_v0 = vrot.slane %v8272_v62, 1  ;;  %v1154_v13 = vrot.slane %v8275_v47, 1  ;;  %v10529_v19 = vld [vmem:[#allocation117_spill] sm:$0xff] }
 0x19f   : > { %v701_v31 = vadd.f32 %v10527_v1, %v672_v49  ;;  %v702_v4 = vadd.f32 %v10528_v35, %v673_v32  ;;  %v5606_v9 = vunpack.i.h.bf16 %v10529_v19  ;;  %v5605_v38 = vunpack.i.l.bf16 %v10529_v19  ;;  %v10533_v32 = vld [vmem:[#allocation88_spill] sm:$0xff]  ;;  %v10534_v1 = vld [vmem:[#allocation87_spill] sm:$0xff]  ;;  %v10538_v62 = vld [vmem:[#allocation69_spill] sm:$0xff] }
 0x1a0   : > { %v964_v44 = vadd.f32 %v8130_v43, %v935_v41  ;;  %v965_v42 = vadd.f32 %v8127_v36, %v936_v24  ;;  %v10535_v41 = vmov 15   ;;  %v10536_v35 = vld [vmem:[#allocation112_spill] sm:$0xff]  ;;  %v10537_v19 = vld [vmem:[#allocation111_spill] sm:$0xff] }
 0x1a1   : > { %v730_v39 = vadd.f32 %v10530_v56, %v701_v31  ;;  %v731_v21 = vadd.f32 %v10531_v33, %v702_v4  ;;  %v8314_v52 = vpop.permute.xlu0 %6422  ;;  %v5612_v33 = vunpack.i.h.bf16 %v8019_v63  ;;  %v1228_v49 = vmul.f32 %v5605_v38, %v5118_v28  ;;  %v10542_v38 = vld [vmem:[#allocation25_spill] sm:$0xff] }
 0x1a2   : > { %10532 = vst [vmem:[#allocation44_spill] sm:$0xff] %v8314_v52  ;;  %v993_v47 = vadd.f32 %v10533_v32, %v964_v44  ;;  %v994_v43 = vadd.f32 %v10534_v1, %v965_v42  ;;  %5820 = vset.pattern.permute.xlu1 %v10535_v41  ;;  %v8321_v36 = vpop.permute.xlu1 %5667  ;;  %v5611_v44 = vunpack.i.l.bf16 %v8019_v63  ;;  %v1229_v1 = vmul.f32 %v5606_v9, %v5118_v28  ;;  %v10539_v52 = vld [vmem:[#allocation65_spill] sm:$0xff]  ;;  %v10541_v28 = vld [vmem:[#allocation22_spill] sm:$0xff] }
 0x1a3   : > { %v759_v4 = vadd.f32 %v10536_v35, %v730_v39  ;;  %v760_v56 = vadd.f32 %v10537_v19, %v731_v21  ;;  %5822 = vperm.xlu1 %5820, %v7054_v37   ;;  %v5618_v35 = vunpack.i.h.bf16 %v8044_v10  ;;  %v5617_v19 = vunpack.i.l.bf16 %v8044_v10 }
 0x1a4   : > { %v1022_v42 = vadd.f32 %v8176_v5, %v993_v47  ;;  %v1023_v32 = vadd.f32 %v8169_v46, %v994_v43  ;;  %v6338_v46 = vunpack.i.h.bf16 %v8046_v6  ;;  %v6337_v5 = vunpack.i.l.bf16 %v8046_v6  ;;  %v10544_v47 = vld [vmem:[#allocation101_spill] sm:$0xff]  ;;  %v10545_v43 = vld [vmem:[#allocation98_spill] sm:$0xff] }
 0x1a5   : > { %v788_v24 = vadd.f32 %v10538_v62, %v759_v4  ;;  %v789_v31 = vadd.f32 %v10539_v52, %v760_v56  ;;  %v10543_v62 = vmov 16   ;;  %v1237_v56 = vrot.slane %v1229_v1, 1 }
 0x1a6   : > { %v1051_v39 = vadd.f32 %v8182_v48, %v1022_v42  ;;  %v1052_v21 = vadd.f32 %v8179_v14, %v1023_v32  ;;  %v8338_v41 = vpop.permute.xlu1 %5672  ;;  %v8340_v63 = vpop.permute.xlu0 %6428  ;;  %v1270_v14 = vmul.f32 %v5612_v33, %v8210_v29  ;;  %v1269_v48 = vmul.f32 %v5611_v44, %v8210_v29  ;;  %v10546_v32 = vld [vmem:[#allocation120_spill] sm:$0xff]  ;;  %v5122_v29 = vld [vmem:[%s10067_s1 + $0x26] ss:$0 sm:$0xff] }
 0x1a7   : > { %10540 = vst [vmem:[#allocation33_spill] sm:$0xff] %v8340_v63  ;;  %v817_v9 = vadd.f32 %v10541_v28, %v788_v24  ;;  %v818_v52 = vadd.f32 %v10542_v38, %v789_v31  ;;  %5826 = vset.pattern.permute.xlu1 %v10543_v62  ;;  %v1236_v42 = vrot.slane %v1228_v49, 1  ;;  %v10547_v63 = vld [vmem:[#allocation29_spill] sm:$0xff]  ;;  %v8367_v49 = vmul.f32 %v6338_v46, %v5122_v29 }
 0x1a8   : > { %v1080_v10 = vadd.f32 %v10544_v47, %v1051_v39  ;;  %v1081_v4 = vadd.f32 %v10545_v43, %v1052_v21  ;;  %5828 = vperm.xlu1 %5826, %v7054_v37   ;;  %v10548_v28 = vld [vmem:[#allocation17_spill] sm:$0xff]  ;;  %v8369_v39 = vmul.f32 %v6337_v5, %v5122_v29  ;;  %v10550_v21 = vld [vmem:[#allocation75_spill] sm:$0xff]  ;;  %v1277_v47 = vrot.slane %v1269_v48, 1  ;;  %v10554_v48 = vld [vmem:[#allocation104_spill] sm:$0xff] }
 0x1a9   : > { %v846_v6 = vadd.f32 %v10546_v32, %v817_v9  ;;  %v847_v24 = vadd.f32 %v10547_v63, %v818_v52  ;;  %v8355_v31 = vmul.f32 %v5618_v35, %v10548_v28  ;;  %v8358_v38 = vmul.f32 %v5617_v19, %v10548_v28  ;;  %v10551_v63 = vld [vmem:[#allocation73_spill] sm:$0xff] }
 0x1aa   : > { %v1109_v33 = vadd.f32 %v8282_v57, %v1080_v10  ;;  %v1110_v44 = vadd.f32 %v8255_v15, %v1081_v4  ;;  %v8365_v1 = vpop.permute.xlu0 %6444  ;;  %v1278_v52 = vrot.slane %v1270_v14, 1  ;;  %v5629_v57 = vunpack.i.h.bf16 %v8106_v23 }
 0x1ab   : > { %10549 = vst [vmem:[#allocation32_spill] sm:$0xff] %v8365_v1  ;;  %v875_v35 = vadd.f32 %v10550_v21, %v846_v6  ;;  %v876_v9 = vadd.f32 %v10551_v63, %v847_v24  ;;  %v8373_v19 = vpop.permute.xlu1 %5678  ;;  %v5628_v15 = vunpack.i.l.bf16 %v8106_v23  ;;  %v10552_v6 = vld [vmem:[#allocation106_spill] sm:$0xff] }
 0x1ac   : > { %v1162_v43 = vadd.f32 %v1154_v13, %v1109_v33  ;;  %v1163_v32 = vadd.f32 %v1155_v0, %v1110_v44  ;;  %5833 = vperm.xlu1 %5826, %v7044_v30   ;;  %v10553_v24 = vrot.slane %v10552_v6, 1  ;;  %v10555_v13 = vrot.slane %v10554_v48, 1  ;;  %v10556_v21 = vld [vmem:[#allocation38_spill] sm:$0xff] }
 0x1ad   : > { %v904_v46 = vadd.f32 %v8055_v26, %v875_v35  ;;  %v905_v5 = vadd.f32 %v8051_v51, %v876_v9  ;;  %v5121_v51 = vld [vmem:[%s10067_s1 + $0x25] ss:$0 sm:$0xff]  ;;  %v5624_v35 = vunpack.i.h.bf16 %v10556_v21  ;;  %v5623_v63 = vunpack.i.l.bf16 %v10556_v21 }
 0x1ae   : > { %v1203_v14 = vadd.f32 %v10553_v24, %v1162_v43  ;;  %v1204_v0 = vadd.f32 %v10555_v13, %v1163_v32  ;;  %v10557_v32 = vmov 17   ;;  %v1352_v24 = vmul.f32 %v5629_v57, %v5121_v51 }
 0x1af   : > { %v933_v23 = vadd.f32 %v8088_v8, %v904_v46  ;;  %v934_v26 = vadd.f32 %v8083_v59, %v905_v5  ;;  %v8390_v44 = vpop.permute.xlu0 %6450  ;;  %v1351_v8 = vmul.f32 %v5628_v15, %v5121_v51  ;;  %v10558_v46 = vld [vmem:[#allocation83_spill] sm:$0xff]  ;;  %v10559_v5 = vld [vmem:[#allocation82_spill] sm:$0xff]  ;;  %v5635_v33 = vunpack.i.h.bf16 %v8136_v58 }
 0x1b0   : > { %v1244_v9 = vadd.f32 %v1236_v42, %v1203_v14  ;;  %v1245_v43 = vadd.f32 %v1237_v56, %v1204_v0  ;;  %5837 = vset.pattern.permute.xlu1 %v10557_v32  ;;  %v8398_v6 = vpop.permute.xlu1 %5684  ;;  %v5634_v21 = vunpack.i.l.bf16 %v8136_v58  ;;  %v5641_v56 = vunpack.i.h.bf16 %v8162_v45 }
 0x1b1   : > { %v962_v59 = vadd.f32 %v10558_v46, %v933_v23  ;;  %v963_v48 = vadd.f32 %v10559_v5, %v934_v26  ;;  %5839 = vperm.xlu1 %5837, %v7044_v30   ;;  %v5640_v42 = vunpack.i.l.bf16 %v8162_v45  ;;  %v8411_v0 = vmul.f32 %v5624_v35, %v5121_v51  ;;  %v10563_v46 = vld [vmem:[#allocation30_spill] sm:$0xff]  ;;  %v10566_v5 = vld [vmem:[#allocation92_spill] sm:$0xff] }
 0x1b2   : > { %v1285_v13 = vadd.f32 %v1277_v47, %v1244_v9  ;;  %v1286_v28 = vadd.f32 %v1278_v52, %v1245_v43  ;;  %v8413_v23 = vmul.f32 %v5623_v63, %v5121_v51  ;;  %v5647_v52 = vunpack.i.h.bf16 %v8191_v7  ;;  %v10561_v51 = vld [vmem:[#allocation107_spill] sm:$0xff] }
 0x1b3   : > { %v991_v14 = vadd.f32 %v8142_v22, %v962_v59  ;;  %v992_v57 = vadd.f32 %v8139_v50, %v963_v48  ;;  %v8409_v15 = vpop.permute.xlu0 %6455  ;;  %v5646_v47 = vunpack.i.l.bf16 %v8191_v7  ;;  %v1360_v26 = vrot.slane %v1352_v24, 1  ;;  %v5124_v50 = vld [vmem:[%s10067_s1 + $0x28] ss:$0 sm:$0xff] }
 0x1b4   : > { %v1359_v58 = vrot.slane %v1351_v8, 1  ;;  %v10560_v22 = vmov 18   ;;  %v10562_v63 = vrot.slane %v10561_v51, 1  ;;  %v10564_v59 = vrot.slane %v10563_v46, 1 }
 0x1b5   : > { %v1020_v9 = vadd.f32 %v8154_v20, %v991_v14  ;;  %v1021_v45 = vadd.f32 %v8149_v11, %v992_v57  ;;  %5843 = vset.pattern.permute.xlu1 %v10560_v22  ;;  %v8423_v35 = vpop.permute.xlu1 %5690  ;;  %v1393_v24 = vmul.f32 %v5635_v33, %v5122_v29  ;;  %v1392_v8 = vmul.f32 %v5634_v21, %v5122_v29  ;;  %v10565_v20 = vld [vmem:[#allocation16_spill] sm:$0xff]  ;;  %v10567_v14 = vld [vmem:[#allocation91_spill] sm:$0xff] }
 0x1b6   : > { %v1326_v43 = vadd.f32 %v10562_v63, %v1285_v13  ;;  %v1327_v7 = vadd.f32 %v10564_v59, %v1286_v28  ;;  %5845 = vperm.xlu1 %5843, %v7054_v37   ;;  %v8431_v11 = vmul.f32 %v5641_v56, %v10565_v20  ;;  %v8436_v10 = vmul.f32 %v5640_v42, %v10565_v20 }
 0x1b7   : > { %v1049_v48 = vadd.f32 %v10566_v5, %v1020_v9  ;;  %v1050_v57 = vadd.f32 %v10567_v14, %v1021_v45  ;;  %v8438_v4 = vmul.f32 %v5647_v52, %v5124_v50  ;;  %v8440_v13 = vmul.f32 %v5646_v47, %v5124_v50  ;;  %v8450_v42 = vpop.permute.xlu0 %6460 }
 0x1b8   : > { %v5652_v28 = vunpack.i.h.bf16 %v8222_v25  ;;  %v5651_v29 = vunpack.i.l.bf16 %v8222_v25  ;;  %v1358_v33 = vrot.slane %v8411_v0, 1  ;;  %v1357_v21 = vrot.slane %v8413_v23, 1  ;;  %10568 = vst [vmem:[#allocation53_spill] sm:$0xff] %v8450_v42 }
 0x1b9   : > { %v1078_v56 = vadd.f32 %v8228_v17, %v1049_v48  ;;  %v1079_v9 = vadd.f32 %v8225_v54, %v1050_v57  ;;  %v8448_v45 = vpop.permute.xlu1 %5695  ;;  %v1367_v52 = vadd.f32 %v1359_v58, %v1326_v43  ;;  %v1368_v51 = vadd.f32 %v1360_v26, %v1327_v7 }
 0x1ba   : > { %v1401_v47 = vrot.slane %v1393_v24, 1  ;;  %v1400_v63 = vrot.slane %v1392_v8, 1  ;;  %v10569_v46 = vmov 19   ;;  %v1439_v17 = vrot.slane %v8436_v10, 1  ;;  %v10571_v24 = vld [vmem:[#allocation28_spill] sm:$0xff] }
 0x1bb   : > { %5849 = vset.pattern.permute.xlu1 %v10569_v46  ;;  %v1107_v59 = vadd.f32 %v8241_v34, %v1078_v56  ;;  %v1108_v20 = vadd.f32 %v8233_v18, %v1079_v9  ;;  %v1475_v58 = vmul.f32 %v5652_v28, %v5124_v50  ;;  %v1474_v26 = vmul.f32 %v5651_v29, %v5124_v50  ;;  %v5125_v56 = vld [vmem:[%s10067_s1 + $0x29] ss:$0 sm:$0xff]  ;;  %v8794_v46 = vld [vmem:[%s10067_s1 + $0x3a] ss:$0 sm:$0xff] }
 0x1bc   : > { %5851 = vperm.xlu1 %5849, %v7054_v37   ;;  %v10570_v43 = vrot.slane %v8095_v2, 1  ;;  %v10572_v8 = vrot.slane %v10571_v24, 1  ;;  %v5658_v34 = vunpack.i.h.bf16 %v8253_v60  ;;  %v5657_v18 = vunpack.i.l.bf16 %v8253_v60 }
 0x1bd   : > { %v1408_v14 = vadd.f32 %v1400_v63, %v1367_v52  ;;  %v1409_v57 = vadd.f32 %v1401_v47, %v1368_v51  ;;  %v6398_v9 = vunpack.i.h.bf16 %v8239_v16  ;;  %v6397_v50 = vunpack.i.l.bf16 %v8239_v16  ;;  %v8480_v51 = vpop.permute.xlu0 %6477 }
 0x1be   : > { %v1160_v7 = vadd.f32 %v10570_v43, %v1107_v59  ;;  %v1161_v48 = vadd.f32 %v10572_v8, %v1108_v20  ;;  %v8471_v28 = vpop.permute.xlu1 %5701  ;;  %v10573_v2 = vrot.slane %v8295_v55, 1  ;;  %v10574_v59 = vrot.slane %v8292_v61, 1  ;;  %10575 = vst [vmem:[#allocation46_spill] sm:$0xff] %v8480_v51 }
 0x1bf   : > { %v5664_v60 = vunpack.i.h.bf16 %v8287_v40  ;;  %v5663_v52 = vunpack.i.l.bf16 %v8287_v40  ;;  %v1483_v47 = vrot.slane %v1475_v58, 1  ;;  %v1482_v63 = vrot.slane %v1474_v26, 1  ;;  %v5127_v40 = vld [vmem:[%s10067_s1 + $0x2b] ss:$0 sm:$0xff]  ;;  %v10580_v26 = vld [vmem:[#allocation113_spill] sm:$0xff] }
 0x1c0   : > { %v1201_v29 = vadd.f32 %v10573_v2, %v1160_v7  ;;  %v1202_v20 = vadd.f32 %v10574_v59, %v1161_v48  ;;  %5856 = vperm.xlu1 %5849, %v7044_v30   ;;  %v5670_v16 = vunpack.i.h.bf16 %v8321_v36  ;;  %v5669_v43 = vunpack.i.l.bf16 %v8321_v36  ;;  %v10578_v2 = vld [vmem:[#allocation115_spill] sm:$0xff] }
 0x1c1   : > { %v10576_v55 = vrot.slane %v8302_v27, 1  ;;  %v10577_v61 = vrot.slane %v8300_v53, 1  ;;  %v1516_v8 = vmul.f32 %v5658_v34, %v5125_v56  ;;  %v1515_v48 = vmul.f32 %v5657_v18, %v5125_v56 }
 0x1c2   : > { %v10579_v59 = vrot.slane %v10578_v2, 1  ;;  %v10581_v54 = vrot.slane %v10580_v26, 1  ;;  %v8495_v25 = vmul.f32 %v6398_v9, %v5125_v56  ;;  %v8497_v36 = vmul.f32 %v6397_v50, %v5125_v56 }
 0x1c3   : > { %v1242_v7 = vadd.f32 %v10576_v55, %v1201_v29  ;;  %v1243_v24 = vadd.f32 %v10577_v61, %v1202_v20  ;;  %v10582_v27 = vrot.slane %v8218_v12, 1  ;;  %v10583_v29 = vld [vmem:[#allocation31_spill] sm:$0xff]  ;;  %v10585_v20 = vld [vmem:[#allocation18_spill] sm:$0xff]  ;;  %v8510_v2 = vpop.permute.xlu1 %5707  ;;  %v5675_v12 = vunpack.i.h.bf16 %v8338_v41 }
 0x1c4   : > { %v1449_v58 = vadd.f32 %v10579_v59, %v1408_v14  ;;  %v1450_v5 = vadd.f32 %v10581_v54, %v1409_v57  ;;  %v10584_v34 = vrot.slane %v10583_v29, 1  ;;  %v8504_v55 = vmul.f32 %v5664_v60, %v10585_v20  ;;  %v8523_v59 = vpop.permute.xlu0 %6483 }
 0x1c5   : > { %v1283_v53 = vadd.f32 %v10582_v27, %v1242_v7  ;;  %v8507_v61 = vmul.f32 %v5663_v52, %v10585_v20  ;;  %v10586_v14 = vmov 20   ;;  %v8512_v54 = vmul.f32 %v5670_v16, %v5127_v40 }
 0x1c6   : > { %v1284_v18 = vadd.f32 %v10584_v34, %v1243_v24  ;;  %5860 = vset.pattern.permute.xlu1 %v10586_v14  ;;  %v8514_v57 = vmul.f32 %v5669_v43, %v5127_v40  ;;  %v5674_v56 = vunpack.i.l.bf16 %v8338_v41  ;;  %v10587_v9 = vrot.slane %v8358_v38, 1 }
 0x1c7   : > { %5862 = vperm.xlu1 %5860, %v7044_v30   ;;  %v10588_v60 = vrot.slane %v8355_v31, 1  ;;  %v1524_v7 = vrot.slane %v1516_v8, 1  ;;  %v1523_v24 = vrot.slane %v1515_v48, 1  ;;  %v1490_v16 = vadd.f32 %v1482_v63, %v1449_v58 }
 0x1c8   : > { %v1324_v50 = vadd.f32 %v10587_v9, %v1283_v53  ;;  %v1491_v26 = vadd.f32 %v1483_v47, %v1450_v5  ;;  %v1522_v43 = vrot.slane %v8495_v25, 1  ;;  %v1521_v27 = vrot.slane %v8497_v36, 1  ;;  %v8536_v25 = vpop.permute.xlu1 %5713 }
 0x1c9   : > { %v1325_v52 = vadd.f32 %v10588_v60, %v1284_v18  ;;  %v1563_v53 = vrot.slane %v8504_v55, 1  ;;  %v1562_v31 = vrot.slane %v8507_v61, 1  ;;  %v1604_v8 = vrot.slane %v8512_v54, 1  ;;  %v8556_v54 = vpop.permute.xlu0 %6499 }
 0x1ca   : > { %v1365_v41 = vadd.f32 %v1357_v21, %v1324_v50  ;;  %v1603_v48 = vrot.slane %v8514_v57, 1  ;;  %v1598_v63 = vmul.f32 %v5675_v12, %v5127_v40  ;;  %v1597_v5 = vmul.f32 %v5674_v56, %v5127_v40  ;;  %10593 = vst [vmem:[#allocation52_spill] sm:$0xff] %v8556_v54 }
 0x1cb   : > { %v1366_v38 = vadd.f32 %v1358_v33, %v1325_v52  ;;  %v10589_v47 = vmov 21   ;;  %v10590_v23 = vrot.slane %v8369_v39, 1  ;;  %v10591_v0 = vrot.slane %v8367_v49, 1  ;;  %v5128_v49 = vld [vmem:[%s10067_s1 + $0x2c] ss:$0 sm:$0xff] }
 0x1cc   : > { %5866 = vset.pattern.permute.xlu1 %v10589_v47  ;;  %v6453_v58 = vunpack.i.h.bf16 %v8390_v44  ;;  %v6452_v36 = vunpack.i.l.bf16 %v8390_v44  ;;  %v1531_v29 = vadd.f32 %v1523_v24, %v1490_v16  ;;  %v1532_v34 = vadd.f32 %v1524_v7, %v1491_v26  ;;  %v10597_v24 = vld [vmem:[#allocation20_spill] sm:$0xff] }
 0x1cd   : > { %v1406_v21 = vadd.f32 %v10590_v23, %v1365_v41  ;;  %v1407_v33 = vadd.f32 %v10591_v0, %v1366_v38  ;;  %5868 = vperm.xlu1 %5866, %v7054_v37   ;;  %v5681_v40 = vunpack.i.h.bf16 %v8373_v19  ;;  %v5680_v18 = vunpack.i.l.bf16 %v8373_v19  ;;  %v10601_v23 = vld [vmem:[#allocation24_spill] sm:$0xff] }
 0x1ce   : > { %v10592_v39 = vrot.slane %v8431_v11, 1  ;;  %v5687_v44 = vunpack.i.h.bf16 %v8398_v6  ;;  %v5686_v61 = vunpack.i.l.bf16 %v8398_v6  ;;  %v1606_v57 = vrot.slane %v1598_v63, 1  ;;  %v5130_v6 = vld [vmem:[%s10067_s1 + $0x2e] ss:$0 sm:$0xff] }
 0x1cf   : > { %v1447_v20 = vadd.f32 %v1439_v17, %v1406_v21  ;;  %v1605_v12 = vrot.slane %v1597_v5, 1  ;;  %v5693_v19 = vunpack.i.h.bf16 %v8423_v35  ;;  %v5692_v10 = vunpack.i.l.bf16 %v8423_v35  ;;  %v8560_v17 = vpop.permute.xlu1 %5718  ;;  %v10599_v35 = vld [vmem:[#allocation37_spill] sm:$0xff] }
 0x1d0   : > { %v1448_v55 = vadd.f32 %v10592_v39, %v1407_v33  ;;  %v10594_v11 = vrot.slane %v8440_v13, 1  ;;  %v10595_v9 = vrot.slane %v8438_v4, 1  ;;  %v1637_v60 = vmul.f32 %v6453_v58, %v5128_v49 }
 0x1d1   : > { %v1636_v52 = vmul.f32 %v6452_v36, %v5128_v49  ;;  %v10596_v7 = vmov 22   ;;  %v10598_v16 = vrot.slane %v10597_v24, 1  ;;  %v10600_v41 = vrot.slane %v10599_v35, 1 }
 0x1d2   : > { %v1488_v56 = vadd.f32 %v10594_v11, %v1447_v20  ;;  %v1489_v50 = vadd.f32 %v10595_v9, %v1448_v55  ;;  %5883 = vset.pattern.permute.xlu1 %v10596_v7  ;;  %v1639_v63 = vmul.f32 %v5681_v40, %v5128_v49  ;;  %v1638_v13 = vmul.f32 %v5680_v18, %v5128_v49  ;;  %v6506_v18 = vpop.permute.xlu0 %6505 }
 0x1d3   : > { %v1572_v26 = vadd.f32 %v10598_v16, %v1531_v29  ;;  %v1573_v38 = vadd.f32 %v10600_v41, %v1532_v34  ;;  %5885 = vperm.xlu1 %5883, %v7054_v37   ;;  %v1678_v21 = vmul.f32 %v5687_v44, %v10601_v23  ;;  %v1677_v0 = vmul.f32 %v5686_v61, %v10601_v23  ;;  %v8579_v40 = vpop.permute.xlu1 %5724 }
 0x1d4   : > { %v1529_v4 = vadd.f32 %v1521_v27, %v1488_v56  ;;  %v1530_v5 = vadd.f32 %v1522_v43, %v1489_v50  ;;  %v1719_v33 = vmul.f32 %v5693_v19, %v5130_v6  ;;  %v1718_v58 = vmul.f32 %v5692_v10, %v5130_v6 }
 0x1d5   : > { %v5698_v36 = vunpack.i.h.bf16 %v8448_v45  ;;  %v5697_v20 = vunpack.i.l.bf16 %v8448_v45  ;;  %v1645_v55 = vrot.slane %v1637_v60, 1  ;;  %v1644_v34 = vrot.slane %v1636_v52, 1 }
 0x1d6   : > { %v1570_v29 = vadd.f32 %v1562_v31, %v1529_v4  ;;  %v1571_v39 = vadd.f32 %v1563_v53, %v1530_v5  ;;  %v1613_v49 = vadd.f32 %v1605_v12, %v1572_v26  ;;  %v1614_v27 = vadd.f32 %v1606_v57, %v1573_v38  ;;  %v5131_v57 = vld [vmem:[%s10067_s1 + $0x2f] ss:$0 sm:$0xff] }
 0x1d7   : > { %v1647_v43 = vrot.slane %v1639_v63, 1  ;;  %v1646_v11 = vrot.slane %v1638_v13, 1  ;;  %5890 = vperm.xlu1 %5883, %v7044_v30   ;;  %v1686_v44 = vrot.slane %v1678_v21, 1  ;;  %v1685_v61 = vrot.slane %v1677_v0, 1  ;;  %v5136_v63 = vld [vmem:[%s10067_s1 + $0x30] ss:$0 sm:$0xff] }
 0x1d8   : > { %v1611_v19 = vadd.f32 %v1603_v48, %v1570_v29  ;;  %v1612_v10 = vadd.f32 %v1604_v8, %v1571_v39  ;;  %v1727_v56 = vrot.slane %v1719_v33, 1  ;;  %v1726_v9 = vrot.slane %v1718_v58, 1  ;;  %v8586_v48 = vpop.permute.xlu1 %5730 }
 0x1d9   : > { %v6508_v45 = vunpack.i.h.bf16 %v6506_v18  ;;  %v6507_v31 = vunpack.i.l.bf16 %v6506_v18  ;;  %v1721_v53 = vmul.f32 %v5698_v36, %v5130_v6  ;;  %v1720_v50 = vmul.f32 %v5697_v20, %v5130_v6  ;;  %v10603_v36 = vld [vmem:[#allocation74_spill] sm:$0xff]  ;;  %v10604_v20 = vld [vmem:[#allocation121_spill] sm:$0xff] }
 0x1da   : > { %v1652_v60 = vadd.f32 %v1644_v34, %v1611_v19  ;;  %v1653_v52 = vadd.f32 %v1645_v55, %v1612_v10  ;;  %v1654_v12 = vadd.f32 %v1646_v11, %v1613_v49  ;;  %v1655_v24 = vadd.f32 %v1647_v43, %v1614_v27  ;;  %v10606_v55 = vld [vmem:[#allocation118_spill] sm:$0xff] }
 0x1db   : > { %v1760_v16 = vmul.f32 %v6508_v45, %v5131_v57  ;;  %v1759_v26 = vmul.f32 %v6507_v31, %v5131_v57  ;;  %v10602_v35 = vmov 23   ;;  %v5710_v38 = vunpack.i.h.bf16 %v8510_v2 }
 0x1dc   : > { %5905 = vset.pattern.permute.xlu1 %v10602_v35  ;;  %v1693_v8 = vadd.f32 %v1685_v61, %v1652_v60  ;;  %v1694_v41 = vadd.f32 %v1686_v44, %v1653_v52  ;;  %v5709_v6 = vunpack.i.l.bf16 %v8510_v2  ;;  %v5704_v13 = vunpack.i.h.bf16 %v8471_v28 }
 0x1dd   : > { %5907 = vperm.xlu1 %5905, %v7044_v30   ;;  %v5703_v4 = vunpack.i.l.bf16 %v8471_v28  ;;  %v1768_v5 = vrot.slane %v1760_v16, 1  ;;  %v1767_v23 = vrot.slane %v1759_v26, 1  ;;  %v5716_v21 = vunpack.i.h.bf16 %v8536_v25  ;;  %v5137_v28 = vld [vmem:[%s10067_s1 + $0x31] ss:$0 sm:$0xff] }
 0x1de   : > { %v5715_v0 = vunpack.i.l.bf16 %v8536_v25  ;;  %v1734_v33 = vadd.f32 %v1726_v9, %v1693_v8  ;;  %v1735_v58 = vadd.f32 %v1727_v56, %v1694_v41  ;;  %v6245_v2 = vunpack.i.l.bf16 %v10603_v36  ;;  %v8607_v25 = vpop.permute.xlu1 %5736  ;;  %v5138_v9 = vld [vmem:[%s10067_s1 + $0x32] ss:$0 sm:$0xff] }
 0x1df   : > { %v10605_v29 = vrot.slane %v10604_v20, 1  ;;  %v10607_v34 = vrot.slane %v10606_v55, 1  ;;  %v1814_v49 = vmul.f32 %v5710_v38, %v5136_v63  ;;  %v1813_v27 = vmul.f32 %v5709_v6, %v5136_v63 }
 0x1e0   : > { %v1775_v43 = vadd.f32 %v1767_v23, %v1734_v33  ;;  %v1776_v11 = vadd.f32 %v1768_v5, %v1735_v58  ;;  %v10608_v44 = vmov 24   ;;  %v1729_v61 = vrot.slane %v1721_v53, 1 }
 0x1e1   : > { %v1695_v39 = vadd.f32 %v10605_v29, %v1654_v12  ;;  %v1696_v18 = vadd.f32 %v10607_v34, %v1655_v24  ;;  %5911 = vset.pattern.permute.xlu1 %v10608_v44  ;;  %v1728_v19 = vrot.slane %v1720_v50, 1  ;;  %v1762_v10 = vmul.f32 %v5704_v13, %v5131_v57  ;;  %v10609_v12 = vld [vmem:[#allocation43_spill] sm:$0xff]  ;;  %v10612_v50 = vld [vmem:[#allocation97_spill] sm:$0xff] }
 0x1e2   : > { %v1761_v56 = vmul.f32 %v5703_v4, %v5131_v57  ;;  %5913 = vperm.xlu1 %5911, %v7054_v37   ;;  %v1843_v45 = vmul.f32 %v5716_v21, %v5137_v28  ;;  %v1842_v31 = vmul.f32 %v5715_v0, %v5137_v28  ;;  %v1817_v60 = vadd.f32 %v1813_v27, %v1775_v43  ;;  %v5139_v57 = vld [vmem:[%s10067_s1 + $0x33] ss:$0 sm:$0xff]  ;;  %v8621_v5 = vpop.permute.xlu1 %5741  ;;  %v10615_v34 = vld [vmem:[#allocation21_spill] sm:$0xff] }
 0x1e3   : > { %v1818_v52 = vadd.f32 %v1814_v49, %v1776_v11  ;;  %v10610_v24 = vunpack.i.h.bf16 %v10609_v12  ;;  %v10611_v26 = vunpack.i.h.bf16 %v10603_v36  ;;  %v1871_v53 = vmul.f32 %v6245_v2, %v5138_v9 }
 0x1e4   : > { %v6278_v41 = vunpack.i.h.bf16 %v10612_v50  ;;  %v1736_v38 = vadd.f32 %v1728_v19, %v1695_v39  ;;  %v1737_v6 = vadd.f32 %v1729_v61, %v1696_v18  ;;  %v1846_v13 = vadd.f32 %v1842_v31, %v1817_v60 }
 0x1e5   : > { %v1816_v16 = vmul.f32 %v10610_v24, %v5136_v63  ;;  %v1872_v8 = vmul.f32 %v10611_v26, %v5138_v9  ;;  %v1847_v4 = vadd.f32 %v1843_v45, %v1818_v52  ;;  %v10613_v23 = vunpack.i.l.bf16 %v10609_v12 }
 0x1e6   : > { %v5721_v0 = vunpack.i.h.bf16 %v8560_v17  ;;  %v5720_v33 = vunpack.i.l.bf16 %v8560_v17  ;;  %v10614_v58 = vmov 25   ;;  %v1770_v36 = vrot.slane %v1762_v10, 1  ;;  %v8639_v17 = vld [vmem:[%s10067_s1 + $0x35] ss:$0 sm:$0xff] }
 0x1e7   : > { %v1815_v21 = vmul.f32 %v10613_v23, %v5136_v63  ;;  %5928 = vset.pattern.permute.xlu1 %v10614_v58  ;;  %v1769_v2 = vrot.slane %v1761_v56, 1  ;;  %v5733_v20 = vunpack.i.h.bf16 %v8586_v48  ;;  %v5732_v29 = vunpack.i.l.bf16 %v8586_v48  ;;  %v5748_v56 = vpop.permute.xlu1 %5747 }
 0x1e8   : > { %5930 = vperm.xlu1 %5928, %v7054_v37   ;;  %v8631_v39 = vmul.f32 %v6278_v41, %v5139_v57  ;;  %v6277_v55 = vunpack.i.l.bf16 %v10612_v50  ;;  %v6311_v63 = vunpack.i.h.bf16 %v10615_v34  ;;  %v6310_v18 = vunpack.i.l.bf16 %v10615_v34  ;;  %v10616_v41 = vld [vmem:[#allocation35_spill] sm:$0xff]  ;;  %v5142_v34 = vld [vmem:[%s10067_s1 + $0x36] ss:$0 sm:$0xff] }
 0x1e9   : > { %v1777_v49 = vadd.f32 %v1769_v2, %v1736_v38  ;;  %v1778_v27 = vadd.f32 %v1770_v36, %v1737_v6  ;;  %v1875_v43 = vadd.f32 %v1871_v53, %v1846_v13  ;;  %v1876_v11 = vadd.f32 %v1872_v8, %v1847_v4 }
 0x1ea   : > { %v1845_v48 = vmul.f32 %v5721_v0, %v5137_v28  ;;  %v1844_v61 = vmul.f32 %v5720_v33, %v5137_v28  ;;  %v5727_v19 = vunpack.i.h.bf16 %v8579_v40  ;;  %v5726_v10 = vunpack.i.l.bf16 %v8579_v40  ;;  %v5140_v28 = vld [vmem:[%s10067_s1 + $0x34] ss:$0 sm:$0xff] }
 0x1eb   : > { %v1901_v45 = vmul.f32 %v5733_v20, %v5139_v57  ;;  %v1900_v31 = vmul.f32 %v5732_v29, %v5139_v57  ;;  %v5739_v60 = vunpack.i.h.bf16 %v8607_v25  ;;  %v5738_v52 = vunpack.i.l.bf16 %v8607_v25  ;;  %v5754_v36 = vpop.permute.xlu1 %5753  ;;  %v8660_v29 = vld [vmem:[%s10067_s1 + $0x38] ss:$0 sm:$0xff] }
 0x1ec   : > { %5935 = vperm.xlu1 %5928, %v7044_v30   ;;  %v1902_v12 = vmul.f32 %v6277_v55, %v5139_v57  ;;  %v1959_v24 = vmul.f32 %v6311_v63, %v8639_v17  ;;  %v1958_v26 = vmul.f32 %v6310_v18, %v8639_v17  ;;  %v1819_v8 = vadd.f32 %v1815_v21, %v1777_v49 }
 0x1ed   : > { %v1820_v40 = vadd.f32 %v1816_v16, %v1778_v27  ;;  %v1904_v53 = vadd.f32 %v1900_v31, %v1875_v43  ;;  %v1905_v50 = vadd.f32 %v1901_v45, %v1876_v11  ;;  %v6376_v38 = vunpack.i.h.bf16 %v10616_v41 }
 0x1ee   : > { %v6375_v6 = vunpack.i.l.bf16 %v10616_v41  ;;  %v1874_v25 = vmul.f32 %v5727_v19, %v5138_v9  ;;  %v1873_v13 = vmul.f32 %v5726_v10, %v5138_v9  ;;  %v1848_v4 = vadd.f32 %v1844_v61, %v1819_v8 }
 0x1ef   : > { %v1849_v57 = vadd.f32 %v1845_v48, %v1820_v40  ;;  %v1930_v23 = vmul.f32 %v5739_v60, %v5140_v28  ;;  %v1929_v0 = vmul.f32 %v5738_v52, %v5140_v28  ;;  %v10617_v33 = vmov 26   ;;  %v5143_v52 = vld [vmem:[%s10067_s1 + $0x37] ss:$0 sm:$0xff]  ;;  %v5760_v8 = vpop.permute.xlu1 %5759 }
 0x1f0   : > { %5950 = vset.pattern.permute.xlu1 %v10617_v33  ;;  %v5744_v2 = vunpack.i.h.bf16 %v8621_v5  ;;  %v5743_v21 = vunpack.i.l.bf16 %v8621_v5  ;;  %v5756_v16 = vunpack.i.h.bf16 %v5754_v36  ;;  %v5755_v20 = vunpack.i.l.bf16 %v5754_v36  ;;  %v10618_v5 = vld [vmem:[#allocation26_spill] sm:$0xff] }
 0x1f1   : > { %5952 = vperm.xlu1 %5950, %v7044_v30   ;;  %v1933_v9 = vadd.f32 %v1929_v0, %v1904_v53  ;;  %v1934_v55 = vadd.f32 %v1930_v23, %v1905_v50  ;;  %v1877_v63 = vadd.f32 %v1873_v13, %v1848_v4  ;;  %v1878_v18 = vadd.f32 %v1874_v25, %v1849_v57 }
 0x1f2   : > { %v5750_v49 = vunpack.i.h.bf16 %v5748_v56  ;;  %v5749_v27 = vunpack.i.l.bf16 %v5748_v56  ;;  %v6343_v43 = vunpack.i.h.bf16 %v10618_v5  ;;  %v6342_v11 = vunpack.i.l.bf16 %v10618_v5 }
 0x1f3   : > { %v1988_v48 = vmul.f32 %v5756_v16, %v5142_v34  ;;  %v1987_v61 = vmul.f32 %v5755_v20, %v5142_v34  ;;  %v2046_v19 = vmul.f32 %v6376_v38, %v8660_v29  ;;  %v2045_v10 = vmul.f32 %v6375_v6, %v8660_v29  ;;  %v5765_v36 = vpop.permute.xlu1 %5764 }
 0x1f4   : > { %v1932_v45 = vmul.f32 %v5744_v2, %v5140_v28  ;;  %v1931_v31 = vmul.f32 %v5743_v21, %v5140_v28  ;;  %v10619_v60 = vmov 27   ;;  %v1962_v56 = vadd.f32 %v1958_v26, %v1933_v9 }
 0x1f5   : > { %5956 = vset.pattern.permute.xlu1 %v10619_v60  ;;  %v1963_v40 = vadd.f32 %v1959_v24, %v1934_v55  ;;  %v5762_v53 = vunpack.i.h.bf16 %v5760_v8  ;;  %v5761_v50 = vunpack.i.l.bf16 %v5760_v8  ;;  %v1906_v41 = vadd.f32 %v1902_v12, %v1877_v63 }
 0x1f6   : > { %5958 = vperm.xlu1 %5956, %v7054_v37   ;;  %v1907_v38 = vadd.f32 %v8631_v39, %v1878_v18  ;;  %v1961_v6 = vmul.f32 %v5750_v49, %v8639_v17  ;;  %v1960_v28 = vmul.f32 %v5749_v27, %v8639_v17  ;;  %v1991_v25 = vadd.f32 %v1987_v61, %v1962_v56  ;;  %v10621_v17 = vld [vmem:[#allocation39_spill] sm:$0xff]  ;;  %v8688_v27 = vld [vmem:[%s10067_s1 + $0x39] ss:$0 sm:$0xff] }
 0x1f7   : > { %v1992_v13 = vadd.f32 %v1988_v48, %v1963_v40  ;;  %v2017_v4 = vmul.f32 %v5762_v53, %v5143_v52  ;;  %v2016_v57 = vmul.f32 %v5761_v50, %v5143_v52  ;;  %v1935_v23 = vadd.f32 %v1931_v31, %v1906_v41 }
 0x1f8   : > { %v1936_v0 = vadd.f32 %v1932_v45, %v1907_v38  ;;  %v5767_v2 = vunpack.i.h.bf16 %v5765_v36  ;;  %v5766_v21 = vunpack.i.l.bf16 %v5765_v36  ;;  %v10620_v16 = vmov 28  }
 0x1f9   : > { %v2020_v26 = vadd.f32 %v2016_v57, %v1991_v25  ;;  %v2021_v24 = vadd.f32 %v2017_v4, %v1992_v13  ;;  %v1990_v12 = vmul.f32 %v6343_v43, %v5142_v34  ;;  %v1989_v20 = vmul.f32 %v6342_v11, %v5142_v34  ;;  %v5771_v34 = vpop.permute.xlu1 %5770 }
 0x1fa   : > { %5973 = vset.pattern.permute.xlu1 %v10620_v16  ;;  %v1964_v39 = vadd.f32 %v1960_v28, %v1935_v23  ;;  %v1965_v9 = vadd.f32 %v1961_v6, %v1936_v0  ;;  %v6403_v55 = vunpack.i.h.bf16 %v10621_v17  ;;  %v6402_v63 = vunpack.i.l.bf16 %v10621_v17  ;;  %v10626_v0 = vld [vmem:[#allocation2_spill] sm:$0xff] }
 0x1fb   : > { %5975 = vperm.xlu1 %5973, %v7054_v37   ;;  %v8681_v18 = vadd.f32 %v2045_v10, %v2020_v26  ;;  %v8683_v49 = vadd.f32 %v2046_v19, %v2021_v24  ;;  %v2019_v5 = vmul.f32 %v5767_v2, %v5143_v52  ;;  %v2018_v43 = vmul.f32 %v5766_v21, %v5143_v52  ;;  %v10628_v24 = vld [vmem:[#allocation3_spill] sm:$0xff] }
 0x1fc   : > { %v1993_v11 = vadd.f32 %v1989_v20, %v1964_v39  ;;  %v1994_v48 = vadd.f32 %v1990_v12, %v1965_v9  ;;  %v5773_v61 = vunpack.i.h.bf16 %v5771_v34  ;;  %v5772_v45 = vunpack.i.l.bf16 %v5771_v34 }
 0x1fd   : > { %v2077_v31 = vmul.f32 %v6403_v55, %v8688_v27  ;;  %v2076_v10 = vmul.f32 %v6402_v63, %v8688_v27  ;;  %v10622_v52 = vmov 29   ;;  %v8696_v41 = vpop.permute.xlu1 %5776  ;;  %v10623_v28 = vmov 30  }
 0x1fe   : > { %v2022_v19 = vadd.f32 %v2018_v43, %v1993_v11  ;;  %v2023_v8 = vadd.f32 %v2019_v5, %v1994_v48  ;;  %v2048_v56 = vmul.f32 %v5773_v61, %v8660_v29  ;;  %v2047_v40 = vmul.f32 %v5772_v45, %v8660_v29 }
 0x1ff   : > { %5980 = vperm.xlu1 %5973, %v7044_v30   ;;  %v10624_v29 = vmov 31   ;;  %v10625_v57 = vmov 0   ;;  %v10627_v36 = vmov 1   ;;  %v10629_v21 = vmov 2  }
 0x200   : > { %v2051_v53 = vadd.f32 %v2047_v40, %v2022_v19  ;;  %v2052_v50 = vadd.f32 %v2048_v56, %v2023_v8  ;;  %v10631_v20 = vmov 4   ;;  %v10632_v17 = vmov 5   ;;  %v8770_v40 = vpop.permute.xlu0 %6510 }
 0x201   : > { %v8704_v25 = vpop.permute.xlu1 %5782  ;;  %v10633_v63 = vmov 6   ;;  %v10634_v43 = vmov 7   ;;  %v10636_v48 = vmov 8   ;;  %v10638_v45 = vmov 9  }
 0x202   : > { %v8699_v38 = vadd.f32 %v2076_v10, %v2051_v53  ;;  %v8701_v6 = vadd.f32 %v2077_v31, %v2052_v50  ;;  %v10639_v10 = vmov 10   ;;  %v10641_v56 = vmov 11  }
 0x203   : > { %5995 = vset.pattern.permute.xlu1 %v10622_v52  ;;  %v10644_v54 = vmov 12   ;;  %v5778_v1 = vunpack.i.l.bf16 %v8696_v41  ;;  %v10646_v16 = vmov 13   ;;  %v5779_v7 = vunpack.i.h.bf16 %v8696_v41  ;;  %v10648_v41 = vld [vmem:[#allocation33_spill] sm:$0xff] }
 0x204   : > { %5997 = vperm.xlu1 %5995, %v7044_v30   ;;  %v8776_v50 = vpop.permute.xlu0 %6515  ;;  %v5784_v14 = vunpack.i.l.bf16 %v8704_v25  ;;  %v5785_v22 = vunpack.i.h.bf16 %v8704_v25  ;;  %v6430_v42 = vunpack.i.l.bf16 %v10648_v41  ;;  %v8810_v25 = vld [vmem:[%s10067_s1 + $0x3b] ss:$0 sm:$0xff] }
 0x205   : > { %v8707_v13 = vpop.permute.xlu1 %5787  ;;  %10643 = vst [vmem:[#allocation42_spill] sm:$0xff] %v8776_v50  ;;  %v2075_v50 = vmul.f32 %v5779_v7, %v8688_v27 }
 0x208   : > { %6001 = vset.pattern.permute.xlu1 %v10623_v28 }
 0x209   : > { %6003 = vperm.xlu1 %6001, %v7054_v37  }
 0x20a   : > { %v8711_v4 = vpop.permute.xlu1 %5793 }
 0x20d   : > { %6018 = vset.pattern.permute.xlu1 %v10624_v29  ;;  %v8782_v29 = vpop.permute.xlu0 %6532 }
 0x20e   : > { %6020 = vperm.xlu1 %6018, %v7054_v37   ;;  %10645 = vst [vmem:[#allocation63_spill] sm:$0xff] %v8782_v29  ;;  %v2074_v29 = vmul.f32 %v5778_v1, %v8688_v27  ;;  %v6431_v1 = vunpack.i.h.bf16 %v10648_v41 }
 0x20f   : > { %v8715_v23 = vpop.permute.xlu1 %5799 }
 0x210   : > { %v2078_v7 = vadd.f32 %v2074_v29, %v8681_v18  ;;  %v5801_v27 = vunpack.i.l.bf16 %v8715_v23  ;;  %v2133_v41 = vmul.f32 %v6431_v1, %v8810_v25 }
 0x211   : > { %v8801_v62 = vpop.permute.xlu0 %6538 }
 0x212   : > { %6025 = vperm.xlu1 %6018, %v7044_v30   ;;  %v10630_v30 = vmov 3  }
 0x214   : > { %v8719_v26 = vpop.permute.xlu1 %5805 }
 0x216   : > { %6029 = vset.pattern.permute.xlu1 %v10625_v57 }
 0x217   : > { %6031 = vperm.xlu1 %6029, %v10626_v0  }
 0x218   : > { %v8722_v2 = vpop.permute.xlu1 %5810 }
 0x21b   : > { %6035 = vset.pattern.permute.xlu1 %v10627_v36 }
 0x21c   : > { %6037 = vperm.xlu1 %6035, %v10628_v24  }
 0x21d   : > { %v8726_v37 = vpop.permute.xlu1 %5816 }
 0x220   : > { %6052 = vset.pattern.permute.xlu1 %v10629_v21 }
 0x221   : > { %6054 = vperm.xlu1 %6052, %v10628_v24  }
 0x222   : > { %v8730_v12 = vpop.permute.xlu1 %5822 }
 0x225   : > { %6059 = vperm.xlu1 %6052, %v10626_v0  }
 0x227   : > { %v8734_v39 = vpop.permute.xlu1 %5828 }
 0x229   : > { %6063 = vset.pattern.permute.xlu1 %v10630_v30 }
 0x22a   : > { %6065 = vperm.xlu1 %6063, %v10626_v0  }
 0x22b   : > { %v8737_v9 = vpop.permute.xlu1 %5833 }
 0x22e   : > { %6069 = vset.pattern.permute.xlu1 %v10631_v20 }
 0x22f   : > { %6071 = vperm.xlu1 %6069, %v10628_v24  }
 0x230   : > { %v8741_v55 = vpop.permute.xlu1 %5839 }
 0x233   : > { %6086 = vset.pattern.permute.xlu1 %v10632_v17 }
 0x234   : > { %6088 = vperm.xlu1 %6086, %v10628_v24  }
 0x235   : > { %v8745_v5 = vpop.permute.xlu1 %5845 }
 0x238   : > { %6093 = vperm.xlu1 %6086, %v10626_v0  }
 0x23b   : > { %v8749_v34 = vpop.permute.xlu1 %5851 }
 0x23c   : > { %6097 = vset.pattern.permute.xlu1 %v10633_v63 }
 0x23d   : > { %6099 = vperm.xlu1 %6097, %v10626_v0  }
 0x23f   : > { %v8752_v11 = vpop.permute.xlu1 %5856 }
 0x240   : > { %10635 = vst [vmem:[#allocation51_spill] sm:$0xff] %v8752_v11 }
 0x241   : > { %6103 = vset.pattern.permute.xlu1 %v10634_v43 }
 0x242   : > { %6105 = vperm.xlu1 %6103, %v10628_v24  }
 0x246   : > { %6120 = vset.pattern.permute.xlu1 %v10636_v48  ;;  %v8756_v61 = vpop.permute.xlu1 %5862 }
 0x247   : > { %6122 = vperm.xlu1 %6120, %v10628_v24   ;;  %10637 = vst [vmem:[#allocation56_spill] sm:$0xff] %v8756_v61 }
 0x24b   : > { %6127 = vperm.xlu1 %6120, %v10626_v0  }
 0x24c   : > { %v8760_v31 = vpop.permute.xlu1 %5868 }
 0x24f   : > { %6131 = vset.pattern.permute.xlu1 %v10638_v45 }
 0x250   : > { %6133 = vperm.xlu1 %6131, %v10626_v0  }
 0x252   : > { %v8764_v19 = vpop.permute.xlu1 %5885 }
 0x254   : > { %6137 = vset.pattern.permute.xlu1 %v10639_v10 }
 0x255   : > { %6139 = vperm.xlu1 %6137, %v10628_v24  }
 0x256   : > { %v8767_v8 = vpop.permute.xlu1 %5890 }
 0x257   : > { %10640 = vst [vmem:[#allocation66_spill] sm:$0xff] %v8767_v8 }
 0x259   : > { %6154 = vset.pattern.permute.xlu1 %v10641_v56  ;;  %v5807_v56 = vunpack.i.l.bf16 %v8719_v26 }
 0x25a   : > { %6156 = vperm.xlu1 %6154, %v10628_v24  }
 0x25c   : > { %v8773_v53 = vpop.permute.xlu1 %5907 }
 0x25d   : > { %10642 = vst [vmem:[#allocation45_spill] sm:$0xff] %v8773_v53 }
 0x25e   : > { %6161 = vperm.xlu1 %6154, %v10626_v0  }
 0x261   : > { %v8779_v51 = vpop.permute.xlu1 %5913 }
 0x262   : > { %6165 = vset.pattern.permute.xlu1 %v10644_v54  ;;  %v5802_v54 = vunpack.i.h.bf16 %v8715_v23 }
 0x263   : > { %6167 = vperm.xlu1 %6165, %v10626_v0  }
 0x267   : > { %6171 = vset.pattern.permute.xlu1 %v10646_v16  ;;  %v8786_v58 = vpop.permute.xlu1 %5930  ;;  %v2103_v16 = vmul.f32 %v5784_v14, %v8794_v46 }
 0x268   : > { %6173 = vperm.xlu1 %6171, %v10628_v24  }
 0x269   : > { %v2107_v53 = vadd.f32 %v2103_v16, %v2078_v7  ;;  %v8835_v16 = vpop.permute.xlu0 %6554 }
 0x26a   : > { %10650 = vst [vmem:[#allocation54_spill] sm:$0xff] %v8835_v16 }
 0x26b   : > { %v8798_v32 = vpop.permute.xlu1 %5935 }
 0x26c   : > { %10647 = vst [vmem:[#allocation62_spill] sm:$0xff] %v8798_v32  ;;  %6208 = vset.pattern.permute.xlu1 %v10524_v3  ;;  %v2104_v32 = vmul.f32 %v5785_v22, %v8794_v46  ;;  %v2079_v3 = vadd.f32 %v2075_v50, %v8683_v49  ;;  %v8827_v22 = vld [vmem:[%s10067_s1 + $0x3c] ss:$0 sm:$0xff]  ;;  %v8832_v49 = vld [vmem:[%s10067_s1 + $0x3d] ss:$0 sm:$0xff]  ;;  %v6485_v50 = vunpack.i.l.bf16 %v8523_v59 }
 0x26d   : > { %6210 = vperm.xlu1 %6208, %v10628_v24   ;;  %v2132_v24 = vmul.f32 %v6430_v42, %v8810_v25  ;;  %v5808_v42 = vunpack.i.h.bf16 %v8719_v26  ;;  %v2161_v29 = vmul.f32 %v5801_v27, %v8827_v22  ;;  %v2162_v23 = vmul.f32 %v5802_v54, %v8827_v22  ;;  %v8855_v8 = vpop.permute.xlu0 %6560 }
 0x26e   : > { %v2108_v18 = vadd.f32 %v2104_v32, %v2079_v3  ;;  %v2190_v7 = vmul.f32 %v5807_v56, %v8832_v49  ;;  %v8847_v32 = vld [vmem:[%s10067_s1 + $0x3e] ss:$0 sm:$0xff]  ;;  %v6486_v26 = vunpack.i.h.bf16 %v8523_v59  ;;  %v10652_v56 = vld [vmem:[#allocation6_spill] sm:$0xff]  ;;  %v5830_v59 = vunpack.i.l.bf16 %v8734_v39 }
 0x26f   : > { %v2136_v1 = vadd.f32 %v2132_v24, %v2107_v53  ;;  %v2191_v27 = vmul.f32 %v5808_v42, %v8832_v49  ;;  %v5824_v53 = vunpack.i.l.bf16 %v8730_v12  ;;  %6599 = vperm.xlu0 %6581, %v10652_v56   ;;  %v2219_v61 = vmul.f32 %v6485_v50, %v8847_v32  ;;  %v8868_v42 = vld [vmem:[%s10067_s1 + $0x40] ss:$0 sm:$0xff] }
 0x270   : > { %v8818_v14 = vpop.permute.xlu1 %5952  ;;  %v2137_v16 = vadd.f32 %v2133_v41, %v2108_v18  ;;  %v2220_v41 = vmul.f32 %v6486_v26, %v8847_v32  ;;  %v6540_v26 = vunpack.i.l.bf16 %v8801_v62 }
 0x271   : > { %10649 = vst [vmem:[#allocation55_spill] sm:$0xff] %v8818_v14  ;;  %6215 = vperm.xlu1 %6208, %v10626_v0   ;;  %v10651_v14 = vmov 15   ;;  %v2165_v54 = vadd.f32 %v2161_v29, %v2136_v1  ;;  %v8878_v50 = vpop.permute.xlu0 %6577 }
 0x272   : > { %v2166_v24 = vadd.f32 %v2162_v23, %v2137_v16  ;;  %10653 = vst [vmem:[#allocation68_spill] sm:$0xff] %v8878_v50  ;;  %v5847_v50 = vunpack.i.l.bf16 %v8745_v5 }
 0x273   : > { %v2194_v10 = vadd.f32 %v2190_v7, %v2165_v54  ;;  %6615 = vset.pattern.permute.xlu0 %v10589_v47  ;;  %v2277_v7 = vmul.f32 %v5830_v59, %v8868_v42  ;;  %v8886_v54 = vld [vmem:[%s10067_s1 + $0x41] ss:$0 sm:$0xff]  ;;  %v10656_v59 = vld [vmem:[#allocation4_spill] sm:$0xff] }
 0x274   : > { %v2195_v18 = vadd.f32 %v2191_v27, %v2166_v24  ;;  %10654 = vst [vmem:[#allocation70_spill] sm:$0xff] %v8886_v54  ;;  %6617 = vperm.xlu0 %6615, %v10656_v59  }
 0x275   : > { %6219 = vset.pattern.permute.xlu1 %v10651_v14  ;;  %v8842_v3 = vpop.permute.xlu1 %5958  ;;  %v5825_v14 = vunpack.i.h.bf16 %v8730_v12  ;;  %v5831_v12 = vunpack.i.h.bf16 %v8734_v39  ;;  %v2223_v1 = vadd.f32 %v2219_v61, %v2194_v10  ;;  %v5848_v10 = vunpack.i.h.bf16 %v8745_v5  ;;  %v8907_v5 = vld [vmem:[%s10067_s1 + $0x43] ss:$0 sm:$0xff] }
 0x276   : > { %6221 = vperm.xlu1 %6219, %v10626_v0   ;;  %v8863_v0 = vld [vmem:[%s10067_s1 + $0x3f] ss:$0 sm:$0xff]  ;;  %v2224_v39 = vadd.f32 %v2220_v41, %v2195_v18  ;;  %v2306_v18 = vmul.f32 %v6540_v26, %v8886_v54  ;;  %10657 = vst [vmem:[#allocation76_spill] sm:$0xff] %v8907_v5 }
 0x277   : > { %v2248_v29 = vmul.f32 %v5824_v53, %v8863_v0  ;;  %v2249_v23 = vmul.f32 %v5825_v14, %v8863_v0  ;;  %v2278_v27 = vmul.f32 %v5831_v12, %v8868_v42  ;;  %v6541_v53 = vunpack.i.h.bf16 %v8801_v62 }
 0x278   : > { %v5853_v12 = vunpack.i.l.bf16 %v8749_v34  ;;  %6632 = vset.pattern.permute.xlu0 %v10602_v35  ;;  %v8960_v35 = vld [vmem:[%s10067_s1 + $0x50] ss:$0 sm:$0xff] }
 0x279   : > { %v2252_v14 = vadd.f32 %v2248_v29, %v2223_v1  ;;  %v2253_v61 = vadd.f32 %v2249_v23, %v2224_v39  ;;  %v2307_v47 = vmul.f32 %v6541_v53, %v8886_v54  ;;  %v8902_v29 = vld [vmem:[%s10067_s1 + $0x42] ss:$0 sm:$0xff]  ;;  %v5854_v23 = vunpack.i.h.bf16 %v8749_v34  ;;  %v6584_v1 = vpop.permute.xlu0 %6583  ;;  %v8921_v34 = vld [vmem:[%s10067_s1 + $0x44] ss:$0 sm:$0xff]  ;;  %6634 = vperm.xlu0 %6632, %v10652_v56   ;;  %10666 = vst [vmem:[#allocation77_spill] sm:$0xff] %v8960_v35 }
 0x27a   : > { %6225 = vset.pattern.permute.xlu1 %v10625_v57  ;;  %v8872_v16 = vpop.permute.xlu1 %5975  ;;  %v2336_v39 = vmul.f32 %v5848_v10, %v8902_v29  ;;  %v2364_v53 = vmul.f32 %v5853_v12, %v8907_v5  ;;  %10659 = vst [vmem:[#allocation64_spill] sm:$0xff] %v8921_v34  ;;  %v5870_v10 = vunpack.i.l.bf16 %v8760_v31 }
 0x27b   : > { %6227 = vperm.xlu1 %6225, %v10652_v56   ;;  %v2281_v41 = vadd.f32 %v2277_v7, %v2252_v14  ;;  %v2282_v62 = vadd.f32 %v2278_v27, %v2253_v61  ;;  %v2335_v7 = vmul.f32 %v5847_v50, %v8902_v29  ;;  %v6585_v14 = vunpack.i.l.bf16 %v6584_v1 }
 0x27c   : > { %v6586_v50 = vunpack.i.h.bf16 %v6584_v1  ;;  %v5887_v1 = vunpack.i.l.bf16 %v8764_v19 }
 0x27d   : > { %v2310_v27 = vadd.f32 %v2306_v18, %v2281_v41  ;;  %v2311_v61 = vadd.f32 %v2307_v47, %v2282_v62  ;;  %v5871_v41 = vunpack.i.h.bf16 %v8760_v31  ;;  %v8932_v47 = vld [vmem:[%s10067_s1 + $0x47] ss:$0 sm:$0xff]  ;;  %v8941_v31 = vld [vmem:[%s10067_s1 + $0x45] ss:$0 sm:$0xff]  ;;  %6650 = vset.pattern.permute.xlu0 %v10608_v44 }
 0x27e   : > { %v8889_v24 = vpop.permute.xlu1 %5980  ;;  %10661 = vst [vmem:[#allocation61_spill] sm:$0xff] %v8932_v47  ;;  %10662 = vst [vmem:[#allocation93_spill] sm:$0xff] %v8941_v31  ;;  %6652 = vperm.xlu0 %6650, %v10656_v59  }
 0x27f   : > { %10655 = vst [vmem:[#allocation67_spill] sm:$0xff] %v8889_v24  ;;  %6247 = vset.pattern.permute.xlu1 %v10627_v36  ;;  %v2365_v24 = vmul.f32 %v5854_v23, %v8907_v5  ;;  %v10660_v36 = vld [vmem:[#allocation7_spill] sm:$0xff]  ;;  %v2340_v11 = vadd.f32 %v2336_v39, %v2311_v61  ;;  %v2393_v23 = vmul.f32 %v6585_v14, %v8921_v34  ;;  %v10664_v14 = vld [vmem:[#allocation50_spill] sm:$0xff] }
 0x280   : > { %6249 = vperm.xlu1 %6247, %v10652_v56   ;;  %v5898_v57 = vunpack.i.h.bf16 %v10660_v36  ;;  %v5897_v12 = vunpack.i.l.bf16 %v10660_v36  ;;  %v2394_v39 = vmul.f32 %v6586_v50, %v8921_v34  ;;  %v5888_v36 = vunpack.i.h.bf16 %v8764_v19 }
 0x281   : > { %v6207_v61 = vunpack.i.h.bf16 %v10664_v14 }
 0x282   : > { %6667 = vset.pattern.permute.xlu0 %v10617_v33 }
 0x283   : > { %v8911_v26 = vpop.permute.xlu1 %5997  ;;  %6669 = vperm.xlu0 %6667, %v10652_v56  }
 0x284   : > { %10658 = vst [vmem:[#allocation85_spill] sm:$0xff] %v8911_v26  ;;  %6254 = vperm.xlu1 %6247, %v10656_v59   ;;  %v2339_v26 = vadd.f32 %v2335_v7, %v2310_v27  ;;  %v2369_v7 = vadd.f32 %v2365_v24, %v2340_v11  ;;  %v8947_v27 = vld [vmem:[%s10067_s1 + $0x46] ss:$0 sm:$0xff]  ;;  %v2480_v11 = vmul.f32 %v5897_v12, %v8932_v47  ;;  %v10665_v24 = vld [vmem:[#allocation9_spill] sm:$0xff] }
 0x285   : > { %10663 = vst [vmem:[#allocation78_spill] sm:$0xff] %v8947_v27  ;;  %v5943_v50 = vunpack.i.h.bf16 %v10665_v24  ;;  %v2451_v34 = vmul.f32 %v5887_v1, %v8947_v27  ;;  %v2452_v12 = vmul.f32 %v5888_v36, %v8947_v27  ;;  %v8976_v1 = vld [vmem:[%s10067_s1 + $0x4a] ss:$0 sm:$0xff]  ;;  %v5916_v36 = vunpack.i.h.bf16 %v8779_v51 }
 0x286   : > { %v2368_v62 = vadd.f32 %v2364_v53, %v2339_v26  ;;  %v2422_v26 = vmul.f32 %v5870_v10, %v8941_v31  ;;  %v2481_v53 = vmul.f32 %v5898_v57, %v8932_v47  ;;  %v5942_v57 = vunpack.i.l.bf16 %v10665_v24  ;;  %v10667_v47 = vld [vmem:[#allocation11_spill] sm:$0xff]  ;;  %10668 = vst [vmem:[#allocation116_spill] sm:$0xff] %v8976_v1 }
 0x287   : > { %v5988_v5 = vunpack.i.h.bf16 %v10667_v47  ;;  %v5987_v24 = vunpack.i.l.bf16 %v10667_v47  ;;  %v8995_v47 = vld [vmem:[%s10067_s1 + $0x48] ss:$0 sm:$0xff]  ;;  %6685 = vset.pattern.permute.xlu0 %v10619_v60 }
 0x288   : > { %6284 = vset.pattern.permute.xlu1 %v10629_v21  ;;  %v8927_v18 = vpop.permute.xlu1 %6003  ;;  %v2423_v21 = vmul.f32 %v5871_v41, %v8941_v31  ;;  %v2397_v19 = vadd.f32 %v2393_v23, %v2368_v62  ;;  %v6206_v41 = vunpack.i.l.bf16 %v10664_v14  ;;  %v2398_v31 = vadd.f32 %v2394_v39, %v2369_v7  ;;  %v8986_v14 = vld [vmem:[%s10067_s1 + $0x4d] ss:$0 sm:$0xff]  ;;  %10672 = vst [vmem:[#allocation96_spill] sm:$0xff] %v8995_v47 }
 0x289   : > { %6286 = vperm.xlu1 %6284, %v10656_v59   ;;  %v5915_v23 = vunpack.i.l.bf16 %v8779_v51  ;;  %v8980_v7 = vmul.f32 %v6207_v61, %v8960_v35  ;;  %10669 = vst [vmem:[#allocation41_spill] sm:$0xff] %v8986_v14  ;;  %v9003_v51 = vld [vmem:[%s10067_s1 + $0x53] ss:$0 sm:$0xff]  ;;  %v9009_v61 = vld [vmem:[%s10067_s1 + $0x49] ss:$0 sm:$0xff]  ;;  %6687 = vperm.xlu0 %6685, %v10656_v59  }
 0x28a   : > { %v2426_v62 = vadd.f32 %v2422_v26, %v2397_v19  ;;  %v2427_v39 = vadd.f32 %v2423_v21, %v2398_v31  ;;  %v10670_v26 = vld [vmem:[#allocation105_spill] sm:$0xff]  ;;  %v8998_v21 = vmul.f32 %v6206_v41, %v8960_v35  ;;  %10673 = vst [vmem:[#allocation99_spill] sm:$0xff] %v9003_v51  ;;  %v2568_v35 = vmul.f32 %v5943_v50, %v8976_v1 }
 0x28b   : > { %v6283_v19 = vunpack.i.h.bf16 %v10670_v26  ;;  %v6282_v31 = vunpack.i.l.bf16 %v10670_v26  ;;  %v2509_v54 = vmul.f32 %v5915_v23, %v8995_v47  ;;  %v9023_v26 = vmul.f32 %v5987_v24, %v8986_v14 }
 0x28c   : > { %v2455_v44 = vadd.f32 %v2451_v34, %v2426_v62  ;;  %v2456_v34 = vadd.f32 %v2452_v12, %v2427_v39  ;;  %v5933_v62 = vunpack.i.h.bf16 %v8786_v58  ;;  %v2567_v12 = vmul.f32 %v5942_v57, %v8976_v1 }
 0x28d   : > { %6290 = vset.pattern.permute.xlu1 %v10630_v30  ;;  %v8964_v10 = vpop.permute.xlu1 %6020  ;;  %v5932_v30 = vunpack.i.l.bf16 %v8786_v58  ;;  %v9020_v39 = vmul.f32 %v5988_v5, %v8986_v14  ;;  %v2510_v58 = vmul.f32 %v5916_v36, %v8995_v47  ;;  %v9028_v50 = vmul.f32 %v6283_v19, %v9003_v51  ;;  %v10675_v14 = vld [vmem:[#allocation57_spill] sm:$0xff]  ;;  %6702 = vset.pattern.permute.xlu0 %v10622_v52 }
 0x28e   : > { %6292 = vperm.xlu1 %6290, %v10652_v56   ;;  %v2484_v23 = vadd.f32 %v2480_v11, %v2455_v44  ;;  %v9033_v57 = vmul.f32 %v6282_v31, %v9003_v51  ;;  %v2485_v5 = vadd.f32 %v2481_v53, %v2456_v34  ;;  %v2539_v1 = vmul.f32 %v5933_v62, %v9009_v61  ;;  %v9049_v31 = vld [vmem:[%s10067_s1 + $0x56] ss:$0 sm:$0xff]  ;;  %v9056_v62 = vld [vmem:[%s10067_s1 + $0x4b] ss:$0 sm:$0xff] }
 0x28f   : > { %v6348_v36 = vunpack.i.h.bf16 %v10675_v14  ;;  %v6347_v41 = vunpack.i.l.bf16 %v10675_v14  ;;  %v5960_v19 = vunpack.i.l.bf16 %v8842_v3  ;;  %v5790_v44 = vunpack.i.h.bf16 %v8707_v13  ;;  %10676 = vst [vmem:[#allocation86_spill] sm:$0xff] %v9049_v31  ;;  %6704 = vperm.xlu0 %6702, %v10652_v56  }
 0x290   : > { %v2513_v47 = vadd.f32 %v2509_v54, %v2484_v23  ;;  %v5961_v53 = vunpack.i.h.bf16 %v8842_v3  ;;  %v5789_v54 = vunpack.i.l.bf16 %v8707_v13  ;;  %v5977_v34 = vunpack.i.l.bf16 %v8872_v16 }
 0x291   : > { %v8990_v27 = vpop.permute.xlu1 %6025  ;;  %v6458_v3 = vunpack.i.h.bf16 %v8409_v15  ;;  %v5978_v13 = vunpack.i.h.bf16 %v8872_v16  ;;  %v2596_v11 = vmul.f32 %v5960_v19, %v9056_v62 }
 0x292   : > { %10671 = vst [vmem:[#allocation40_spill] sm:$0xff] %v8990_v27  ;;  %6312 = vset.pattern.permute.xlu1 %v10631_v20  ;;  %v2538_v20 = vmul.f32 %v5932_v30, %v9009_v61  ;;  %v2514_v30 = vadd.f32 %v2510_v58, %v2485_v5  ;;  %v9063_v5 = vld [vmem:[%s10067_s1 + $0x4c] ss:$0 sm:$0xff]  ;;  %v9073_v58 = vmul.f32 %v6348_v36, %v9049_v31  ;;  %v5796_v36 = vunpack.i.h.bf16 %v8711_v4 }
 0x293   : > { %6314 = vperm.xlu1 %6312, %v10652_v56   ;;  %v2597_v16 = vmul.f32 %v5961_v53, %v9056_v62  ;;  %v2625_v19 = vmul.f32 %v5977_v34, %v9063_v5  ;;  %v6006_v34 = vunpack.i.h.bf16 %v8927_v18  ;;  %6720 = vset.pattern.permute.xlu0 %v10623_v28 }
 0x294   : > { %v2542_v14 = vadd.f32 %v2538_v20, %v2513_v47  ;;  %v2543_v23 = vadd.f32 %v2539_v1, %v2514_v30  ;;  %v6457_v20 = vunpack.i.l.bf16 %v8409_v15  ;;  %v5795_v47 = vunpack.i.l.bf16 %v8711_v4  ;;  %6722 = vperm.xlu0 %6720, %v10656_v59  }
 0x295   : > { %v9076_v1 = vmul.f32 %v6347_v41, %v9049_v31  ;;  %v2106_v30 = vmul.f32 %v5790_v44, %v8794_v46  ;;  %v2105_v15 = vmul.f32 %v5789_v54, %v8794_v46  ;;  %v2626_v31 = vmul.f32 %v5978_v13, %v9063_v5 }
 0x296   : > { %v9036_v24 = vpop.permute.xlu1 %6031  ;;  %v2571_v33 = vadd.f32 %v2567_v12, %v2542_v14  ;;  %v2572_v41 = vadd.f32 %v2568_v35, %v2543_v23  ;;  %v2163_v44 = vmul.f32 %v6457_v20, %v8827_v22  ;;  %v2134_v53 = vmul.f32 %v5795_v47, %v8810_v25 }
 0x297   : > { %6319 = vperm.xlu1 %6312, %v10656_v59   ;;  %v6005_v46 = vunpack.i.l.bf16 %v8927_v18  ;;  %v6513_v12 = vunpack.i.h.bf16 %v8770_v40  ;;  %v6512_v54 = vunpack.i.l.bf16 %v8770_v40  ;;  %v2109_v35 = vadd.f32 %v2105_v15, %v8699_v38  ;;  %v9110_v38 = vld [vmem:[%s10067_s1 + $0x4f] ss:$0 sm:$0xff] }
 0x298   : > { %v2600_v51 = vadd.f32 %v2596_v11, %v2571_v33  ;;  %v2601_v14 = vadd.f32 %v2597_v16, %v2572_v41  ;;  %v6022_v23 = vunpack.i.l.bf16 %v8964_v10  ;;  %v9104_v33 = vld [vmem:[%s10067_s1 + $0x4e] ss:$0 sm:$0xff]  ;;  %v2135_v40 = vmul.f32 %v5796_v36, %v8810_v25 }
 0x299   : > { %v5813_v11 = vunpack.i.h.bf16 %v8722_v2  ;;  %v5812_v13 = vunpack.i.l.bf16 %v8722_v2  ;;  %v2683_v20 = vmul.f32 %v6005_v46, %v9104_v33  ;;  %v2684_v47 = vmul.f32 %v6006_v34, %v9104_v33 }
 0x29a   : > { %v2630_v18 = vadd.f32 %v2626_v31, %v2601_v14  ;;  %v5818_v16 = vunpack.i.l.bf16 %v8726_v37  ;;  %v5819_v46 = vunpack.i.h.bf16 %v8726_v37  ;;  %v2251_v34 = vmul.f32 %v6513_v12, %v8863_v0 }
 0x29b   : > { %6349 = vset.pattern.permute.xlu1 %v10632_v17  ;;  %v9070_v27 = vpop.permute.xlu1 %6037  ;;  %v9085_v17 = vmul.f32 %v6458_v3, %v8827_v22  ;;  %v2110_v3 = vadd.f32 %v2106_v30, %v8701_v6  ;;  %v2629_v22 = vadd.f32 %v2625_v19, %v2600_v51  ;;  %v6023_v6 = vunpack.i.h.bf16 %v8964_v10 }
 0x29c   : > { %6351 = vperm.xlu1 %6349, %v10656_v59   ;;  %v2138_v51 = vadd.f32 %v2134_v53, %v2109_v35  ;;  %v6040_v30 = vunpack.i.h.bf16 %v9070_v27  ;;  %v6039_v25 = vunpack.i.l.bf16 %v9070_v27  ;;  %v2712_v10 = vmul.f32 %v6022_v23, %v9110_v38  ;;  %v9132_v27 = vld [vmem:[%s10067_s1 + $0x51] ss:$0 sm:$0xff] }
 0x29d   : > { %v2658_v15 = vadd.f32 %v9023_v26, %v2629_v22  ;;  %v2659_v2 = vadd.f32 %v9020_v39, %v2630_v18  ;;  %v2713_v19 = vmul.f32 %v6023_v6, %v9110_v38  ;;  %v2139_v26 = vadd.f32 %v2135_v40, %v2110_v3  ;;  %v9139_v39 = vld [vmem:[%s10067_s1 + $0x52] ss:$0 sm:$0xff] }
 0x29e   : > { %v2192_v53 = vmul.f32 %v5812_v13, %v8832_v49  ;;  %v2795_v35 = vmul.f32 %v6040_v30, %v9132_v27  ;;  %v2794_v22 = vmul.f32 %v6039_v25, %v9132_v27  ;;  %v2193_v23 = vmul.f32 %v5813_v11, %v8832_v49 }
 0x29f   : > { %v2687_v14 = vadd.f32 %v2683_v20, %v2658_v15  ;;  %v2167_v3 = vadd.f32 %v2163_v44, %v2138_v51  ;;  %v2221_v40 = vmul.f32 %v5818_v16, %v8847_v32  ;;  %v3008_v6 = vrot.slane %v9073_v58, 1  ;;  %v9230_v58 = vld [vmem:[%s10067_s1 + $0x59] ss:$0 sm:$0xff] }
 0x2a0   : > { %6355 = vset.pattern.permute.xlu1 %v10633_v63  ;;  %v6055_v4 = vpop.permute.xlu1 %6054  ;;  %v2222_v44 = vmul.f32 %v5819_v46, %v8847_v32  ;;  %v2250_v51 = vmul.f32 %v6512_v54, %v8863_v0  ;;  %v5835_v11 = vunpack.i.l.bf16 %v8737_v9  ;;  %v2803_v30 = vrot.slane %v2795_v35, 1 }
 0x2a1   : > { %6357 = vperm.xlu1 %6355, %v10652_v56   ;;  %v6057_v36 = vunpack.i.h.bf16 %v6055_v4  ;;  %v6056_v41 = vunpack.i.l.bf16 %v6055_v4  ;;  %v2688_v4 = vadd.f32 %v2684_v47, %v2659_v2  ;;  %v2716_v18 = vadd.f32 %v2712_v10, %v2687_v14 }
 0x2a2   : > { %v2168_v47 = vadd.f32 %v9085_v17, %v2139_v26  ;;  %v2196_v49 = vadd.f32 %v2192_v53, %v2167_v3  ;;  %v2802_v25 = vrot.slane %v2794_v22, 1  ;;  %v6563_v10 = vunpack.i.h.bf16 %v8855_v8 }
 0x2a3   : > { %v2717_v13 = vadd.f32 %v2713_v19, %v2688_v4  ;;  %v2836_v20 = vmul.f32 %v6057_v36, %v9139_v39  ;;  %v2835_v12 = vmul.f32 %v6056_v41, %v9139_v39  ;;  %v10677_v2 = vrot.slane %v8998_v21, 1  ;;  %v9168_v21 = vld [vmem:[%s10067_s1 + $0x54] ss:$0 sm:$0xff] }
 0x2a4   : > { %v9119_v31 = vpop.permute.xlu1 %6059  ;;  %v2197_v16 = vadd.f32 %v2193_v23, %v2168_v47  ;;  %v2225_v15 = vadd.f32 %v2221_v40, %v2196_v49  ;;  %v10678_v36 = vrot.slane %v8980_v7, 1  ;;  %v5836_v54 = vunpack.i.h.bf16 %v8737_v9 }
 0x2a5   : > { %6377 = vset.pattern.permute.xlu1 %v10634_v43  ;;  %v2769_v19 = vadd.f32 %v10677_v2, %v2716_v18  ;;  %v2844_v17 = vrot.slane %v2836_v20, 1  ;;  %v2843_v26 = vrot.slane %v2835_v12, 1  ;;  %v2279_v7 = vmul.f32 %v5835_v11, %v8868_v42 }
 0x2a6   : > { %6379 = vperm.xlu1 %6377, %v10652_v56   ;;  %v2770_v41 = vadd.f32 %v10678_v36, %v2717_v13  ;;  %v2226_v0 = vadd.f32 %v2222_v44, %v2197_v16  ;;  %v5842_v35 = vunpack.i.h.bf16 %v8741_v55  ;;  %v5841_v22 = vunpack.i.l.bf16 %v8741_v55  ;;  %v9184_v55 = vld [vmem:[%s10067_s1 + $0x55] ss:$0 sm:$0xff] }
 0x2a7   : > { %v2810_v14 = vadd.f32 %v2802_v25, %v2769_v19  ;;  %v3007_v3 = vrot.slane %v9076_v1, 1  ;;  %v6562_v40 = vunpack.i.l.bf16 %v8855_v8  ;;  %v2280_v20 = vmul.f32 %v5836_v54, %v8868_v42 }
 0x2a8   : > { %v2811_v4 = vadd.f32 %v2803_v30, %v2770_v41  ;;  %v2254_v12 = vadd.f32 %v2250_v51, %v2225_v15  ;;  %v2255_v47 = vadd.f32 %v2251_v34, %v2226_v0  ;;  %v2338_v49 = vmul.f32 %v6563_v10, %v8902_v29  ;;  %v10679_v34 = vld [vmem:[#allocation70_spill] sm:$0xff] }
 0x2a9   : > { %v9146_v37 = vpop.permute.xlu1 %6065  ;;  %v2851_v18 = vadd.f32 %v2843_v26, %v2810_v14  ;;  %v2309_v51 = vmul.f32 %v5842_v35, %v10679_v34  ;;  %v2308_v25 = vmul.f32 %v5841_v22, %v10679_v34  ;;  %v10680_v16 = vrot.slane %v9033_v57, 1  ;;  %v5225_v34 = vld [vmem:[%s7000_s17 + $0x10] sm:$0x7] }
 0x2aa   : > { %6384 = vperm.xlu1 %6377, %v10656_v59   ;;  %v2852_v13 = vadd.f32 %v2844_v17, %v2811_v4  ;;  %v2283_v42 = vadd.f32 %v2279_v7, %v2254_v12  ;;  %v10681_v10 = vrot.slane %v9028_v50, 1  ;;  %v2284_v41 = vadd.f32 %v2280_v20, %v2255_v47  ;;  %v10682_v17 = vld [vmem:[#allocation51_spill] sm:$0xff]  ;;  %v10684_v4 = vld [vmem:[#allocation56_spill] sm:$0xff] }
 0x2ab   : > { %v2892_v15 = vadd.f32 %v10680_v16, %v2851_v18  ;;  %v5859_v26 = vunpack.i.h.bf16 %v10682_v17  ;;  %v10683_v57 = vmov 10   ;;  %v2337_v50 = vmul.f32 %v6562_v40, %v8902_v29  ;;  %v10686_v12 = vld [vmem:[#allocation47_spill] sm:$0xff] }
 0x2ac   : > { %v2893_v2 = vadd.f32 %v10681_v10, %v2852_v13  ;;  %v2312_v14 = vadd.f32 %v2308_v25, %v2283_v42  ;;  %v5864_v35 = vunpack.i.l.bf16 %v10684_v4  ;;  %v2313_v22 = vadd.f32 %v2309_v51, %v2284_v41  ;;  %v10685_v13 = vld [vmem:[#allocation5_spill] sm:$0xff]  ;;  %v5224_v42 = vld [vmem:[%s7000_s17 + $0x8] sm:$0x7]  ;;  %v10688_v25 = vld [vmem:[#allocation64_spill] sm:$0xff] }
 0x2ad   : > { %v5875_v20 = vunpack.i.l.bf16 %v10685_v13  ;;  %v6408_v47 = vunpack.i.h.bf16 %v10686_v12  ;;  %v6407_v29 = vunpack.i.l.bf16 %v10686_v12  ;;  %v4333_v10 = vunpack.c.l.bf16 %v5224_v42  ;;  %v10696_v12 = vld [vmem:[#allocation45_spill] sm:$0xff] }
 0x2ae   : > { %6409 = vset.pattern.permute.xlu1 %v10636_v48  ;;  %v6072_v32 = vpop.permute.xlu1 %6071  ;;  %v2341_v51 = vadd.f32 %v2337_v50, %v2312_v14  ;;  %v2395_v16 = vmul.f32 %v5864_v35, %v10688_v25 }
 0x2af   : > { %v6074_v53 = vunpack.i.h.bf16 %v6072_v32  ;;  %v6073_v46 = vunpack.i.l.bf16 %v6072_v32  ;;  %6411 = vperm.xlu1 %6409, %v10656_v59   ;;  %v5858_v32 = vunpack.i.l.bf16 %v10682_v17  ;;  %v10692_v17 = vld [vmem:[#allocation8_spill] sm:$0xff] }
 0x2b1   : > { %v2918_v9 = vmul.f32 %v6074_v53, %v9168_v21  ;;  %v2917_v23 = vmul.f32 %v6073_v46, %v9168_v21 }
 0x2b3   : > { %6415 = vset.pattern.permute.xlu1 %v10638_v45  ;;  %v6089_v44 = vpop.permute.xlu1 %6088  ;;  %v2926_v11 = vrot.slane %v2918_v9, 1  ;;  %v2925_v1 = vrot.slane %v2917_v23, 1  ;;  %v5865_v9 = vunpack.i.h.bf16 %v10684_v4  ;;  %v10694_v4 = vld [vmem:[#allocation66_spill] sm:$0xff] }
 0x2b4   : > { %v6091_v30 = vunpack.i.h.bf16 %v6089_v44  ;;  %v6090_v8 = vunpack.i.l.bf16 %v6089_v44  ;;  %6417 = vperm.xlu1 %6415, %v10652_v56   ;;  %v10687_v44 = vld [vmem:[#allocation76_spill] sm:$0xff]  ;;  %v5892_v35 = vunpack.i.l.bf16 %v10694_v4 }
 0x2b5   : > { %v2933_v54 = vadd.f32 %v2925_v1, %v2892_v15  ;;  %v2934_v53 = vadd.f32 %v2926_v11, %v2893_v2  ;;  %v2366_v11 = vmul.f32 %v5858_v32, %v10687_v44  ;;  %v2367_v40 = vmul.f32 %v5859_v26, %v10687_v44 }
 0x2b6   : > { %v2959_v19 = vmul.f32 %v6091_v30, %v9184_v55  ;;  %v2958_v36 = vmul.f32 %v6090_v8, %v9184_v55  ;;  %v10689_v15 = vmov 0   ;;  %v4334_v2 = vunpack.c.l.bf16 %v5225_v34 }
 0x2b7   : > { %v9198_v0 = vpop.permute.xlu1 %6093  ;;  %6737 = vset.pattern.permute.xlu0 %v10689_v15  ;;  %v2396_v41 = vmul.f32 %v5865_v9, %v10688_v25  ;;  %v5921_v26 = vunpack.i.h.bf16 %v10692_v17  ;;  %v5920_v32 = vunpack.i.l.bf16 %v10692_v17  ;;  %v5893_v9 = vunpack.i.h.bf16 %v10694_v4  ;;  %v10698_v25 = vld [vmem:[#allocation78_spill] sm:$0xff]  ;;  %v10700_v4 = vld [vmem:[#allocation61_spill] sm:$0xff] }
 0x2b8   : > { %v2967_v46 = vrot.slane %v2959_v19, 1  ;;  %v2966_v7 = vrot.slane %v2958_v36, 1  ;;  %6432 = vset.pattern.permute.xlu1 %v10683_v57  ;;  %v10690_v19 = vld [vmem:[#allocation93_spill] sm:$0xff]  ;;  %v5909_v44 = vunpack.i.l.bf16 %v10696_v12 }
 0x2b9   : > { %6434 = vperm.xlu1 %6432, %v10652_v56   ;;  %v2454_v17 = vmul.f32 %v5893_v9, %v10698_v25 }
 0x2ba   : > { %v2974_v23 = vadd.f32 %v2966_v7, %v2933_v54  ;;  %v2975_v18 = vadd.f32 %v2967_v46, %v2934_v53  ;;  %v2370_v54 = vadd.f32 %v2366_v11, %v2341_v51  ;;  %v9235_v53 = vpack.i.bf16 %v4334_v2, %v4333_v10  ;;  %v10693_v7 = vld [vmem:[#allocation10_spill] sm:$0xff]  ;;  %v9259_v51 = vld [vmem:[%s10067_s1 + $0x57] ss:$0 sm:$0xff] }
 0x2bb   : > { %v2424_v46 = vmul.f32 %v5875_v20, %v10690_v19  ;;  %v5966_v14 = vunpack.i.h.bf16 %v10693_v7  ;;  %v5965_v34 = vunpack.i.l.bf16 %v10693_v7  ;;  %v5910_v10 = vunpack.i.h.bf16 %v10696_v12 }
 0x2bc   : > { %v9211_v1 = vadd.f32 %v3007_v3, %v2974_v23  ;;  %v9215_v30 = vadd.f32 %v3008_v6, %v2975_v18  ;;  %v9217_v8 = vpop.permute.xlu1 %6099  ;;  %v10691_v3 = vunpack.i.h.bf16 %v10685_v13  ;;  %v2342_v6 = vadd.f32 %v2338_v49, %v2313_v22  ;;  %6739 = vperm.xlu0 %6737, %v9235_v53  }
 0x2bd   : > { %6439 = vperm.xlu1 %6432, %v10656_v59   ;;  %v9241_v23 = vmul.f32 %v6408_v47, %v9230_v58  ;;  %v9244_v49 = vmul.f32 %v6407_v29, %v9230_v58  ;;  %v2399_v22 = vadd.f32 %v2395_v16, %v2370_v54  ;;  %v10695_v18 = vmov 11   ;;  %v10697_v47 = vld [vmem:[#allocation96_spill] sm:$0xff] }
 0x2be   : > { %v2425_v36 = vmul.f32 %v10691_v3, %v10690_v19  ;;  %v2371_v50 = vadd.f32 %v2367_v40, %v2342_v6  ;;  %v9252_v29 = vmul.f32 %v5921_v26, %v10697_v47  ;;  %v2511_v42 = vmul.f32 %v5920_v32, %v10697_v47  ;;  %v5226_v26 = vld [vmem:[%s7000_s17 + $0x18] sm:$0x7]  ;;  %v5227_v32 = vld [vmem:[%s7000_s17 + $0x20] sm:$0x7] }
 0x2bf   : > { %v2453_v16 = vmul.f32 %v5892_v35, %v10698_v25  ;;  %v9266_v3 = vmul.f32 %v5966_v14, %v9056_v62  ;;  %v3131_v6 = vrot.slane %v9241_v23, 1  ;;  %v10699_v54 = vmov 1   ;;  %v9279_v14 = vld [vmem:[%s10067_s1 + $0x58] ss:$0 sm:$0xff] }
 0x2c0   : > { %v2400_v20 = vadd.f32 %v2396_v41, %v2371_v50  ;;  %v3130_v41 = vrot.slane %v9244_v49, 1  ;;  %6755 = vset.pattern.permute.xlu0 %v10699_v54  ;;  %v2428_v7 = vadd.f32 %v2424_v46, %v2399_v22  ;;  %v2482_v35 = vmul.f32 %v5909_v44, %v10700_v4  ;;  %v10702_v44 = vld [vmem:[#allocation62_spill] sm:$0xff] }
 0x2c1   : > { %6464 = vset.pattern.permute.xlu1 %v10695_v18  ;;  %v6106_v13 = vpop.permute.xlu1 %6105  ;;  %v2483_v46 = vmul.f32 %v5910_v10, %v10700_v4  ;;  %v4336_v22 = vunpack.c.l.bf16 %v5227_v32  ;;  %v5937_v47 = vunpack.i.l.bf16 %v10702_v44  ;;  %v10704_v32 = vmov 13  }
 0x2c2   : > { %v6108_v11 = vunpack.i.h.bf16 %v6106_v13  ;;  %v6107_v40 = vunpack.i.l.bf16 %v6106_v13  ;;  %6466 = vperm.xlu1 %6464, %v10656_v59   ;;  %v2429_v50 = vadd.f32 %v2425_v36, %v2400_v20  ;;  %v10701_v13 = vmov 12  }
 0x2c3   : > { %v4335_v36 = vunpack.c.l.bf16 %v5226_v26 }
 0x2c4   : > { %v3041_v2 = vmul.f32 %v6108_v11, %v9259_v51  ;;  %v3040_v19 = vmul.f32 %v6107_v40, %v9259_v51  ;;  %v2457_v40 = vadd.f32 %v2453_v16, %v2428_v7  ;;  %v2458_v20 = vadd.f32 %v2454_v17, %v2429_v50  ;;  %v10705_v7 = vld [vmem:[#allocation12_spill] sm:$0xff] }
 0x2c5   : > { %v9290_v15 = vpack.i.bf16 %v4336_v22, %v4335_v36  ;;  %v6011_v50 = vunpack.i.h.bf16 %v10705_v7  ;;  %v10707_v22 = vld [vmem:[#allocation116_spill] sm:$0xff] }
 0x2c6   : > { %6470 = vset.pattern.permute.xlu1 %v10701_v13  ;;  %v6123_v23 = vpop.permute.xlu1 %6122  ;;  %v3049_v12 = vrot.slane %v3041_v2, 1  ;;  %v3048_v49 = vrot.slane %v3040_v19, 1  ;;  %v2486_v48 = vadd.f32 %v2482_v35, %v2457_v40  ;;  %v5938_v2 = vunpack.i.h.bf16 %v10702_v44  ;;  %v10703_v19 = vld [vmem:[#allocation55_spill] sm:$0xff] }
 0x2c7   : > { %v6125_v11 = vunpack.i.h.bf16 %v6123_v23  ;;  %v6124_v9 = vunpack.i.l.bf16 %v6123_v23  ;;  %6472 = vperm.xlu1 %6470, %v10652_v56   ;;  %v5954_v54 = vunpack.i.l.bf16 %v10703_v19  ;;  %v2487_v4 = vadd.f32 %v2483_v46, %v2458_v20  ;;  %6757 = vperm.xlu0 %6755, %v9290_v15  }
 0x2c8   : > { %v3056_v16 = vadd.f32 %v3048_v49, %v9211_v1  ;;  %v3057_v10 = vadd.f32 %v3049_v12, %v9215_v30  ;;  %v5955_v35 = vunpack.i.h.bf16 %v10703_v19  ;;  %v2598_v30 = vmul.f32 %v5965_v34, %v9056_v62 }
 0x2c9   : > { %v3082_v25 = vmul.f32 %v6125_v11, %v9279_v14  ;;  %v3081_v18 = vmul.f32 %v6124_v9, %v9279_v14  ;;  %v6010_v11 = vunpack.i.l.bf16 %v10705_v7  ;;  %v2540_v9 = vmul.f32 %v5937_v47, %v9009_v61 }
 0x2ca   : > { %v9288_v23 = vpop.permute.xlu1 %6127  ;;  %v2541_v46 = vmul.f32 %v5938_v2, %v9009_v61  ;;  %v2515_v36 = vadd.f32 %v2511_v42, %v2486_v48  ;;  %v2569_v20 = vmul.f32 %v5954_v54, %v10707_v22  ;;  %v9313_v47 = vmul.f32 %v6011_v50, %v9104_v33  ;;  %v9326_v42 = vld [vmem:[%s10067_s1 + $0x5c] ss:$0 sm:$0xff] }
 0x2cb   : > { %v3090_v17 = vrot.slane %v3082_v25, 1  ;;  %v3089_v26 = vrot.slane %v3081_v18, 1  ;;  %6487 = vset.pattern.permute.xlu1 %v10704_v32  ;;  %v10706_v18 = vld [vmem:[#allocation13_spill] sm:$0xff]  ;;  %v2516_v34 = vadd.f32 %v9252_v29, %v2487_v4  ;;  %v10709_v48 = vmov 3   ;;  %v10711_v29 = vld [vmem:[#allocation15_spill] sm:$0xff] }
 0x2cc   : > { %6489 = vperm.xlu1 %6487, %v10652_v56   ;;  %v6045_v12 = vunpack.i.h.bf16 %v10706_v18  ;;  %v6044_v40 = vunpack.i.l.bf16 %v10706_v18  ;;  %6772 = vset.pattern.permute.xlu0 %v10709_v48  ;;  %v9321_v61 = vmul.f32 %v6010_v11, %v9104_v33  ;;  %v10713_v18 = vmov 14  }
 0x2cd   : > { %v3097_v1 = vadd.f32 %v3089_v26, %v3056_v16  ;;  %v3098_v49 = vadd.f32 %v3090_v17, %v3057_v10  ;;  %v10708_v16 = vld [vmem:[#allocation53_spill] sm:$0xff]  ;;  %v2570_v10 = vmul.f32 %v5955_v35, %v10707_v22  ;;  %v6079_v17 = vunpack.i.h.bf16 %v10711_v29  ;;  %6774 = vperm.xlu0 %6772, %v9235_v53  }
 0x2ce   : > { %v6463_v62 = vunpack.i.h.bf16 %v10708_v16  ;;  %v9330_v2 = vmul.f32 %v6045_v12, %v9132_v27  ;;  %v6078_v26 = vunpack.i.l.bf16 %v10711_v29  ;;  %v2545_v7 = vadd.f32 %v2541_v46, %v2516_v34 }
 0x2cf   : > { %v9306_v44 = vadd.f32 %v3130_v41, %v3097_v1  ;;  %v9308_v25 = vadd.f32 %v3131_v6, %v3098_v49  ;;  %v9310_v19 = vpop.permute.xlu1 %6133  ;;  %v2544_v6 = vadd.f32 %v2540_v9, %v2515_v36  ;;  %v10710_v41 = vld [vmem:[#allocation67_spill] sm:$0xff]  ;;  %v9335_v50 = vmul.f32 %v6044_v40, %v9132_v27  ;;  %v10712_v1 = vld [vmem:[#allocation85_spill] sm:$0xff] }
 0x2d0   : > { %6494 = vperm.xlu1 %6487, %v10656_v59   ;;  %v5982_v54 = vunpack.i.l.bf16 %v10710_v41  ;;  %v6462_v33 = vunpack.i.l.bf16 %v10708_v16  ;;  %v5983_v35 = vunpack.i.h.bf16 %v10710_v41  ;;  %v9340_v11 = vmul.f32 %v6463_v62, %v9326_v42  ;;  %v9357_v62 = vld [vmem:[%s10067_s1 + $0x5a] ss:$0 sm:$0xff] }
 0x2d1   : > { %v2573_v4 = vadd.f32 %v2569_v20, %v2544_v6  ;;  %v2574_v9 = vadd.f32 %v2570_v10, %v2545_v7  ;;  %v5999_v49 = vunpack.i.l.bf16 %v10712_v1  ;;  %v6000_v46 = vunpack.i.h.bf16 %v10712_v1 }
 0x2d2   : > { %v2627_v36 = vmul.f32 %v5982_v54, %v9063_v5  ;;  %v9349_v20 = vmul.f32 %v6079_v17, %v9168_v21  ;;  %v9352_v16 = vmul.f32 %v6078_v26, %v9168_v21  ;;  %v2628_v34 = vmul.f32 %v5983_v35, %v9063_v5  ;;  %v10714_v17 = vld [vmem:[#allocation41_spill] sm:$0xff] }
 0x2d3   : > { %v2602_v10 = vadd.f32 %v2598_v30, %v2573_v4  ;;  %v3254_v54 = vrot.slane %v9340_v11, 1  ;;  %v3245_v29 = vmul.f32 %v6462_v33, %v9326_v42  ;;  %v2603_v21 = vadd.f32 %v9266_v3, %v2574_v9  ;;  %v9374_v4 = vld [vmem:[%s10067_s1 + $0x5b] ss:$0 sm:$0xff] }
 0x2d4   : > { %6519 = vset.pattern.permute.xlu1 %v10713_v18  ;;  %v6140_v12 = vpop.permute.xlu1 %6139  ;;  %v2656_v26 = vmul.f32 %v5999_v49, %v10714_v17  ;;  %v2657_v1 = vmul.f32 %v6000_v46, %v10714_v17  ;;  %v6033_v5 = vunpack.i.l.bf16 %v9036_v24  ;;  %v10715_v30 = vmov 15   ;;  %v10717_v46 = vld [vmem:[#allocation40_spill] sm:$0xff] }
 0x2d5   : > { %v6142_v27 = vunpack.i.h.bf16 %v6140_v12  ;;  %v6141_v40 = vunpack.i.l.bf16 %v6140_v12  ;;  %6521 = vperm.xlu1 %6519, %v10656_v59   ;;  %v2631_v7 = vadd.f32 %v2627_v36, %v2602_v10  ;;  %v6034_v12 = vunpack.i.h.bf16 %v9036_v24 }
 0x2d6   : > { %v10716_v49 = vmov 4   ;;  %v2632_v36 = vadd.f32 %v2628_v34, %v2603_v21  ;;  %v6027_v24 = vunpack.i.l.bf16 %v10717_v46 }
 0x2d7   : > { %v3164_v6 = vmul.f32 %v6142_v27, %v9357_v62  ;;  %v3163_v41 = vmul.f32 %v6141_v40, %v9357_v62  ;;  %6790 = vset.pattern.permute.xlu0 %v10716_v49  ;;  %v6028_v27 = vunpack.i.h.bf16 %v10717_v46  ;;  %v3253_v40 = vrot.slane %v3245_v29, 1 }
 0x2d8   : > { %v2660_v10 = vadd.f32 %v2656_v26, %v2631_v7  ;;  %v2661_v18 = vadd.f32 %v2657_v1, %v2632_v36  ;;  %v10719_v46 = vmov 16   ;;  %v2714_v26 = vmul.f32 %v6027_v24, %v9110_v38  ;;  %6792 = vperm.xlu0 %6790, %v9290_v15  }
 0x2d9   : > { %6525 = vset.pattern.permute.xlu1 %v10715_v30  ;;  %v6157_v35 = vpop.permute.xlu1 %6156  ;;  %v3172_v33 = vrot.slane %v3164_v6, 1  ;;  %v3171_v11 = vrot.slane %v3163_v41, 1  ;;  %v10718_v6 = vld [vmem:[#allocation77_spill] sm:$0xff]  ;;  %v2715_v29 = vmul.f32 %v6028_v27, %v9110_v38  ;;  %v6062_v7 = vunpack.i.h.bf16 %v9119_v31 }
 0x2da   : > { %v6159_v3 = vunpack.i.h.bf16 %v6157_v35  ;;  %v6158_v9 = vunpack.i.l.bf16 %v6157_v35  ;;  %6527 = vperm.xlu1 %6525, %v10652_v56   ;;  %v2756_v41 = vmul.f32 %v6034_v12, %v10718_v6  ;;  %v2755_v35 = vmul.f32 %v6033_v5, %v10718_v6  ;;  %v10721_v6 = vld [vmem:[#allocation99_spill] sm:$0xff] }
 0x2db   : > { %v3179_v49 = vadd.f32 %v3171_v11, %v9306_v44  ;;  %v3180_v34 = vadd.f32 %v3172_v33, %v9308_v25  ;;  %v2689_v1 = vadd.f32 %v9321_v61, %v2660_v10  ;;  %v6061_v44 = vunpack.i.l.bf16 %v9119_v31 }
 0x2dc   : > { %v3205_v17 = vmul.f32 %v6159_v3, %v9374_v4  ;;  %v3204_v22 = vmul.f32 %v6158_v9, %v9374_v4  ;;  %v2764_v5 = vrot.slane %v2756_v41, 1  ;;  %v2763_v33 = vrot.slane %v2755_v35, 1  ;;  %v10720_v3 = vld [vmem:[#allocation42_spill] sm:$0xff]  ;;  %6807 = vset.pattern.permute.xlu0 %v10633_v63  ;;  %v10722_v35 = vld [vmem:[#allocation19_spill] sm:$0xff] }
 0x2dd   : > { %v9384_v48 = vpop.permute.xlu1 %6161  ;;  %v6068_v11 = vunpack.i.h.bf16 %v9146_v37  ;;  %v6518_v38 = vunpack.i.h.bf16 %v10720_v3  ;;  %v6067_v9 = vunpack.i.l.bf16 %v9146_v37  ;;  %v6517_v31 = vunpack.i.l.bf16 %v10720_v3  ;;  %6809 = vperm.xlu0 %6807, %v9235_v53  }
 0x2de   : > { %v3213_v21 = vrot.slane %v3205_v17, 1  ;;  %v3212_v28 = vrot.slane %v3204_v22, 1  ;;  %6542 = vset.pattern.permute.xlu1 %v10719_v46  ;;  %v2690_v22 = vadd.f32 %v9313_v47, %v2661_v18  ;;  %v2718_v47 = vadd.f32 %v2714_v26, %v2689_v1 }
 0x2df   : > { %6544 = vperm.xlu1 %6542, %v10652_v56   ;;  %v2838_v18 = vmul.f32 %v6062_v7, %v9139_v39  ;;  %v2804_v37 = vrot.slane %v9335_v50, 1  ;;  %v2879_v41 = vmul.f32 %v6068_v11, %v10721_v6  ;;  %v6095_v1 = vunpack.i.l.bf16 %v9198_v0 }
 0x2e0   : > { %v3220_v12 = vadd.f32 %v3212_v28, %v3179_v49  ;;  %v3221_v25 = vadd.f32 %v3213_v21, %v3180_v34  ;;  %v9409_v28 = vld [vmem:[%s10067_s1 + $0x5f] ss:$0 sm:$0xff]  ;;  %v2719_v61 = vadd.f32 %v2715_v29, %v2690_v22  ;;  %v2837_v49 = vmul.f32 %v6061_v44, %v9139_v39 }
 0x2e1   : > { %v2771_v10 = vadd.f32 %v2763_v33, %v2718_v47  ;;  %v6113_v34 = vunpack.i.h.bf16 %v10722_v35  ;;  %v6112_v21 = vunpack.i.l.bf16 %v10722_v35  ;;  %v9423_v46 = vmul.f32 %v6518_v38, %v9409_v28  ;;  %6825 = vset.pattern.permute.xlu0 %v10634_v43 }
 0x2e2   : > { %v9400_v36 = vpop.permute.xlu1 %6167  ;;  %v9402_v27 = vadd.f32 %v3253_v40, %v3220_v12  ;;  %v9404_v24 = vadd.f32 %v3254_v54, %v3221_v25  ;;  %v2928_v54 = vrot.slane %v9349_v20, 1  ;;  %v2927_v40 = vrot.slane %v9352_v16, 1  ;;  %v9436_v25 = vld [vmem:[%s10067_s1 + $0x5d] ss:$0 sm:$0xff]  ;;  %6827 = vperm.xlu0 %6825, %v9290_v15  }
 0x2e3   : > { %6549 = vperm.xlu1 %6542, %v10656_v59   ;;  %v2772_v17 = vadd.f32 %v2764_v5, %v2719_v61  ;;  %v2878_v29 = vmul.f32 %v6067_v9, %v10721_v6  ;;  %v9427_v50 = vmul.f32 %v6517_v31, %v9409_v28  ;;  %v2846_v20 = vrot.slane %v2838_v18, 1 }
 0x2e4   : > { %v6096_v39 = vunpack.i.h.bf16 %v9198_v0  ;;  %v10723_v16 = vmov 17   ;;  %v2845_v7 = vrot.slane %v2837_v49, 1  ;;  %v2812_v22 = vadd.f32 %v2804_v37, %v2771_v10 }
 0x2e5   : > { %v10724_v5 = vrot.slane %v9330_v2, 1  ;;  %v2887_v11 = vrot.slane %v2879_v41, 1  ;;  %v2886_v3 = vrot.slane %v2878_v29, 1  ;;  %v6101_v38 = vunpack.i.l.bf16 %v9217_v8 }
 0x2e6   : > { %v3377_v31 = vrot.slane %v9423_v46, 1  ;;  %v3376_v47 = vrot.slane %v9427_v50, 1  ;;  %v2961_v61 = vmul.f32 %v6096_v39, %v9184_v55  ;;  %v6102_v18 = vunpack.i.h.bf16 %v9217_v8  ;;  %v10726_v39 = vld [vmem:[#allocation86_spill] sm:$0xff]  ;;  %6842 = vset.pattern.permute.xlu0 %v10638_v45 }
 0x2e7   : > { %6564 = vset.pattern.permute.xlu1 %v10723_v16  ;;  %v6174_v26 = vpop.permute.xlu1 %6173  ;;  %v2813_v33 = vadd.f32 %v10724_v5, %v2772_v17  ;;  %v2853_v2 = vadd.f32 %v2845_v7, %v2812_v22  ;;  %v2960_v49 = vmul.f32 %v6095_v1, %v9184_v55  ;;  %v10725_v10 = vmov 18   ;;  %v9453_v17 = vld [vmem:[%s10067_s1 + $0x5e] ss:$0 sm:$0xff]  ;;  %6844 = vperm.xlu0 %6842, %v9235_v53  }
 0x2e8   : > { %v6176_v44 = vunpack.i.h.bf16 %v6174_v26  ;;  %v6175_v12 = vunpack.i.l.bf16 %v6174_v26  ;;  %6566 = vperm.xlu1 %6564, %v10656_v59   ;;  %v3001_v55 = vmul.f32 %v6101_v38, %v10726_v39  ;;  %v2969_v16 = vrot.slane %v2961_v61, 1 }
 0x2e9   : > { %v2854_v37 = vadd.f32 %v2846_v20, %v2813_v33  ;;  %v2894_v8 = vadd.f32 %v2886_v3, %v2853_v2  ;;  %v3002_v26 = vmul.f32 %v6102_v18, %v10726_v39  ;;  %v6129_v22 = vunpack.i.l.bf16 %v9288_v23 }
 0x2ea   : > { %v3287_v0 = vmul.f32 %v6176_v44, %v9436_v25  ;;  %v3286_v9 = vmul.f32 %v6175_v12, %v9436_v25  ;;  %v2968_v44 = vrot.slane %v2960_v49, 1  ;;  %v6130_v12 = vunpack.i.h.bf16 %v9288_v23 }
 0x2eb   : > { %v2895_v20 = vadd.f32 %v2887_v11, %v2854_v37  ;;  %v3009_v18 = vrot.slane %v3001_v55, 1  ;;  %v6135_v2 = vunpack.i.l.bf16 %v9310_v19  ;;  %v3010_v23 = vrot.slane %v3002_v26, 1  ;;  %6860 = vset.pattern.permute.xlu0 %v10683_v57 }
 0x2ec   : > { %6570 = vset.pattern.permute.xlu1 %v10725_v10  ;;  %v6211_v6 = vpop.permute.xlu1 %6210  ;;  %v3295_v41 = vrot.slane %v3287_v0, 1  ;;  %v3294_v46 = vrot.slane %v3286_v9, 1  ;;  %v10727_v0 = vmov 19   ;;  %v2935_v9 = vadd.f32 %v2927_v40, %v2894_v8  ;;  %6862 = vperm.xlu0 %6860, %v9290_v15  }
 0x2ed   : > { %v6213_v29 = vunpack.i.h.bf16 %v6211_v6  ;;  %v6212_v50 = vunpack.i.l.bf16 %v6211_v6  ;;  %6572 = vperm.xlu1 %6570, %v10652_v56   ;;  %v2936_v61 = vadd.f32 %v2928_v54, %v2895_v20  ;;  %v6136_v37 = vunpack.i.h.bf16 %v9310_v19 }
 0x2ee   : > { %v3302_v33 = vadd.f32 %v3294_v46, %v9402_v27  ;;  %v3303_v11 = vadd.f32 %v3295_v41, %v9404_v24  ;;  %v3043_v24 = vmul.f32 %v6113_v34, %v9259_v51  ;;  %v3042_v54 = vmul.f32 %v6112_v21, %v9259_v51  ;;  %v10728_v51 = vld [vmem:[#allocation23_spill] sm:$0xff] }
 0x2ef   : > { %v3328_v7 = vmul.f32 %v6213_v29, %v9453_v17  ;;  %v3327_v1 = vmul.f32 %v6212_v50, %v9453_v17  ;;  %v2976_v40 = vadd.f32 %v2968_v44, %v2935_v9  ;;  %v3083_v10 = vmul.f32 %v6129_v22, %v9279_v14 }
 0x2f0   : > { %v9463_v5 = vpop.permute.xlu1 %6215  ;;  %v2977_v6 = vadd.f32 %v2969_v16, %v2936_v61  ;;  %v3084_v41 = vmul.f32 %v6130_v12, %v9279_v14  ;;  %v3124_v8 = vmul.f32 %v6135_v2, %v9230_v58  ;;  %v6147_v35 = vunpack.i.h.bf16 %v10728_v51  ;;  %6877 = vset.pattern.permute.xlu0 %v10701_v13 }
 0x2f1   : > { %v3336_v3 = vrot.slane %v3328_v7, 1  ;;  %v3335_v38 = vrot.slane %v3327_v1, 1  ;;  %6587 = vset.pattern.permute.xlu1 %v10727_v0  ;;  %v3017_v50 = vadd.f32 %v3009_v18, %v2976_v40  ;;  %v3125_v21 = vmul.f32 %v6136_v37, %v9230_v58  ;;  %v10730_v0 = vld [vmem:[#allocation27_spill] sm:$0xff]  ;;  %6879 = vperm.xlu0 %6877, %v9235_v53  }
 0x2f2   : > { %6589 = vperm.xlu1 %6587, %v10652_v56   ;;  %v3018_v34 = vadd.f32 %v3010_v23, %v2977_v6  ;;  %v3050_v20 = vrot.slane %v3042_v54, 1  ;;  %v6146_v14 = vunpack.i.l.bf16 %v10728_v51  ;;  %v3091_v39 = vrot.slane %v3083_v10, 1 }
 0x2f3   : > { %v3343_v49 = vadd.f32 %v3335_v38, %v3302_v33  ;;  %v3344_v27 = vadd.f32 %v3336_v3, %v3303_v11  ;;  %v3092_v55 = vrot.slane %v3084_v41, 1  ;;  %v6164_v16 = vunpack.i.h.bf16 %v9384_v48 }
 0x2f4   : > { %v3058_v26 = vadd.f32 %v3050_v20, %v3017_v50  ;;  %v3132_v7 = vrot.slane %v3124_v8, 1  ;;  %v6169_v1 = vunpack.i.l.bf16 %v9400_v36  ;;  %v10729_v44 = vmov 20  }
 0x2f5   : > { %v9480_v46 = vpop.permute.xlu1 %6221  ;;  %v9482_v29 = vadd.f32 %v3376_v47, %v3343_v49  ;;  %v9484_v19 = vadd.f32 %v3377_v31, %v3344_v27  ;;  %v6163_v47 = vunpack.i.l.bf16 %v9384_v48  ;;  %v3051_v31 = vrot.slane %v3043_v24, 1  ;;  %6895 = vset.pattern.permute.xlu0 %v10704_v32 }
 0x2f6   : > { %6594 = vperm.xlu1 %6587, %v10656_v59   ;;  %v3166_v58 = vmul.f32 %v6147_v35, %v9357_v62  ;;  %v3133_v33 = vrot.slane %v3125_v21, 1  ;;  %v6170_v11 = vunpack.i.h.bf16 %v9400_v36  ;;  %v3165_v3 = vmul.f32 %v6146_v14, %v9357_v62  ;;  %6897 = vperm.xlu0 %6895, %v9290_v15  }
 0x2f7   : > { %v3059_v22 = vadd.f32 %v3051_v31, %v3018_v34  ;;  %v3099_v38 = vadd.f32 %v3091_v39, %v3058_v26  ;;  %v3206_v48 = vmul.f32 %v6163_v47, %v9374_v4  ;;  %v6181_v9 = vunpack.i.h.bf16 %v10730_v0 }
 0x2f8   : > { %v3207_v18 = vmul.f32 %v6164_v16, %v9374_v4  ;;  %v6180_v2 = vunpack.i.l.bf16 %v10730_v0  ;;  %v3247_v37 = vmul.f32 %v6169_v1, %v9326_v42  ;;  %v3248_v49 = vmul.f32 %v6170_v11, %v9326_v42  ;;  %v10732_v42 = vld [vmem:[#allocation60_spill] sm:$0xff]  ;;  %v5192_v1 = vld [vmem:[%s10067_s1 + $0x60] ss:$0 sm:$0xff] }
 0x2f9   : > { %v3100_v61 = vadd.f32 %v3092_v55, %v3059_v22  ;;  %v3140_v23 = vadd.f32 %v3132_v7, %v3099_v38  ;;  %v10731_v27 = vmov 21   ;;  %v3174_v24 = vrot.slane %v3166_v58, 1 }
 0x2fa   : > { %6603 = vset.pattern.permute.xlu1 %v10729_v44  ;;  %v9496_v12 = vpop.permute.xlu1 %6227  ;;  %v3173_v54 = vrot.slane %v3165_v3, 1  ;;  %v3214_v40 = vrot.slane %v3206_v48, 1  ;;  %v6217_v10 = vunpack.i.l.bf16 %v9463_v5  ;;  %v3289_v4 = vmul.f32 %v6181_v9, %v9436_v25  ;;  %v10734_v44 = vld [vmem:[#allocation80_spill] sm:$0xff]  ;;  %6912 = vset.pattern.permute.xlu0 %v10715_v30 }
 0x2fb   : > { %6605 = vperm.xlu1 %6603, %v10656_v59   ;;  %v3141_v36 = vadd.f32 %v3133_v33, %v3100_v61  ;;  %v3215_v6 = vrot.slane %v3207_v18, 1  ;;  %v6218_v41 = vunpack.i.h.bf16 %v9463_v5  ;;  %v3288_v50 = vmul.f32 %v6180_v2, %v9436_v25  ;;  %v5193_v61 = vld [vmem:[%s10067_s1 + $0x61] ss:$0 sm:$0xff]  ;;  %6914 = vperm.xlu0 %6912, %v9235_v53  }
 0x2fc   : > { %v6235_v8 = vunpack.i.h.bf16 %v10732_v42  ;;  %v3181_v51 = vadd.f32 %v3173_v54, %v3140_v23  ;;  %v3255_v35 = vrot.slane %v3247_v37, 1  ;;  %v3256_v21 = vrot.slane %v3248_v49, 1 }
 0x2fd   : > { %v3182_v34 = vadd.f32 %v3174_v24, %v3141_v36  ;;  %v3329_v39 = vmul.f32 %v6217_v10, %v9453_v17  ;;  %v6224_v47 = vunpack.i.h.bf16 %v9480_v46  ;;  %v6223_v31 = vunpack.i.l.bf16 %v9480_v46  ;;  %v10735_v10 = vld [vmem:[#allocation119_spill] sm:$0xff] }
 0x2fe   : > { %v3222_v14 = vadd.f32 %v3214_v40, %v3181_v51  ;;  %v10733_v55 = vmov 22   ;;  %v3330_v25 = vmul.f32 %v6218_v41, %v9453_v17  ;;  %v6230_v16 = vunpack.i.h.bf16 %v9496_v12  ;;  %v9536_v17 = vld [vmem:[%s10067_s1 + $0x62] ss:$0 sm:$0xff] }
 0x2ff   : > { %6609 = vset.pattern.permute.xlu1 %v10731_v27  ;;  %v6250_v62 = vpop.permute.xlu1 %6249  ;;  %v3223_v5 = vadd.f32 %v3215_v6, %v3182_v34  ;;  %v6229_v26 = vunpack.i.l.bf16 %v9496_v12  ;;  %v3297_v7 = vrot.slane %v3289_v4, 1  ;;  %v6234_v46 = vunpack.i.l.bf16 %v10732_v42 }
 0x300   : > { %6611 = vperm.xlu1 %6609, %v10652_v56   ;;  %v6262_v58 = vunpack.i.h.bf16 %v10734_v44  ;;  %v3263_v22 = vadd.f32 %v3255_v35, %v3222_v14  ;;  %v6261_v12 = vunpack.i.l.bf16 %v10734_v44  ;;  %v6252_v11 = vunpack.i.h.bf16 %v6250_v62 }
 0x301   : > { %v3264_v33 = vadd.f32 %v3256_v21, %v3223_v5  ;;  %v6251_v3 = vunpack.i.l.bf16 %v6250_v62  ;;  %v3296_v38 = vrot.slane %v3288_v50, 1  ;;  %v3337_v48 = vrot.slane %v3329_v39, 1  ;;  %v9559_v5 = vld [vmem:[%s10067_s1 + $0x65] ss:$0 sm:$0xff] }
 0x302   : > { %v3371_v0 = vmul.f32 %v6224_v47, %v9409_v28  ;;  %v3370_v9 = vmul.f32 %v6223_v31, %v9409_v28  ;;  %v3425_v2 = vmul.f32 %v6235_v8, %v5192_v1  ;;  %v3338_v23 = vrot.slane %v3330_v25, 1  ;;  %v10737_v31 = vld [vmem:[#allocation108_spill] sm:$0xff]  ;;  %v5195_v25 = vld [vmem:[%s10067_s1 + $0x63] ss:$0 sm:$0xff] }
 0x303   : > { %v9517_v20 = vpop.permute.xlu1 %6254  ;;  %v3423_v37 = vmul.f32 %v6230_v16, %v5192_v1  ;;  %v3422_v36 = vmul.f32 %v6229_v26, %v5192_v1  ;;  %v3424_v49 = vmul.f32 %v6234_v46, %v5192_v1  ;;  %v3481_v27 = vmul.f32 %v6262_v58, %v9536_v17 }
 0x304   : > { %6621 = vset.pattern.permute.xlu1 %v10733_v55  ;;  %v3304_v62 = vadd.f32 %v3296_v38, %v3263_v22  ;;  %v3480_v24 = vmul.f32 %v6261_v12, %v9536_v17  ;;  %v3305_v28 = vadd.f32 %v3297_v7, %v3264_v33  ;;  %v3452_v54 = vmul.f32 %v6252_v11, %v5193_v61 }
 0x305   : > { %6623 = vperm.xlu1 %6621, %v10652_v56   ;;  %v3451_v40 = vmul.f32 %v6251_v3, %v5193_v61  ;;  %v6327_v4 = vunpack.i.h.bf16 %v10735_v10  ;;  %v3379_v41 = vrot.slane %v3371_v0, 1  ;;  %v3378_v50 = vrot.slane %v3370_v9, 1  ;;  %v5196_v3 = vld [vmem:[%s10067_s1 + $0x64] ss:$0 sm:$0xff] }
 0x306   : > { %v3345_v6 = vadd.f32 %v3337_v48, %v3304_v62  ;;  %v3346_v42 = vadd.f32 %v3338_v23, %v3305_v28  ;;  %v3426_v8 = vadd.f32 %v3422_v36, %v9482_v29  ;;  %v3427_v51 = vadd.f32 %v3423_v37, %v9484_v19 }
 0x307   : > { %v10736_v35 = vmov 23   ;;  %v6257_v21 = vunpack.i.h.bf16 %v9517_v20  ;;  %v6256_v14 = vunpack.i.l.bf16 %v9517_v20  ;;  %v6300_v55 = vunpack.i.h.bf16 %v10737_v31 }
 0x308   : > { %v6287_v18 = vpop.permute.xlu1 %6286  ;;  %v3455_v29 = vadd.f32 %v3451_v40, %v3426_v8  ;;  %v3456_v19 = vadd.f32 %v3452_v54, %v3427_v51  ;;  %v3386_v20 = vadd.f32 %v3378_v50, %v3345_v6  ;;  %v3387_v16 = vadd.f32 %v3379_v41, %v3346_v42 }
 0x309   : > { %6628 = vperm.xlu1 %6621, %v10656_v59   ;;  %v6289_v26 = vunpack.i.h.bf16 %v6287_v18  ;;  %v6288_v7 = vunpack.i.l.bf16 %v6287_v18  ;;  %v6299_v1 = vunpack.i.l.bf16 %v10737_v31  ;;  %v6326_v46 = vunpack.i.l.bf16 %v10735_v10 }
 0x30a   : > { %v3568_v22 = vmul.f32 %v6327_v4, %v9559_v5  ;;  %v3454_v12 = vmul.f32 %v6257_v21, %v5193_v61  ;;  %v3453_v33 = vmul.f32 %v6256_v14, %v5193_v61  ;;  %v10738_v11 = vmov 24  }
 0x30b   : > { %v3484_v48 = vadd.f32 %v3480_v24, %v3455_v29  ;;  %v3485_v0 = vadd.f32 %v3481_v27, %v3456_v19  ;;  %v3428_v23 = vadd.f32 %v3424_v49, %v3386_v20  ;;  %v3429_v37 = vadd.f32 %v3425_v2, %v3387_v16  ;;  %v5198_v19 = vld [vmem:[%s10067_s1 + $0x66] ss:$0 sm:$0xff] }
 0x30c   : > { %v3483_v36 = vmul.f32 %v6289_v26, %v9536_v17  ;;  %v3482_v61 = vmul.f32 %v6288_v7, %v9536_v17  ;;  %v3567_v10 = vmul.f32 %v6326_v46, %v9559_v5  ;;  %v10739_v8 = vmov 25  }
 0x30d   : > { %6638 = vset.pattern.permute.xlu1 %v10736_v35  ;;  %v6293_v34 = vpop.permute.xlu1 %6292  ;;  %v3457_v24 = vadd.f32 %v3453_v33, %v3428_v23  ;;  %v3458_v27 = vadd.f32 %v3454_v12, %v3429_v37  ;;  %v3512_v35 = vmul.f32 %v6300_v55, %v5195_v25  ;;  %v10741_v33 = vmov 26   ;;  %v10742_v23 = vld [vmem:[#allocation34_spill] sm:$0xff] }
 0x30e   : > { %v6295_v39 = vunpack.i.h.bf16 %v6293_v34  ;;  %v6294_v47 = vunpack.i.l.bf16 %v6293_v34  ;;  %6640 = vperm.xlu1 %6638, %v10656_v59   ;;  %v3511_v34 = vmul.f32 %v6299_v1, %v5195_v25  ;;  %v6392_v37 = vunpack.i.h.bf16 %v10742_v23 }
 0x30f   : > { %v3486_v2 = vadd.f32 %v3482_v61, %v3457_v24  ;;  %v3487_v49 = vadd.f32 %v3483_v36, %v3458_v27  ;;  %v5199_v36 = vld [vmem:[%s10067_s1 + $0x67] ss:$0 sm:$0xff] }
 0x310   : > { %v3510_v44 = vmul.f32 %v6295_v39, %v5195_v25  ;;  %v3509_v58 = vmul.f32 %v6294_v47, %v5195_v25  ;;  %v10740_v39 = vld [vmem:[#allocation36_spill] sm:$0xff] }
 0x311   : > { %v6365_v47 = vunpack.i.h.bf16 %v10740_v39  ;;  %v6364_v31 = vunpack.i.l.bf16 %v10740_v39  ;;  %v3515_v20 = vadd.f32 %v3511_v34, %v3486_v2  ;;  %v3516_v16 = vadd.f32 %v3512_v35, %v3487_v49  ;;  %v10744_v49 = vld [vmem:[#allocation44_spill] sm:$0xff] }
 0x312   : > { %6644 = vset.pattern.permute.xlu1 %v10738_v11  ;;  %v6315_v38 = vpop.permute.xlu1 %6314  ;;  %v3513_v62 = vadd.f32 %v3509_v58, %v3484_v48  ;;  %v3514_v28 = vadd.f32 %v3510_v44, %v3485_v0  ;;  %v10743_v2 = vmov 28   ;;  %v6425_v35 = vunpack.i.h.bf16 %v10744_v49 }
 0x313   : > { %v6317_v9 = vunpack.i.h.bf16 %v6315_v38  ;;  %v6316_v18 = vunpack.i.l.bf16 %v6315_v38  ;;  %6646 = vperm.xlu1 %6644, %v10652_v56   ;;  %v3599_v44 = vmul.f32 %v6365_v47, %v5198_v19  ;;  %v3598_v58 = vmul.f32 %v6364_v31, %v5198_v19 }
 0x314   : > { %v6424_v34 = vunpack.i.l.bf16 %v10744_v49 }
 0x315   : > { %v3539_v54 = vmul.f32 %v6317_v9, %v5196_v3  ;;  %v3538_v40 = vmul.f32 %v6316_v18, %v5196_v3 }
 0x316   : > { %v6320_v4 = vpop.permute.xlu1 %6319 }
 0x317   : > { %v3542_v6 = vadd.f32 %v3538_v40, %v3513_v62  ;;  %v3543_v41 = vadd.f32 %v3539_v54, %v3514_v28  ;;  %v6322_v50 = vunpack.i.h.bf16 %v6320_v4  ;;  %v6321_v42 = vunpack.i.l.bf16 %v6320_v4  ;;  %6656 = vset.pattern.permute.xlu1 %v10739_v8  ;;  %v5200_v62 = vld [vmem:[%s10067_s1 + $0x68] ss:$0 sm:$0xff] }
 0x318   : > { %6658 = vperm.xlu1 %6656, %v10652_v56   ;;  %v3655_v4 = vmul.f32 %v6392_v37, %v5200_v62 }
 0x319   : > { %v3571_v17 = vadd.f32 %v3567_v10, %v3542_v6  ;;  %v3572_v51 = vadd.f32 %v3568_v22, %v3543_v41  ;;  %v3541_v21 = vmul.f32 %v6322_v50, %v5196_v3  ;;  %v3540_v14 = vmul.f32 %v6321_v42, %v5196_v3 }
 0x31b   : > { %v6352_v29 = vpop.permute.xlu1 %6351  ;;  %v3544_v55 = vadd.f32 %v3540_v14, %v3515_v20  ;;  %v3545_v25 = vadd.f32 %v3541_v21, %v3516_v16 }
 0x31c   : > { %v6354_v26 = vunpack.i.h.bf16 %v6352_v29  ;;  %v6353_v7 = vunpack.i.l.bf16 %v6352_v29  ;;  %6663 = vperm.xlu1 %6656, %v10656_v59  }
 0x31e   : > { %v3570_v1 = vmul.f32 %v6354_v26, %v9559_v5  ;;  %v3569_v46 = vmul.f32 %v6353_v7, %v9559_v5  ;;  %v6391_v5 = vunpack.i.l.bf16 %v10742_v23 }
 0x320   : > { %v3573_v22 = vadd.f32 %v3569_v46, %v3544_v55  ;;  %v3574_v12 = vadd.f32 %v3570_v1, %v3545_v25  ;;  %6673 = vset.pattern.permute.xlu1 %v10741_v33  ;;  %v6358_v11 = vpop.permute.xlu1 %6357  ;;  %v3654_v6 = vmul.f32 %v6391_v5, %v5200_v62  ;;  %v10745_v33 = vld [vmem:[#allocation32_spill] sm:$0xff] }
 0x321   : > { %v6360_v3 = vunpack.i.h.bf16 %v6358_v11  ;;  %v6359_v38 = vunpack.i.l.bf16 %v6358_v11  ;;  %6675 = vperm.xlu1 %6673, %v10656_v59   ;;  %v6447_v11 = vunpack.i.h.bf16 %v10745_v33 }
 0x322   : > { %v3602_v48 = vadd.f32 %v3598_v58, %v3573_v22  ;;  %v3603_v0 = vadd.f32 %v3599_v44, %v3574_v12 }
 0x323   : > { %v3597_v9 = vmul.f32 %v6360_v3, %v5198_v19  ;;  %v3596_v18 = vmul.f32 %v6359_v38, %v5198_v19  ;;  %v6446_v3 = vunpack.i.l.bf16 %v10745_v33  ;;  %v5203_v38 = vld [vmem:[%s10067_s1 + $0x6b] ss:$0 sm:$0xff] }
 0x324   : > { %v3742_v5 = vmul.f32 %v6447_v11, %v5203_v38  ;;  %v10751_v11 = vmov 1  }
 0x325   : > { %6679 = vset.pattern.permute.xlu1 %v10619_v60  ;;  %v6380_v61 = vpop.permute.xlu1 %6379  ;;  %v3600_v40 = vadd.f32 %v3596_v18, %v3571_v17  ;;  %v3601_v10 = vadd.f32 %v3597_v9, %v3572_v51  ;;  %v5201_v51 = vld [vmem:[%s10067_s1 + $0x69] ss:$0 sm:$0xff]  ;;  %v10746_v9 = vmov 30  }
 0x326   : > { %v6382_v28 = vunpack.i.h.bf16 %v6380_v61  ;;  %v6381_v54 = vunpack.i.l.bf16 %v6380_v61  ;;  %6681 = vperm.xlu1 %6679, %v10652_v56   ;;  %v3686_v19 = vmul.f32 %v6425_v35, %v5201_v51  ;;  %v3685_v20 = vmul.f32 %v6424_v34, %v5201_v51 }
 0x328   : > { %v3626_v24 = vmul.f32 %v6382_v28, %v5199_v36  ;;  %v3625_v27 = vmul.f32 %v6381_v54, %v5199_v36 }
 0x329   : > { %v6385_v60 = vpop.permute.xlu1 %6384 }
 0x32a   : > { %v3629_v41 = vadd.f32 %v3625_v27, %v3600_v40  ;;  %v3630_v50 = vadd.f32 %v3626_v24, %v3601_v10  ;;  %v6387_v42 = vunpack.i.h.bf16 %v6385_v60  ;;  %v6386_v8 = vunpack.i.l.bf16 %v6385_v60  ;;  %6691 = vset.pattern.permute.xlu1 %v10743_v2  ;;  %v10748_v60 = vld [vmem:[#allocation46_spill] sm:$0xff]  ;;  %v5204_v2 = vld [vmem:[%s10067_s1 + $0x6c] ss:$0 sm:$0xff] }
 0x32b   : > { %6693 = vperm.xlu1 %6691, %v10652_v56  }
 0x32c   : > { %v3658_v21 = vadd.f32 %v3654_v6, %v3629_v41  ;;  %v3659_v17 = vadd.f32 %v3655_v4, %v3630_v50  ;;  %v3628_v14 = vmul.f32 %v6387_v42, %v5199_v36  ;;  %v3627_v39 = vmul.f32 %v6386_v8, %v5199_v36 }
 0x32d   : > { %v3741_v36 = vmul.f32 %v6446_v3, %v5203_v38  ;;  %v10747_v6 = vmov 31   ;;  %v6480_v41 = vunpack.i.h.bf16 %v10748_v60  ;;  %v6479_v50 = vunpack.i.l.bf16 %v10748_v60  ;;  %v5205_v3 = vld [vmem:[%s10067_s1 + $0x6d] ss:$0 sm:$0xff]  ;;  %v5207_v60 = vld [vmem:[%s10067_s1 + $0x6f] ss:$0 sm:$0xff] }
 0x32e   : > { %v6412_v47 = vpop.permute.xlu1 %6411  ;;  %v3631_v16 = vadd.f32 %v3627_v39, %v3602_v48  ;;  %v3632_v26 = vadd.f32 %v3628_v14, %v3603_v0 }
 0x32f   : > { %v6414_v31 = vunpack.i.h.bf16 %v6412_v47  ;;  %v6413_v29 = vunpack.i.l.bf16 %v6412_v47  ;;  %6698 = vperm.xlu1 %6691, %v10656_v59   ;;  %v3772_v14 = vmul.f32 %v6479_v50, %v5204_v2 }
 0x331   : > { %v3657_v7 = vmul.f32 %v6414_v31, %v5200_v62  ;;  %v3656_v55 = vmul.f32 %v6413_v29, %v5200_v62 }
 0x333   : > { %v3660_v25 = vadd.f32 %v3656_v55, %v3631_v16  ;;  %v3661_v1 = vadd.f32 %v3657_v7, %v3632_v26  ;;  %6708 = vset.pattern.permute.xlu1 %v10622_v52  ;;  %v6418_v46 = vpop.permute.xlu1 %6417  ;;  %v5202_v52 = vld [vmem:[%s10067_s1 + $0x6a] ss:$0 sm:$0xff] }
 0x334   : > { %v6420_v44 = vunpack.i.h.bf16 %v6418_v46  ;;  %v6419_v58 = vunpack.i.l.bf16 %v6418_v46  ;;  %6710 = vperm.xlu1 %6708, %v10656_v59  }
 0x335   : > { %v3689_v22 = vadd.f32 %v3685_v20, %v3660_v25  ;;  %v3690_v12 = vadd.f32 %v3686_v19, %v3661_v1  ;;  %v10749_v20 = vmov 0  }
 0x336   : > { %v3684_v48 = vmul.f32 %v6420_v44, %v5201_v51  ;;  %v3683_v0 = vmul.f32 %v6419_v58, %v5201_v51  ;;  %v3773_v51 = vmul.f32 %v6480_v41, %v5204_v2 }
 0x338   : > { %6714 = vset.pattern.permute.xlu1 %v10746_v9  ;;  %v6435_v18 = vpop.permute.xlu1 %6434  ;;  %v3687_v61 = vadd.f32 %v3683_v0, %v3658_v21  ;;  %v3688_v62 = vadd.f32 %v3684_v48, %v3659_v17 }
 0x339   : > { %v6437_v23 = vunpack.i.h.bf16 %v6435_v18  ;;  %v6436_v37 = vunpack.i.l.bf16 %v6435_v18  ;;  %6716 = vperm.xlu1 %6714, %v10652_v56  }
 0x33b   : > { %v3713_v28 = vmul.f32 %v6437_v23, %v5202_v52  ;;  %v3712_v54 = vmul.f32 %v6436_v37, %v5202_v52 }
 0x33c   : > { %v6440_v40 = vpop.permute.xlu1 %6439 }
 0x33d   : > { %v3716_v10 = vadd.f32 %v3712_v54, %v3687_v61  ;;  %v3717_v24 = vadd.f32 %v3713_v28, %v3688_v62  ;;  %v6442_v27 = vunpack.i.h.bf16 %v6440_v40  ;;  %v6441_v4 = vunpack.i.l.bf16 %v6440_v40  ;;  %6726 = vset.pattern.permute.xlu1 %v10747_v6 }
 0x33e   : > { %6728 = vperm.xlu1 %6726, %v10652_v56   ;;  %v10752_v28 = vmov 2  }
 0x33f   : > { %v3745_v42 = vadd.f32 %v3741_v36, %v3716_v10  ;;  %v3746_v8 = vadd.f32 %v3742_v5, %v3717_v24  ;;  %v3715_v49 = vmul.f32 %v6442_v27, %v5202_v52  ;;  %v3714_v35 = vmul.f32 %v6441_v4, %v5202_v52  ;;  %v10753_v27 = vld [vmem:[#allocation63_spill] sm:$0xff] }
 0x340   : > { %v6535_v4 = vunpack.i.h.bf16 %v10753_v27  ;;  %v6534_v6 = vunpack.i.l.bf16 %v10753_v27 }
 0x341   : > { %v6467_v34 = vpop.permute.xlu1 %6466  ;;  %v3718_v56 = vadd.f32 %v3714_v35, %v3689_v22  ;;  %v3719_v39 = vadd.f32 %v3715_v49, %v3690_v12  ;;  %v5206_v22 = vld [vmem:[%s10067_s1 + $0x6e] ss:$0 sm:$0xff] }
 0x342   : > { %v6469_v21 = vunpack.i.h.bf16 %v6467_v34  ;;  %v6468_v17 = vunpack.i.l.bf16 %v6467_v34  ;;  %6733 = vperm.xlu1 %6726, %v10656_v59   ;;  %v10750_v59 = vld [vmem:[#allocation52_spill] sm:$0xff]  ;;  %v3860_v49 = vmul.f32 %v6535_v4, %v5207_v60  ;;  %v3859_v35 = vmul.f32 %v6534_v6, %v5207_v60 }
 0x343   : > { %v6502_v44 = vunpack.i.h.bf16 %v10750_v59  ;;  %v6501_v58 = vunpack.i.l.bf16 %v10750_v59  ;;  %v5208_v59 = vld [vmem:[%s10067_s1 + $0x70] ss:$0 sm:$0xff] }
 0x344   : > { %v3744_v47 = vmul.f32 %v6469_v21, %v5203_v38  ;;  %v3743_v31 = vmul.f32 %v6468_v17, %v5203_v38 }
 0x345   : > { %v3829_v9 = vmul.f32 %v6502_v44, %v5206_v22  ;;  %v3828_v52 = vmul.f32 %v6501_v58, %v5206_v22 }
 0x346   : > { %v3747_v29 = vadd.f32 %v3743_v31, %v3718_v56  ;;  %v3748_v19 = vadd.f32 %v3744_v47, %v3719_v39  ;;  %6743 = vset.pattern.permute.xlu1 %v10749_v20  ;;  %v6473_v16 = vpop.permute.xlu1 %6472 }
 0x347   : > { %v6475_v26 = vunpack.i.h.bf16 %v6473_v16  ;;  %v6474_v7 = vunpack.i.l.bf16 %v6473_v16  ;;  %6745 = vperm.xlu1 %6743, %v9290_v15   ;;  %v10755_v16 = vld [vmem:[#allocation54_spill] sm:$0xff] }
 0x348   : > { %v3776_v55 = vadd.f32 %v3772_v14, %v3747_v29  ;;  %v3777_v25 = vadd.f32 %v3773_v51, %v3748_v19  ;;  %v10754_v14 = vmov 3  }
 0x349   : > { %v3771_v1 = vmul.f32 %v6475_v26, %v5204_v2  ;;  %v3770_v46 = vmul.f32 %v6474_v7, %v5204_v2  ;;  %v6557_v26 = vunpack.i.h.bf16 %v10755_v16  ;;  %v6556_v7 = vunpack.i.l.bf16 %v10755_v16 }
 0x34b   : > { %v3774_v12 = vadd.f32 %v3770_v46, %v3745_v42  ;;  %v3775_v33 = vadd.f32 %v3771_v1, %v3746_v8  ;;  %6749 = vset.pattern.permute.xlu1 %v10751_v11  ;;  %v6490_v38 = vpop.permute.xlu1 %6489  ;;  %v10756_v46 = vmov 4  }
 0x34c   : > { %v6492_v48 = vunpack.i.h.bf16 %v6490_v38  ;;  %v6491_v0 = vunpack.i.l.bf16 %v6490_v38  ;;  %6751 = vperm.xlu1 %6749, %v9235_v53  }
 0x34e   : > { %v3800_v18 = vmul.f32 %v6492_v48, %v5205_v3  ;;  %v3799_v23 = vmul.f32 %v6491_v0, %v5205_v3 }
 0x34f   : > { %v6495_v37 = vpop.permute.xlu1 %6494 }
 0x350   : > { %v3803_v5 = vadd.f32 %v3799_v23, %v3774_v12  ;;  %v3804_v36 = vadd.f32 %v3800_v18, %v3775_v33  ;;  %v6497_v61 = vunpack.i.h.bf16 %v6495_v37  ;;  %v6496_v62 = vunpack.i.l.bf16 %v6495_v37  ;;  %6761 = vset.pattern.permute.xlu1 %v10752_v28 }
 0x351   : > { %6763 = vperm.xlu1 %6761, %v9235_v53   ;;  %v10757_v18 = vmov 5  }
 0x352   : > { %v3802_v54 = vmul.f32 %v6497_v61, %v5205_v3  ;;  %v3801_v40 = vmul.f32 %v6496_v62, %v5205_v3  ;;  %v3832_v10 = vadd.f32 %v3828_v52, %v3803_v5  ;;  %v3833_v24 = vadd.f32 %v3829_v9, %v3804_v36  ;;  %v10758_v61 = vld [vmem:[#allocation68_spill] sm:$0xff] }
 0x353   : > { %v6580_v62 = vunpack.i.h.bf16 %v10758_v61  ;;  %v6579_v28 = vunpack.i.l.bf16 %v10758_v61  ;;  %v5213_v61 = vld [vmem:[%s10067_s1 + $0x75] ss:$0 sm:$0xff] }
 0x354   : > { %v3805_v41 = vadd.f32 %v3801_v40, %v3776_v55  ;;  %v3806_v50 = vadd.f32 %v3802_v54, %v3777_v25  ;;  %v6522_v42 = vpop.permute.xlu1 %6521  ;;  %v5209_v55 = vld [vmem:[%s10067_s1 + $0x71] ss:$0 sm:$0xff]  ;;  %v5210_v54 = vld [vmem:[%s10067_s1 + $0x72] ss:$0 sm:$0xff] }
 0x355   : > { %v6524_v8 = vunpack.i.h.bf16 %v6522_v42  ;;  %v6523_v2 = vunpack.i.l.bf16 %v6522_v42  ;;  %6768 = vperm.xlu1 %6761, %v9290_v15   ;;  %v3916_v12 = vmul.f32 %v6557_v26, %v5209_v55  ;;  %v3915_v33 = vmul.f32 %v6556_v7, %v5209_v55 }
 0x356   : > { %v3947_v6 = vmul.f32 %v6580_v62, %v5210_v54 }
 0x357   : > { %v3831_v34 = vmul.f32 %v6524_v8, %v5206_v22  ;;  %v3830_v21 = vmul.f32 %v6523_v2, %v5206_v22 }
 0x359   : > { %v3834_v17 = vadd.f32 %v3830_v21, %v3805_v41  ;;  %v3835_v51 = vadd.f32 %v3831_v34, %v3806_v50  ;;  %6778 = vset.pattern.permute.xlu1 %v10754_v14  ;;  %v6528_v56 = vpop.permute.xlu1 %6527 }
 0x35a   : > { %v6530_v39 = vunpack.i.h.bf16 %v6528_v56  ;;  %v6529_v47 = vunpack.i.l.bf16 %v6528_v56  ;;  %6780 = vperm.xlu1 %6778, %v9290_v15  }
 0x35b   : > { %v3863_v31 = vadd.f32 %v3859_v35, %v3834_v17  ;;  %v3864_v29 = vadd.f32 %v3860_v49, %v3835_v51 }
 0x35c   : > { %v3858_v19 = vmul.f32 %v6530_v39, %v5207_v60  ;;  %v3857_v20 = vmul.f32 %v6529_v47, %v5207_v60  ;;  %v3946_v60 = vmul.f32 %v6579_v28, %v5210_v54  ;;  %v5211_v39 = vld [vmem:[%s10067_s1 + $0x73] ss:$0 sm:$0xff] }
 0x35e   : > { %v3861_v25 = vadd.f32 %v3857_v20, %v3832_v10  ;;  %v3862_v1 = vadd.f32 %v3858_v19, %v3833_v24  ;;  %6784 = vset.pattern.permute.xlu1 %v10756_v46  ;;  %v6545_v44 = vpop.permute.xlu1 %6544 }
 0x35f   : > { %v6547_v58 = vunpack.i.h.bf16 %v6545_v44  ;;  %v6546_v22 = vunpack.i.l.bf16 %v6545_v44  ;;  %6786 = vperm.xlu1 %6784, %v9235_v53  }
 0x361   : > { %v3887_v11 = vmul.f32 %v6547_v58, %v5208_v59  ;;  %v3886_v3 = vmul.f32 %v6546_v22, %v5208_v59 }
 0x362   : > { %v6550_v38 = vpop.permute.xlu1 %6549 }
 0x363   : > { %v3890_v48 = vadd.f32 %v3886_v3, %v3861_v25  ;;  %v3891_v0 = vadd.f32 %v3887_v11, %v3862_v1  ;;  %v6552_v9 = vunpack.i.h.bf16 %v6550_v38  ;;  %v6551_v52 = vunpack.i.l.bf16 %v6550_v38  ;;  %6796 = vset.pattern.permute.xlu1 %v10757_v18  ;;  %v6600_v1 = vpop.permute.xlu0 %6599 }
 0x364   : > { %6798 = vperm.xlu1 %6796, %v9235_v53   ;;  %v10759_v25 = vmov 8   ;;  %v6601_v44 = vunpack.i.l.bf16 %v6600_v1 }
 0x365   : > { %v3889_v23 = vmul.f32 %v6552_v9, %v5208_v59  ;;  %v3888_v37 = vmul.f32 %v6551_v52, %v5208_v59  ;;  %v3919_v5 = vadd.f32 %v3915_v33, %v3890_v48  ;;  %v3920_v36 = vadd.f32 %v3916_v12, %v3891_v0  ;;  %v5212_v33 = vld [vmem:[%s10067_s1 + $0x74] ss:$0 sm:$0xff] }
 0x366   : > { %v6602_v59 = vunpack.i.h.bf16 %v6600_v1  ;;  %v4002_v9 = vmul.f32 %v6601_v44, %v5212_v33 }
 0x367   : > { %v3892_v40 = vadd.f32 %v3888_v37, %v3863_v31  ;;  %v3893_v10 = vadd.f32 %v3889_v23, %v3864_v29  ;;  %v6567_v24 = vpop.permute.xlu1 %6566  ;;  %v6618_v37 = vpop.permute.xlu0 %6617 }
 0x368   : > { %v6569_v27 = vunpack.i.h.bf16 %v6567_v24  ;;  %v6568_v4 = vunpack.i.l.bf16 %v6567_v24  ;;  %6803 = vperm.xlu1 %6796, %v9290_v15   ;;  %v4003_v0 = vmul.f32 %v6602_v59, %v5212_v33  ;;  %v6619_v24 = vunpack.i.l.bf16 %v6618_v37 }
 0x36a   : > { %v3918_v41 = vmul.f32 %v6569_v27, %v5209_v55  ;;  %v3917_v50 = vmul.f32 %v6568_v4, %v5209_v55 }
 0x36c   : > { %v3921_v42 = vadd.f32 %v3917_v50, %v3892_v40  ;;  %v3922_v8 = vadd.f32 %v3918_v41, %v3893_v10  ;;  %6813 = vset.pattern.permute.xlu1 %v10633_v63  ;;  %v6573_v2 = vpop.permute.xlu1 %6572  ;;  %v6620_v10 = vunpack.i.h.bf16 %v6618_v37 }
 0x36d   : > { %v6575_v49 = vunpack.i.h.bf16 %v6573_v2  ;;  %v6574_v35 = vunpack.i.l.bf16 %v6573_v2  ;;  %6815 = vperm.xlu1 %6813, %v9290_v15  }
 0x36e   : > { %v3950_v34 = vadd.f32 %v3946_v60, %v3921_v42  ;;  %v3951_v21 = vadd.f32 %v3947_v6, %v3922_v8  ;;  %v4034_v50 = vmul.f32 %v6620_v10, %v5213_v61  ;;  %v4033_v42 = vmul.f32 %v6619_v24, %v5213_v61 }
 0x36f   : > { %v3945_v17 = vmul.f32 %v6575_v49, %v5210_v54  ;;  %v3944_v51 = vmul.f32 %v6574_v35, %v5210_v54 }
 0x371   : > { %v3948_v14 = vadd.f32 %v3944_v51, %v3919_v5  ;;  %v3949_v56 = vadd.f32 %v3945_v17, %v3920_v36  ;;  %6819 = vset.pattern.permute.xlu1 %v10634_v43  ;;  %v6590_v47 = vpop.permute.xlu1 %6589  ;;  %v10760_v51 = vmov 11  }
 0x372   : > { %v6592_v31 = vunpack.i.h.bf16 %v6590_v47  ;;  %v6591_v63 = vunpack.i.l.bf16 %v6590_v47  ;;  %6821 = vperm.xlu1 %6819, %v9235_v53  }
 0x374   : > { %v3974_v29 = vmul.f32 %v6592_v31, %v5211_v39  ;;  %v3973_v19 = vmul.f32 %v6591_v63, %v5211_v39 }
 0x375   : > { %v6595_v20 = vpop.permute.xlu1 %6594 }
 0x376   : > { %v3977_v16 = vadd.f32 %v3973_v19, %v3948_v14  ;;  %v3978_v26 = vadd.f32 %v3974_v29, %v3949_v56  ;;  %v6597_v7 = vunpack.i.h.bf16 %v6595_v20  ;;  %v6596_v55 = vunpack.i.l.bf16 %v6595_v20  ;;  %6831 = vset.pattern.permute.xlu1 %v10759_v25 }
 0x377   : > { %6833 = vperm.xlu1 %6831, %v9235_v53  }
 0x378   : > { %v3976_v43 = vmul.f32 %v6597_v7, %v5211_v39  ;;  %v3975_v46 = vmul.f32 %v6596_v55, %v5211_v39  ;;  %v4006_v62 = vadd.f32 %v4002_v9, %v3977_v16  ;;  %v4007_v28 = vadd.f32 %v4003_v0, %v3978_v26  ;;  %v5215_v16 = vld [vmem:[%s10067_s1 + $0x77] ss:$0 sm:$0xff] }
 0x37a   : > { %v3979_v58 = vadd.f32 %v3975_v46, %v3950_v34  ;;  %v3980_v22 = vadd.f32 %v3976_v43, %v3951_v21  ;;  %v6606_v12 = vpop.permute.xlu1 %6605 }
 0x37b   : > { %v6608_v11 = vunpack.i.h.bf16 %v6606_v12  ;;  %v6607_v3 = vunpack.i.l.bf16 %v6606_v12  ;;  %6838 = vperm.xlu1 %6831, %v9290_v15  }
 0x37d   : > { %v4005_v38 = vmul.f32 %v6608_v11, %v5212_v33  ;;  %v4004_v48 = vmul.f32 %v6607_v3, %v5212_v33  ;;  %v5216_v33 = vld [vmem:[%s10067_s1 + $0x78] ss:$0 sm:$0xff] }
 0x37f   : > { %v4008_v52 = vadd.f32 %v4004_v48, %v3979_v58  ;;  %v4009_v18 = vadd.f32 %v4005_v38, %v3980_v22  ;;  %6848 = vset.pattern.permute.xlu1 %v10638_v45  ;;  %v6612_v23 = vpop.permute.xlu1 %6611  ;;  %v5214_v45 = vld [vmem:[%s10067_s1 + $0x76] ss:$0 sm:$0xff] }
 0x380   : > { %v6614_v5 = vunpack.i.h.bf16 %v6612_v23  ;;  %v6613_v36 = vunpack.i.l.bf16 %v6612_v23  ;;  %6850 = vperm.xlu1 %6848, %v9290_v15  }
 0x381   : > { %v4037_v14 = vadd.f32 %v4033_v42, %v4008_v52  ;;  %v4038_v56 = vadd.f32 %v4034_v50, %v4009_v18 }
 0x382   : > { %v4032_v54 = vmul.f32 %v6614_v5, %v5213_v61  ;;  %v4031_v40 = vmul.f32 %v6613_v36, %v5213_v61 }
 0x384   : > { %v4035_v27 = vadd.f32 %v4031_v40, %v4006_v62  ;;  %v4036_v4 = vadd.f32 %v4032_v54, %v4007_v28  ;;  %6854 = vset.pattern.permute.xlu1 %v10683_v57  ;;  %v6624_v6 = vpop.permute.xlu1 %6623  ;;  %v6635_v57 = vpop.permute.xlu0 %6634 }
 0x385   : > { %v6626_v60 = vunpack.i.h.bf16 %v6624_v6  ;;  %v6625_v41 = vunpack.i.l.bf16 %v6624_v6  ;;  %6856 = vperm.xlu1 %6854, %v9235_v53   ;;  %v6637_v31 = vunpack.i.h.bf16 %v6635_v57  ;;  %v6636_v63 = vunpack.i.l.bf16 %v6635_v57 }
 0x387   : > { %v4061_v8 = vmul.f32 %v6626_v60, %v5214_v45  ;;  %v4060_v2 = vmul.f32 %v6625_v41, %v5214_v45  ;;  %v4090_v1 = vmul.f32 %v6637_v31, %v5215_v16  ;;  %v4089_v43 = vmul.f32 %v6636_v63, %v5215_v16 }
 0x388   : > { %v6629_v49 = vpop.permute.xlu1 %6628  ;;  %v6653_v58 = vpop.permute.xlu0 %6652 }
 0x389   : > { %v4064_v35 = vadd.f32 %v4060_v2, %v4035_v27  ;;  %v4065_v34 = vadd.f32 %v4061_v8, %v4036_v4  ;;  %v6631_v21 = vunpack.i.h.bf16 %v6629_v49  ;;  %v6630_v17 = vunpack.i.l.bf16 %v6629_v49  ;;  %6866 = vset.pattern.permute.xlu1 %v10760_v51 }
 0x38a   : > { %6868 = vperm.xlu1 %6866, %v9235_v53   ;;  %v6655_v0 = vunpack.i.h.bf16 %v6653_v58  ;;  %v6654_v9 = vunpack.i.l.bf16 %v6653_v58  ;;  %v10761_v4 = vmov 14   ;;  %v9729_v58 = vld [vmem:[%s10067_s1 + $0x7c] ss:$0 sm:$0xff] }
 0x38b   : > { %v4063_v39 = vmul.f32 %v6631_v21, %v5214_v45  ;;  %v4062_v47 = vmul.f32 %v6630_v17, %v5214_v45  ;;  %v4093_v11 = vadd.f32 %v4089_v43, %v4064_v35  ;;  %v4094_v3 = vadd.f32 %v4090_v1, %v4065_v34  ;;  %v5218_v35 = vld [vmem:[%s10067_s1 + $0x7a] ss:$0 sm:$0xff] }
 0x38c   : > { %v4121_v36 = vmul.f32 %v6655_v0, %v5216_v33  ;;  %v4120_v61 = vmul.f32 %v6654_v9, %v5216_v33 }
 0x38d   : > { %v4066_v29 = vadd.f32 %v4062_v47, %v4037_v14  ;;  %v4067_v19 = vadd.f32 %v4063_v39, %v4038_v56  ;;  %v6641_v20 = vpop.permute.xlu1 %6640 }
 0x38e   : > { %v6643_v26 = vunpack.i.h.bf16 %v6641_v20  ;;  %v6642_v7 = vunpack.i.l.bf16 %v6641_v20  ;;  %6873 = vperm.xlu1 %6866, %v9290_v15  }
 0x390   : > { %v4092_v55 = vmul.f32 %v6643_v26, %v5215_v16  ;;  %v4091_v25 = vmul.f32 %v6642_v7, %v5215_v16 }
 0x392   : > { %v4095_v46 = vadd.f32 %v4091_v25, %v4066_v29  ;;  %v4096_v59 = vadd.f32 %v4092_v55, %v4067_v19  ;;  %6883 = vset.pattern.permute.xlu1 %v10701_v13  ;;  %v6647_v44 = vpop.permute.xlu1 %6646  ;;  %v5217_v13 = vld [vmem:[%s10067_s1 + $0x79] ss:$0 sm:$0xff]  ;;  %v5219_v29 = vld [vmem:[%s10067_s1 + $0x7b] ss:$0 sm:$0xff] }
 0x393   : > { %v6649_v22 = vunpack.i.h.bf16 %v6647_v44  ;;  %v6648_v12 = vunpack.i.l.bf16 %v6647_v44  ;;  %6885 = vperm.xlu1 %6883, %v9290_v15  }
 0x394   : > { %v4124_v45 = vadd.f32 %v4120_v61, %v4095_v46  ;;  %v4125_v6 = vadd.f32 %v4121_v36, %v4096_v59 }
 0x395   : > { %v4119_v38 = vmul.f32 %v6649_v22, %v5216_v33  ;;  %v4118_v48 = vmul.f32 %v6648_v12, %v5216_v33 }
 0x397   : > { %v4122_v52 = vadd.f32 %v4118_v48, %v4093_v11  ;;  %v4123_v18 = vadd.f32 %v4119_v38, %v4094_v3  ;;  %6889 = vset.pattern.permute.xlu1 %v10704_v32  ;;  %v6659_v23 = vpop.permute.xlu1 %6658  ;;  %v6670_v32 = vpop.permute.xlu0 %6669 }
 0x398   : > { %v6661_v37 = vunpack.i.h.bf16 %v6659_v23  ;;  %v6660_v5 = vunpack.i.l.bf16 %v6659_v23  ;;  %6891 = vperm.xlu1 %6889, %v9235_v53   ;;  %v6672_v50 = vunpack.i.h.bf16 %v6670_v32  ;;  %v6671_v42 = vunpack.i.l.bf16 %v6670_v32 }
 0x39a   : > { %v4148_v62 = vmul.f32 %v6661_v37, %v5217_v13  ;;  %v4147_v28 = vmul.f32 %v6660_v5, %v5217_v13  ;;  %v4176_v57 = vmul.f32 %v6671_v42, %v5218_v35 }
 0x39b   : > { %v6664_v54 = vpop.permute.xlu1 %6663  ;;  %v6688_v47 = vpop.permute.xlu0 %6687 }
 0x39c   : > { %v4151_v40 = vadd.f32 %v4147_v28, %v4122_v52  ;;  %v4152_v10 = vadd.f32 %v4148_v62, %v4123_v18  ;;  %v6666_v24 = vunpack.i.h.bf16 %v6664_v54  ;;  %v6665_v27 = vunpack.i.l.bf16 %v6664_v54  ;;  %6901 = vset.pattern.permute.xlu1 %v10761_v4 }
 0x39d   : > { %6903 = vperm.xlu1 %6901, %v9235_v53   ;;  %v4177_v53 = vmul.f32 %v6672_v50, %v5218_v35  ;;  %v6690_v7 = vunpack.i.h.bf16 %v6688_v47  ;;  %v6689_v55 = vunpack.i.l.bf16 %v6688_v47 }
 0x39e   : > { %v4150_v60 = vmul.f32 %v6666_v24, %v5217_v13  ;;  %v4149_v41 = vmul.f32 %v6665_v27, %v5217_v13  ;;  %v4180_v19 = vadd.f32 %v4176_v57, %v4151_v40  ;;  %v9758_v27 = vld [vmem:[%s10067_s1 + $0x80] ss:$0 sm:$0xff] }
 0x39f   : > { %v4181_v20 = vadd.f32 %v4177_v53, %v4152_v10  ;;  %v4208_v43 = vmul.f32 %v6690_v7, %v5219_v29  ;;  %v4207_v46 = vmul.f32 %v6689_v55, %v5219_v29  ;;  %v6705_v18 = vpop.permute.xlu0 %6704  ;;  %v9811_v7 = vld [vmem:[%s10067_s1 + $0x84] ss:$0 sm:$0xff] }
 0x3a0   : > { %v4153_v8 = vadd.f32 %v4149_v41, %v4124_v45  ;;  %v4154_v2 = vadd.f32 %v4150_v60, %v4125_v6  ;;  %v6676_v49 = vpop.permute.xlu1 %6675  ;;  %v6707_v32 = vunpack.i.h.bf16 %v6705_v18  ;;  %v6706_v45 = vunpack.i.l.bf16 %v6705_v18  ;;  %v9763_v6 = vld [vmem:[%s10067_s1 + $0x7d] ss:$0 sm:$0xff]  ;;  %v9829_v18 = vld [vmem:[%s10067_s1 + $0x87] ss:$0 sm:$0xff] }
 0x3a1   : > { %v6678_v34 = vunpack.i.h.bf16 %v6676_v49  ;;  %v6677_v21 = vunpack.i.l.bf16 %v6676_v49  ;;  %6908 = vperm.xlu1 %6901, %v9290_v15  }
 0x3a3   : > { %v4179_v17 = vmul.f32 %v6678_v34, %v5218_v35  ;;  %v4178_v51 = vmul.f32 %v6677_v21, %v5218_v35  ;;  %v6723_v23 = vpop.permute.xlu0 %6722  ;;  %v9779_v21 = vmul.f32 %v6707_v32, %v9763_v6 }
 0x3a4   : > { %v6725_v53 = vunpack.i.h.bf16 %v6723_v23  ;;  %v6724_v57 = vunpack.i.l.bf16 %v6723_v23 }
 0x3a5   : > { %v4182_v14 = vadd.f32 %v4178_v51, %v4153_v8  ;;  %v4183_v56 = vadd.f32 %v4179_v17, %v4154_v2  ;;  %6918 = vset.pattern.permute.xlu1 %v10715_v30  ;;  %v6682_v39 = vpop.permute.xlu1 %6681  ;;  %v9774_v8 = vld [vmem:[%s10067_s1 + $0x81] ss:$0 sm:$0xff]  ;;  %v9782_v17 = vmul.f32 %v6706_v45, %v9763_v6  ;;  %v9787_v51 = vld [vmem:[%s10067_s1 + $0x83] ss:$0 sm:$0xff]  ;;  %v9846_v45 = vld [vmem:[%s10067_s1 + $0x89] ss:$0 sm:$0xff] }
 0x3a6   : > { %v6684_v31 = vunpack.i.h.bf16 %v6682_v39  ;;  %v6683_v63 = vunpack.i.l.bf16 %v6682_v39  ;;  %6920 = vperm.xlu1 %6918, %v9290_v15   ;;  %v5222_v39 = vld [vmem:[%s10067_s1 + $0x7e] ss:$0 sm:$0xff] }
 0x3a7   : > { %v4211_v22 = vadd.f32 %v4207_v46, %v4182_v14  ;;  %v4212_v12 = vadd.f32 %v4208_v43, %v4183_v56  ;;  %v6740_v37 = vpop.permute.xlu0 %6739 }
 0x3a8   : > { %v4206_v16 = vmul.f32 %v6684_v31, %v5219_v29  ;;  %v4205_v26 = vmul.f32 %v6683_v63, %v5219_v29  ;;  %v6742_v10 = vunpack.i.h.bf16 %v6740_v37  ;;  %v6741_v24 = vunpack.i.l.bf16 %v6740_v37 }
 0x3aa   : > { %v9720_v25 = vadd.f32 %v4205_v26, %v4180_v19  ;;  %v9722_v1 = vadd.f32 %v4206_v16, %v4181_v20  ;;  %v9724_v30 = vpop.permute.xlu1 %6693  ;;  %v9766_v50 = vmul.f32 %v6742_v10, %v9758_v27  ;;  %v9769_v42 = vmul.f32 %v6741_v24, %v9758_v27 }
 0x3ab   : > { %v6758_v36 = vpop.permute.xlu0 %6757  ;;  %v6696_v19 = vunpack.i.h.bf16 %v9724_v30  ;;  %v6695_v20 = vunpack.i.l.bf16 %v9724_v30  ;;  %v9817_v30 = vmul.f32 %v6724_v57, %v5222_v39 }
 0x3ac   : > { %v6760_v60 = vunpack.i.h.bf16 %v6758_v36  ;;  %v6759_v41 = vunpack.i.l.bf16 %v6758_v36  ;;  %v4371_v47 = vrot.slane %v9766_v50, 1  ;;  %v4370_v31 = vrot.slane %v9769_v42, 1 }
 0x3ad   : > { %v4234_v10 = vmul.f32 %v6695_v20, %v9729_v58 }
 0x3ae   : > { %v6699_v59 = vpop.permute.xlu1 %6698  ;;  %v9790_v14 = vmul.f32 %v6760_v60, %v9774_v8  ;;  %v9793_v56 = vmul.f32 %v6759_v41, %v9774_v8 }
 0x3af   : > { %v6701_v15 = vunpack.i.h.bf16 %v6699_v59  ;;  %v6700_v44 = vunpack.i.l.bf16 %v6699_v59  ;;  %v6775_v62 = vpop.permute.xlu0 %6774 }
 0x3b0   : > { %v6777_v49 = vunpack.i.h.bf16 %v6775_v62  ;;  %v6776_v35 = vunpack.i.l.bf16 %v6775_v62 }
 0x3b1   : > { %v4237_v33 = vmul.f32 %v6701_v15, %v9729_v58  ;;  %v4236_v11 = vmul.f32 %v6700_v44, %v9729_v58 }
 0x3b2   : > { %v9803_v16 = vmul.f32 %v6777_v49, %v9787_v51  ;;  %v9806_v26 = vmul.f32 %v6776_v35, %v9787_v51 }
 0x3b3   : > { %v9733_v3 = vadd.f32 %v4236_v11, %v4211_v22  ;;  %v9735_v38 = vadd.f32 %v4237_v33, %v4212_v12  ;;  %v9737_v48 = vpop.permute.xlu1 %6710  ;;  %v6793_v54 = vpop.permute.xlu0 %6792  ;;  %v9815_v22 = vmul.f32 %v6725_v53, %v5222_v39  ;;  %v9824_v11 = vld [vmem:[%s10067_s1 + $0x86] ss:$0 sm:$0xff] }
 0x3b4   : > { %v6795_v63 = vunpack.i.h.bf16 %v6793_v54  ;;  %v6794_v29 = vunpack.i.l.bf16 %v6793_v54  ;;  %v4235_v54 = vmul.f32 %v6696_v19, %v9729_v58  ;;  %v6713_v35 = vunpack.i.h.bf16 %v9737_v48 }
 0x3b6   : > { %v9832_v23 = vmul.f32 %v6795_v63, %v9811_v7  ;;  %v9835_v37 = vmul.f32 %v6794_v29, %v9811_v7 }
 0x3b7   : > { %v6810_v4 = vpop.permute.xlu0 %6809 }
 0x3b8   : > { %v9739_v0 = vpop.permute.xlu1 %6716  ;;  %v6812_v46 = vunpack.i.h.bf16 %v6810_v4  ;;  %v6811_v59 = vunpack.i.l.bf16 %v6810_v4 }
 0x3b9   : > { %v6719_v53 = vunpack.i.h.bf16 %v9739_v0  ;;  %v6718_v57 = vunpack.i.l.bf16 %v9739_v0  ;;  %v5223_v0 = vld [vmem:[%s10067_s1 + $0x7f] ss:$0 sm:$0xff] }
 0x3ba   : > { %v9849_v60 = vmul.f32 %v6812_v46, %v9824_v11  ;;  %v9852_v41 = vmul.f32 %v6811_v59, %v9824_v11  ;;  %v4239_v46 = vadd.f32 %v4235_v54, %v9722_v1  ;;  %v4266_v1 = vmul.f32 %v6713_v35, %v9763_v6 }
 0x3bb   : > { %v6828_v34 = vpop.permute.xlu0 %6827 }
 0x3bc   : > { %v6830_v15 = vunpack.i.h.bf16 %v6828_v34  ;;  %v6829_v44 = vunpack.i.l.bf16 %v6828_v34  ;;  %v6712_v34 = vunpack.i.l.bf16 %v9737_v48  ;;  %v4268_v12 = vadd.f32 %v9779_v21, %v4239_v46 }
 0x3bd   : > { %v9741_v9 = vpop.permute.xlu1 %6728 }
 0x3be   : > { %v9855_v49 = vmul.f32 %v6830_v15, %v9829_v18  ;;  %v9858_v58 = vmul.f32 %v6829_v44, %v9829_v18  ;;  %v6731_v48 = vunpack.i.h.bf16 %v9741_v9  ;;  %v6730_v59 = vunpack.i.l.bf16 %v9741_v9 }
 0x3bf   : > { %v6845_v43 = vpop.permute.xlu0 %6844  ;;  %v4265_v54 = vmul.f32 %v6712_v34, %v9763_v6  ;;  %v4293_v9 = vmul.f32 %v6719_v53, %v5222_v39  ;;  %v9898_v34 = vld [vmem:[%s10067_s1 + $0x8a] ss:$0 sm:$0xff] }
 0x3c0   : > { %v6847_v36 = vunpack.i.h.bf16 %v6845_v43  ;;  %v6846_v62 = vunpack.i.l.bf16 %v6845_v43  ;;  %v4238_v43 = vadd.f32 %v4234_v10, %v9720_v25  ;;  %v4292_v10 = vmul.f32 %v6718_v57, %v5222_v39 }
 0x3c1   : > { %v9743_v52 = vpop.permute.xlu1 %6733  ;;  %v4322_v33 = vmul.f32 %v6731_v48, %v5223_v0  ;;  %v4269_v53 = vadd.f32 %v4265_v54, %v9733_v3  ;;  %v4297_v57 = vadd.f32 %v4293_v9, %v4268_v12  ;;  %v5230_v3 = vld [vmem:[%s10067_s1 + $0x82] ss:$0 sm:$0xff] }
 0x3c2   : > { %v9867_v19 = vmul.f32 %v6847_v36, %v9846_v45  ;;  %v9870_v20 = vmul.f32 %v6846_v62, %v9846_v45  ;;  %v4267_v36 = vadd.f32 %v9782_v17, %v4238_v43  ;;  %v4321_v62 = vmul.f32 %v6730_v59, %v5223_v0 }
 0x3c3   : > { %v6863_v15 = vpop.permute.xlu0 %6862  ;;  %v4270_v17 = vadd.f32 %v4266_v1, %v9735_v38  ;;  %v6736_v46 = vunpack.i.h.bf16 %v9743_v52  ;;  %v4326_v29 = vadd.f32 %v4322_v33, %v4297_v57  ;;  %v4298_v33 = vadd.f32 %v9817_v30, %v4269_v53 }
 0x3c4   : > { %v4739_v24 = vrot.slane %v9870_v20, 1  ;;  %v6865_v4 = vunpack.i.h.bf16 %v6863_v15  ;;  %v6864_v44 = vunpack.i.l.bf16 %v6863_v15  ;;  %v4296_v21 = vadd.f32 %v4292_v10, %v4267_v36 }
 0x3c5   : > { %v4324_v9 = vmul.f32 %v6736_v46, %v5223_v0 }
 0x3c6   : > { %v9745_v13 = vpop.permute.xlu1 %6745  ;;  %v4325_v15 = vadd.f32 %v4321_v62, %v4296_v21  ;;  %v9914_v38 = vmul.f32 %v6865_v4, %v9898_v34  ;;  %v9917_v12 = vmul.f32 %v6864_v44, %v9898_v34  ;;  %v4299_v62 = vadd.f32 %v9815_v22, %v4270_v17 }
 0x3c7   : > { %v6748_v25 = vunpack.i.h.bf16 %v9745_v13  ;;  %v6747_v35 = vunpack.i.l.bf16 %v9745_v13  ;;  %v6735_v13 = vunpack.i.l.bf16 %v9743_v52  ;;  %v9908_v59 = vpop.permute.xlu0 %6879 }
 0x3c8   : > { %v6882_v54 = vunpack.i.h.bf16 %v9908_v59  ;;  %v6881_v4 = vunpack.i.l.bf16 %v9908_v59  ;;  %v4328_v46 = vadd.f32 %v4324_v9, %v4299_v62  ;;  %v4783_v9 = vrot.slane %v9914_v38, 1 }
 0x3c9   : > { %v4365_v52 = vmul.f32 %v6748_v25, %v9758_v27  ;;  %v4364_v36 = vmul.f32 %v6747_v35, %v9758_v27  ;;  %v4323_v10 = vmul.f32 %v6735_v13, %v5223_v0  ;;  %v4378_v27 = vadd.f32 %v4370_v31, %v4325_v15 }
 0x3cb   : > { %v9747_v5 = vpop.permute.xlu1 %6751  ;;  %v4373_v25 = vrot.slane %v4365_v52, 1  ;;  %v4372_v35 = vrot.slane %v4364_v36, 1  ;;  %v4327_v31 = vadd.f32 %v4323_v10, %v4298_v33  ;;  %v4782_v10 = vrot.slane %v9917_v12, 1 }
 0x3cc   : > { %v6754_v6 = vunpack.i.h.bf16 %v9747_v5  ;;  %v6753_v39 = vunpack.i.l.bf16 %v9747_v5 }
 0x3cd   : > { %v4380_v59 = vadd.f32 %v4372_v35, %v4327_v31  ;;  %v4381_v15 = vadd.f32 %v4373_v25, %v4328_v46  ;;  %v10765_v46 = vrot.slane %v9803_v16, 1 }
 0x3ce   : > { %v4403_v1 = vmul.f32 %v6753_v39, %v9774_v8 }
 0x3d0   : > { %v9749_v61 = vpop.permute.xlu1 %6763  ;;  %v4411_v39 = vrot.slane %v4403_v1, 1 }
 0x3d1   : > { %v6766_v48 = vunpack.i.h.bf16 %v9749_v61  ;;  %v6765_v5 = vunpack.i.l.bf16 %v9749_v61  ;;  %v4404_v61 = vmul.f32 %v6754_v6, %v9774_v8  ;;  %v4379_v8 = vadd.f32 %v4371_v47, %v4326_v29 }
 0x3d2   : > { %v4419_v52 = vadd.f32 %v4411_v39, %v4378_v27 }
 0x3d3   : > { %v4445_v44 = vmul.f32 %v6766_v48, %v5230_v3  ;;  %v4444_v21 = vmul.f32 %v6765_v5, %v5230_v3  ;;  %v4412_v6 = vrot.slane %v4404_v61, 1 }
 0x3d4   : > { %v9751_v28 = vpop.permute.xlu1 %6768 }
 0x3d5   : > { %v6771_v30 = vunpack.i.h.bf16 %v9751_v28  ;;  %v6770_v22 = vunpack.i.l.bf16 %v9751_v28  ;;  %v4453_v50 = vrot.slane %v4445_v44, 1  ;;  %v4452_v47 = vrot.slane %v4444_v21, 1 }
 0x3d7   : > { %v4447_v13 = vmul.f32 %v6771_v30, %v5230_v3  ;;  %v4446_v28 = vmul.f32 %v6770_v22, %v5230_v3  ;;  %v4460_v33 = vadd.f32 %v4452_v47, %v4419_v52  ;;  %v10762_v30 = vrot.slane %v9793_v56, 1  ;;  %v9975_v47 = vpop.permute.xlu0 %6897 }
 0x3d8   : > { %v10763_v22 = vrot.slane %v9790_v14, 1 }
 0x3d9   : > { %v9753_v40 = vpop.permute.xlu1 %6780  ;;  %v4455_v44 = vrot.slane %v4447_v13, 1  ;;  %v4454_v21 = vrot.slane %v4446_v28, 1 }
 0x3da   : > { %v6783_v0 = vunpack.i.h.bf16 %v9753_v40  ;;  %v6782_v53 = vunpack.i.l.bf16 %v9753_v40  ;;  %v4420_v40 = vadd.f32 %v4412_v6, %v4379_v8  ;;  %v4422_v25 = vadd.f32 %v10763_v22, %v4381_v15 }
 0x3db   : > { %v10766_v22 = vrot.slane %v9835_v37, 1 }
 0x3dc   : > { %v4488_v36 = vmul.f32 %v6783_v0, %v9787_v51  ;;  %v4487_v61 = vmul.f32 %v6782_v53, %v9787_v51  ;;  %v4461_v62 = vadd.f32 %v4453_v50, %v4420_v40  ;;  %v4463_v13 = vadd.f32 %v4455_v44, %v4422_v25 }
 0x3de   : > { %v9776_v2 = vpop.permute.xlu1 %6786  ;;  %v4496_v39 = vrot.slane %v4488_v36, 1  ;;  %v4495_v0 = vrot.slane %v4487_v61, 1  ;;  %v4502_v56 = vadd.f32 %v10765_v46, %v4461_v62 }
 0x3df   : > { %v6789_v17 = vunpack.i.h.bf16 %v9776_v2  ;;  %v6788_v42 = vunpack.i.l.bf16 %v9776_v2  ;;  %v5233_v2 = vld [vmem:[%s10067_s1 + $0x85] ss:$0 sm:$0xff] }
 0x3e0   : > { %v4504_v52 = vadd.f32 %v4496_v39, %v4463_v13 }
 0x3e1   : > { %v4527_v1 = vmul.f32 %v6789_v17, %v9811_v7  ;;  %v4526_v3 = vmul.f32 %v6788_v42, %v9811_v7  ;;  %v4421_v7 = vadd.f32 %v10762_v30, %v4380_v59  ;;  %v10764_v42 = vrot.slane %v9806_v26, 1 }
 0x3e3   : > { %v9813_v55 = vpop.permute.xlu1 %6798  ;;  %v4535_v53 = vrot.slane %v4527_v1, 1  ;;  %v4534_v17 = vrot.slane %v4526_v3, 1  ;;  %v4501_v31 = vadd.f32 %v10764_v42, %v4460_v33  ;;  %v6915_v33 = vpop.permute.xlu0 %6914 }
 0x3e4   : > { %v6801_v48 = vunpack.i.h.bf16 %v9813_v55  ;;  %v6800_v5 = vunpack.i.l.bf16 %v9813_v55  ;;  %v9953_v55 = vld [vmem:[%s10067_s1 + $0x8c] ss:$0 sm:$0xff] }
 0x3e5   : > { %v9964_v35 = vmul.f32 %v6882_v54, %v9953_v55  ;;  %v9967_v6 = vmul.f32 %v6881_v4, %v9953_v55  ;;  %v4462_v54 = vadd.f32 %v4454_v21, %v4421_v7  ;;  %v4542_v40 = vadd.f32 %v4534_v17, %v4501_v31 }
 0x3e6   : > { %v4568_v27 = vmul.f32 %v6801_v48, %v5233_v2  ;;  %v4567_v8 = vmul.f32 %v6800_v5, %v5233_v2  ;;  %v4543_v36 = vadd.f32 %v4535_v53, %v4502_v56  ;;  %v6917_v53 = vunpack.i.h.bf16 %v6915_v33 }
 0x3e7   : > { %v9841_v32 = vpop.permute.xlu1 %6803  ;;  %v4503_v15 = vadd.f32 %v4495_v0, %v4462_v54  ;;  %v4863_v44 = vrot.slane %v9964_v35, 1  ;;  %v4862_v21 = vrot.slane %v9967_v6, 1  ;;  %v10768_v56 = vrot.slane %v9852_v41, 1 }
 0x3e8   : > { %v4576_v4 = vrot.slane %v4568_v27, 1  ;;  %v4575_v28 = vrot.slane %v4567_v8, 1  ;;  %v6806_v48 = vunpack.i.h.bf16 %v9841_v32  ;;  %v6805_v5 = vunpack.i.l.bf16 %v9841_v32 }
 0x3e9   : > { %v4544_v25 = vadd.f32 %v10766_v22, %v4503_v15 }
 0x3ea   : > { %v4583_v62 = vadd.f32 %v4575_v28, %v4542_v40  ;;  %v4570_v27 = vmul.f32 %v6806_v48, %v5233_v2  ;;  %v4569_v8 = vmul.f32 %v6805_v5, %v5233_v2 }
 0x3ec   : > { %v9881_v63 = vpop.permute.xlu1 %6815  ;;  %v4624_v2 = vadd.f32 %v10768_v56, %v4583_v62  ;;  %v4578_v13 = vrot.slane %v4570_v27, 1 }
 0x3ed   : > { %v6818_v61 = vunpack.i.h.bf16 %v9881_v63  ;;  %v6817_v1 = vunpack.i.l.bf16 %v9881_v63  ;;  %v10767_v63 = vrot.slane %v9832_v23, 1  ;;  %v4577_v23 = vrot.slane %v4569_v8, 1 }
 0x3ef   : > { %v4545_v39 = vadd.f32 %v10767_v63, %v4504_v52  ;;  %v4611_v17 = vmul.f32 %v6818_v61, %v9824_v11  ;;  %v4610_v42 = vmul.f32 %v6817_v1, %v9824_v11  ;;  %v6900_v63 = vunpack.i.h.bf16 %v9975_v47 }
 0x3f1   : > { %v9902_v43 = vpop.permute.xlu1 %6821  ;;  %v4619_v15 = vrot.slane %v4611_v17, 1  ;;  %v4618_v52 = vrot.slane %v4610_v42, 1  ;;  %v10770_v42 = vrot.slane %v9867_v19, 1 }
 0x3f2   : > { %v6824_v50 = vunpack.i.h.bf16 %v9902_v43  ;;  %v6823_v14 = vunpack.i.l.bf16 %v9902_v43  ;;  %v5236_v43 = vld [vmem:[%s10067_s1 + $0x88] ss:$0 sm:$0xff] }
 0x3f4   : > { %v4650_v3 = vmul.f32 %v6824_v50, %v9829_v18  ;;  %v4649_v32 = vmul.f32 %v6823_v14, %v9829_v18  ;;  %v6916_v18 = vunpack.i.l.bf16 %v6915_v33  ;;  %v10769_v50 = vrot.slane %v9849_v60, 1  ;;  %v5239_v60 = vld [vmem:[%s10067_s1 + $0x8b] ss:$0 sm:$0xff] }
 0x3f6   : > { %v9927_v57 = vpop.permute.xlu1 %6833  ;;  %v4658_v31 = vrot.slane %v4650_v3, 1  ;;  %v4657_v46 = vrot.slane %v4649_v32, 1  ;;  %v4586_v3 = vadd.f32 %v4578_v13, %v4545_v39 }
 0x3f7   : > { %v6836_v26 = vunpack.i.h.bf16 %v9927_v57  ;;  %v6835_v59 = vunpack.i.l.bf16 %v9927_v57  ;;  %v4584_v57 = vadd.f32 %v4576_v4, %v4543_v36 }
 0x3f8   : > { %v4665_v41 = vadd.f32 %v4657_v46, %v4624_v2  ;;  %v4627_v22 = vadd.f32 %v4619_v15, %v4586_v3 }
 0x3f9   : > { %v4691_v30 = vmul.f32 %v6836_v26, %v5236_v43  ;;  %v4690_v7 = vmul.f32 %v6835_v59, %v5236_v43  ;;  %v4625_v14 = vadd.f32 %v10769_v50, %v4584_v57 }
 0x3fa   : > { %v9939_v29 = vpop.permute.xlu1 %6838 }
 0x3fb   : > { %v4699_v4 = vrot.slane %v4691_v30, 1  ;;  %v4698_v28 = vrot.slane %v4690_v7, 1  ;;  %v6841_v48 = vunpack.i.h.bf16 %v9939_v29  ;;  %v6840_v5 = vunpack.i.l.bf16 %v9939_v29  ;;  %v10012_v30 = vld [vmem:[%s10067_s1 + $0x8f] ss:$0 sm:$0xff] }
 0x3fc   : > { %v4666_v40 = vadd.f32 %v4658_v31, %v4625_v14  ;;  %v4585_v29 = vadd.f32 %v4577_v23, %v4544_v25  ;;  %v10023_v46 = vmul.f32 %v6917_v53, %v10012_v30  ;;  %v10026_v56 = vmul.f32 %v6916_v18, %v10012_v30 }
 0x3fd   : > { %v4706_v32 = vadd.f32 %v4698_v28, %v4665_v41  ;;  %v4693_v62 = vmul.f32 %v6841_v48, %v5236_v43  ;;  %v4692_v57 = vmul.f32 %v6840_v5, %v5236_v43  ;;  %v5241_v5 = vld [vmem:[%s10067_s1 + $0x8d] ss:$0 sm:$0xff] }
 0x3fe   : > { %v4707_v33 = vadd.f32 %v4699_v4, %v4666_v40  ;;  %v4626_v7 = vadd.f32 %v4618_v52, %v4585_v29 }
 0x3ff   : > { %v9957_v51 = vpop.permute.xlu1 %6850  ;;  %v4747_v17 = vadd.f32 %v4739_v24, %v4706_v32  ;;  %v4701_v2 = vrot.slane %v4693_v62, 1 }
 0x400   : > { %v6852_v36 = vunpack.i.l.bf16 %v9957_v51  ;;  %v4748_v31 = vadd.f32 %v10770_v42, %v4707_v33 }
 0x402   : > { %v4733_v39 = vmul.f32 %v6852_v36, %v9846_v45 }
 0x404   : > { %v6857_v16 = vpop.permute.xlu1 %6856  ;;  %v4741_v23 = vrot.slane %v4733_v39, 1 }
 0x405   : > { %v6859_v37 = vunpack.i.h.bf16 %v6857_v16  ;;  %v6858_v54 = vunpack.i.l.bf16 %v6857_v16  ;;  %v6853_v16 = vunpack.i.h.bf16 %v9957_v51 }
 0x407   : > { %v4773_v61 = vmul.f32 %v6859_v37, %v9898_v34  ;;  %v4772_v1 = vmul.f32 %v6858_v54, %v9898_v34  ;;  %v6899_v34 = vunpack.i.l.bf16 %v9975_v47  ;;  %v4734_v25 = vmul.f32 %v6853_v16, %v9846_v45 }
 0x408   : > { %v4700_v47 = vrot.slane %v4692_v57, 1  ;;  %v10771_v45 = vrot.slane %v9858_v58, 1  ;;  %v10772_v54 = vrot.slane %v9855_v49, 1  ;;  %v5242_v57 = vld [vmem:[%s10067_s1 + $0x8e] ss:$0 sm:$0xff] }
 0x409   : > { %v6869_v0 = vpop.permute.xlu1 %6868  ;;  %v4780_v43 = vrot.slane %v4772_v1, 1  ;;  %v4742_v19 = vrot.slane %v4734_v25, 1  ;;  %v4898_v1 = vmul.f32 %v6900_v63, %v5241_v5  ;;  %v4897_v29 = vmul.f32 %v6899_v34, %v5241_v5 }
 0x40a   : > { %v6871_v26 = vunpack.i.h.bf16 %v6869_v0  ;;  %v6870_v11 = vunpack.i.l.bf16 %v6869_v0  ;;  %v4781_v0 = vrot.slane %v4773_v61, 1  ;;  %v4667_v37 = vadd.f32 %v10771_v45, %v4626_v7 }
 0x40b   : > { %v4668_v20 = vadd.f32 %v10772_v54, %v4627_v22  ;;  %v4788_v4 = vadd.f32 %v4780_v43, %v4747_v17  ;;  %v4985_v22 = vrot.slane %v10026_v56, 1  ;;  %v4906_v45 = vrot.slane %v4898_v1, 1  ;;  %v5244_v54 = vld [vmem:[%s10068_s2] ss:$0 sm:$0xff] }
 0x40c   : > { %v4814_v27 = vmul.f32 %v6871_v26, %v5239_v60  ;;  %v4813_v8 = vmul.f32 %v6870_v11, %v5239_v60  ;;  %v4789_v53 = vadd.f32 %v4781_v0, %v4748_v31  ;;  %v4708_v58 = vadd.f32 %v4700_v47, %v4667_v37 }
 0x40d   : > { %v6874_v59 = vpop.permute.xlu1 %6873  ;;  %v4709_v15 = vadd.f32 %v4701_v2, %v4668_v20  ;;  %v4905_v37 = vrot.slane %v4897_v29, 1 }
 0x40e   : > { %v4822_v50 = vrot.slane %v4814_v27, 1  ;;  %v4821_v14 = vrot.slane %v4813_v8, 1  ;;  %v6876_v24 = vunpack.i.h.bf16 %v6874_v59  ;;  %v6875_v13 = vunpack.i.l.bf16 %v6874_v59 }
 0x40f   : > { %v4749_v36 = vadd.f32 %v4741_v23, %v4708_v58  ;;  %v4750_v61 = vadd.f32 %v4742_v19, %v4709_v15 }
 0x410   : > { %v4829_v52 = vadd.f32 %v4821_v14, %v4788_v4  ;;  %v4830_v49 = vadd.f32 %v4822_v50, %v4789_v53  ;;  %v4816_v41 = vmul.f32 %v6876_v24, %v5239_v60  ;;  %v4815_v40 = vmul.f32 %v6875_v13, %v5239_v60 }
 0x411   : > { %v4986_v60 = vrot.slane %v10023_v46, 1  ;;  %v4790_v25 = vadd.f32 %v4782_v10, %v4749_v36  ;;  %v4791_v39 = vadd.f32 %v4783_v9, %v4750_v61 }
 0x412   : > { %v6886_v51 = vpop.permute.xlu1 %6885  ;;  %v4871_v63 = vadd.f32 %v4863_v44, %v4830_v49  ;;  %v4823_v34 = vrot.slane %v4815_v40, 1 }
 0x413   : > { %v6888_v48 = vunpack.i.h.bf16 %v6886_v51  ;;  %v6887_v18 = vunpack.i.l.bf16 %v6886_v51  ;;  %v4870_v51 = vadd.f32 %v4862_v21, %v4829_v52 }
 0x414   : > { %v4831_v44 = vadd.f32 %v4823_v34, %v4790_v25 }
 0x415   : > { %v4857_v3 = vmul.f32 %v6888_v48, %v9953_v55  ;;  %v4856_v32 = vmul.f32 %v6887_v18, %v9953_v55  ;;  %v4824_v55 = vrot.slane %v4816_v41, 1 }
 0x417   : > { %v6892_v28 = vpop.permute.xlu1 %6891  ;;  %v4865_v17 = vrot.slane %v4857_v3, 1  ;;  %v4864_v42 = vrot.slane %v4856_v32, 1  ;;  %v4832_v47 = vadd.f32 %v4824_v55, %v4791_v39 }
 0x418   : > { %v6894_v26 = vunpack.i.h.bf16 %v6892_v28  ;;  %v6893_v11 = vunpack.i.l.bf16 %v6892_v28 }
 0x419   : > { %v4872_v38 = vadd.f32 %v4864_v42, %v4831_v44  ;;  %v4873_v9 = vadd.f32 %v4865_v17, %v4832_v47 }
 0x41a   : > { %v4896_v59 = vmul.f32 %v6894_v26, %v5241_v5  ;;  %v4895_v16 = vmul.f32 %v6893_v11, %v5241_v5 }
 0x41b   : > { %v4913_v18 = vadd.f32 %v4905_v37, %v4872_v38  ;;  %v4914_v5 = vadd.f32 %v4906_v45, %v4873_v9 }
 0x41c   : > { %v4904_v33 = vrot.slane %v4896_v59, 1  ;;  %v4903_v62 = vrot.slane %v4895_v16, 1  ;;  %v6904_v27 = vpop.permute.xlu1 %6903 }
 0x41d   : > { %v6906_v8 = vunpack.i.h.bf16 %v6904_v27  ;;  %v6905_v7 = vunpack.i.l.bf16 %v6904_v27 }
 0x41e   : > { %v4911_v31 = vadd.f32 %v4903_v62, %v4870_v51  ;;  %v4912_v46 = vadd.f32 %v4904_v33, %v4871_v63 }
 0x41f   : > { %v4937_v0 = vmul.f32 %v6906_v8, %v5242_v57  ;;  %v4936_v43 = vmul.f32 %v6905_v7, %v5242_v57 }
 0x420   : > { %v6909_v56 = vpop.permute.xlu1 %6908 }
 0x421   : > { %v4945_v6 = vrot.slane %v4937_v0, 1  ;;  %v4944_v21 = vrot.slane %v4936_v43, 1  ;;  %v6911_v2 = vunpack.i.h.bf16 %v6909_v56  ;;  %v6910_v35 = vunpack.i.l.bf16 %v6909_v56 }
 0x423   : > { %v4952_v50 = vadd.f32 %v4944_v21, %v4911_v31  ;;  %v4953_v12 = vadd.f32 %v4945_v6, %v4912_v46  ;;  %v4939_v10 = vmul.f32 %v6911_v2, %v5242_v57  ;;  %v4938_v14 = vmul.f32 %v6910_v35, %v5242_v57 }
 0x425   : > { %v4993_v20 = vadd.f32 %v4985_v22, %v4952_v50  ;;  %v4994_v24 = vadd.f32 %v4986_v60, %v4953_v12  ;;  %v6921_v13 = vpop.permute.xlu1 %6920  ;;  %v4947_v19 = vrot.slane %v4939_v10, 1  ;;  %v4946_v23 = vrot.slane %v4938_v14, 1 }
 0x426   : > { %v6923_v4 = vunpack.i.h.bf16 %v6921_v13  ;;  %v6922_v53 = vunpack.i.l.bf16 %v6921_v13 }
 0x427   : > { %v5004_v28 = vadd.f32 %v5244_v54, %v4993_v20  ;;  %v5005_v48 = vadd.f32 %v5244_v54, %v4994_v24  ;;  %v4954_v52 = vadd.f32 %v4946_v23, %v4913_v18  ;;  %v4955_v49 = vadd.f32 %v4947_v19, %v4914_v5 }
 0x428   : > { %v4980_v26 = vmul.f32 %v6923_v4, %v10012_v30  ;;  %v4979_v11 = vmul.f32 %v6922_v53, %v10012_v30 }
 0x429   : > { %v5008_v58 = vmax.f32 %v5004_v28, 0.0  ;;  %v5009_v15 = vmax.f32 %v5005_v48, 0.0 }
 0x42a   : > { %v4988_v41 = vrot.slane %v4980_v26, 1  ;;  %v4987_v40 = vrot.slane %v4979_v11, 1 }
 0x42b   : > { %v5012_v59 = vpack.c.bf16 %v5008_v58, %v5008_v58  ;;  %v5013_v16 = vpack.c.bf16 %v5009_v15, %v5009_v15 }
 0x42c   : > { %v4995_v36 = vadd.f32 %v4987_v40, %v4954_v52  ;;  %v4996_v61 = vadd.f32 %v4988_v41, %v4955_v49 }
 0x42d   : > { %5017 = vst.msk [vmem:[%s170_s18] sm:$0x3] %vm5016_vm0, %v5012_v59  ;;  %5018 = vst.msk [vmem:[%s170_s18 + $0x2] sm:$0x3] %vm5016_vm0, %v5013_v16 }
 0x42e   : > { %v5006_v30 = vadd.f32 %v5244_v54, %v4995_v36  ;;  %v5007_v1 = vadd.f32 %v5244_v54, %v4996_v61 }
 0x430   : > { %v5010_v29 = vmax.f32 %v5006_v30, 0.0  ;;  %v5011_v3 = vmax.f32 %v5007_v1, 0.0 }
 0x432   : > { %v5014_v32 = vpack.c.bf16 %v5010_v29, %v5010_v29  ;;  %v5015_v33 = vpack.c.bf16 %v5011_v3, %v5011_v3 }
 0x434   : > { %5019 = vst.msk [vmem:[%s170_s18 + $0x4] sm:$0x3] %vm5016_vm0, %v5014_v32  ;;  %5020 = vst.msk [vmem:[%s170_s18 + $0x6] sm:$0x3] %vm5016_vm0, %v5015_v33 }
 0x435 PF: > { %s13_s12 = sadd.s32 1, %s6930_s12  }
 0x436   : > { %p10_p4 = scmp.ge.s32.totalorder %s13_s12, 6  }
 0x438   :  { %12 = sbr.rel (!%p10_p4) target bundleno = 1 (0x1), region = 64 }

</bundles_post_ra>
